<compile_context>
chip_gen: v7x
topology: tpu7x:2x2x1
jax: 0.10.0
libtpu: 0.0.40
codegen_flags: <defaults>
</compile_context>

<pallas_src>
import functools

import jax
import jax.numpy as jnp
from jax.experimental import pallas as pl
from jax.experimental.pallas import tpu as pltpu


LRELU_SLOPE = 0.2
BN_EPS = 1e-5
KSIZE, STRIDE, PAD = 4, 2, 1
TN = 128  # lane-dense output channel block


def _round_up(x, m):
    return (x + m - 1) // m * m


def _pick_tm(M):
    """Row-tile: multiple of 8, divides M, prefer >=4 grid steps, cap at 512."""
    if M <= 8:
        return M
    best = None
    for tm in (512, 256, 128, 64, 32, 16, 8):
        if tm <= M and M % tm == 0:
            if best is None:
                best = tm
            if M // tm >= 4:
                return tm
    return best if best is not None else M


# ------------------------------ Pallas kernel ------------------------------ #

def _conv_bn_lrelu_kernel(a_ref, w_ref, b_ref, g_ref, bt_ref,
                          o_ref, y_sc, sum_sc, sq_sc,
                          *, tm, inv_m, eps, alpha):
    """Fused conv-GEMM + BatchNorm(batch stats) + LeakyReLU for one layer.

    Grid = (N//TN, M//tm); axis 0 ("parallel") over 128-wide output-channel
    blocks, axis 1 ("arbitrary") streams row tiles.  Per (n, m): the f32 GEMM
    result lands in the layer-resident f32 VMEM scratch while per-channel
    sum / sum-sq accumulate; at the last row tile the BN affine + LeakyReLU is
    applied and the (bf16 or f32) output block is written once.
    """
    m = pl.program_id(1)

    @pl.when(m == 0)
    def _init():
        sum_sc[...] = jnp.zeros_like(sum_sc)
        sq_sc[...] = jnp.zeros_like(sq_sc)

    y = jnp.dot(a_ref[...], w_ref[...], preferred_element_type=jnp.float32)
    y = y + b_ref[...]

    row0 = pl.multiple_of(m * tm, tm)
    y_sc[pl.ds(row0, tm), :] = y

    sum_sc[...] += jnp.sum(y, axis=0, keepdims=True)
    sq_sc[...] += jnp.sum(y * y, axis=0, keepdims=True)

    @pl.when(m == pl.num_programs(1) - 1)
    def _epilogue():
        mean = sum_sc[...] * inv_m
        # clamp: f32 cancellation (esp. with bf16 matmul inputs) can go < 0
        var = jnp.maximum(sq_sc[...] * inv_m - mean * mean, 0.0)
        scale = g_ref[...] * jax.lax.rsqrt(var + eps)
        shift = bt_ref[...] - mean * scale
        z = y_sc[...] * scale + shift
        o_ref[...] = jnp.where(z >= 0.0, z, alpha * z).astype(o_ref.dtype)


def fused_conv_bn_lrelu(patches_bf16, w2d_bf16, bias, gamma, beta,
                        *, out_dtype=jnp.bfloat16,
                        eps=BN_EPS, alpha=LRELU_SLOPE):
    """patches: (M, K) bf16 ; w2d: (K, N) bf16 ; bias/gamma/beta: (N,) f32."""
    M, K = patches_bf16.shape
    Kw, N = w2d_bf16.shape
    assert Kw == K
    assert N % TN == 0, "Cout must be lane-padded to a multiple of 128"

    tm = _pick_tm(M)
    grid = (N // TN, M // tm)

    # VMEM budget: f32 y-scratch + output block + 2x A tile + 2x weight block.
    out_bytes = jnp.dtype(out_dtype).itemsize
    vmem_needed = (M * TN * 4 + M * TN * out_bytes
                   + 2 * tm * K * 2 + 2 * K * TN * 2 + 8 * TN * 4)
    assert vmem_needed <= 40 * 1024 * 1024, \
        "layer too large for VMEM-resident fused epilogue (v7x budget)"
    vmem_limit = int(min(48 * 1024 * 1024,
                         max(32 * 1024 * 1024, 2 * vmem_needed)))

    kern = functools.partial(_conv_bn_lrelu_kernel,
                             tm=tm, inv_m=float(1.0 / M), eps=eps, alpha=alpha)

    return pl.pallas_call(
        kern,
        out_shape=jax.ShapeDtypeStruct((M, N), out_dtype),
        grid=grid,
        in_specs=[
            pl.BlockSpec((tm, K), lambda n, m: (m, 0)),    # patch tile (streamed)
            pl.BlockSpec((K, TN), lambda n, m: (0, n)),    # weight block (resident)
            pl.BlockSpec((1, TN), lambda n, m: (0, n)),    # bias
            pl.BlockSpec((1, TN), lambda n, m: (0, n)),    # gamma
            pl.BlockSpec((1, TN), lambda n, m: (0, n)),    # beta
        ],
        # constant over the m axis -> output block resident, one HBM write per n
        out_specs=pl.BlockSpec((M, TN), lambda n, m: (0, n)),
        scratch_shapes=[
            pltpu.VMEM((M, TN), jnp.float32),              # f32 pre-BN activations
            pltpu.VMEM((1, TN), jnp.float32),              # per-channel sum
            pltpu.VMEM((1, TN), jnp.float32),              # per-channel sum of squares
        ],
        compiler_params=pltpu.CompilerParams(
            dimension_semantics=("parallel", "arbitrary"),
            vmem_limit_bytes=vmem_limit),
    )(patches_bf16, w2d_bf16,
      bias.reshape(1, N), gamma.reshape(1, N), beta.reshape(1, N))


# ---------------------------------- glue ----------------------------------- #

def im2col(x_nhwc, k=KSIZE, s=STRIDE, p=PAD):
    """Extract conv patches, (kh, kw, C) fastest-varying per output pixel."""
    B, H, W, C = x_nhwc.shape
    xp = jnp.pad(x_nhwc, ((0, 0), (p, p), (p, p), (0, 0)))
    Ho = (H + 2 * p - k) // s + 1
    Wo = (W + 2 * p - k) // s + 1
    cols = []
    for di in range(k):
        for dj in range(k):
            cols.append(xp[:, di:di + s * Ho:s, dj:dj + s * Wo:s, :])
    patches = jnp.stack(cols, axis=3)                    # (B, Ho, Wo, k*k, C)
    return patches.reshape(B * Ho * Wo, k * k * C), (B, Ho, Wo)


def _prep_layer_params(w, b, gamma, beta):
    """Permute/pad the (tiny) weight instead of the big activation tensor.

    w: (Cout, Cin, 4, 4) -> (kh*kw*Cin, Cout_padded) bf16, matching the patch
    layout. Cout is lane-padded to a multiple of 128; padded output channels
    are sliced off between layers so they never inflate the next layer's K."""
    cout, cin, kh, kw = w.shape
    npad = _round_up(cout, 128)
    # (Cout, Cin, kh, kw) -> (kh, kw, Cin, Cout) -> (K, Cout), matching patches
    w2d = jnp.transpose(w, (2, 3, 1, 0)).reshape(kh * kw * cin, cout)
    if npad > cout:
        w2d = jnp.pad(w2d, ((0, 0), (0, npad - cout)))
        b = jnp.pad(b, (0, npad - cout))
        gamma = jnp.pad(gamma, (0, npad - cout))
        beta = jnp.pad(beta, (0, npad - cout))
    return (w2d.astype(jnp.bfloat16),
            b.astype(jnp.float32),
            gamma.astype(jnp.float32),
            beta.astype(jnp.float32),
            npad)


def e1_forward(x_nchw, params_list, sep, size):
    x = jnp.transpose(x_nchw, (0, 2, 3, 1)).astype(jnp.bfloat16)   # NCHW -> NHWC
    n_layers = len(params_list)
    for li, (w, b, gamma, beta) in enumerate(params_list):
        cout_true = w.shape[0]
        w2d, bp, gp, btp, npad = _prep_layer_params(w, b, gamma, beta)
        patches, (B, Ho, Wo) = im2col(x)
        last = (li == n_layers - 1)
        out = fused_conv_bn_lrelu(
            patches, w2d, bp, gp, btp,
            out_dtype=jnp.float32 if last else jnp.bfloat16)
        # drop lane padding immediately so it never inflates the next layer's K
        x = out.reshape(B, Ho, Wo, npad)[..., :cout_true]
    x = jnp.transpose(x, (0, 3, 1, 2)).astype(jnp.float32)   # back to NCHW
    return x.reshape(-1, (512 - sep) * size * size)


def init_params(key, sep):
    chans = [3, 32, 64, 128, 256, 512 - sep, 512 - sep]
    params = []
    for layer in range(6):
        cin, cout = chans[layer], chans[layer + 1]
        key, k1, k2 = jax.random.split(key, 3)
        w = jax.random.normal(k1, (cout, cin, 4, 4), jnp.float32) * 0.05
        b = jax.random.normal(k2, (cout,), jnp.float32) * 0.01
        gamma = jnp.ones((cout,), jnp.float32)
        beta = jnp.zeros((cout,), jnp.float32)
        params.append((w, b, gamma, beta))
    return params


# ---------------------------------- main ----------------------------------- #

if __name__ == "__main__":
    sep, size = 384, 1          # 512 - sep = 128 output channels
    batch = 2
    spatial = 64 * size         # 6 stride-2 convs: spatial -> size

    key = jax.random.PRNGKey(0)
    key, kx = jax.random.split(key)
    x = jax.random.normal(kx, (batch, 3, spatial, spatial), jnp.float32)
    params = init_params(key, sep)

    fwd = jax.jit(functools.partial(e1_forward, sep=sep, size=size))
    out = fwd(x, params)
    jax.block_until_ready(out)

    assert out.shape == (batch, (512 - sep) * size * size), out.shape
    assert out.dtype == jnp.float32
    assert bool(jnp.all(jnp.isfinite(out)))
    print("KERNEL_OK")
</pallas_src>

<mosaic_0001>
module attributes {stable_mosaic.version = 11 : i64} {
  func.func @_conv_bn_lrelu_kernel(%arg0: i32, %arg1: i32, %arg2: memref<512x48xbf16, #tpu.memory_space<vmem>>, %arg3: memref<48x128xbf16, #tpu.memory_space<vmem>>, %arg4: memref<1x128xf32, #tpu.memory_space<vmem>>, %arg5: memref<1x128xf32, #tpu.memory_space<vmem>>, %arg6: memref<1x128xf32, #tpu.memory_space<vmem>>, %arg7: memref<2048x128xbf16, #tpu.memory_space<vmem>>, %arg8: memref<2048x128xf32, #tpu.memory_space<vmem>>, %arg9: memref<1x128xf32, #tpu.memory_space<vmem>>, %arg10: memref<1x128xf32, #tpu.memory_space<vmem>>) attributes {dimension_semantics = [#tpu.dimension_semantics<parallel>, #tpu.dimension_semantics<arbitrary>], iteration_bounds = array<i64: 1, 4>, scalar_prefetch = 0 : i64, scratch_operands = 3 : i64, tpu.core_type = #tpu.core_type<tc>, window_params = [{transform_indices = @transform_0, window_bounds = array<i64: 512, 48>}, {transform_indices = @transform_1, window_bounds = array<i64: 48, 128>}, {transform_indices = @transform_2, window_bounds = array<i64: 1, 128>}, {transform_indices = @transform_3, window_bounds = array<i64: 1, 128>}, {transform_indices = @transform_4, window_bounds = array<i64: 1, 128>}, {transform_indices = @transform_5, window_bounds = array<i64: 2048, 128>}]} {
    %c0_i32 = arith.constant 0 : i32
    %0 = arith.cmpi eq, %arg1, %c0_i32 : i32
    %1 = arith.extui %0 : i1 to i32
    %c0_i32_0 = arith.constant 0 : i32
    %2 = arith.cmpi ne, %1, %c0_i32_0 : i32
    scf.if %2 {
      %cst_18 = arith.constant 0.000000e+00 : f32
      %27 = vector.broadcast %cst_18 : f32 to vector<1x128xf32>
      %c0_19 = arith.constant 0 : index
      %c0_20 = arith.constant 0 : index
      %28 = vector.load %arg9[%c0_19, %c0_20] : memref<1x128xf32, #tpu.memory_space<vmem>>, vector<1x128xf32>
      tpu.vector_store %arg9[%c0_19, %c0_20], %27 {strides = array<i32>} : memref<1x128xf32, #tpu.memory_space<vmem>>, vector<1x128xf32>,
      %cst_21 = arith.constant 0.000000e+00 : f32
      %29 = vector.broadcast %cst_21 : f32 to vector<1x128xf32>
      %c0_22 = arith.constant 0 : index
      %c0_23 = arith.constant 0 : index
      %30 = vector.load %arg10[%c0_22, %c0_23] : memref<1x128xf32, #tpu.memory_space<vmem>>, vector<1x128xf32>
      tpu.vector_store %arg10[%c0_22, %c0_23], %29 {strides = array<i32>} : memref<1x128xf32, #tpu.memory_space<vmem>>, vector<1x128xf32>,
    } else {
    }
    %c0 = arith.constant 0 : index
    %c0_1 = arith.constant 0 : index
    %3 = vector.load %arg2[%c0, %c0_1] : memref<512x48xbf16, #tpu.memory_space<vmem>>, vector<512x48xbf16>
    %c0_2 = arith.constant 0 : index
    %c0_3 = arith.constant 0 : index
    %4 = vector.load %arg3[%c0_2, %c0_3] : memref<48x128xbf16, #tpu.memory_space<vmem>>, vector<48x128xbf16>
    %cst = arith.constant dense<0.000000e+00> : vector<512x128xf32>
    %5 = tpu.matmul %3, %4, %cst {dimension_numbers = #tpu.dot_dimension_numbers<[1], [0], [0], [1], [0, 0, 1, 1], [], []>} : vector<512x48xbf16>, vector<48x128xbf16>, vector<512x128xf32> -> vector<512x128xf32>
    %c0_4 = arith.constant 0 : index
    %c0_5 = arith.constant 0 : index
    %6 = vector.load %arg4[%c0_4, %c0_5] : memref<1x128xf32, #tpu.memory_space<vmem>>, vector<1x128xf32>
    %7 = vector.broadcast %6 : vector<1x128xf32> to vector<512x128xf32>
    %8 = arith.addf %5, %7 : vector<512x128xf32>
    %c512_i32 = arith.constant 512 : i32
    %9 = arith.muli %arg1, %c512_i32 : i32
    %10 = tpu.assume_multiple %9, 512 : i32
    %11 = arith.index_cast %10 : i32 to index
    %c0_6 = arith.constant 0 : index
    %12 = vector.load %arg8[%11, %c0_6] : memref<2048x128xf32, #tpu.memory_space<vmem>>, vector<512x128xf32>
    tpu.vector_store %arg8[%11, %c0_6], %8 {strides = array<i32>} : memref<2048x128xf32, #tpu.memory_space<vmem>>, vector<512x128xf32>,
    %c0_7 = arith.constant 0 : index
    %c0_8 = arith.constant 0 : index
    %13 = vector.load %arg9[%c0_7, %c0_8] : memref<1x128xf32, #tpu.memory_space<vmem>>, vector<1x128xf32>
    %cst_9 = arith.constant dense<0.000000e+00> : vector<128xf32>
    %14 = vector.multi_reduction <add>, %8, %cst_9 [0] : vector<512x128xf32> to vector<128xf32>
    %15 = vector.shape_cast %14 : vector<128xf32> to vector<1x128xf32>
    %16 = arith.addf %13, %15 : vector<1x128xf32>
    %c0_10 = arith.constant 0 : index
    %c0_11 = arith.constant 0 : index
    %17 = vector.load %arg9[%c0_10, %c0_11] : memref<1x128xf32, #tpu.memory_space<vmem>>, vector<1x128xf32>
    tpu.vector_store %arg9[%c0_10, %c0_11], %16 {strides = array<i32>} : memref<1x128xf32, #tpu.memory_space<vmem>>, vector<1x128xf32>,
    %c0_12 = arith.constant 0 : index
    %c0_13 = arith.constant 0 : index
    %18 = vector.load %arg10[%c0_12, %c0_13] : memref<1x128xf32, #tpu.memory_space<vmem>>, vector<1x128xf32>
    %19 = arith.mulf %8, %8 : vector<512x128xf32>
    %cst_14 = arith.constant dense<0.000000e+00> : vector<128xf32>
    %20 = vector.multi_reduction <add>, %19, %cst_14 [0] : vector<512x128xf32> to vector<128xf32>
    %21 = vector.shape_cast %20 : vector<128xf32> to vector<1x128xf32>
    %22 = arith.addf %18, %21 : vector<1x128xf32>
    %c0_15 = arith.constant 0 : index
    %c0_16 = arith.constant 0 : index
    %23 = vector.load %arg10[%c0_15, %c0_16] : memref<1x128xf32, #tpu.memory_space<vmem>>, vector<1x128xf32>
    tpu.vector_store %arg10[%c0_15, %c0_16], %22 {strides = array<i32>} : memref<1x128xf32, #tpu.memory_space<vmem>>, vector<1x128xf32>,
    %c3_i32 = arith.constant 3 : i32
    %24 = arith.cmpi eq, %arg1, %c3_i32 : i32
    %25 = arith.extui %24 : i1 to i32
    %c0_i32_17 = arith.constant 0 : i32
    %26 = arith.cmpi ne, %25, %c0_i32_17 : i32
    scf.if %26 {
      %c0_18 = arith.constant 0 : index
      %c0_19 = arith.constant 0 : index
      %27 = vector.load %arg9[%c0_18, %c0_19] : memref<1x128xf32, #tpu.memory_space<vmem>>, vector<1x128xf32>
      %cst_20 = arith.constant 4.8828125E-4 : f32
      %28 = vector.broadcast %cst_20 : f32 to vector<1x128xf32>
      %29 = arith.mulf %27, %28 : vector<1x128xf32>
      %c0_21 = arith.constant 0 : index
      %c0_22 = arith.constant 0 : index
      %30 = vector.load %arg10[%c0_21, %c0_22] : memref<1x128xf32, #tpu.memory_space<vmem>>, vector<1x128xf32>
      %cst_23 = arith.constant 4.8828125E-4 : f32
      %31 = vector.broadcast %cst_23 : f32 to vector<1x128xf32>
      %32 = arith.mulf %30, %31 : vector<1x128xf32>
      %33 = arith.mulf %29, %29 : vector<1x128xf32>
      %34 = arith.subf %32, %33 : vector<1x128xf32>
      %cst_24 = arith.constant 0.000000e+00 : f32
      %35 = vector.broadcast %cst_24 : f32 to vector<1x128xf32>
      %36 = arith.maximumf %34, %35 : vector<1x128xf32>
      %c0_25 = arith.constant 0 : index
      %c0_26 = arith.constant 0 : index
      %37 = vector.load %arg5[%c0_25, %c0_26] : memref<1x128xf32, #tpu.memory_space<vmem>>, vector<1x128xf32>
      %cst_27 = arith.constant 9.99999974E-6 : f32
      %38 = vector.broadcast %cst_27 : f32 to vector<1x128xf32>
      %39 = arith.addf %36, %38 : vector<1x128xf32>
      %40 = math.rsqrt %39 : vector<1x128xf32>
      %41 = arith.mulf %37, %40 : vector<1x128xf32>
      %c0_28 = arith.constant 0 : index
      %c0_29 = arith.constant 0 : index
      %42 = vector.load %arg6[%c0_28, %c0_29] : memref<1x128xf32, #tpu.memory_space<vmem>>, vector<1x128xf32>
      %43 = arith.mulf %29, %41 : vector<1x128xf32>
      %44 = arith.subf %42, %43 : vector<1x128xf32>
      %c0_30 = arith.constant 0 : index
      %c0_31 = arith.constant 0 : index
      %45 = vector.load %arg8[%c0_30, %c0_31] : memref<2048x128xf32, #tpu.memory_space<vmem>>, vector<2048x128xf32>
      %46 = vector.broadcast %41 : vector<1x128xf32> to vector<2048x128xf32>
      %47 = arith.mulf %45, %46 : vector<2048x128xf32>
      %48 = vector.broadcast %44 : vector<1x128xf32> to vector<2048x128xf32>
      %49 = arith.addf %47, %48 : vector<2048x128xf32>
      %cst_32 = arith.constant 0.000000e+00 : f32
      %50 = vector.broadcast %cst_32 : f32 to vector<2048x128xf32>
      %51 = arith.cmpf oge, %49, %50 : vector<2048x128xf32>
      %cst_33 = arith.constant 2.000000e-01 : f32
      %52 = vector.broadcast %cst_33 : f32 to vector<2048x128xf32>
      %53 = arith.mulf %52, %49 : vector<2048x128xf32>
      %54 = arith.select %51, %49, %53 : vector<2048x128xi1>, vector<2048x128xf32>
      %55 = arith.truncf %54 : vector<2048x128xf32> to vector<2048x128xbf16>
      %c0_34 = arith.constant 0 : index
      %c0_35 = arith.constant 0 : index
      %56 = vector.load %arg7[%c0_34, %c0_35] : memref<2048x128xbf16, #tpu.memory_space<vmem>>, vector<2048x128xbf16>
      tpu.vector_store %arg7[%c0_34, %c0_35], %55 {strides = array<i32>} : memref<2048x128xbf16, #tpu.memory_space<vmem>>, vector<2048x128xbf16>,
    } else {
    }
    return
  }
  func.func @transform_0(%arg0: i32, %arg1: i32) -> (i32, i32) {
    %c0_i32 = arith.constant 0 : i32
    %c0_i32_0 = arith.constant 0 : i32
    return %arg1, %c0_i32 : i32, i32
  }
  func.func @transform_1(%arg0: i32, %arg1: i32) -> (i32, i32) {
    %c0_i32 = arith.constant 0 : i32
    %c0_i32_0 = arith.constant 0 : i32
    return %c0_i32, %arg0 : i32, i32
  }
  func.func @transform_2(%arg0: i32, %arg1: i32) -> (i32, i32) {
    %c0_i32 = arith.constant 0 : i32
    %c0_i32_0 = arith.constant 0 : i32
    return %c0_i32, %arg0 : i32, i32
  }
  func.func @transform_3(%arg0: i32, %arg1: i32) -> (i32, i32) {
    %c0_i32 = arith.constant 0 : i32
    %c0_i32_0 = arith.constant 0 : i32
    return %c0_i32, %arg0 : i32, i32
  }
  func.func @transform_4(%arg0: i32, %arg1: i32) -> (i32, i32) {
    %c0_i32 = arith.constant 0 : i32
    %c0_i32_0 = arith.constant 0 : i32
    return %c0_i32, %arg0 : i32, i32
  }
  func.func @transform_5(%arg0: i32, %arg1: i32) -> (i32, i32) {
    %c0_i32 = arith.constant 0 : i32
    %c0_i32_0 = arith.constant 0 : i32
    return %c0_i32, %arg0 : i32, i32
  }
}

module attributes {stable_mosaic.version = 11 : i64} {
  func.func @_conv_bn_lrelu_kernel(%arg0: i32, %arg1: i32, %arg2: memref<128x512xbf16, #tpu.memory_space<vmem>>, %arg3: memref<512x128xbf16, #tpu.memory_space<vmem>>, %arg4: memref<1x128xf32, #tpu.memory_space<vmem>>, %arg5: memref<1x128xf32, #tpu.memory_space<vmem>>, %arg6: memref<1x128xf32, #tpu.memory_space<vmem>>, %arg7: memref<512x128xbf16, #tpu.memory_space<vmem>>, %arg8: memref<512x128xf32, #tpu.memory_space<vmem>>, %arg9: memref<1x128xf32, #tpu.memory_space<vmem>>, %arg10: memref<1x128xf32, #tpu.memory_space<vmem>>) attributes {dimension_semantics = [#tpu.dimension_semantics<parallel>, #tpu.dimension_semantics<arbitrary>], iteration_bounds = array<i64: 1, 4>, scalar_prefetch = 0 : i64, scratch_operands = 3 : i64, tpu.core_type = #tpu.core_type<tc>, window_params = [{transform_indices = @transform_0, window_bounds = array<i64: 128, 512>}, {transform_indices = @transform_1, window_bounds = array<i64: 512, 128>}, {transform_indices = @transform_2, window_bounds = array<i64: 1, 128>}, {transform_indices = @transform_3, window_bounds = array<i64: 1, 128>}, {transform_indices = @transform_4, window_bounds = array<i64: 1, 128>}, {transform_indices = @transform_5, window_bounds = array<i64: 512, 128>}]} {
    %c0_i32 = arith.constant 0 : i32
    %0 = arith.cmpi eq, %arg1, %c0_i32 : i32
    %1 = arith.extui %0 : i1 to i32
    %c0_i32_0 = arith.constant 0 : i32
    %2 = arith.cmpi ne, %1, %c0_i32_0 : i32
    scf.if %2 {
      %cst_18 = arith.constant 0.000000e+00 : f32
      %27 = vector.broadcast %cst_18 : f32 to vector<1x128xf32>
      %c0_19 = arith.constant 0 : index
      %c0_20 = arith.constant 0 : index
      %28 = vector.load %arg9[%c0_19, %c0_20] : memref<1x128xf32, #tpu.memory_space<vmem>>, vector<1x128xf32>
      tpu.vector_store %arg9[%c0_19, %c0_20], %27 {strides = array<i32>} : memref<1x128xf32, #tpu.memory_space<vmem>>, vector<1x128xf32>,
      %cst_21 = arith.constant 0.000000e+00 : f32
      %29 = vector.broadcast %cst_21 : f32 to vector<1x128xf32>
      %c0_22 = arith.constant 0 : index
      %c0_23 = arith.constant 0 : index
      %30 = vector.load %arg10[%c0_22, %c0_23] : memref<1x128xf32, #tpu.memory_space<vmem>>, vector<1x128xf32>
      tpu.vector_store %arg10[%c0_22, %c0_23], %29 {strides = array<i32>} : memref<1x128xf32, #tpu.memory_space<vmem>>, vector<1x128xf32>,
    } else {
    }
    %c0 = arith.constant 0 : index
    %c0_1 = arith.constant 0 : index
    %3 = vector.load %arg2[%c0, %c0_1] : memref<128x512xbf16, #tpu.memory_space<vmem>>, vector<128x512xbf16>
    %c0_2 = arith.constant 0 : index
    %c0_3 = arith.constant 0 : index
    %4 = vector.load %arg3[%c0_2, %c0_3] : memref<512x128xbf16, #tpu.memory_space<vmem>>, vector<512x128xbf16>
    %cst = arith.constant dense<0.000000e+00> : vector<128x128xf32>
    %5 = tpu.matmul %3, %4, %cst {dimension_numbers = #tpu.dot_dimension_numbers<[1], [0], [0], [1], [0, 0, 1, 1], [], []>} : vector<128x512xbf16>, vector<512x128xbf16>, vector<128x128xf32> -> vector<128x128xf32>
    %c0_4 = arith.constant 0 : index
    %c0_5 = arith.constant 0 : index
    %6 = vector.load %arg4[%c0_4, %c0_5] : memref<1x128xf32, #tpu.memory_space<vmem>>, vector<1x128xf32>
    %7 = vector.broadcast %6 : vector<1x128xf32> to vector<128x128xf32>
    %8 = arith.addf %5, %7 : vector<128x128xf32>
    %c128_i32 = arith.constant 128 : i32
    %9 = arith.muli %arg1, %c128_i32 : i32
    %10 = tpu.assume_multiple %9, 128 : i32
    %11 = arith.index_cast %10 : i32 to index
    %c0_6 = arith.constant 0 : index
    %12 = vector.load %arg8[%11, %c0_6] : memref<512x128xf32, #tpu.memory_space<vmem>>, vector<128x128xf32>
    tpu.vector_store %arg8[%11, %c0_6], %8 {strides = array<i32>} : memref<512x128xf32, #tpu.memory_space<vmem>>, vector<128x128xf32>,
    %c0_7 = arith.constant 0 : index
    %c0_8 = arith.constant 0 : index
    %13 = vector.load %arg9[%c0_7, %c0_8] : memref<1x128xf32, #tpu.memory_space<vmem>>, vector<1x128xf32>
    %cst_9 = arith.constant dense<0.000000e+00> : vector<128xf32>
    %14 = vector.multi_reduction <add>, %8, %cst_9 [0] : vector<128x128xf32> to vector<128xf32>
    %15 = vector.shape_cast %14 : vector<128xf32> to vector<1x128xf32>
    %16 = arith.addf %13, %15 : vector<1x128xf32>
    %c0_10 = arith.constant 0 : index
    %c0_11 = arith.constant 0 : index
    %17 = vector.load %arg9[%c0_10, %c0_11] : memref<1x128xf32, #tpu.memory_space<vmem>>, vector<1x128xf32>
    tpu.vector_store %arg9[%c0_10, %c0_11], %16 {strides = array<i32>} : memref<1x128xf32, #tpu.memory_space<vmem>>, vector<1x128xf32>,
    %c0_12 = arith.constant 0 : index
    %c0_13 = arith.constant 0 : index
    %18 = vector.load %arg10[%c0_12, %c0_13] : memref<1x128xf32, #tpu.memory_space<vmem>>, vector<1x128xf32>
    %19 = arith.mulf %8, %8 : vector<128x128xf32>
    %cst_14 = arith.constant dense<0.000000e+00> : vector<128xf32>
    %20 = vector.multi_reduction <add>, %19, %cst_14 [0] : vector<128x128xf32> to vector<128xf32>
    %21 = vector.shape_cast %20 : vector<128xf32> to vector<1x128xf32>
    %22 = arith.addf %18, %21 : vector<1x128xf32>
    %c0_15 = arith.constant 0 : index
    %c0_16 = arith.constant 0 : index
    %23 = vector.load %arg10[%c0_15, %c0_16] : memref<1x128xf32, #tpu.memory_space<vmem>>, vector<1x128xf32>
    tpu.vector_store %arg10[%c0_15, %c0_16], %22 {strides = array<i32>} : memref<1x128xf32, #tpu.memory_space<vmem>>, vector<1x128xf32>,
    %c3_i32 = arith.constant 3 : i32
    %24 = arith.cmpi eq, %arg1, %c3_i32 : i32
    %25 = arith.extui %24 : i1 to i32
    %c0_i32_17 = arith.constant 0 : i32
    %26 = arith.cmpi ne, %25, %c0_i32_17 : i32
    scf.if %26 {
      %c0_18 = arith.constant 0 : index
      %c0_19 = arith.constant 0 : index
      %27 = vector.load %arg9[%c0_18, %c0_19] : memref<1x128xf32, #tpu.memory_space<vmem>>, vector<1x128xf32>
      %cst_20 = arith.constant 0.001953125 : f32
      %28 = vector.broadcast %cst_20 : f32 to vector<1x128xf32>
      %29 = arith.mulf %27, %28 : vector<1x128xf32>
      %c0_21 = arith.constant 0 : index
      %c0_22 = arith.constant 0 : index
      %30 = vector.load %arg10[%c0_21, %c0_22] : memref<1x128xf32, #tpu.memory_space<vmem>>, vector<1x128xf32>
      %cst_23 = arith.constant 0.001953125 : f32
      %31 = vector.broadcast %cst_23 : f32 to vector<1x128xf32>
      %32 = arith.mulf %30, %31 : vector<1x128xf32>
      %33 = arith.mulf %29, %29 : vector<1x128xf32>
      %34 = arith.subf %32, %33 : vector<1x128xf32>
      %cst_24 = arith.constant 0.000000e+00 : f32
      %35 = vector.broadcast %cst_24 : f32 to vector<1x128xf32>
      %36 = arith.maximumf %34, %35 : vector<1x128xf32>
      %c0_25 = arith.constant 0 : index
      %c0_26 = arith.constant 0 : index
      %37 = vector.load %arg5[%c0_25, %c0_26] : memref<1x128xf32, #tpu.memory_space<vmem>>, vector<1x128xf32>
      %cst_27 = arith.constant 9.99999974E-6 : f32
      %38 = vector.broadcast %cst_27 : f32 to vector<1x128xf32>
      %39 = arith.addf %36, %38 : vector<1x128xf32>
      %40 = math.rsqrt %39 : vector<1x128xf32>
      %41 = arith.mulf %37, %40 : vector<1x128xf32>
      %c0_28 = arith.constant 0 : index
      %c0_29 = arith.constant 0 : index
      %42 = vector.load %arg6[%c0_28, %c0_29] : memref<1x128xf32, #tpu.memory_space<vmem>>, vector<1x128xf32>
      %43 = arith.mulf %29, %41 : vector<1x128xf32>
      %44 = arith.subf %42, %43 : vector<1x128xf32>
      %c0_30 = arith.constant 0 : index
      %c0_31 = arith.constant 0 : index
      %45 = vector.load %arg8[%c0_30, %c0_31] : memref<512x128xf32, #tpu.memory_space<vmem>>, vector<512x128xf32>
      %46 = vector.broadcast %41 : vector<1x128xf32> to vector<512x128xf32>
      %47 = arith.mulf %45, %46 : vector<512x128xf32>
      %48 = vector.broadcast %44 : vector<1x128xf32> to vector<512x128xf32>
      %49 = arith.addf %47, %48 : vector<512x128xf32>
      %cst_32 = arith.constant 0.000000e+00 : f32
      %50 = vector.broadcast %cst_32 : f32 to vector<512x128xf32>
      %51 = arith.cmpf oge, %49, %50 : vector<512x128xf32>
      %cst_33 = arith.constant 2.000000e-01 : f32
      %52 = vector.broadcast %cst_33 : f32 to vector<512x128xf32>
      %53 = arith.mulf %52, %49 : vector<512x128xf32>
      %54 = arith.select %51, %49, %53 : vector<512x128xi1>, vector<512x128xf32>
      %55 = arith.truncf %54 : vector<512x128xf32> to vector<512x128xbf16>
      %c0_34 = arith.constant 0 : index
      %c0_35 = arith.constant 0 : index
      %56 = vector.load %arg7[%c0_34, %c0_35] : memref<512x128xbf16, #tpu.memory_space<vmem>>, vector<512x128xbf16>
      tpu.vector_store %arg7[%c0_34, %c0_35], %55 {strides = array<i32>} : memref<512x128xbf16, #tpu.memory_space<vmem>>, vector<512x128xbf16>,
    } else {
    }
    return
  }
  func.func @transform_0(%arg0: i32, %arg1: i32) -> (i32, i32) {
    %c0_i32 = arith.constant 0 : i32
    %c0_i32_0 = arith.constant 0 : i32
    return %arg1, %c0_i32 : i32, i32
  }
  func.func @transform_1(%arg0: i32, %arg1: i32) -> (i32, i32) {
    %c0_i32 = arith.constant 0 : i32
    %c0_i32_0 = arith.constant 0 : i32
    return %c0_i32, %arg0 : i32, i32
  }
  func.func @transform_2(%arg0: i32, %arg1: i32) -> (i32, i32) {
    %c0_i32 = arith.constant 0 : i32
    %c0_i32_0 = arith.constant 0 : i32
    return %c0_i32, %arg0 : i32, i32
  }
  func.func @transform_3(%arg0: i32, %arg1: i32) -> (i32, i32) {
    %c0_i32 = arith.constant 0 : i32
    %c0_i32_0 = arith.constant 0 : i32
    return %c0_i32, %arg0 : i32, i32
  }
  func.func @transform_4(%arg0: i32, %arg1: i32) -> (i32, i32) {
    %c0_i32 = arith.constant 0 : i32
    %c0_i32_0 = arith.constant 0 : i32
    return %c0_i32, %arg0 : i32, i32
  }
  func.func @transform_5(%arg0: i32, %arg1: i32) -> (i32, i32) {
    %c0_i32 = arith.constant 0 : i32
    %c0_i32_0 = arith.constant 0 : i32
    return %c0_i32, %arg0 : i32, i32
  }
}

module attributes {stable_mosaic.version = 11 : i64} {
  func.func @_conv_bn_lrelu_kernel(%arg0: i32, %arg1: i32, %arg2: memref<32x1024xbf16, #tpu.memory_space<vmem>>, %arg3: memref<1024x128xbf16, #tpu.memory_space<vmem>>, %arg4: memref<1x128xf32, #tpu.memory_space<vmem>>, %arg5: memref<1x128xf32, #tpu.memory_space<vmem>>, %arg6: memref<1x128xf32, #tpu.memory_space<vmem>>, %arg7: memref<128x128xbf16, #tpu.memory_space<vmem>>, %arg8: memref<128x128xf32, #tpu.memory_space<vmem>>, %arg9: memref<1x128xf32, #tpu.memory_space<vmem>>, %arg10: memref<1x128xf32, #tpu.memory_space<vmem>>) attributes {dimension_semantics = [#tpu.dimension_semantics<parallel>, #tpu.dimension_semantics<arbitrary>], iteration_bounds = array<i64: 1, 4>, scalar_prefetch = 0 : i64, scratch_operands = 3 : i64, tpu.core_type = #tpu.core_type<tc>, window_params = [{transform_indices = @transform_0, window_bounds = array<i64: 32, 1024>}, {transform_indices = @transform_1, window_bounds = array<i64: 1024, 128>}, {transform_indices = @transform_2, window_bounds = array<i64: 1, 128>}, {transform_indices = @transform_3, window_bounds = array<i64: 1, 128>}, {transform_indices = @transform_4, window_bounds = array<i64: 1, 128>}, {transform_indices = @transform_5, window_bounds = array<i64: 128, 128>}]} {
    %c0_i32 = arith.constant 0 : i32
    %0 = arith.cmpi eq, %arg1, %c0_i32 : i32
    %1 = arith.extui %0 : i1 to i32
    %c0_i32_0 = arith.constant 0 : i32
    %2 = arith.cmpi ne, %1, %c0_i32_0 : i32
    scf.if %2 {
      %cst_18 = arith.constant 0.000000e+00 : f32
      %27 = vector.broadcast %cst_18 : f32 to vector<1x128xf32>
      %c0_19 = arith.constant 0 : index
      %c0_20 = arith.constant 0 : index
      %28 = vector.load %arg9[%c0_19, %c0_20] : memref<1x128xf32, #tpu.memory_space<vmem>>, vector<1x128xf32>
      tpu.vector_store %arg9[%c0_19, %c0_20], %27 {strides = array<i32>} : memref<1x128xf32, #tpu.memory_space<vmem>>, vector<1x128xf32>,
      %cst_21 = arith.constant 0.000000e+00 : f32
      %29 = vector.broadcast %cst_21 : f32 to vector<1x128xf32>
      %c0_22 = arith.constant 0 : index
      %c0_23 = arith.constant 0 : index
      %30 = vector.load %arg10[%c0_22, %c0_23] : memref<1x128xf32, #tpu.memory_space<vmem>>, vector<1x128xf32>
      tpu.vector_store %arg10[%c0_22, %c0_23], %29 {strides = array<i32>} : memref<1x128xf32, #tpu.memory_space<vmem>>, vector<1x128xf32>,
    } else {
    }
    %c0 = arith.constant 0 : index
    %c0_1 = arith.constant 0 : index
    %3 = vector.load %arg2[%c0, %c0_1] : memref<32x1024xbf16, #tpu.memory_space<vmem>>, vector<32x1024xbf16>
    %c0_2 = arith.constant 0 : index
    %c0_3 = arith.constant 0 : index
    %4 = vector.load %arg3[%c0_2, %c0_3] : memref<1024x128xbf16, #tpu.memory_space<vmem>>, vector<1024x128xbf16>
    %cst = arith.constant dense<0.000000e+00> : vector<32x128xf32>
    %5 = tpu.matmul %3, %4, %cst {dimension_numbers = #tpu.dot_dimension_numbers<[1], [0], [0], [1], [0, 0, 1, 1], [], []>} : vector<32x1024xbf16>, vector<1024x128xbf16>, vector<32x128xf32> -> vector<32x128xf32>
    %c0_4 = arith.constant 0 : index
    %c0_5 = arith.constant 0 : index
    %6 = vector.load %arg4[%c0_4, %c0_5] : memref<1x128xf32, #tpu.memory_space<vmem>>, vector<1x128xf32>
    %7 = vector.broadcast %6 : vector<1x128xf32> to vector<32x128xf32>
    %8 = arith.addf %5, %7 : vector<32x128xf32>
    %c32_i32 = arith.constant 32 : i32
    %9 = arith.muli %arg1, %c32_i32 : i32
    %10 = tpu.assume_multiple %9, 32 : i32
    %11 = arith.index_cast %10 : i32 to index
    %c0_6 = arith.constant 0 : index
    %12 = vector.load %arg8[%11, %c0_6] : memref<128x128xf32, #tpu.memory_space<vmem>>, vector<32x128xf32>
    tpu.vector_store %arg8[%11, %c0_6], %8 {strides = array<i32>} : memref<128x128xf32, #tpu.memory_space<vmem>>, vector<32x128xf32>,
    %c0_7 = arith.constant 0 : index
    %c0_8 = arith.constant 0 : index
    %13 = vector.load %arg9[%c0_7, %c0_8] : memref<1x128xf32, #tpu.memory_space<vmem>>, vector<1x128xf32>
    %cst_9 = arith.constant dense<0.000000e+00> : vector<128xf32>
    %14 = vector.multi_reduction <add>, %8, %cst_9 [0] : vector<32x128xf32> to vector<128xf32>
    %15 = vector.shape_cast %14 : vector<128xf32> to vector<1x128xf32>
    %16 = arith.addf %13, %15 : vector<1x128xf32>
    %c0_10 = arith.constant 0 : index
    %c0_11 = arith.constant 0 : index
    %17 = vector.load %arg9[%c0_10, %c0_11] : memref<1x128xf32, #tpu.memory_space<vmem>>, vector<1x128xf32>
    tpu.vector_store %arg9[%c0_10, %c0_11], %16 {strides = array<i32>} : memref<1x128xf32, #tpu.memory_space<vmem>>, vector<1x128xf32>,
    %c0_12 = arith.constant 0 : index
    %c0_13 = arith.constant 0 : index
    %18 = vector.load %arg10[%c0_12, %c0_13] : memref<1x128xf32, #tpu.memory_space<vmem>>, vector<1x128xf32>
    %19 = arith.mulf %8, %8 : vector<32x128xf32>
    %cst_14 = arith.constant dense<0.000000e+00> : vector<128xf32>
    %20 = vector.multi_reduction <add>, %19, %cst_14 [0] : vector<32x128xf32> to vector<128xf32>
    %21 = vector.shape_cast %20 : vector<128xf32> to vector<1x128xf32>
    %22 = arith.addf %18, %21 : vector<1x128xf32>
    %c0_15 = arith.constant 0 : index
    %c0_16 = arith.constant 0 : index
    %23 = vector.load %arg10[%c0_15, %c0_16] : memref<1x128xf32, #tpu.memory_space<vmem>>, vector<1x128xf32>
    tpu.vector_store %arg10[%c0_15, %c0_16], %22 {strides = array<i32>} : memref<1x128xf32, #tpu.memory_space<vmem>>, vector<1x128xf32>,
    %c3_i32 = arith.constant 3 : i32
    %24 = arith.cmpi eq, %arg1, %c3_i32 : i32
    %25 = arith.extui %24 : i1 to i32
    %c0_i32_17 = arith.constant 0 : i32
    %26 = arith.cmpi ne, %25, %c0_i32_17 : i32
    scf.if %26 {
      %c0_18 = arith.constant 0 : index
      %c0_19 = arith.constant 0 : index
      %27 = vector.load %arg9[%c0_18, %c0_19] : memref<1x128xf32, #tpu.memory_space<vmem>>, vector<1x128xf32>
      %cst_20 = arith.constant 7.812500e-03 : f32
      %28 = vector.broadcast %cst_20 : f32 to vector<1x128xf32>
      %29 = arith.mulf %27, %28 : vector<1x128xf32>
      %c0_21 = arith.constant 0 : index
      %c0_22 = arith.constant 0 : index
      %30 = vector.load %arg10[%c0_21, %c0_22] : memref<1x128xf32, #tpu.memory_space<vmem>>, vector<1x128xf32>
      %cst_23 = arith.constant 7.812500e-03 : f32
      %31 = vector.broadcast %cst_23 : f32 to vector<1x128xf32>
      %32 = arith.mulf %30, %31 : vector<1x128xf32>
      %33 = arith.mulf %29, %29 : vector<1x128xf32>
      %34 = arith.subf %32, %33 : vector<1x128xf32>
      %cst_24 = arith.constant 0.000000e+00 : f32
      %35 = vector.broadcast %cst_24 : f32 to vector<1x128xf32>
      %36 = arith.maximumf %34, %35 : vector<1x128xf32>
      %c0_25 = arith.constant 0 : index
      %c0_26 = arith.constant 0 : index
      %37 = vector.load %arg5[%c0_25, %c0_26] : memref<1x128xf32, #tpu.memory_space<vmem>>, vector<1x128xf32>
      %cst_27 = arith.constant 9.99999974E-6 : f32
      %38 = vector.broadcast %cst_27 : f32 to vector<1x128xf32>
      %39 = arith.addf %36, %38 : vector<1x128xf32>
      %40 = math.rsqrt %39 : vector<1x128xf32>
      %41 = arith.mulf %37, %40 : vector<1x128xf32>
      %c0_28 = arith.constant 0 : index
      %c0_29 = arith.constant 0 : index
      %42 = vector.load %arg6[%c0_28, %c0_29] : memref<1x128xf32, #tpu.memory_space<vmem>>, vector<1x128xf32>
      %43 = arith.mulf %29, %41 : vector<1x128xf32>
      %44 = arith.subf %42, %43 : vector<1x128xf32>
      %c0_30 = arith.constant 0 : index
      %c0_31 = arith.constant 0 : index
      %45 = vector.load %arg8[%c0_30, %c0_31] : memref<128x128xf32, #tpu.memory_space<vmem>>, vector<128x128xf32>
      %46 = vector.broadcast %41 : vector<1x128xf32> to vector<128x128xf32>
      %47 = arith.mulf %45, %46 : vector<128x128xf32>
      %48 = vector.broadcast %44 : vector<1x128xf32> to vector<128x128xf32>
      %49 = arith.addf %47, %48 : vector<128x128xf32>
      %cst_32 = arith.constant 0.000000e+00 : f32
      %50 = vector.broadcast %cst_32 : f32 to vector<128x128xf32>
      %51 = arith.cmpf oge, %49, %50 : vector<128x128xf32>
      %cst_33 = arith.constant 2.000000e-01 : f32
      %52 = vector.broadcast %cst_33 : f32 to vector<128x128xf32>
      %53 = arith.mulf %52, %49 : vector<128x128xf32>
      %54 = arith.select %51, %49, %53 : vector<128x128xi1>, vector<128x128xf32>
      %55 = arith.truncf %54 : vector<128x128xf32> to vector<128x128xbf16>
      %c0_34 = arith.constant 0 : index
      %c0_35 = arith.constant 0 : index
      %56 = vector.load %arg7[%c0_34, %c0_35] : memref<128x128xbf16, #tpu.memory_space<vmem>>, vector<128x128xbf16>
      tpu.vector_store %arg7[%c0_34, %c0_35], %55 {strides = array<i32>} : memref<128x128xbf16, #tpu.memory_space<vmem>>, vector<128x128xbf16>,
    } else {
    }
    return
  }
  func.func @transform_0(%arg0: i32, %arg1: i32) -> (i32, i32) {
    %c0_i32 = arith.constant 0 : i32
    %c0_i32_0 = arith.constant 0 : i32
    return %arg1, %c0_i32 : i32, i32
  }
  func.func @transform_1(%arg0: i32, %arg1: i32) -> (i32, i32) {
    %c0_i32 = arith.constant 0 : i32
    %c0_i32_0 = arith.constant 0 : i32
    return %c0_i32, %arg0 : i32, i32
  }
  func.func @transform_2(%arg0: i32, %arg1: i32) -> (i32, i32) {
    %c0_i32 = arith.constant 0 : i32
    %c0_i32_0 = arith.constant 0 : i32
    return %c0_i32, %arg0 : i32, i32
  }
  func.func @transform_3(%arg0: i32, %arg1: i32) -> (i32, i32) {
    %c0_i32 = arith.constant 0 : i32
    %c0_i32_0 = arith.constant 0 : i32
    return %c0_i32, %arg0 : i32, i32
  }
  func.func @transform_4(%arg0: i32, %arg1: i32) -> (i32, i32) {
    %c0_i32 = arith.constant 0 : i32
    %c0_i32_0 = arith.constant 0 : i32
    return %c0_i32, %arg0 : i32, i32
  }
  func.func @transform_5(%arg0: i32, %arg1: i32) -> (i32, i32) {
    %c0_i32 = arith.constant 0 : i32
    %c0_i32_0 = arith.constant 0 : i32
    return %c0_i32, %arg0 : i32, i32
  }
}

module attributes {stable_mosaic.version = 11 : i64} {
  func.func @_conv_bn_lrelu_kernel(%arg0: i32, %arg1: i32, %arg2: memref<8x2048xbf16, #tpu.memory_space<vmem>>, %arg3: memref<2048x128xbf16, #tpu.memory_space<vmem>>, %arg4: memref<1x128xf32, #tpu.memory_space<vmem>>, %arg5: memref<1x128xf32, #tpu.memory_space<vmem>>, %arg6: memref<1x128xf32, #tpu.memory_space<vmem>>, %arg7: memref<32x128xbf16, #tpu.memory_space<vmem>>, %arg8: memref<32x128xf32, #tpu.memory_space<vmem>>, %arg9: memref<1x128xf32, #tpu.memory_space<vmem>>, %arg10: memref<1x128xf32, #tpu.memory_space<vmem>>) attributes {dimension_semantics = [#tpu.dimension_semantics<parallel>, #tpu.dimension_semantics<arbitrary>], iteration_bounds = array<i64: 2, 4>, scalar_prefetch = 0 : i64, scratch_operands = 3 : i64, tpu.core_type = #tpu.core_type<tc>, window_params = [{transform_indices = @transform_0, window_bounds = array<i64: 8, 2048>}, {transform_indices = @transform_1, window_bounds = array<i64: 2048, 128>}, {transform_indices = @transform_2, window_bounds = array<i64: 1, 128>}, {transform_indices = @transform_3, window_bounds = array<i64: 1, 128>}, {transform_indices = @transform_4, window_bounds = array<i64: 1, 128>}, {transform_indices = @transform_5, window_bounds = array<i64: 32, 128>}]} {
    %c0_i32 = arith.constant 0 : i32
    %0 = arith.cmpi eq, %arg1, %c0_i32 : i32
    %1 = arith.extui %0 : i1 to i32
    %c0_i32_0 = arith.constant 0 : i32
    %2 = arith.cmpi ne, %1, %c0_i32_0 : i32
    scf.if %2 {
      %cst_18 = arith.constant 0.000000e+00 : f32
      %27 = vector.broadcast %cst_18 : f32 to vector<1x128xf32>
      %c0_19 = arith.constant 0 : index
      %c0_20 = arith.constant 0 : index
      %28 = vector.load %arg9[%c0_19, %c0_20] : memref<1x128xf32, #tpu.memory_space<vmem>>, vector<1x128xf32>
      tpu.vector_store %arg9[%c0_19, %c0_20], %27 {strides = array<i32>} : memref<1x128xf32, #tpu.memory_space<vmem>>, vector<1x128xf32>,
      %cst_21 = arith.constant 0.000000e+00 : f32
      %29 = vector.broadcast %cst_21 : f32 to vector<1x128xf32>
      %c0_22 = arith.constant 0 : index
      %c0_23 = arith.constant 0 : index
      %30 = vector.load %arg10[%c0_22, %c0_23] : memref<1x128xf32, #tpu.memory_space<vmem>>, vector<1x128xf32>
      tpu.vector_store %arg10[%c0_22, %c0_23], %29 {strides = array<i32>} : memref<1x128xf32, #tpu.memory_space<vmem>>, vector<1x128xf32>,
    } else {
    }
    %c0 = arith.constant 0 : index
    %c0_1 = arith.constant 0 : index
    %3 = vector.load %arg2[%c0, %c0_1] : memref<8x2048xbf16, #tpu.memory_space<vmem>>, vector<8x2048xbf16>
    %c0_2 = arith.constant 0 : index
    %c0_3 = arith.constant 0 : index
    %4 = vector.load %arg3[%c0_2, %c0_3] : memref<2048x128xbf16, #tpu.memory_space<vmem>>, vector<2048x128xbf16>
    %cst = arith.constant dense<0.000000e+00> : vector<8x128xf32>
    %5 = tpu.matmul %3, %4, %cst {dimension_numbers = #tpu.dot_dimension_numbers<[1], [0], [0], [1], [0, 0, 1, 1], [], []>} : vector<8x2048xbf16>, vector<2048x128xbf16>, vector<8x128xf32> -> vector<8x128xf32>
    %c0_4 = arith.constant 0 : index
    %c0_5 = arith.constant 0 : index
    %6 = vector.load %arg4[%c0_4, %c0_5] : memref<1x128xf32, #tpu.memory_space<vmem>>, vector<1x128xf32>
    %7 = vector.broadcast %6 : vector<1x128xf32> to vector<8x128xf32>
    %8 = arith.addf %5, %7 : vector<8x128xf32>
    %c8_i32 = arith.constant 8 : i32
    %9 = arith.muli %arg1, %c8_i32 : i32
    %10 = tpu.assume_multiple %9, 8 : i32
    %11 = arith.index_cast %10 : i32 to index
    %c0_6 = arith.constant 0 : index
    %12 = vector.load %arg8[%11, %c0_6] : memref<32x128xf32, #tpu.memory_space<vmem>>, vector<8x128xf32>
    tpu.vector_store %arg8[%11, %c0_6], %8 {strides = array<i32>} : memref<32x128xf32, #tpu.memory_space<vmem>>, vector<8x128xf32>,
    %c0_7 = arith.constant 0 : index
    %c0_8 = arith.constant 0 : index
    %13 = vector.load %arg9[%c0_7, %c0_8] : memref<1x128xf32, #tpu.memory_space<vmem>>, vector<1x128xf32>
    %cst_9 = arith.constant dense<0.000000e+00> : vector<128xf32>
    %14 = vector.multi_reduction <add>, %8, %cst_9 [0] : vector<8x128xf32> to vector<128xf32>
    %15 = vector.shape_cast %14 : vector<128xf32> to vector<1x128xf32>
    %16 = arith.addf %13, %15 : vector<1x128xf32>
    %c0_10 = arith.constant 0 : index
    %c0_11 = arith.constant 0 : index
    %17 = vector.load %arg9[%c0_10, %c0_11] : memref<1x128xf32, #tpu.memory_space<vmem>>, vector<1x128xf32>
    tpu.vector_store %arg9[%c0_10, %c0_11], %16 {strides = array<i32>} : memref<1x128xf32, #tpu.memory_space<vmem>>, vector<1x128xf32>,
    %c0_12 = arith.constant 0 : index
    %c0_13 = arith.constant 0 : index
    %18 = vector.load %arg10[%c0_12, %c0_13] : memref<1x128xf32, #tpu.memory_space<vmem>>, vector<1x128xf32>
    %19 = arith.mulf %8, %8 : vector<8x128xf32>
    %cst_14 = arith.constant dense<0.000000e+00> : vector<128xf32>
    %20 = vector.multi_reduction <add>, %19, %cst_14 [0] : vector<8x128xf32> to vector<128xf32>
    %21 = vector.shape_cast %20 : vector<128xf32> to vector<1x128xf32>
    %22 = arith.addf %18, %21 : vector<1x128xf32>
    %c0_15 = arith.constant 0 : index
    %c0_16 = arith.constant 0 : index
    %23 = vector.load %arg10[%c0_15, %c0_16] : memref<1x128xf32, #tpu.memory_space<vmem>>, vector<1x128xf32>
    tpu.vector_store %arg10[%c0_15, %c0_16], %22 {strides = array<i32>} : memref<1x128xf32, #tpu.memory_space<vmem>>, vector<1x128xf32>,
    %c3_i32 = arith.constant 3 : i32
    %24 = arith.cmpi eq, %arg1, %c3_i32 : i32
    %25 = arith.extui %24 : i1 to i32
    %c0_i32_17 = arith.constant 0 : i32
    %26 = arith.cmpi ne, %25, %c0_i32_17 : i32
    scf.if %26 {
      %c0_18 = arith.constant 0 : index
      %c0_19 = arith.constant 0 : index
      %27 = vector.load %arg9[%c0_18, %c0_19] : memref<1x128xf32, #tpu.memory_space<vmem>>, vector<1x128xf32>
      %cst_20 = arith.constant 3.125000e-02 : f32
      %28 = vector.broadcast %cst_20 : f32 to vector<1x128xf32>
      %29 = arith.mulf %27, %28 : vector<1x128xf32>
      %c0_21 = arith.constant 0 : index
      %c0_22 = arith.constant 0 : index
      %30 = vector.load %arg10[%c0_21, %c0_22] : memref<1x128xf32, #tpu.memory_space<vmem>>, vector<1x128xf32>
      %cst_23 = arith.constant 3.125000e-02 : f32
      %31 = vector.broadcast %cst_23 : f32 to vector<1x128xf32>
      %32 = arith.mulf %30, %31 : vector<1x128xf32>
      %33 = arith.mulf %29, %29 : vector<1x128xf32>
      %34 = arith.subf %32, %33 : vector<1x128xf32>
      %cst_24 = arith.constant 0.000000e+00 : f32
      %35 = vector.broadcast %cst_24 : f32 to vector<1x128xf32>
      %36 = arith.maximumf %34, %35 : vector<1x128xf32>
      %c0_25 = arith.constant 0 : index
      %c0_26 = arith.constant 0 : index
      %37 = vector.load %arg5[%c0_25, %c0_26] : memref<1x128xf32, #tpu.memory_space<vmem>>, vector<1x128xf32>
      %cst_27 = arith.constant 9.99999974E-6 : f32
      %38 = vector.broadcast %cst_27 : f32 to vector<1x128xf32>
      %39 = arith.addf %36, %38 : vector<1x128xf32>
      %40 = math.rsqrt %39 : vector<1x128xf32>
      %41 = arith.mulf %37, %40 : vector<1x128xf32>
      %c0_28 = arith.constant 0 : index
      %c0_29 = arith.constant 0 : index
      %42 = vector.load %arg6[%c0_28, %c0_29] : memref<1x128xf32, #tpu.memory_space<vmem>>, vector<1x128xf32>
      %43 = arith.mulf %29, %41 : vector<1x128xf32>
      %44 = arith.subf %42, %43 : vector<1x128xf32>
      %c0_30 = arith.constant 0 : index
      %c0_31 = arith.constant 0 : index
      %45 = vector.load %arg8[%c0_30, %c0_31] : memref<32x128xf32, #tpu.memory_space<vmem>>, vector<32x128xf32>
      %46 = vector.broadcast %41 : vector<1x128xf32> to vector<32x128xf32>
      %47 = arith.mulf %45, %46 : vector<32x128xf32>
      %48 = vector.broadcast %44 : vector<1x128xf32> to vector<32x128xf32>
      %49 = arith.addf %47, %48 : vector<32x128xf32>
      %cst_32 = arith.constant 0.000000e+00 : f32
      %50 = vector.broadcast %cst_32 : f32 to vector<32x128xf32>
      %51 = arith.cmpf oge, %49, %50 : vector<32x128xf32>
      %cst_33 = arith.constant 2.000000e-01 : f32
      %52 = vector.broadcast %cst_33 : f32 to vector<32x128xf32>
      %53 = arith.mulf %52, %49 : vector<32x128xf32>
      %54 = arith.select %51, %49, %53 : vector<32x128xi1>, vector<32x128xf32>
      %55 = arith.truncf %54 : vector<32x128xf32> to vector<32x128xbf16>
      %c0_34 = arith.constant 0 : index
      %c0_35 = arith.constant 0 : index
      %56 = vector.load %arg7[%c0_34, %c0_35] : memref<32x128xbf16, #tpu.memory_space<vmem>>, vector<32x128xbf16>
      tpu.vector_store %arg7[%c0_34, %c0_35], %55 {strides = array<i32>} : memref<32x128xbf16, #tpu.memory_space<vmem>>, vector<32x128xbf16>,
    } else {
    }
    return
  }
  func.func @transform_0(%arg0: i32, %arg1: i32) -> (i32, i32) {
    %c0_i32 = arith.constant 0 : i32
    %c0_i32_0 = arith.constant 0 : i32
    return %arg1, %c0_i32 : i32, i32
  }
  func.func @transform_1(%arg0: i32, %arg1: i32) -> (i32, i32) {
    %c0_i32 = arith.constant 0 : i32
    %c0_i32_0 = arith.constant 0 : i32
    return %c0_i32, %arg0 : i32, i32
  }
  func.func @transform_2(%arg0: i32, %arg1: i32) -> (i32, i32) {
    %c0_i32 = arith.constant 0 : i32
    %c0_i32_0 = arith.constant 0 : i32
    return %c0_i32, %arg0 : i32, i32
  }
  func.func @transform_3(%arg0: i32, %arg1: i32) -> (i32, i32) {
    %c0_i32 = arith.constant 0 : i32
    %c0_i32_0 = arith.constant 0 : i32
    return %c0_i32, %arg0 : i32, i32
  }
  func.func @transform_4(%arg0: i32, %arg1: i32) -> (i32, i32) {
    %c0_i32 = arith.constant 0 : i32
    %c0_i32_0 = arith.constant 0 : i32
    return %c0_i32, %arg0 : i32, i32
  }
  func.func @transform_5(%arg0: i32, %arg1: i32) -> (i32, i32) {
    %c0_i32 = arith.constant 0 : i32
    %c0_i32_0 = arith.constant 0 : i32
    return %c0_i32, %arg0 : i32, i32
  }
}

module attributes {stable_mosaic.version = 11 : i64} {
  func.func @_conv_bn_lrelu_kernel(%arg0: i32, %arg1: i32, %arg2: memref<8x4096xbf16, #tpu.memory_space<vmem>>, %arg3: memref<4096x128xbf16, #tpu.memory_space<vmem>>, %arg4: memref<1x128xf32, #tpu.memory_space<vmem>>, %arg5: memref<1x128xf32, #tpu.memory_space<vmem>>, %arg6: memref<1x128xf32, #tpu.memory_space<vmem>>, %arg7: memref<8x128xbf16, #tpu.memory_space<vmem>>, %arg8: memref<8x128xf32, #tpu.memory_space<vmem>>, %arg9: memref<1x128xf32, #tpu.memory_space<vmem>>, %arg10: memref<1x128xf32, #tpu.memory_space<vmem>>) attributes {dimension_semantics = [#tpu.dimension_semantics<parallel>, #tpu.dimension_semantics<arbitrary>], iteration_bounds = array<i64: 1, 1>, scalar_prefetch = 0 : i64, scratch_operands = 3 : i64, tpu.core_type = #tpu.core_type<tc>, window_params = [{transform_indices = @transform_0, window_bounds = array<i64: 8, 4096>}, {transform_indices = @transform_1, window_bounds = array<i64: 4096, 128>}, {transform_indices = @transform_2, window_bounds = array<i64: 1, 128>}, {transform_indices = @transform_3, window_bounds = array<i64: 1, 128>}, {transform_indices = @transform_4, window_bounds = array<i64: 1, 128>}, {transform_indices = @transform_5, window_bounds = array<i64: 8, 128>}]} {
    %c0_i32 = arith.constant 0 : i32
    %0 = arith.cmpi eq, %arg1, %c0_i32 : i32
    %1 = arith.extui %0 : i1 to i32
    %c0_i32_0 = arith.constant 0 : i32
    %2 = arith.cmpi ne, %1, %c0_i32_0 : i32
    scf.if %2 {
      %cst_19 = arith.constant 0.000000e+00 : f32
      %27 = vector.broadcast %cst_19 : f32 to vector<1x128xf32>
      %c0_20 = arith.constant 0 : index
      %c0_21 = arith.constant 0 : index
      %28 = vector.load %arg9[%c0_20, %c0_21] : memref<1x128xf32, #tpu.memory_space<vmem>>, vector<1x128xf32>
      tpu.vector_store %arg9[%c0_20, %c0_21], %27 {strides = array<i32>} : memref<1x128xf32, #tpu.memory_space<vmem>>, vector<1x128xf32>,
      %cst_22 = arith.constant 0.000000e+00 : f32
      %29 = vector.broadcast %cst_22 : f32 to vector<1x128xf32>
      %c0_23 = arith.constant 0 : index
      %c0_24 = arith.constant 0 : index
      %30 = vector.load %arg10[%c0_23, %c0_24] : memref<1x128xf32, #tpu.memory_space<vmem>>, vector<1x128xf32>
      tpu.vector_store %arg10[%c0_23, %c0_24], %29 {strides = array<i32>} : memref<1x128xf32, #tpu.memory_space<vmem>>, vector<1x128xf32>,
    } else {
    }
    %c0 = arith.constant 0 : index
    %c0_1 = arith.constant 0 : index
    %3 = vector.load %arg2[%c0, %c0_1] : memref<8x4096xbf16, #tpu.memory_space<vmem>>, vector<8x4096xbf16>
    %c0_2 = arith.constant 0 : index
    %c0_3 = arith.constant 0 : index
    %4 = vector.load %arg3[%c0_2, %c0_3] : memref<4096x128xbf16, #tpu.memory_space<vmem>>, vector<4096x128xbf16>
    %cst = arith.constant dense<0.000000e+00> : vector<8x128xf32>
    %5 = tpu.matmul %3, %4, %cst {dimension_numbers = #tpu.dot_dimension_numbers<[1], [0], [0], [1], [0, 0, 1, 1], [], []>} : vector<8x4096xbf16>, vector<4096x128xbf16>, vector<8x128xf32> -> vector<8x128xf32>
    %c0_4 = arith.constant 0 : index
    %c0_5 = arith.constant 0 : index
    %6 = vector.load %arg4[%c0_4, %c0_5] : memref<1x128xf32, #tpu.memory_space<vmem>>, vector<1x128xf32>
    %7 = vector.broadcast %6 : vector<1x128xf32> to vector<8x128xf32>
    %8 = arith.addf %5, %7 : vector<8x128xf32>
    %c8_i32 = arith.constant 8 : i32
    %9 = arith.muli %arg1, %c8_i32 : i32
    %10 = tpu.assume_multiple %9, 8 : i32
    %11 = arith.index_cast %10 : i32 to index
    %c0_6 = arith.constant 0 : index
    %12 = vector.load %arg8[%11, %c0_6] : memref<8x128xf32, #tpu.memory_space<vmem>>, vector<8x128xf32>
    tpu.vector_store %arg8[%11, %c0_6], %8 {strides = array<i32>} : memref<8x128xf32, #tpu.memory_space<vmem>>, vector<8x128xf32>,
    %c0_7 = arith.constant 0 : index
    %c0_8 = arith.constant 0 : index
    %13 = vector.load %arg9[%c0_7, %c0_8] : memref<1x128xf32, #tpu.memory_space<vmem>>, vector<1x128xf32>
    %cst_9 = arith.constant dense<0.000000e+00> : vector<128xf32>
    %14 = vector.multi_reduction <add>, %8, %cst_9 [0] : vector<8x128xf32> to vector<128xf32>
    %15 = vector.shape_cast %14 : vector<128xf32> to vector<1x128xf32>
    %16 = arith.addf %13, %15 : vector<1x128xf32>
    %c0_10 = arith.constant 0 : index
    %c0_11 = arith.constant 0 : index
    %17 = vector.load %arg9[%c0_10, %c0_11] : memref<1x128xf32, #tpu.memory_space<vmem>>, vector<1x128xf32>
    tpu.vector_store %arg9[%c0_10, %c0_11], %16 {strides = array<i32>} : memref<1x128xf32, #tpu.memory_space<vmem>>, vector<1x128xf32>,
    %c0_12 = arith.constant 0 : index
    %c0_13 = arith.constant 0 : index
    %18 = vector.load %arg10[%c0_12, %c0_13] : memref<1x128xf32, #tpu.memory_space<vmem>>, vector<1x128xf32>
    %19 = arith.mulf %8, %8 : vector<8x128xf32>
    %cst_14 = arith.constant dense<0.000000e+00> : vector<128xf32>
    %20 = vector.multi_reduction <add>, %19, %cst_14 [0] : vector<8x128xf32> to vector<128xf32>
    %21 = vector.shape_cast %20 : vector<128xf32> to vector<1x128xf32>
    %22 = arith.addf %18, %21 : vector<1x128xf32>
    %c0_15 = arith.constant 0 : index
    %c0_16 = arith.constant 0 : index
    %23 = vector.load %arg10[%c0_15, %c0_16] : memref<1x128xf32, #tpu.memory_space<vmem>>, vector<1x128xf32>
    tpu.vector_store %arg10[%c0_15, %c0_16], %22 {strides = array<i32>} : memref<1x128xf32, #tpu.memory_space<vmem>>, vector<1x128xf32>,
    %c0_i32_17 = arith.constant 0 : i32
    %24 = arith.cmpi eq, %arg1, %c0_i32_17 : i32
    %25 = arith.extui %24 : i1 to i32
    %c0_i32_18 = arith.constant 0 : i32
    %26 = arith.cmpi ne, %25, %c0_i32_18 : i32
    scf.if %26 {
      %c0_19 = arith.constant 0 : index
      %c0_20 = arith.constant 0 : index
      %27 = vector.load %arg9[%c0_19, %c0_20] : memref<1x128xf32, #tpu.memory_space<vmem>>, vector<1x128xf32>
      %cst_21 = arith.constant 1.250000e-01 : f32
      %28 = vector.broadcast %cst_21 : f32 to vector<1x128xf32>
      %29 = arith.mulf %27, %28 : vector<1x128xf32>
      %c0_22 = arith.constant 0 : index
      %c0_23 = arith.constant 0 : index
      %30 = vector.load %arg10[%c0_22, %c0_23] : memref<1x128xf32, #tpu.memory_space<vmem>>, vector<1x128xf32>
      %cst_24 = arith.constant 1.250000e-01 : f32
      %31 = vector.broadcast %cst_24 : f32 to vector<1x128xf32>
      %32 = arith.mulf %30, %31 : vector<1x128xf32>
      %33 = arith.mulf %29, %29 : vector<1x128xf32>
      %34 = arith.subf %32, %33 : vector<1x128xf32>
      %cst_25 = arith.constant 0.000000e+00 : f32
      %35 = vector.broadcast %cst_25 : f32 to vector<1x128xf32>
      %36 = arith.maximumf %34, %35 : vector<1x128xf32>
      %c0_26 = arith.constant 0 : index
      %c0_27 = arith.constant 0 : index
      %37 = vector.load %arg5[%c0_26, %c0_27] : memref<1x128xf32, #tpu.memory_space<vmem>>, vector<1x128xf32>
      %cst_28 = arith.constant 9.99999974E-6 : f32
      %38 = vector.broadcast %cst_28 : f32 to vector<1x128xf32>
      %39 = arith.addf %36, %38 : vector<1x128xf32>
      %40 = math.rsqrt %39 : vector<1x128xf32>
      %41 = arith.mulf %37, %40 : vector<1x128xf32>
      %c0_29 = arith.constant 0 : index
      %c0_30 = arith.constant 0 : index
      %42 = vector.load %arg6[%c0_29, %c0_30] : memref<1x128xf32, #tpu.memory_space<vmem>>, vector<1x128xf32>
      %43 = arith.mulf %29, %41 : vector<1x128xf32>
      %44 = arith.subf %42, %43 : vector<1x128xf32>
      %c0_31 = arith.constant 0 : index
      %c0_32 = arith.constant 0 : index
      %45 = vector.load %arg8[%c0_31, %c0_32] : memref<8x128xf32, #tpu.memory_space<vmem>>, vector<8x128xf32>
      %46 = vector.broadcast %41 : vector<1x128xf32> to vector<8x128xf32>
      %47 = arith.mulf %45, %46 : vector<8x128xf32>
      %48 = vector.broadcast %44 : vector<1x128xf32> to vector<8x128xf32>
      %49 = arith.addf %47, %48 : vector<8x128xf32>
      %cst_33 = arith.constant 0.000000e+00 : f32
      %50 = vector.broadcast %cst_33 : f32 to vector<8x128xf32>
      %51 = arith.cmpf oge, %49, %50 : vector<8x128xf32>
      %cst_34 = arith.constant 2.000000e-01 : f32
      %52 = vector.broadcast %cst_34 : f32 to vector<8x128xf32>
      %53 = arith.mulf %52, %49 : vector<8x128xf32>
      %54 = arith.select %51, %49, %53 : vector<8x128xi1>, vector<8x128xf32>
      %55 = arith.truncf %54 : vector<8x128xf32> to vector<8x128xbf16>
      %c0_35 = arith.constant 0 : index
      %c0_36 = arith.constant 0 : index
      %56 = vector.load %arg7[%c0_35, %c0_36] : memref<8x128xbf16, #tpu.memory_space<vmem>>, vector<8x128xbf16>
      tpu.vector_store %arg7[%c0_35, %c0_36], %55 {strides = array<i32>} : memref<8x128xbf16, #tpu.memory_space<vmem>>, vector<8x128xbf16>,
    } else {
    }
    return
  }
  func.func @transform_0(%arg0: i32, %arg1: i32) -> (i32, i32) {
    %c0_i32 = arith.constant 0 : i32
    %c0_i32_0 = arith.constant 0 : i32
    return %arg1, %c0_i32 : i32, i32
  }
  func.func @transform_1(%arg0: i32, %arg1: i32) -> (i32, i32) {
    %c0_i32 = arith.constant 0 : i32
    %c0_i32_0 = arith.constant 0 : i32
    return %c0_i32, %arg0 : i32, i32
  }
  func.func @transform_2(%arg0: i32, %arg1: i32) -> (i32, i32) {
    %c0_i32 = arith.constant 0 : i32
    %c0_i32_0 = arith.constant 0 : i32
    return %c0_i32, %arg0 : i32, i32
  }
  func.func @transform_3(%arg0: i32, %arg1: i32) -> (i32, i32) {
    %c0_i32 = arith.constant 0 : i32
    %c0_i32_0 = arith.constant 0 : i32
    return %c0_i32, %arg0 : i32, i32
  }
  func.func @transform_4(%arg0: i32, %arg1: i32) -> (i32, i32) {
    %c0_i32 = arith.constant 0 : i32
    %c0_i32_0 = arith.constant 0 : i32
    return %c0_i32, %arg0 : i32, i32
  }
  func.func @transform_5(%arg0: i32, %arg1: i32) -> (i32, i32) {
    %c0_i32 = arith.constant 0 : i32
    %c0_i32_0 = arith.constant 0 : i32
    return %c0_i32, %arg0 : i32, i32
  }
}

module attributes {stable_mosaic.version = 11 : i64} {
  func.func @_conv_bn_lrelu_kernel(%arg0: i32, %arg1: i32, %arg2: memref<2x2048xbf16, #tpu.memory_space<vmem>>, %arg3: memref<2048x128xbf16, #tpu.memory_space<vmem>>, %arg4: memref<1x128xf32, #tpu.memory_space<vmem>>, %arg5: memref<1x128xf32, #tpu.memory_space<vmem>>, %arg6: memref<1x128xf32, #tpu.memory_space<vmem>>, %arg7: memref<2x128xf32, #tpu.memory_space<vmem>>, %arg8: memref<2x128xf32, #tpu.memory_space<vmem>>, %arg9: memref<1x128xf32, #tpu.memory_space<vmem>>, %arg10: memref<1x128xf32, #tpu.memory_space<vmem>>) attributes {dimension_semantics = [#tpu.dimension_semantics<parallel>, #tpu.dimension_semantics<arbitrary>], iteration_bounds = array<i64: 1, 1>, scalar_prefetch = 0 : i64, scratch_operands = 3 : i64, tpu.core_type = #tpu.core_type<tc>, window_params = [{transform_indices = @transform_0, window_bounds = array<i64: 2, 2048>}, {transform_indices = @transform_1, window_bounds = array<i64: 2048, 128>}, {transform_indices = @transform_2, window_bounds = array<i64: 1, 128>}, {transform_indices = @transform_3, window_bounds = array<i64: 1, 128>}, {transform_indices = @transform_4, window_bounds = array<i64: 1, 128>}, {transform_indices = @transform_5, window_bounds = array<i64: 2, 128>}]} {
    %c0_i32 = arith.constant 0 : i32
    %0 = arith.cmpi eq, %arg1, %c0_i32 : i32
    %1 = arith.extui %0 : i1 to i32
    %c0_i32_0 = arith.constant 0 : i32
    %2 = arith.cmpi ne, %1, %c0_i32_0 : i32
    scf.if %2 {
      %cst_19 = arith.constant 0.000000e+00 : f32
      %27 = vector.broadcast %cst_19 : f32 to vector<1x128xf32>
      %c0_20 = arith.constant 0 : index
      %c0_21 = arith.constant 0 : index
      %28 = vector.load %arg9[%c0_20, %c0_21] : memref<1x128xf32, #tpu.memory_space<vmem>>, vector<1x128xf32>
      tpu.vector_store %arg9[%c0_20, %c0_21], %27 {strides = array<i32>} : memref<1x128xf32, #tpu.memory_space<vmem>>, vector<1x128xf32>,
      %cst_22 = arith.constant 0.000000e+00 : f32
      %29 = vector.broadcast %cst_22 : f32 to vector<1x128xf32>
      %c0_23 = arith.constant 0 : index
      %c0_24 = arith.constant 0 : index
      %30 = vector.load %arg10[%c0_23, %c0_24] : memref<1x128xf32, #tpu.memory_space<vmem>>, vector<1x128xf32>
      tpu.vector_store %arg10[%c0_23, %c0_24], %29 {strides = array<i32>} : memref<1x128xf32, #tpu.memory_space<vmem>>, vector<1x128xf32>,
    } else {
    }
    %c0 = arith.constant 0 : index
    %c0_1 = arith.constant 0 : index
    %3 = vector.load %arg2[%c0, %c0_1] : memref<2x2048xbf16, #tpu.memory_space<vmem>>, vector<2x2048xbf16>
    %c0_2 = arith.constant 0 : index
    %c0_3 = arith.constant 0 : index
    %4 = vector.load %arg3[%c0_2, %c0_3] : memref<2048x128xbf16, #tpu.memory_space<vmem>>, vector<2048x128xbf16>
    %cst = arith.constant dense<0.000000e+00> : vector<2x128xf32>
    %5 = tpu.matmul %3, %4, %cst {dimension_numbers = #tpu.dot_dimension_numbers<[1], [0], [0], [1], [0, 0, 1, 1], [], []>} : vector<2x2048xbf16>, vector<2048x128xbf16>, vector<2x128xf32> -> vector<2x128xf32>
    %c0_4 = arith.constant 0 : index
    %c0_5 = arith.constant 0 : index
    %6 = vector.load %arg4[%c0_4, %c0_5] : memref<1x128xf32, #tpu.memory_space<vmem>>, vector<1x128xf32>
    %7 = vector.broadcast %6 : vector<1x128xf32> to vector<2x128xf32>
    %8 = arith.addf %5, %7 : vector<2x128xf32>
    %c2_i32 = arith.constant 2 : i32
    %9 = arith.muli %arg1, %c2_i32 : i32
    %10 = tpu.assume_multiple %9, 2 : i32
    %11 = arith.index_cast %10 : i32 to index
    %c0_6 = arith.constant 0 : index
    %12 = vector.load %arg8[%11, %c0_6] : memref<2x128xf32, #tpu.memory_space<vmem>>, vector<2x128xf32>
    tpu.vector_store %arg8[%11, %c0_6], %8 {strides = array<i32>} : memref<2x128xf32, #tpu.memory_space<vmem>>, vector<2x128xf32>,
    %c0_7 = arith.constant 0 : index
    %c0_8 = arith.constant 0 : index
    %13 = vector.load %arg9[%c0_7, %c0_8] : memref<1x128xf32, #tpu.memory_space<vmem>>, vector<1x128xf32>
    %cst_9 = arith.constant dense<0.000000e+00> : vector<128xf32>
    %14 = vector.multi_reduction <add>, %8, %cst_9 [0] : vector<2x128xf32> to vector<128xf32>
    %15 = vector.shape_cast %14 : vector<128xf32> to vector<1x128xf32>
    %16 = arith.addf %13, %15 : vector<1x128xf32>
    %c0_10 = arith.constant 0 : index
    %c0_11 = arith.constant 0 : index
    %17 = vector.load %arg9[%c0_10, %c0_11] : memref<1x128xf32, #tpu.memory_space<vmem>>, vector<1x128xf32>
    tpu.vector_store %arg9[%c0_10, %c0_11], %16 {strides = array<i32>} : memref<1x128xf32, #tpu.memory_space<vmem>>, vector<1x128xf32>,
    %c0_12 = arith.constant 0 : index
    %c0_13 = arith.constant 0 : index
    %18 = vector.load %arg10[%c0_12, %c0_13] : memref<1x128xf32, #tpu.memory_space<vmem>>, vector<1x128xf32>
    %19 = arith.mulf %8, %8 : vector<2x128xf32>
    %cst_14 = arith.constant dense<0.000000e+00> : vector<128xf32>
    %20 = vector.multi_reduction <add>, %19, %cst_14 [0] : vector<2x128xf32> to vector<128xf32>
    %21 = vector.shape_cast %20 : vector<128xf32> to vector<1x128xf32>
    %22 = arith.addf %18, %21 : vector<1x128xf32>
    %c0_15 = arith.constant 0 : index
    %c0_16 = arith.constant 0 : index
    %23 = vector.load %arg10[%c0_15, %c0_16] : memref<1x128xf32, #tpu.memory_space<vmem>>, vector<1x128xf32>
    tpu.vector_store %arg10[%c0_15, %c0_16], %22 {strides = array<i32>} : memref<1x128xf32, #tpu.memory_space<vmem>>, vector<1x128xf32>,
    %c0_i32_17 = arith.constant 0 : i32
    %24 = arith.cmpi eq, %arg1, %c0_i32_17 : i32
    %25 = arith.extui %24 : i1 to i32
    %c0_i32_18 = arith.constant 0 : i32
    %26 = arith.cmpi ne, %25, %c0_i32_18 : i32
    scf.if %26 {
      %c0_19 = arith.constant 0 : index
      %c0_20 = arith.constant 0 : index
      %27 = vector.load %arg9[%c0_19, %c0_20] : memref<1x128xf32, #tpu.memory_space<vmem>>, vector<1x128xf32>
      %cst_21 = arith.constant 5.000000e-01 : f32
      %28 = vector.broadcast %cst_21 : f32 to vector<1x128xf32>
      %29 = arith.mulf %27, %28 : vector<1x128xf32>
      %c0_22 = arith.constant 0 : index
      %c0_23 = arith.constant 0 : index
      %30 = vector.load %arg10[%c0_22, %c0_23] : memref<1x128xf32, #tpu.memory_space<vmem>>, vector<1x128xf32>
      %cst_24 = arith.constant 5.000000e-01 : f32
      %31 = vector.broadcast %cst_24 : f32 to vector<1x128xf32>
      %32 = arith.mulf %30, %31 : vector<1x128xf32>
      %33 = arith.mulf %29, %29 : vector<1x128xf32>
      %34 = arith.subf %32, %33 : vector<1x128xf32>
      %cst_25 = arith.constant 0.000000e+00 : f32
      %35 = vector.broadcast %cst_25 : f32 to vector<1x128xf32>
      %36 = arith.maximumf %34, %35 : vector<1x128xf32>
      %c0_26 = arith.constant 0 : index
      %c0_27 = arith.constant 0 : index
      %37 = vector.load %arg5[%c0_26, %c0_27] : memref<1x128xf32, #tpu.memory_space<vmem>>, vector<1x128xf32>
      %cst_28 = arith.constant 9.99999974E-6 : f32
      %38 = vector.broadcast %cst_28 : f32 to vector<1x128xf32>
      %39 = arith.addf %36, %38 : vector<1x128xf32>
      %40 = math.rsqrt %39 : vector<1x128xf32>
      %41 = arith.mulf %37, %40 : vector<1x128xf32>
      %c0_29 = arith.constant 0 : index
      %c0_30 = arith.constant 0 : index
      %42 = vector.load %arg6[%c0_29, %c0_30] : memref<1x128xf32, #tpu.memory_space<vmem>>, vector<1x128xf32>
      %43 = arith.mulf %29, %41 : vector<1x128xf32>
      %44 = arith.subf %42, %43 : vector<1x128xf32>
      %c0_31 = arith.constant 0 : index
      %c0_32 = arith.constant 0 : index
      %45 = vector.load %arg8[%c0_31, %c0_32] : memref<2x128xf32, #tpu.memory_space<vmem>>, vector<2x128xf32>
      %46 = vector.broadcast %41 : vector<1x128xf32> to vector<2x128xf32>
      %47 = arith.mulf %45, %46 : vector<2x128xf32>
      %48 = vector.broadcast %44 : vector<1x128xf32> to vector<2x128xf32>
      %49 = arith.addf %47, %48 : vector<2x128xf32>
      %cst_33 = arith.constant 0.000000e+00 : f32
      %50 = vector.broadcast %cst_33 : f32 to vector<2x128xf32>
      %51 = arith.cmpf oge, %49, %50 : vector<2x128xf32>
      %cst_34 = arith.constant 2.000000e-01 : f32
      %52 = vector.broadcast %cst_34 : f32 to vector<2x128xf32>
      %53 = arith.mulf %52, %49 : vector<2x128xf32>
      %54 = arith.select %51, %49, %53 : vector<2x128xi1>, vector<2x128xf32>
      %c0_35 = arith.constant 0 : index
      %c0_36 = arith.constant 0 : index
      %55 = vector.load %arg7[%c0_35, %c0_36] : memref<2x128xf32, #tpu.memory_space<vmem>>, vector<2x128xf32>
      tpu.vector_store %arg7[%c0_35, %c0_36], %54 {strides = array<i32>} : memref<2x128xf32, #tpu.memory_space<vmem>>, vector<2x128xf32>,
    } else {
    }
    return
  }
  func.func @transform_0(%arg0: i32, %arg1: i32) -> (i32, i32) {
    %c0_i32 = arith.constant 0 : i32
    %c0_i32_0 = arith.constant 0 : i32
    return %arg1, %c0_i32 : i32, i32
  }
  func.func @transform_1(%arg0: i32, %arg1: i32) -> (i32, i32) {
    %c0_i32 = arith.constant 0 : i32
    %c0_i32_0 = arith.constant 0 : i32
    return %c0_i32, %arg0 : i32, i32
  }
  func.func @transform_2(%arg0: i32, %arg1: i32) -> (i32, i32) {
    %c0_i32 = arith.constant 0 : i32
    %c0_i32_0 = arith.constant 0 : i32
    return %c0_i32, %arg0 : i32, i32
  }
  func.func @transform_3(%arg0: i32, %arg1: i32) -> (i32, i32) {
    %c0_i32 = arith.constant 0 : i32
    %c0_i32_0 = arith.constant 0 : i32
    return %c0_i32, %arg0 : i32, i32
  }
  func.func @transform_4(%arg0: i32, %arg1: i32) -> (i32, i32) {
    %c0_i32 = arith.constant 0 : i32
    %c0_i32_0 = arith.constant 0 : i32
    return %c0_i32, %arg0 : i32, i32
  }
  func.func @transform_5(%arg0: i32, %arg1: i32) -> (i32, i32) {
    %c0_i32 = arith.constant 0 : i32
    %c0_i32_0 = arith.constant 0 : i32
    return %c0_i32, %arg0 : i32, i32
  }
}

</mosaic_0001>

<bundles_post_ra>
// kernel: e1_forward.6
= control target key start
LH: loop header
LB: loop body
LE: loop exit
PB: predicated region body
PF: predicated region fallthrough
CT: control target
= control target key end

     0   :  { %s5767_s18 = smov 0   ;;  %s5769_s19 = smov 0   ;;  %s7111_s0 = inlined_call_operand.vmem [shape: bf16[2048,48], index: 0, kind: input, shape index: {}]   ;;  %s7112_s1 = inlined_call_operand.vmem [shape: bf16[48,128], index: 1, kind: input, shape index: {}]   ;;  %s7113_s2 = inlined_call_operand.vmem [shape: f32[1,128], index: 2, kind: input, shape index: {}]   ;;  %s7114_s3 = inlined_call_operand.vmem [shape: f32[1,128], index: 3, kind: input, shape index: {}]   ;;  %s7115_s4 = inlined_call_operand.vmem [shape: f32[1,128], index: 4, kind: input, shape index: {}]   ;;  %s7116_s5 = inlined_call_operand.vmem [shape: bf16[2048,128], index: 5, kind: output, shape index: {}]  }
   0x1   :  { %s5771_s20 = smov 0  }
   0x2 LB: > { %s24_s21 = sadd.s32 1, %s5730_s19  ;;  %p4183_p0 = scmp.ge.s32.totalorder %s5734_s20, 1  ;;  %s5734_s20 = sphi %s5771_s20, %s15_s20   ;;  %s5730_s19 = sphi %s5769_s19, %s7118_s19   ;;  %s5726_s18 = sphi %s5767_s18, %s7117_s18  }
   0x3   : > { %p25_p1 = scmp.ge.s32.totalorder %s24_s21, 4  ;;  %p233_p2 = scmp.lt.s32.totalorder %s5734_s20, 5 }
   0x5   : > { %s7120_s21 = smov (%p25_p1, %s24_s21), 0  ;;  %p234_p3 = pnand %p4183_p0, %p233_p2 }
   0x6   : > { %s4184_s22 = sshll.u32 (!%p234_p3), %s5726_s18, 6  ;;  %p4186_p5 = scmp.ne.s32.totalorder (!%p234_p3), %s5726_s18, 0 }
   0x7   : > { %237 = sbr.rel (%p234_p3) target bundleno = 783 (0x30f), region = 40  ;;  %p274_p4 = scmp.lt.s32.totalorder (!%p234_p3), %s4184_s22, 255 }
   0xe   : > { %s7122_s22 = smov (!%p274_p4, %s4184_s22), 255  ;;  %300 = sbr.rel (%p4186_p5) target bundleno = 21 (0x15), region = 44 }
   0xf   : > { %s4185_s23 = sshll.u32 %s7122_s22, 2  ;;  %v5736_v0 = vmov (!%p4186_p5), 0.0  }
  0x10   : > { %s5791_s26 = scalar_lea.vmem %s7111_s0, %s4185_s23  ;;  %301 = vst [vmem:[#allocation3] sm:$0x1] (!%p4186_p5), %v5736_v0  ;;  %302 = vst [vmem:[#allocation4] sm:$0x1] (!%p4186_p5), %v5736_v0 }
  0x15 PF: > { %v5675_v1 = vld [vmem:[%s7112_s1] sm:$0xff]   ;;  %v5676_v2 = vld [vmem:[%s7112_s1 + $0x8] sm:$0xff]   ;;  %vm558_vm0 = vcmask 392192   ;;  %v5677_v4 = vld [vmem:[%s7112_s1 + $0x10] sm:$0xff]   ;;  %s4255_s8 = sshll.u32 %s5726_s18, 9  ;;  %p4256_p6 = scmp.ne.s32.totalorder %s5726_s18, 3 }
  0x16   : > { %5574 = vmatprep.subr.bf16.mxu0 %v5675_v1  ;;  %5644 = vmatprep.subr.bf16.mxu1 %v5675_v1  ;;  %v5678_v3 = vld [vmem:[%s5791_s26] sm:$0xff]   ;;  %v5679_v5 = vld [vmem:[%s5791_s26 + $0x8] sm:$0xff]   ;;  %v5680_v6 = vld [vmem:[%s5791_s26 + $0x10] sm:$0xff]   ;;  %s5875_s11 = scalar_lea.vmem [#allocation2], %s4255_s8 }
  0x17   : > { %5575 = vmatpush3.bf16.msra.mxu0 %v5675_v1  ;;  %5647 = vmatpush3.bf16.msra.mxu1 %v5675_v1  ;;  %v5681_v7 = vld [vmem:[%s5791_s26 + $0x18] sm:$0xff]   ;;  %v5682_v8 = vld [vmem:[%s5791_s26 + $0x20] sm:$0xff]   ;;  %v5695_v10 = vld [vmem:[%s5791_s26 + $0x88] sm:$0xff]  }
  0x18   : > { %5576 = vmatprep.subr.bf16.mxu0 %v5676_v2  ;;  %5645 = vmatprep.subr.bf16.mxu1 %v5676_v2  ;;  %v5694_v9 = vld [vmem:[%s5791_s26 + $0x80] sm:$0xff]   ;;  %v5696_v11 = vld [vmem:[%s5791_s26 + $0x90] sm:$0xff]   ;;  %v5683_v12 = vld [vmem:[%s5791_s26 + $0x28] sm:$0xff]  }
  0x19   : > { %5580 = vmatprep.mubr.msk.bf16.mxu0 %vm558_vm0, %v5678_v3  ;;  %5612 = vmatprep.mubr.msk.bf16.mxu1 %vm558_vm0, %v5694_v9  ;;  %v5684_v13 = vld [vmem:[%s5791_s26 + $0x30] sm:$0xff]   ;;  %v5697_v14 = vld [vmem:[%s5791_s26 + $0x98] sm:$0xff]   ;;  %v5698_v15 = vld [vmem:[%s5791_s26 + $0xa0] sm:$0xff]  }
  0x1a   : > { %v5685_v16 = vld [vmem:[%s5791_s26 + $0x38] sm:$0xff]   ;;  %v5699_v17 = vld [vmem:[%s5791_s26 + $0xa8] sm:$0xff]   ;;  %v5686_v18 = vld [vmem:[%s5791_s26 + $0x40] sm:$0xff]  }
  0x1b   : > { %5577 = vmatpush3.bf16.msra.mxu0 %v5676_v2  ;;  %5648 = vmatpush3.bf16.msra.mxu1 %v5676_v2  ;;  %v5700_v19 = vld [vmem:[%s5791_s26 + $0xb0] sm:$0xff]   ;;  %v5687_v20 = vld [vmem:[%s5791_s26 + $0x48] sm:$0xff]   ;;  %v5701_v21 = vld [vmem:[%s5791_s26 + $0xb8] sm:$0xff]  }
  0x1c   : > { %5578 = vmatprep.subr.bf16.mxu0 %v5677_v4  ;;  %5646 = vmatprep.subr.bf16.mxu1 %v5677_v4  ;;  %v5688_v22 = vld [vmem:[%s5791_s26 + $0x50] sm:$0xff]   ;;  %v5702_v23 = vld [vmem:[%s5791_s26 + $0xc0] sm:$0xff]   ;;  %v5689_v24 = vld [vmem:[%s5791_s26 + $0x58] sm:$0xff]  }
  0x1d   : > { %v5703_v25 = vld [vmem:[%s5791_s26 + $0xc8] sm:$0xff]   ;;  %v5690_v26 = vld [vmem:[%s5791_s26 + $0x60] sm:$0xff]   ;;  %v5704_v27 = vld [vmem:[%s5791_s26 + $0xd0] sm:$0xff]  }
  0x1e   : > { %v5691_v28 = vld [vmem:[%s5791_s26 + $0x68] sm:$0xff]   ;;  %v5705_v29 = vld [vmem:[%s5791_s26 + $0xd8] sm:$0xff]   ;;  %v5692_v30 = vld [vmem:[%s5791_s26 + $0x70] sm:$0xff]  }
  0x1f   : > { %5579 = vmatpush3.bf16.msra.mxu0 %v5677_v4  ;;  %5649 = vmatpush3.bf16.msra.mxu1 %v5677_v4  ;;  %v5706_v31 = vld [vmem:[%s5791_s26 + $0xe0] sm:$0xff]   ;;  %v5693_v32 = vld [vmem:[%s5791_s26 + $0x78] sm:$0xff]   ;;  %v5707_v33 = vld [vmem:[%s5791_s26 + $0xe8] sm:$0xff]  }
  0x20   : > { %v5708_v34 = vld [vmem:[%s5791_s26 + $0xf0] sm:$0xff]   ;;  %v5709_v35 = vld [vmem:[%s5791_s26 + $0xf8] sm:$0xff]   ;;  %v5871_v36 = vld [vmem:[%s7113_s2] ss:$0 sm:$0xff] }
  0x22   : > { %5581 = vmatmul.mubr.msk.bf16.vlgmr.msra.gmra.mrb[0].mxu0 %vm558_vm0, %v5679_v5  ;;  %5613 = vmatmul.mubr.msk.bf16.vlgmr.msra.gmra.mrb[0].mxu1 %vm558_vm0, %v5695_v10 }
  0x23   : > { %5584 = vmatprep.mubr.msk.bf16.mxu0 %vm558_vm0, %v5680_v6  ;;  %5616 = vmatprep.mubr.msk.bf16.mxu1 %vm558_vm0, %v5696_v11 }
  0x2a   : > { %5585 = vmatmul.mubr.msk.bf16.gmra.mrb[4].mxu0 %vm558_vm0, %v5681_v7  ;;  %5617 = vmatmul.mubr.msk.bf16.gmra.mrb[4].mxu1 %vm558_vm0, %v5697_v14 }
  0x2b   : > { %5588 = vmatprep.mubr.msk.bf16.mxu0 %vm558_vm0, %v5682_v8  ;;  %5620 = vmatprep.mubr.msk.bf16.mxu1 %vm558_vm0, %v5698_v15 }
  0x32   : > { %5589 = vmatmul.mubr.msk.bf16.gmra.mrb[8].mxu0 %vm558_vm0, %v5683_v12  ;;  %5621 = vmatmul.mubr.msk.bf16.gmra.mrb[8].mxu1 %vm558_vm0, %v5699_v17 }
  0x33   : > { %5592 = vmatprep.mubr.msk.bf16.mxu0 %vm558_vm0, %v5684_v13  ;;  %5624 = vmatprep.mubr.msk.bf16.mxu1 %vm558_vm0, %v5700_v19 }
  0x3a   : > { %5593 = vmatmul.mubr.msk.bf16.gmra.mrb[12].mxu0 %vm558_vm0, %v5685_v16  ;;  %5625 = vmatmul.mubr.msk.bf16.gmra.mrb[12].mxu1 %vm558_vm0, %v5701_v21 }
  0x3b   : > { %5596 = vmatprep.mubr.msk.bf16.mxu0 %vm558_vm0, %v5686_v18  ;;  %5628 = vmatprep.mubr.msk.bf16.mxu1 %vm558_vm0, %v5702_v23 }
  0x42   : > { %5597 = vmatmul.mubr.msk.bf16.gmra.mrb[16].mxu0 %vm558_vm0, %v5687_v20  ;;  %5629 = vmatmul.mubr.msk.bf16.gmra.mrb[16].mxu1 %vm558_vm0, %v5703_v25 }
  0x43   : > { %5600 = vmatprep.mubr.msk.bf16.mxu0 %vm558_vm0, %v5688_v22  ;;  %5632 = vmatprep.mubr.msk.bf16.mxu1 %vm558_vm0, %v5704_v27 }
  0x4a   : > { %5601 = vmatmul.mubr.msk.bf16.gmra.mrb[20].mxu0 %vm558_vm0, %v5689_v24  ;;  %5633 = vmatmul.mubr.msk.bf16.gmra.mrb[20].mxu1 %vm558_vm0, %v5705_v29 }
  0x4b   : > { %5604 = vmatprep.mubr.msk.bf16.mxu0 %vm558_vm0, %v5690_v26  ;;  %5636 = vmatprep.mubr.msk.bf16.mxu1 %vm558_vm0, %v5706_v31 }
  0x52   : > { %5605 = vmatmul.mubr.msk.bf16.gmra.mrb[24].mxu0 %vm558_vm0, %v5691_v28  ;;  %5637 = vmatmul.mubr.msk.bf16.gmra.mrb[24].mxu1 %vm558_vm0, %v5707_v33 }
  0x53   : > { %5608 = vmatprep.mubr.msk.bf16.mxu0 %vm558_vm0, %v5692_v30  ;;  %5640 = vmatprep.mubr.msk.bf16.mxu1 %vm558_vm0, %v5708_v34 }
  0x5a   : > { %5609 = vmatmul.mubr.msk.bf16.gmra.mrb[28].mxu0 %vm558_vm0, %v5693_v32  ;;  %5641 = vmatmul.mubr.msk.bf16.gmra.mrb[28].mxu1 %vm558_vm0, %v5709_v35 }
  0xf5   : > { %v5582_v37 = vpop.f32.mrb[0].mxu0  ;;  %v5614_v52 = vpop.f32.mrb[0].mxu1 }
  0xf6   : > { %v698_v38 = vadd.f32 %v5582_v37, %v5871_v36  ;;  %v689_v39 = vpop.f32.mrb[1].mxu0  ;;  %v5885_v56 = vadd.f32 %v5614_v52, %v5871_v36  ;;  %v817_v57 = vpop.f32.mrb[1].mxu1 }
  0xf7   : > { %v690_v40 = vadd.f32 %v5871_v36, %v689_v39  ;;  %v5583_v41 = vpop.f32.mrb[2].mxu0  ;;  %v5889_v62 = vadd.f32 %v5871_v36, %v817_v57  ;;  %v5615_v63 = vpop.f32.mrb[2].mxu1 }
  0xf8   : > { %948 = vst [vmem:[%s5875_s11 + $0x10] sm:$0xff] %v698_v38  ;;  %v701_v42 = vadd.f32 %v5583_v41, %v5871_v36  ;;  %v692_v43 = vpop.f32.mrb[3].mxu0  ;;  %v1085_v48 = vmul.f32 %v698_v38, %v698_v38  ;;  %980 = vst [vmem:[%s5875_s11 + $0x110] sm:$0xff] %v5885_v56  ;;  %v5896_v2 = vadd.f32 %v5615_v63, %v5871_v36  ;;  %v820_v3 = vpop.f32.mrb[3].mxu1 }
  0xf9   : > { %946 = vst [vmem:[%s5875_s11] sm:$0xff] %v690_v40  ;;  %v693_v44 = vadd.f32 %v5871_v36, %v692_v43  ;;  %v1083_v45 = vmul.f32 %v690_v40, %v690_v40  ;;  %978 = vst [vmem:[%s5875_s11 + $0x100] sm:$0xff] %v5889_v62  ;;  %v5906_v8 = vadd.f32 %v5871_v36, %v820_v3 }
  0xfa   : > { %949 = vst [vmem:[%s5875_s11 + $0x18] sm:$0xff] %v701_v42  ;;  %v1086_v53 = vmul.f32 %v701_v42, %v701_v42  ;;  %981 = vst [vmem:[%s5875_s11 + $0x118] sm:$0xff] %v5896_v2 }
  0xfb   : > { %947 = vst [vmem:[%s5875_s11 + $0x8] sm:$0xff] %v693_v44  ;;  %v1011_v46 = vadd.f32 %v693_v44, %v690_v40  ;;  %v1084_v47 = vmul.f32 %v693_v44, %v693_v44  ;;  %979 = vst [vmem:[%s5875_s11 + $0x108] sm:$0xff] %v5906_v8 }
  0xfd   : > { %v1012_v49 = vadd.f32 %v1011_v46, %v698_v38  ;;  %v1147_v50 = vadd.f32 %v1084_v47, %v1083_v45  ;;  %v5586_v51 = vpop.f32.mrb[4].mxu0  ;;  %v5618_v16 = vpop.f32.mrb[4].mxu1 }
  0xfe   : > { %v714_v54 = vadd.f32 %v5586_v51, %v5871_v36  ;;  %v705_v55 = vpop.f32.mrb[5].mxu0  ;;  %v5913_v20 = vadd.f32 %v5618_v16, %v5871_v36  ;;  %v833_v21 = vpop.f32.mrb[5].mxu1 }
  0xff   : > { %v1148_v58 = vadd.f32 %v1147_v50, %v1085_v48  ;;  %v706_v59 = vadd.f32 %v5871_v36, %v705_v55  ;;  %v1013_v60 = vadd.f32 %v1012_v49, %v701_v42  ;;  %v5587_v61 = vpop.f32.mrb[6].mxu0  ;;  %v5917_v26 = vadd.f32 %v5871_v36, %v833_v21  ;;  %v5619_v27 = vpop.f32.mrb[6].mxu1 }
 0x100   : > { %952 = vst [vmem:[%s5875_s11 + $0x30] sm:$0xff] %v714_v54  ;;  %v717_v0 = vadd.f32 %v5587_v61, %v5871_v36  ;;  %v708_v1 = vpop.f32.mrb[7].mxu0  ;;  %v1089_v12 = vmul.f32 %v714_v54, %v714_v54  ;;  %984 = vst [vmem:[%s5875_s11 + $0x130] sm:$0xff] %v5913_v20  ;;  %v5924_v30 = vadd.f32 %v5619_v27, %v5871_v36  ;;  %v836_v31 = vpop.f32.mrb[7].mxu1 }
 0x101   : > { %950 = vst [vmem:[%s5875_s11 + $0x20] sm:$0xff] %v706_v59  ;;  %v1014_v4 = vadd.f32 %v1013_v60, %v706_v59  ;;  %v1087_v5 = vmul.f32 %v706_v59, %v706_v59  ;;  %v1149_v6 = vadd.f32 %v1148_v58, %v1086_v53  ;;  %v709_v7 = vadd.f32 %v5871_v36, %v708_v1 }
 0x102   : > { %953 = vst [vmem:[%s5875_s11 + $0x38] sm:$0xff] %v717_v0  ;;  %v1090_v17 = vmul.f32 %v717_v0, %v717_v0  ;;  %982 = vst [vmem:[%s5875_s11 + $0x120] sm:$0xff] %v5917_v26  ;;  %v5934_v37 = vadd.f32 %v5871_v36, %v836_v31 }
 0x103   : > { %v1150_v9 = vadd.f32 %v1149_v6, %v1087_v5  ;;  %951 = vst [vmem:[%s5875_s11 + $0x28] sm:$0xff] %v709_v7  ;;  %v1015_v10 = vadd.f32 %v1014_v4, %v709_v7  ;;  %v1088_v11 = vmul.f32 %v709_v7, %v709_v7  ;;  %985 = vst [vmem:[%s5875_s11 + $0x138] sm:$0xff] %v5924_v30 }
 0x104   : > { %983 = vst [vmem:[%s5875_s11 + $0x128] sm:$0xff] %v5934_v37 }
 0x105   : > { %v1016_v13 = vadd.f32 %v1015_v10, %v714_v54  ;;  %v1151_v14 = vadd.f32 %v1150_v9, %v1088_v11  ;;  %v5590_v15 = vpop.f32.mrb[8].mxu0  ;;  %v5622_v45 = vpop.f32.mrb[8].mxu1 }
 0x106   : > { %v730_v18 = vadd.f32 %v5590_v15, %v5871_v36  ;;  %v721_v19 = vpop.f32.mrb[9].mxu0  ;;  %v5941_v49 = vadd.f32 %v5622_v45, %v5871_v36  ;;  %v849_v50 = vpop.f32.mrb[9].mxu1 }
 0x107   : > { %v1152_v22 = vadd.f32 %v1151_v14, %v1089_v12  ;;  %v722_v23 = vadd.f32 %v5871_v36, %v721_v19  ;;  %v1017_v24 = vadd.f32 %v1016_v13, %v717_v0  ;;  %v5591_v25 = vpop.f32.mrb[10].mxu0  ;;  %v5945_v55 = vadd.f32 %v5871_v36, %v849_v50  ;;  %v5623_v57 = vpop.f32.mrb[10].mxu1 }
 0x108   : > { %956 = vst [vmem:[%s5875_s11 + $0x50] sm:$0xff] %v730_v18  ;;  %v733_v28 = vadd.f32 %v5591_v25, %v5871_v36  ;;  %v724_v29 = vpop.f32.mrb[11].mxu0  ;;  %v1093_v41 = vmul.f32 %v730_v18, %v730_v18  ;;  %988 = vst [vmem:[%s5875_s11 + $0x150] sm:$0xff] %v5941_v49  ;;  %v5952_v60 = vadd.f32 %v5623_v57, %v5871_v36  ;;  %v852_v61 = vpop.f32.mrb[11].mxu1 }
 0x109   : > { %954 = vst [vmem:[%s5875_s11 + $0x40] sm:$0xff] %v722_v23  ;;  %v1018_v32 = vadd.f32 %v1017_v24, %v722_v23  ;;  %v1091_v33 = vmul.f32 %v722_v23, %v722_v23  ;;  %v1153_v34 = vadd.f32 %v1152_v22, %v1090_v17  ;;  %v725_v35 = vadd.f32 %v5871_v36, %v724_v29 }
 0x10a   : > { %957 = vst [vmem:[%s5875_s11 + $0x58] sm:$0xff] %v733_v28  ;;  %v1094_v46 = vmul.f32 %v733_v28, %v733_v28  ;;  %986 = vst [vmem:[%s5875_s11 + $0x140] sm:$0xff] %v5945_v55  ;;  %v5962_v4 = vadd.f32 %v5871_v36, %v852_v61 }
 0x10b   : > { %v1154_v38 = vadd.f32 %v1153_v34, %v1091_v33  ;;  %955 = vst [vmem:[%s5875_s11 + $0x48] sm:$0xff] %v725_v35  ;;  %v1019_v39 = vadd.f32 %v1018_v32, %v725_v35  ;;  %v1092_v40 = vmul.f32 %v725_v35, %v725_v35  ;;  %989 = vst [vmem:[%s5875_s11 + $0x158] sm:$0xff] %v5952_v60 }
 0x10c   : > { %987 = vst [vmem:[%s5875_s11 + $0x148] sm:$0xff] %v5962_v4 }
 0x10d   : > { %v1020_v42 = vadd.f32 %v1019_v39, %v730_v18  ;;  %v1155_v43 = vadd.f32 %v1154_v38, %v1092_v40  ;;  %v5594_v44 = vpop.f32.mrb[12].mxu0  ;;  %v5626_v13 = vpop.f32.mrb[12].mxu1 }
 0x10e   : > { %v746_v47 = vadd.f32 %v5594_v44, %v5871_v36  ;;  %v737_v48 = vpop.f32.mrb[13].mxu0  ;;  %v5969_v17 = vadd.f32 %v5626_v13, %v5871_v36  ;;  %v865_v18 = vpop.f32.mrb[13].mxu1 }
 0x10f   : > { %v1156_v51 = vadd.f32 %v1155_v43, %v1093_v41  ;;  %v738_v52 = vadd.f32 %v5871_v36, %v737_v48  ;;  %v1021_v53 = vadd.f32 %v1020_v42, %v733_v28  ;;  %v5595_v54 = vpop.f32.mrb[14].mxu0  ;;  %v5973_v24 = vadd.f32 %v5871_v36, %v865_v18  ;;  %v5627_v25 = vpop.f32.mrb[14].mxu1 }
 0x110   : > { %960 = vst [vmem:[%s5875_s11 + $0x70] sm:$0xff] %v746_v47  ;;  %v749_v58 = vadd.f32 %v5595_v54, %v5871_v36  ;;  %v740_v59 = vpop.f32.mrb[15].mxu0  ;;  %v1097_v9 = vmul.f32 %v746_v47, %v746_v47  ;;  %992 = vst [vmem:[%s5875_s11 + $0x170] sm:$0xff] %v5969_v17  ;;  %v5980_v29 = vadd.f32 %v5627_v25, %v5871_v36  ;;  %v868_v31 = vpop.f32.mrb[15].mxu1 }
 0x111   : > { %958 = vst [vmem:[%s5875_s11 + $0x60] sm:$0xff] %v738_v52  ;;  %v1022_v63 = vadd.f32 %v1021_v53, %v738_v52  ;;  %v1095_v0 = vmul.f32 %v738_v52, %v738_v52  ;;  %v1157_v1 = vadd.f32 %v1156_v51, %v1094_v46  ;;  %v741_v3 = vadd.f32 %v5871_v36, %v740_v59 }
 0x112   : > { %961 = vst [vmem:[%s5875_s11 + $0x78] sm:$0xff] %v749_v58  ;;  %v1098_v14 = vmul.f32 %v749_v58, %v749_v58  ;;  %990 = vst [vmem:[%s5875_s11 + $0x160] sm:$0xff] %v5973_v24  ;;  %v5990_v38 = vadd.f32 %v5871_v36, %v868_v31 }
 0x113   : > { %v1158_v5 = vadd.f32 %v1157_v1, %v1095_v0  ;;  %959 = vst [vmem:[%s5875_s11 + $0x68] sm:$0xff] %v741_v3  ;;  %v1023_v6 = vadd.f32 %v1022_v63, %v741_v3  ;;  %v1096_v7 = vmul.f32 %v741_v3, %v741_v3  ;;  %993 = vst [vmem:[%s5875_s11 + $0x178] sm:$0xff] %v5980_v29 }
 0x114   : > { %991 = vst [vmem:[%s5875_s11 + $0x168] sm:$0xff] %v5990_v38 }
 0x115   : > { %v1024_v10 = vadd.f32 %v1023_v6, %v746_v47  ;;  %v1159_v11 = vadd.f32 %v1158_v5, %v1096_v7  ;;  %v5598_v12 = vpop.f32.mrb[16].mxu0  ;;  %v5630_v46 = vpop.f32.mrb[16].mxu1 }
 0x116   : > { %v762_v15 = vadd.f32 %v5598_v12, %v5871_v36  ;;  %v753_v16 = vpop.f32.mrb[17].mxu0  ;;  %v5997_v51 = vadd.f32 %v5630_v46, %v5871_v36  ;;  %v881_v52 = vpop.f32.mrb[17].mxu1 }
 0x117   : > { %v1160_v19 = vadd.f32 %v1159_v11, %v1097_v9  ;;  %v754_v21 = vadd.f32 %v5871_v36, %v753_v16  ;;  %v1025_v22 = vadd.f32 %v1024_v10, %v749_v58  ;;  %v5599_v23 = vpop.f32.mrb[18].mxu0  ;;  %v6001_v59 = vadd.f32 %v5871_v36, %v881_v52  ;;  %v5631_v61 = vpop.f32.mrb[18].mxu1 }
 0x118   : > { %964 = vst [vmem:[%s5875_s11 + $0x90] sm:$0xff] %v762_v15  ;;  %v765_v27 = vadd.f32 %v5599_v23, %v5871_v36  ;;  %v756_v28 = vpop.f32.mrb[19].mxu0  ;;  %v1101_v42 = vmul.f32 %v762_v15, %v762_v15  ;;  %996 = vst [vmem:[%s5875_s11 + $0x190] sm:$0xff] %v5997_v51  ;;  %v6008_v1 = vadd.f32 %v5631_v61, %v5871_v36  ;;  %v884_v3 = vpop.f32.mrb[19].mxu1 }
 0x119   : > { %962 = vst [vmem:[%s5875_s11 + $0x80] sm:$0xff] %v754_v21  ;;  %v1026_v32 = vadd.f32 %v1025_v22, %v754_v21  ;;  %v1099_v33 = vmul.f32 %v754_v21, %v754_v21  ;;  %v1161_v34 = vadd.f32 %v1160_v19, %v1098_v14  ;;  %v757_v35 = vadd.f32 %v5871_v36, %v756_v28 }
 0x11a   : > { %965 = vst [vmem:[%s5875_s11 + $0x98] sm:$0xff] %v765_v27  ;;  %v1102_v47 = vmul.f32 %v765_v27, %v765_v27  ;;  %994 = vst [vmem:[%s5875_s11 + $0x180] sm:$0xff] %v6001_v59  ;;  %v6018_v10 = vadd.f32 %v5871_v36, %v884_v3 }
 0x11b   : > { %v1162_v39 = vadd.f32 %v1161_v34, %v1099_v33  ;;  %963 = vst [vmem:[%s5875_s11 + $0x88] sm:$0xff] %v757_v35  ;;  %v1027_v40 = vadd.f32 %v1026_v32, %v757_v35  ;;  %v1100_v41 = vmul.f32 %v757_v35, %v757_v35  ;;  %997 = vst [vmem:[%s5875_s11 + $0x198] sm:$0xff] %v6008_v1 }
 0x11c   : > { %995 = vst [vmem:[%s5875_s11 + $0x188] sm:$0xff] %v6018_v10 }
 0x11d   : > { %v1028_v43 = vadd.f32 %v1027_v40, %v762_v15  ;;  %v1163_v44 = vadd.f32 %v1162_v39, %v1100_v41  ;;  %v5602_v45 = vpop.f32.mrb[20].mxu0  ;;  %v5634_v19 = vpop.f32.mrb[20].mxu1 }
 0x11e   : > { %v778_v48 = vadd.f32 %v5602_v45, %v5871_v36  ;;  %v769_v50 = vpop.f32.mrb[21].mxu0  ;;  %v6025_v25 = vadd.f32 %v5634_v19, %v5871_v36 }
 0x11f   : > { %v1164_v53 = vadd.f32 %v1163_v44, %v1101_v42  ;;  %v770_v54 = vadd.f32 %v5871_v36, %v769_v50  ;;  %v1029_v57 = vadd.f32 %v1028_v43, %v765_v27  ;;  %v5603_v58 = vpop.f32.mrb[22].mxu0  ;;  %v897_v27 = vpop.f32.mrb[21].mxu1 }
 0x120   : > { %968 = vst [vmem:[%s5875_s11 + $0xb0] sm:$0xff] %v778_v48  ;;  %v781_v63 = vadd.f32 %v5603_v58, %v5871_v36  ;;  %v772_v0 = vpop.f32.mrb[23].mxu0  ;;  %v1105_v14 = vmul.f32 %v778_v48, %v778_v48  ;;  %v6029_v34 = vadd.f32 %v5871_v36, %v897_v27  ;;  %v5635_v35 = vpop.f32.mrb[22].mxu1  ;;  %1000 = vst [vmem:[%s5875_s11 + $0x1b0] sm:$0xff] %v6025_v25 }
 0x121   : > { %966 = vst [vmem:[%s5875_s11 + $0xa0] sm:$0xff] %v770_v54  ;;  %v1030_v5 = vadd.f32 %v1029_v57, %v770_v54  ;;  %v1103_v6 = vmul.f32 %v770_v54, %v770_v54  ;;  %v1165_v7 = vadd.f32 %v1164_v53, %v1102_v47  ;;  %v773_v9 = vadd.f32 %v5871_v36, %v772_v0  ;;  %v900_v42 = vpop.f32.mrb[23].mxu1 }
 0x122   : > { %969 = vst [vmem:[%s5875_s11 + $0xb8] sm:$0xff] %v781_v63  ;;  %v1106_v21 = vmul.f32 %v781_v63, %v781_v63  ;;  %v6036_v41 = vadd.f32 %v5635_v35, %v5871_v36  ;;  %998 = vst [vmem:[%s5875_s11 + $0x1a0] sm:$0xff] %v6029_v34  ;;  %v6046_v47 = vadd.f32 %v5871_v36, %v900_v42 }
 0x123   : > { %v1166_v11 = vadd.f32 %v1165_v7, %v1103_v6  ;;  %967 = vst [vmem:[%s5875_s11 + $0xa8] sm:$0xff] %v773_v9  ;;  %v1031_v12 = vadd.f32 %v1030_v5, %v773_v9  ;;  %v1104_v13 = vmul.f32 %v773_v9, %v773_v9 }
 0x124   : > { %1001 = vst [vmem:[%s5875_s11 + $0x1b8] sm:$0xff] %v6036_v41  ;;  %999 = vst [vmem:[%s5875_s11 + $0x1a8] sm:$0xff] %v6046_v47 }
 0x125   : > { %v1032_v15 = vadd.f32 %v1031_v12, %v778_v48  ;;  %v1167_v16 = vadd.f32 %v1166_v11, %v1104_v13  ;;  %v5606_v18 = vpop.f32.mrb[24].mxu0  ;;  %v5638_v61 = vpop.f32.mrb[24].mxu1 }
 0x126   : > { %v794_v22 = vadd.f32 %v5606_v18, %v5871_v36  ;;  %v785_v23 = vpop.f32.mrb[25].mxu0  ;;  %v6053_v5 = vadd.f32 %v5638_v61, %v5871_v36  ;;  %v913_v6 = vpop.f32.mrb[25].mxu1 }
 0x127   : > { %v1168_v28 = vadd.f32 %v1167_v16, %v1105_v14  ;;  %v786_v31 = vadd.f32 %v5871_v36, %v785_v23  ;;  %v1033_v32 = vadd.f32 %v1032_v15, %v781_v63  ;;  %v5607_v33 = vpop.f32.mrb[26].mxu0  ;;  %v6057_v13 = vadd.f32 %v5871_v36, %v913_v6  ;;  %v5639_v14 = vpop.f32.mrb[26].mxu1 }
 0x128   : > { %972 = vst [vmem:[%s5875_s11 + $0xd0] sm:$0xff] %v794_v22  ;;  %v797_v39 = vadd.f32 %v5607_v33, %v5871_v36  ;;  %v788_v40 = vpop.f32.mrb[27].mxu0  ;;  %v1109_v53 = vmul.f32 %v794_v22, %v794_v22  ;;  %1004 = vst [vmem:[%s5875_s11 + $0x1d0] sm:$0xff] %v6053_v5  ;;  %v6064_v18 = vadd.f32 %v5639_v14, %v5871_v36  ;;  %v916_v19 = vpop.f32.mrb[27].mxu1 }
 0x129   : > { %970 = vst [vmem:[%s5875_s11 + $0xc0] sm:$0xff] %v786_v31  ;;  %v1034_v43 = vadd.f32 %v1033_v32, %v786_v31  ;;  %v1107_v44 = vmul.f32 %v786_v31, %v786_v31  ;;  %v1169_v45 = vadd.f32 %v1168_v28, %v1106_v21  ;;  %v789_v46 = vadd.f32 %v5871_v36, %v788_v40 }
 0x12a   : > { %973 = vst [vmem:[%s5875_s11 + $0xd8] sm:$0xff] %v797_v39  ;;  %v1110_v63 = vmul.f32 %v797_v39, %v797_v39  ;;  %1002 = vst [vmem:[%s5875_s11 + $0x1c0] sm:$0xff] %v6057_v13  ;;  %v6074_v28 = vadd.f32 %v5871_v36, %v916_v19  ;;  %v1116_v6 = vmul.f32 %v5906_v8, %v5906_v8 }
 0x12b   : > { %v1170_v48 = vadd.f32 %v1169_v45, %v1107_v44  ;;  %971 = vst [vmem:[%s5875_s11 + $0xc8] sm:$0xff] %v789_v46  ;;  %v1035_v50 = vadd.f32 %v1034_v43, %v789_v46  ;;  %v1108_v52 = vmul.f32 %v789_v46, %v789_v46  ;;  %1005 = vst [vmem:[%s5875_s11 + $0x1d8] sm:$0xff] %v6064_v18 }
 0x12c   : > { %1003 = vst [vmem:[%s5875_s11 + $0x1c8] sm:$0xff] %v6074_v28  ;;  %v1115_v43 = vmul.f32 %v5889_v62, %v5889_v62  ;;  %v1119_v14 = vmul.f32 %v5917_v26, %v5917_v26 }
 0x12d   : > { %v1036_v54 = vadd.f32 %v1035_v50, %v794_v22  ;;  %v1171_v57 = vadd.f32 %v1170_v48, %v1108_v52  ;;  %v5610_v58 = vpop.f32.mrb[28].mxu0  ;;  %v5642_v42 = vpop.f32.mrb[28].mxu1 }
 0x12e   : > { %v810_v0 = vadd.f32 %v5610_v58, %v5871_v36  ;;  %v801_v3 = vpop.f32.mrb[29].mxu0  ;;  %v6082_v44 = vadd.f32 %v5642_v42, %v5871_v36  ;;  %v929_v45 = vpop.f32.mrb[29].mxu1 }
 0x12f   : > { %v1172_v7 = vadd.f32 %v1171_v57, %v1109_v53  ;;  %v802_v9 = vadd.f32 %v5871_v36, %v801_v3  ;;  %v1037_v11 = vadd.f32 %v1036_v54, %v797_v39  ;;  %v5611_v12 = vpop.f32.mrb[30].mxu0  ;;  %v6085_v52 = vadd.f32 %v5871_v36, %v929_v45  ;;  %v5643_v53 = vpop.f32.mrb[30].mxu1 }
 0x130   : > { %976 = vst [vmem:[%s5875_s11 + $0xf0] sm:$0xff] %v810_v0  ;;  %v813_v15 = vadd.f32 %v5611_v12, %v5871_v36  ;;  %v804_v16 = vpop.f32.mrb[31].mxu0  ;;  %v1113_v35 = vmul.f32 %v810_v0, %v810_v0  ;;  %1008 = vst [vmem:[%s5875_s11 + $0x1f0] sm:$0xff] %v6082_v44  ;;  %v6090_v54 = vadd.f32 %v5643_v53, %v5871_v36  ;;  %v932_v57 = vpop.f32.mrb[31].mxu1 }
 0x131   : > { %974 = vst [vmem:[%s5875_s11 + $0xe0] sm:$0xff] %v802_v9  ;;  %v1038_v21 = vadd.f32 %v1037_v11, %v802_v9  ;;  %v1111_v22 = vmul.f32 %v802_v9, %v802_v9  ;;  %v1173_v23 = vadd.f32 %v1172_v7, %v1110_v63  ;;  %v805_v27 = vadd.f32 %v5871_v36, %v804_v16 }
 0x132   : > { %977 = vst [vmem:[%s5875_s11 + $0xf8] sm:$0xff] %v813_v15  ;;  %v1114_v46 = vmul.f32 %v813_v15, %v813_v15  ;;  %1006 = vst [vmem:[%s5875_s11 + $0x1e0] sm:$0xff] %v6085_v52  ;;  %v6096_v63 = vadd.f32 %v5871_v36, %v932_v57  ;;  %v1117_v7 = vmul.f32 %v5885_v56, %v5885_v56 }
 0x133   : > { %v1174_v31 = vadd.f32 %v1173_v23, %v1111_v22  ;;  %975 = vst [vmem:[%s5875_s11 + $0xe8] sm:$0xff] %v805_v27  ;;  %v1039_v32 = vadd.f32 %v1038_v21, %v805_v27  ;;  %v1112_v33 = vmul.f32 %v805_v27, %v805_v27  ;;  %1009 = vst [vmem:[%s5875_s11 + $0x1f8] sm:$0xff] %v6090_v54 }
 0x134   : > { %1007 = vst [vmem:[%s5875_s11 + $0x1e8] sm:$0xff] %v6096_v63  ;;  %v1118_v36 = vmul.f32 %v5896_v2, %v5896_v2  ;;  %v1120_v21 = vmul.f32 %v5934_v37, %v5934_v37  ;;  %v1128_v53 = vmul.f32 %v5990_v38, %v5990_v38 }
 0x135   : > { %v1040_v39 = vadd.f32 %v1039_v32, %v810_v0  ;;  %v1175_v40 = vadd.f32 %v1174_v31, %v1112_v33 }
 0x137   : > { %v1176_v48 = vadd.f32 %v1175_v40, %v1113_v35  ;;  %v1041_v50 = vadd.f32 %v1040_v39, %v813_v15  ;;  %v1124_v39 = vmul.f32 %v5962_v4, %v5962_v4 }
 0x139   : > { %v1042_v58 = vadd.f32 %v1041_v50, %v5889_v62  ;;  %v1177_v61 = vadd.f32 %v1176_v48, %v1114_v46 }
 0x13b   : > { %v1178_v0 = vadd.f32 %v1177_v61, %v1115_v43  ;;  %v1043_v3 = vadd.f32 %v1042_v58, %v5906_v8 }
 0x13d   : > { %v1044_v62 = vadd.f32 %v1043_v3, %v5885_v56  ;;  %v1179_v9 = vadd.f32 %v1178_v0, %v1116_v6  ;;  %v1121_v56 = vmul.f32 %v5913_v20, %v5913_v20 }
 0x13f   : > { %v1180_v11 = vadd.f32 %v1179_v9, %v1117_v7  ;;  %v1045_v12 = vadd.f32 %v1044_v62, %v5896_v2  ;;  %v1122_v2 = vmul.f32 %v5924_v30, %v5924_v30  ;;  %v1132_v62 = vmul.f32 %v6018_v10, %v6018_v10 }
 0x141   : > { %v1046_v15 = vadd.f32 %v1045_v12, %v5917_v26  ;;  %v1181_v8 = vadd.f32 %v1180_v11, %v1118_v36  ;;  %v1123_v26 = vmul.f32 %v5945_v55, %v5945_v55 }
 0x143   : > { %v1182_v16 = vadd.f32 %v1181_v8, %v1119_v14  ;;  %v1047_v19 = vadd.f32 %v1046_v15, %v5934_v37 }
 0x145   : > { %v1048_v22 = vadd.f32 %v1047_v19, %v5913_v20  ;;  %v1183_v23 = vadd.f32 %v1182_v16, %v1120_v21  ;;  %v1125_v20 = vmul.f32 %v5941_v49, %v5941_v49  ;;  %v1136_v16 = vmul.f32 %v6046_v47, %v6046_v47 }
 0x147   : > { %v1184_v27 = vadd.f32 %v1183_v23, %v1121_v56  ;;  %v1049_v31 = vadd.f32 %v1048_v22, %v5924_v30  ;;  %v1126_v30 = vmul.f32 %v5952_v60, %v5952_v60 }
 0x149   : > { %v1050_v32 = vadd.f32 %v1049_v31, %v5945_v55  ;;  %v1185_v33 = vadd.f32 %v1184_v27, %v1122_v2  ;;  %v1127_v55 = vmul.f32 %v5973_v24, %v5973_v24  ;;  %v1140_v31 = vmul.f32 %v6074_v28, %v6074_v28 }
 0x14b   : > { %v1186_v35 = vadd.f32 %v1185_v33, %v1123_v26  ;;  %v1051_v37 = vadd.f32 %v1050_v32, %v5962_v4 }
 0x14d   : > { %v1052_v40 = vadd.f32 %v1051_v37, %v5941_v49  ;;  %v1187_v42 = vadd.f32 %v1186_v35, %v1124_v39  ;;  %v1129_v49 = vmul.f32 %v5969_v17, %v5969_v17 }
 0x14f   : > { %v1188_v43 = vadd.f32 %v1187_v42, %v1125_v20  ;;  %v1053_v45 = vadd.f32 %v1052_v40, %v5952_v60  ;;  %v1130_v60 = vmul.f32 %v5980_v29, %v5980_v29  ;;  %v1144_v40 = vmul.f32 %v6096_v63, %v6096_v63 }
 0x151   : > { %v1054_v46 = vadd.f32 %v1053_v45, %v5973_v24  ;;  %v1189_v48 = vadd.f32 %v1188_v43, %v1126_v30  ;;  %v1131_v24 = vmul.f32 %v6001_v59, %v6001_v59 }
 0x153   : > { %v1190_v50 = vadd.f32 %v1189_v48, %v1127_v55  ;;  %v1055_v4 = vadd.f32 %v1054_v46, %v5990_v38 }
 0x155   : > { %v1056_v57 = vadd.f32 %v1055_v4, %v5969_v17  ;;  %v1191_v58 = vadd.f32 %v1190_v50, %v1128_v53  ;;  %v1133_v17 = vmul.f32 %v5997_v51, %v5997_v51 }
 0x157   : > { %v1192_v61 = vadd.f32 %v1191_v58, %v1129_v49  ;;  %v1057_v0 = vadd.f32 %v1056_v57, %v5980_v29  ;;  %v1134_v29 = vmul.f32 %v6008_v1, %v6008_v1  ;;  %v1010_v58 = vld [vmem:[#allocation3] sm:$0x1] }
 0x159   : > { %v1058_v3 = vadd.f32 %v1057_v0, %v6001_v59  ;;  %v1193_v6 = vadd.f32 %v1192_v61, %v1130_v60  ;;  %v1135_v59 = vmul.f32 %v6029_v34, %v6029_v34  ;;  %v1082_v61 = vld [vmem:[#allocation4] sm:$0x1] }
 0x15b   : > { %v1194_v7 = vadd.f32 %v1193_v6, %v1131_v24  ;;  %v1059_v38 = vadd.f32 %v1058_v3, %v6018_v10 }
 0x15d   : > { %v1060_v9 = vadd.f32 %v1059_v38, %v5997_v51  ;;  %v1195_v36 = vadd.f32 %v1194_v7, %v1132_v62  ;;  %v1137_v51 = vmul.f32 %v6025_v25, %v6025_v25 }
 0x15f   : > { %v1196_v11 = vadd.f32 %v1195_v36, %v1133_v17  ;;  %v1061_v12 = vadd.f32 %v1060_v9, %v6008_v1  ;;  %v1138_v1 = vmul.f32 %v6036_v41, %v6036_v41 }
 0x161   : > { %v1062_v14 = vadd.f32 %v1061_v12, %v6029_v34  ;;  %v1197_v15 = vadd.f32 %v1196_v11, %v1134_v29  ;;  %v1139_v34 = vmul.f32 %v6057_v13, %v6057_v13  ;;  %v1493_v29 = vlaneseq (!%p4256_p6)  ;;  %v1229_v12 = vld [vmem:[%s7114_s3] sm:$0x1] (!%p4256_p6) }
 0x163   : > { %v1198_v8 = vadd.f32 %v1197_v15, %v1135_v59  ;;  %v1063_v10 = vadd.f32 %v1062_v14, %v6046_v47  ;;  %v1494_v11 = vshrl.u32 (!%p4256_p6), %v1493_v29, 7 }
 0x165   : > { %v1064_v19 = vadd.f32 %v1063_v10, %v6025_v25  ;;  %v1199_v21 = vadd.f32 %v1198_v8, %v1136_v16  ;;  %v1141_v25 = vmul.f32 %v6053_v5, %v6053_v5  ;;  %v1495_v59 = vsub.s32 (!%p4256_p6), 0, %v1494_v11  ;;  %v1233_v8 = vld [vmem:[%s7115_s4] sm:$0x1] (!%p4256_p6)  ;;  %v1237_v16 = vld [vmem:[#allocation2 + $0x8] sm:$0xff] (!%p4256_p6) }
 0x166   : > { %v1236_v10 = vld [vmem:[#allocation2] sm:$0xff] (!%p4256_p6) }
 0x167   : > { %v1200_v56 = vadd.f32 %v1199_v21, %v1137_v51  ;;  %v1065_v22 = vadd.f32 %v1064_v19, %v6036_v41  ;;  %v1142_v41 = vmul.f32 %v6064_v18, %v6064_v18  ;;  %v1238_v51 = vld [vmem:[#allocation2 + $0x10] sm:$0xff] (!%p4256_p6)  ;;  %v1239_v19 = vld [vmem:[#allocation2 + $0x18] sm:$0xff] (!%p4256_p6)  ;;  %v1240_v21 = vld [vmem:[#allocation2 + $0x20] sm:$0xff] (!%p4256_p6) }
 0x169   : > { %v1066_v23 = vadd.f32 %v1065_v22, %v6057_v13  ;;  %v1201_v2 = vadd.f32 %v1200_v56, %v1138_v1  ;;  %v1143_v13 = vmul.f32 %v6085_v52, %v6085_v52  ;;  %v1241_v22 = vld [vmem:[#allocation2 + $0x28] sm:$0xff] (!%p4256_p6) }
 0x16b   : > { %v1202_v27 = vadd.f32 %v1201_v2, %v1139_v34  ;;  %v1067_v47 = vadd.f32 %v1066_v23, %v6074_v28  ;;  %v1242_v34 = vld [vmem:[#allocation2 + $0x30] sm:$0xff] (!%p4256_p6)  ;;  %v1243_v23 = vld [vmem:[#allocation2 + $0x38] sm:$0xff] (!%p4256_p6)  ;;  %v1244_v2 = vld [vmem:[#allocation2 + $0x40] sm:$0xff] (!%p4256_p6) }
 0x16d   : > { %v1068_v26 = vadd.f32 %v1067_v47, %v6053_v5  ;;  %v1203_v32 = vadd.f32 %v1202_v27, %v1140_v31  ;;  %v1145_v5 = vmul.f32 %v6082_v44, %v6082_v44  ;;  %v1245_v27 = vld [vmem:[#allocation2 + $0x48] sm:$0xff] (!%p4256_p6)  ;;  %v1246_v47 = vld [vmem:[#allocation2 + $0x50] sm:$0xff] (!%p4256_p6) }
 0x16f   : > { %v1204_v33 = vadd.f32 %v1203_v32, %v1141_v25  ;;  %v1069_v35 = vadd.f32 %v1068_v26, %v6064_v18  ;;  %v1146_v18 = vmul.f32 %v6090_v54, %v6090_v54 }
 0x171   : > { %v1070_v37 = vadd.f32 %v1069_v35, %v6085_v52  ;;  %v1205_v39 = vadd.f32 %v1204_v33, %v1142_v41  ;;  %v1247_v41 = vld [vmem:[#allocation2 + $0x58] sm:$0xff] (!%p4256_p6)  ;;  %v1248_v33 = vld [vmem:[#allocation2 + $0x60] sm:$0xff] (!%p4256_p6)  ;;  %v1249_v35 = vld [vmem:[#allocation2 + $0x68] sm:$0xff] (!%p4256_p6) }
 0x173   : > { %v1206_v20 = vadd.f32 %v1205_v39, %v1143_v13  ;;  %v1071_v28 = vadd.f32 %v1070_v37, %v6096_v63 }
 0x175   : > { %v1072_v42 = vadd.f32 %v1071_v28, %v6082_v44  ;;  %v1207_v30 = vadd.f32 %v1206_v20, %v1144_v40 }
 0x177   : > { %v1073_v43 = vadd.f32 %v1072_v42, %v6090_v54  ;;  %v1208_v45 = vadd.f32 %v1207_v30, %v1145_v5 }
 0x179   : > { %v1074_v52 = vrot.slane %v1073_v43, 4  ;;  %v1209_v55 = vadd.f32 %v1208_v45, %v1146_v18 }
 0x17b   : > { %v1075_v46 = vadd.f32 %v1074_v52, %v1073_v43  ;;  %v1210_v48 = vrot.slane %v1209_v55, 4 }
 0x17d   : > { %v1076_v50 = vrot.slane %v1075_v46, 2  ;;  %v1211_v4 = vadd.f32 %v1210_v48, %v1209_v55 }
 0x17f   : > { %v1077_v53 = vadd.f32 %v1076_v50, %v1075_v46  ;;  %v1212_v63 = vrot.slane %v1211_v4, 2 }
 0x181   : > { %v1078_v49 = vrot.slane %v1077_v53, 1  ;;  %v1213_v57 = vadd.f32 %v1212_v63, %v1211_v4 }
 0x183   : > { %v1079_v60 = vadd.f32 %v1078_v49, %v1077_v53  ;;  %v1214_v44 = vrot.slane %v1213_v57, 1  ;;  %1221 = sbr.rel (%p4256_p6) target bundleno = 783 (0x30f), region = 48 }
 0x185   : > { %v1080_v0 = vadd.f32 %v1079_v60, %v1010_v58  ;;  %v1215_v24 = vadd.f32 %v1214_v44, %v1213_v57 }
 0x187   : > { %1081 = vst [vmem:[#allocation3] sm:$0x1] %v1080_v0  ;;  %v1216_v3 = vadd.f32 %v1215_v24, %v1082_v61 }
 0x189   : > { %1217 = vst [vmem:[#allocation4] sm:$0x1] %v1216_v3 }
 0x18e   : > { %v1222_v54 = vld [vmem:[#allocation3] sm:$0x1] }
 0x18f   : > { %v1223_v7 = vmul.f32 0.00048828125, %v1222_v54 }
 0x190   : > { %v1224_v6 = vld [vmem:[#allocation4] sm:$0x1] }
 0x191   : > { %v1225_v38 = vmul.f32 0.00048828125, %v1224_v6  ;;  %v1226_v62 = vmul.f32 %v1223_v7, %v1223_v7 }
 0x193   : > { %v1227_v17 = vsub.f32 %v1225_v38, %v1226_v62 }
 0x195   : > { %v1228_v9 = vmax.f32 %v1227_v17, 0.0 }
 0x197   : > { %v1230_v36 = vadd.f32 1e-05, %v1228_v9 }
 0x199   : > { %5710 = vrsqrt.f32 %v1230_v36 }
 0x1a3   : > { %v5711_v14 = vpop.eup %5710 }
 0x1a4   : > { %v1232_v15 = vmul.f32 %v5711_v14, %v1229_v12 }
 0x1a6   : > { %v1234_v1 = vmul.f32 %v1232_v15, %v1223_v7  ;;  %v6202_v56 = vrot.slane %v1232_v15, %v1495_v59 }
 0x1a8   : > { %v1235_v31 = vsub.f32 %v1233_v8, %v1234_v1  ;;  %v1498_v25 = vmul.f32 %v6202_v56, %v1236_v10  ;;  %v1499_v26 = vmul.f32 %v6202_v56, %v1237_v16  ;;  %v1500_v32 = vmul.f32 %v6202_v56, %v1238_v51  ;;  %v1250_v51 = vld [vmem:[#allocation2 + $0x70] sm:$0xff] }
 0x1a9   : > { %v1501_v13 = vmul.f32 %v6202_v56, %v1239_v19  ;;  %v1502_v37 = vmul.f32 %v6202_v56, %v1240_v21  ;;  %v1503_v39 = vmul.f32 %v6202_v56, %v1241_v22  ;;  %v1504_v20 = vmul.f32 %v6202_v56, %v1242_v34 }
 0x1aa   : > { %v6211_v28 = vrot.slane %v1235_v31, %v1495_v59  ;;  %v1505_v40 = vmul.f32 %v6202_v56, %v1243_v23  ;;  %v1506_v5 = vmul.f32 %v6202_v56, %v1244_v2  ;;  %v1507_v42 = vmul.f32 %v6202_v56, %v1245_v27  ;;  %v1251_v2 = vld [vmem:[#allocation2 + $0x78] sm:$0xff]  ;;  %v1252_v27 = vld [vmem:[#allocation2 + $0x80] sm:$0xff] }
 0x1ab   : > { %v1508_v30 = vmul.f32 %v6202_v56, %v1246_v47  ;;  %v1509_v18 = vmul.f32 %v6202_v56, %v1247_v41  ;;  %v1510_v43 = vmul.f32 %v6202_v56, %v1248_v33  ;;  %v1511_v45 = vmul.f32 %v6202_v56, %v1249_v35  ;;  %v1254_v41 = vld [vmem:[#allocation2 + $0x90] sm:$0xff]  ;;  %v1255_v33 = vld [vmem:[#allocation2 + $0x98] sm:$0xff] }
 0x1ac   : > { %v1760_v52 = vadd.f32 %v6211_v28, %v1498_v25  ;;  %v1761_v55 = vadd.f32 %v6211_v28, %v1499_v26  ;;  %v1762_v46 = vadd.f32 %v6211_v28, %v1500_v32  ;;  %v1763_v48 = vadd.f32 %v6211_v28, %v1501_v13  ;;  %v1253_v32 = vld [vmem:[#allocation2 + $0x88] sm:$0xff] }
 0x1ad   : > { %v1764_v50 = vadd.f32 %v6211_v28, %v1502_v37  ;;  %v1765_v4 = vadd.f32 %v6211_v28, %v1503_v39  ;;  %v1766_v53 = vadd.f32 %v6211_v28, %v1504_v20  ;;  %v1767_v63 = vadd.f32 %v6211_v28, %v1505_v40 }
 0x1ae   : > { %vm2016_vm1 = vcmp.ge.f32.partialorder %v1760_v52, 0.0  ;;  %vm2017_vm2 = vcmp.ge.f32.partialorder %v1761_v55, 0.0  ;;  %v2272_v49 = vmul.f32 0.2, %v1760_v52  ;;  %v2273_v57 = vmul.f32 0.2, %v1761_v55 }
 0x1af   : > { %vm2018_vm3 = vcmp.ge.f32.partialorder %v1762_v46, 0.0  ;;  %vm2019_vm4 = vcmp.ge.f32.partialorder %v1763_v48, 0.0  ;;  %v2274_v58 = vmul.f32 0.2, %v1762_v46  ;;  %v2275_v60 = vmul.f32 0.2, %v1763_v48 }
 0x1b0   : > { %v2528_v44 = vsel %vm2016_vm1, %v1760_v52, %v2272_v49  ;;  %v2529_v61 = vsel %vm2017_vm2, %v1761_v55, %v2273_v57  ;;  %vm2020_vm5 = vcmp.ge.f32.partialorder %v1764_v50, 0.0  ;;  %vm2021_vm6 = vcmp.ge.f32.partialorder %v1765_v4, 0.0  ;;  %v1256_v49 = vld [vmem:[#allocation2 + $0xa0] sm:$0xff]  ;;  %v1257_v57 = vld [vmem:[#allocation2 + $0xa8] sm:$0xff] }
 0x1b1   : > { %v4775_v0 = vpack.c.bf16 %v2529_v61, %v2528_v44  ;;  %v2530_v24 = vsel %vm2018_vm3, %v1762_v46, %v2274_v58  ;;  %v2531_v3 = vsel %vm2019_vm4, %v1763_v48, %v2275_v60  ;;  %v2276_v54 = vmul.f32 0.2, %v1764_v50  ;;  %v1258_v58 = vld [vmem:[#allocation2 + $0xb0] sm:$0xff] }
 0x1b2   : > { %v4780_v6 = vpack.c.bf16 %v2531_v3, %v2530_v24  ;;  %v2277_v7 = vmul.f32 0.2, %v1765_v4  ;;  %vm2022_vm7 = vcmp.ge.f32.partialorder %v1766_v53, 0.0  ;;  %vm2023_vm8 = vcmp.ge.f32.partialorder %v1767_v63, 0.0  ;;  %v1259_v24 = vld [vmem:[#allocation2 + $0xb8] sm:$0xff]  ;;  %v1260_v3 = vld [vmem:[#allocation2 + $0xc0] sm:$0xff] }
 0x1b3   : > { %4776 = vst [vmem:[%s7116_s5] sm:$0xff] %v4775_v0   ;;  %v2532_v38 = vsel %vm2020_vm5, %v1764_v50, %v2276_v54  ;;  %v2278_v62 = vmul.f32 0.2, %v1766_v53  ;;  %v2279_v17 = vmul.f32 0.2, %v1767_v63  ;;  %v1768_v9 = vadd.f32 %v6211_v28, %v1506_v5 }
 0x1b4   : > { %5412 = vst [vmem:[%s7116_s5 + $0x8] sm:$0xff] %v4780_v6   ;;  %v2533_v36 = vsel %vm2021_vm6, %v1765_v4, %v2277_v7  ;;  %v1769_v29 = vadd.f32 %v6211_v28, %v1507_v42  ;;  %v1770_v11 = vadd.f32 %v6211_v28, %v1508_v30  ;;  %v1771_v12 = vadd.f32 %v6211_v28, %v1509_v18 }
 0x1b5   : > { %v4785_v59 = vpack.c.bf16 %v2533_v36, %v2532_v38  ;;  %v2534_v14 = vsel %vm2022_vm7, %v1766_v53, %v2278_v62  ;;  %v2535_v15 = vsel %vm2023_vm8, %v1767_v63, %v2279_v17  ;;  %vm2024_vm9 = vcmp.ge.f32.partialorder %v1768_v9, 0.0  ;;  %v1261_v62 = vld [vmem:[#allocation2 + $0xc8] sm:$0xff] }
 0x1b6   : > { %v4790_v8 = vpack.c.bf16 %v2535_v15, %v2534_v14  ;;  %vm2025_vm10 = vcmp.ge.f32.partialorder %v1769_v29, 0.0  ;;  %v2280_v10 = vmul.f32 0.2, %v1768_v9  ;;  %v2281_v16 = vmul.f32 0.2, %v1769_v29 }
 0x1b7   : > { %5413 = vst [vmem:[%s7116_s5 + $0x10] sm:$0xff] %v4785_v59   ;;  %vm2026_vm11 = vcmp.ge.f32.partialorder %v1770_v11, 0.0  ;;  %vm2027_vm12 = vcmp.ge.f32.partialorder %v1771_v12, 0.0  ;;  %v2282_v19 = vmul.f32 0.2, %v1770_v11  ;;  %v1772_v34 = vadd.f32 %v6211_v28, %v1510_v43 }
 0x1b8   : > { %v2283_v21 = vmul.f32 0.2, %v1771_v12  ;;  %5414 = vst [vmem:[%s7116_s5 + $0x18] sm:$0xff] %v4790_v8   ;;  %v2536_v1 = vsel %vm2024_vm9, %v1768_v9, %v2280_v10  ;;  %v2537_v22 = vsel %vm2025_vm10, %v1769_v29, %v2281_v16  ;;  %v1773_v23 = vadd.f32 %v6211_v28, %v1511_v45 }
 0x1b9   : > { %v4795_v47 = vpack.c.bf16 %v2537_v22, %v2536_v1  ;;  %v2538_v31 = vsel %vm2026_vm11, %v1770_v11, %v2282_v19  ;;  %v1512_v26 = vmul.f32 %v6202_v56, %v1250_v51  ;;  %vm2028_vm13 = vcmp.ge.f32.partialorder %v1772_v34, 0.0  ;;  %v1262_v11 = vld [vmem:[#allocation2 + $0xd0] sm:$0xff]  ;;  %v1263_v22 = vld [vmem:[#allocation2 + $0xd8] sm:$0xff] }
 0x1ba   : > { %v2539_v25 = vsel %vm2027_vm12, %v1771_v12, %v2283_v21  ;;  %vm2029_vm14 = vcmp.ge.f32.partialorder %v1773_v23, 0.0  ;;  %v2284_v13 = vmul.f32 0.2, %v1772_v34  ;;  %v2285_v37 = vmul.f32 0.2, %v1773_v23 }
 0x1bb   : > { %v4800_v35 = vpack.c.bf16 %v2539_v25, %v2538_v31  ;;  %5415 = vst [vmem:[%s7116_s5 + $0x20] sm:$0xff] %v4795_v47   ;;  %v1513_v39 = vmul.f32 %v6202_v56, %v1251_v2  ;;  %v1774_v20 = vadd.f32 %v6211_v28, %v1512_v26  ;;  %v1514_v40 = vmul.f32 %v6202_v56, %v1252_v27 }
 0x1bc   : > { %v2540_v5 = vsel %vm2028_vm13, %v1772_v34, %v2284_v13  ;;  %v1515_v42 = vmul.f32 %v6202_v56, %v1253_v32  ;;  %v1516_v30 = vmul.f32 %v6202_v56, %v1254_v41  ;;  %v1517_v18 = vmul.f32 %v6202_v56, %v1255_v33  ;;  %v1264_v32 = vld [vmem:[#allocation2 + $0xe0] sm:$0xff]  ;;  %v1265_v41 = vld [vmem:[#allocation2 + $0xe8] sm:$0xff] }
 0x1bd   : > { %5416 = vst [vmem:[%s7116_s5 + $0x28] sm:$0xff] %v4800_v35   ;;  %v2541_v43 = vsel %vm2029_vm14, %v1773_v23, %v2285_v37  ;;  %v1775_v45 = vadd.f32 %v6211_v28, %v1513_v39  ;;  %vm2030_vm15 = vcmp.ge.f32.partialorder %v1774_v20, 0.0  ;;  %v2286_v52 = vmul.f32 0.2, %v1774_v20  ;;  %v1266_v39 = vld [vmem:[#allocation2 + $0xf0] sm:$0xff] }
 0x1be   : > { %v4805_v55 = vpack.c.bf16 %v2541_v43, %v2540_v5  ;;  %v1776_v46 = vadd.f32 %v6211_v28, %v1514_v40  ;;  %v1777_v48 = vadd.f32 %v6211_v28, %v1515_v42  ;;  %v1778_v50 = vadd.f32 %v6211_v28, %v1516_v30 }
 0x1bf   : > { %vm2031_vm0 = vcmp.ge.f32.partialorder %v1775_v45, 0.0  ;;  %v2287_v4 = vmul.f32 0.2, %v1775_v45  ;;  %v2542_v53 = vsel %vm2030_vm15, %v1774_v20, %v2286_v52  ;;  %v1779_v63 = vadd.f32 %v6211_v28, %v1517_v18  ;;  %v1267_v20 = vld [vmem:[#allocation2 + $0xf8] sm:$0xff] }
 0x1c0   : > { %5417 = vst [vmem:[%s7116_s5 + $0x30] sm:$0xff] %v4805_v55   ;;  %vm2032_vm1 = vcmp.ge.f32.partialorder %v1776_v46, 0.0  ;;  %vm2033_vm2 = vcmp.ge.f32.partialorder %v1777_v48, 0.0  ;;  %v2288_v60 = vmul.f32 0.2, %v1776_v46  ;;  %vm2034_vm3 = vcmp.ge.f32.partialorder %v1778_v50, 0.0 }
 0x1c1   : > { %v2289_v44 = vmul.f32 0.2, %v1777_v48  ;;  %v2543_v61 = vsel %vm2031_vm0, %v1775_v45, %v2287_v4  ;;  %vm2035_vm4 = vcmp.ge.f32.partialorder %v1779_v63, 0.0  ;;  %v2290_v0 = vmul.f32 0.2, %v1778_v50 }
 0x1c2   : > { %v4810_v54 = vpack.c.bf16 %v2543_v61, %v2542_v53  ;;  %v2544_v6 = vsel %vm2032_vm1, %v1776_v46, %v2288_v60  ;;  %v2291_v38 = vmul.f32 0.2, %v1779_v63  ;;  %v1518_v36 = vmul.f32 %v6202_v56, %v1256_v49  ;;  %v1268_v61 = vld [vmem:[#allocation2 + $0x100] sm:$0xff] }
 0x1c3   : > { %v2545_v7 = vsel %vm2033_vm2, %v1777_v48, %v2289_v44  ;;  %v2546_v9 = vsel %vm2034_vm3, %v1778_v50, %v2290_v0  ;;  %v1519_v29 = vmul.f32 %v6202_v56, %v1257_v57  ;;  %v1520_v59 = vmul.f32 %v6202_v56, %v1258_v58  ;;  %v1269_v0 = vld [vmem:[#allocation2 + $0x108] sm:$0xff] }
 0x1c4   : > { %v4815_v17 = vpack.c.bf16 %v2545_v7, %v2544_v6  ;;  %5418 = vst [vmem:[%s7116_s5 + $0x38] sm:$0xff] %v4810_v54   ;;  %v2547_v12 = vsel %vm2035_vm4, %v1779_v63, %v2291_v38  ;;  %v1521_v14 = vmul.f32 %v6202_v56, %v1259_v24  ;;  %v1522_v15 = vmul.f32 %v6202_v56, %v1260_v3  ;;  %v1270_v54 = vld [vmem:[#allocation2 + $0x110] sm:$0xff]  ;;  %v1271_v6 = vld [vmem:[#allocation2 + $0x118] sm:$0xff] }
 0x1c5   : > { %v4820_v8 = vpack.c.bf16 %v2547_v12, %v2546_v9  ;;  %v1780_v10 = vadd.f32 %v6211_v28, %v1518_v36  ;;  %v1781_v16 = vadd.f32 %v6211_v28, %v1519_v29  ;;  %v1523_v51 = vmul.f32 %v6202_v56, %v1261_v62  ;;  %v1273_v12 = vld [vmem:[#allocation2 + $0x128] sm:$0xff] }
 0x1c6   : > { %5419 = vst [vmem:[%s7116_s5 + $0x40] sm:$0xff] %v4815_v17   ;;  %v1782_v19 = vadd.f32 %v6211_v28, %v1520_v59  ;;  %v1783_v21 = vadd.f32 %v6211_v28, %v1521_v14  ;;  %v1784_v1 = vadd.f32 %v6211_v28, %v1522_v15  ;;  %v1524_v34 = vmul.f32 %v6202_v56, %v1262_v11  ;;  %v1272_v17 = vld [vmem:[#allocation2 + $0x120] sm:$0xff] }
 0x1c7   : > { %5420 = vst [vmem:[%s7116_s5 + $0x48] sm:$0xff] %v4820_v8   ;;  %vm2036_vm5 = vcmp.ge.f32.partialorder %v1780_v10, 0.0  ;;  %vm2037_vm6 = vcmp.ge.f32.partialorder %v1781_v16, 0.0  ;;  %v2292_v23 = vmul.f32 0.2, %v1780_v10  ;;  %v1785_v26 = vadd.f32 %v6211_v28, %v1523_v51 }
 0x1c8   : > { %v2293_v2 = vmul.f32 0.2, %v1781_v16  ;;  %vm2038_vm7 = vcmp.ge.f32.partialorder %v1782_v19, 0.0  ;;  %vm2039_vm8 = vcmp.ge.f32.partialorder %v1783_v21, 0.0  ;;  %v2294_v27 = vmul.f32 0.2, %v1782_v19 }
 0x1c9   : > { %v2295_v47 = vmul.f32 0.2, %v1783_v21  ;;  %v2548_v31 = vsel %vm2036_vm5, %v1780_v10, %v2292_v23  ;;  %vm2040_vm9 = vcmp.ge.f32.partialorder %v1784_v1, 0.0  ;;  %v2296_v37 = vmul.f32 0.2, %v1784_v1  ;;  %v1274_v23 = vld [vmem:[#allocation2 + $0x130] sm:$0xff] }
 0x1ca   : > { %v2549_v25 = vsel %vm2037_vm6, %v1781_v16, %v2293_v2  ;;  %v2550_v35 = vsel %vm2038_vm7, %v1782_v19, %v2294_v27  ;;  %vm2041_vm10 = vcmp.ge.f32.partialorder %v1785_v26, 0.0  ;;  %v2297_v5 = vmul.f32 0.2, %v1785_v26 }
 0x1cb   : > { %v4825_v33 = vpack.c.bf16 %v2549_v25, %v2548_v31  ;;  %v2551_v13 = vsel %vm2039_vm8, %v1783_v21, %v2295_v47  ;;  %v1525_v42 = vmul.f32 %v6202_v56, %v1263_v22  ;;  %v2552_v30 = vsel %vm2040_vm9, %v1784_v1, %v2296_v37 }
 0x1cc   : > { %v4830_v40 = vpack.c.bf16 %v2551_v13, %v2550_v35  ;;  %v1786_v18 = vadd.f32 %v6211_v28, %v1524_v34  ;;  %v1526_v43 = vmul.f32 %v6202_v56, %v1264_v32  ;;  %v1527_v45 = vmul.f32 %v6202_v56, %v1265_v41  ;;  %v1276_v35 = vld [vmem:[#allocation2 + $0x140] sm:$0xff] }
 0x1cd   : > { %5421 = vst [vmem:[%s7116_s5 + $0x50] sm:$0xff] %v4825_v33   ;;  %v2553_v52 = vsel %vm2041_vm10, %v1785_v26, %v2297_v5  ;;  %v1787_v55 = vadd.f32 %v6211_v28, %v1525_v42  ;;  %v1528_v46 = vmul.f32 %v6202_v56, %v1266_v39  ;;  %v1529_v48 = vmul.f32 %v6202_v56, %v1267_v20  ;;  %v1275_v33 = vld [vmem:[#allocation2 + $0x138] sm:$0xff]  ;;  %v1278_v5 = vld [vmem:[#allocation2 + $0x150] sm:$0xff] }
 0x1ce   : > { %5422 = vst [vmem:[%s7116_s5 + $0x58] sm:$0xff] %v4830_v40   ;;  %v4835_v50 = vpack.c.bf16 %v2553_v52, %v2552_v30  ;;  %vm2042_vm11 = vcmp.ge.f32.partialorder %v1786_v18, 0.0  ;;  %v2298_v4 = vmul.f32 0.2, %v1786_v18  ;;  %v1788_v53 = vadd.f32 %v6211_v28, %v1526_v43  ;;  %v1277_v40 = vld [vmem:[#allocation2 + $0x148] sm:$0xff]  ;;  %v1279_v42 = vld [vmem:[#allocation2 + $0x158] sm:$0xff] }
 0x1cf   : > { %vm2043_vm12 = vcmp.ge.f32.partialorder %v1787_v55, 0.0  ;;  %v2299_v63 = vmul.f32 0.2, %v1787_v55  ;;  %v1789_v49 = vadd.f32 %v6211_v28, %v1527_v45  ;;  %v1790_v57 = vadd.f32 %v6211_v28, %v1528_v46 }
 0x1d0   : > { %5423 = vst [vmem:[%s7116_s5 + $0x60] sm:$0xff] %v4835_v50   ;;  %v2554_v58 = vsel %vm2042_vm11, %v1786_v18, %v2298_v4  ;;  %vm2044_vm13 = vcmp.ge.f32.partialorder %v1788_v53, 0.0  ;;  %v2300_v60 = vmul.f32 0.2, %v1788_v53  ;;  %v1791_v44 = vadd.f32 %v6211_v28, %v1529_v48 }
 0x1d1   : > { %v2555_v24 = vsel %vm2043_vm12, %v1787_v55, %v2299_v63  ;;  %vm2045_vm14 = vcmp.ge.f32.partialorder %v1789_v49, 0.0  ;;  %v2301_v3 = vmul.f32 0.2, %v1789_v49  ;;  %vm2046_vm15 = vcmp.ge.f32.partialorder %v1790_v57, 0.0 }
 0x1d2   : > { %v4840_v7 = vpack.c.bf16 %v2555_v24, %v2554_v58  ;;  %v2556_v38 = vsel %vm2044_vm13, %v1788_v53, %v2300_v60  ;;  %vm2047_vm0 = vcmp.ge.f32.partialorder %v1791_v44, 0.0  ;;  %v2302_v62 = vmul.f32 0.2, %v1790_v57 }
 0x1d3   : > { %v2557_v9 = vsel %vm2045_vm14, %v1789_v49, %v2301_v3  ;;  %v2303_v36 = vmul.f32 0.2, %v1791_v44  ;;  %v1530_v29 = vmul.f32 %v6202_v56, %v1268_v61  ;;  %v1531_v11 = vmul.f32 %v6202_v56, %v1269_v0  ;;  %v1280_v3 = vld [vmem:[#allocation2 + $0x160] sm:$0xff] }
 0x1d4   : > { %5424 = vst [vmem:[%s7116_s5 + $0x68] sm:$0xff] %v4840_v7   ;;  %v4845_v59 = vpack.c.bf16 %v2557_v9, %v2556_v38  ;;  %v2558_v14 = vsel %vm2046_vm15, %v1790_v57, %v2302_v62  ;;  %v1532_v15 = vmul.f32 %v6202_v56, %v1270_v54  ;;  %v1533_v8 = vmul.f32 %v6202_v56, %v1271_v6  ;;  %v1281_v54 = vld [vmem:[#allocation2 + $0x168] sm:$0xff]  ;;  %v1282_v6 = vld [vmem:[#allocation2 + $0x170] sm:$0xff]  ;;  %v1283_v9 = vld [vmem:[#allocation2 + $0x178] sm:$0xff] }
 0x1d5   : > { %v2559_v10 = vsel %vm2047_vm0, %v1791_v44, %v2303_v36  ;;  %v1792_v16 = vadd.f32 %v6211_v28, %v1530_v29  ;;  %v1793_v51 = vadd.f32 %v6211_v28, %v1531_v11  ;;  %v1534_v19 = vmul.f32 %v6202_v56, %v1272_v17  ;;  %v1284_v36 = vld [vmem:[#allocation2 + $0x180] sm:$0xff] }
 0x1d6   : > { %5425 = vst [vmem:[%s7116_s5 + $0x70] sm:$0xff] %v4845_v59   ;;  %v4850_v21 = vpack.c.bf16 %v2559_v10, %v2558_v14  ;;  %v1794_v1 = vadd.f32 %v6211_v28, %v1532_v15  ;;  %v1795_v22 = vadd.f32 %v6211_v28, %v1533_v8  ;;  %v1535_v34 = vmul.f32 %v6202_v56, %v1273_v12  ;;  %v1285_v14 = vld [vmem:[#allocation2 + $0x188] sm:$0xff] }
 0x1d7   : > { %vm2048_vm1 = vcmp.ge.f32.partialorder %v1792_v16, 0.0  ;;  %vm2049_vm2 = vcmp.ge.f32.partialorder %v1793_v51, 0.0  ;;  %v2304_v2 = vmul.f32 0.2, %v1792_v16  ;;  %v2305_v27 = vmul.f32 0.2, %v1793_v51 }
 0x1d8   : > { %5426 = vst [vmem:[%s7116_s5 + $0x78] sm:$0xff] %v4850_v21   ;;  %vm2050_vm3 = vcmp.ge.f32.partialorder %v1794_v1, 0.0  ;;  %vm2051_vm4 = vcmp.ge.f32.partialorder %v1795_v22, 0.0  ;;  %v2306_v47 = vmul.f32 0.2, %v1794_v1  ;;  %v1796_v32 = vadd.f32 %v6211_v28, %v1534_v19 }
 0x1d9   : > { %v2307_v31 = vmul.f32 0.2, %v1795_v22  ;;  %v2560_v25 = vsel %vm2048_vm1, %v1792_v16, %v2304_v2  ;;  %v2561_v26 = vsel %vm2049_vm2, %v1793_v51, %v2305_v27  ;;  %v1797_v41 = vadd.f32 %v6211_v28, %v1535_v34  ;;  %v1286_v51 = vld [vmem:[#allocation2 + $0x190] sm:$0xff] }
 0x1da   : > { %v4855_v13 = vpack.c.bf16 %v2561_v26, %v2560_v25  ;;  %v2562_v37 = vsel %vm2050_vm3, %v1794_v1, %v2306_v47  ;;  %v1536_v20 = vmul.f32 %v6202_v56, %v1274_v23  ;;  %vm2052_vm5 = vcmp.ge.f32.partialorder %v1796_v32, 0.0  ;;  %v1287_v26 = vld [vmem:[#allocation2 + $0x198] sm:$0xff] }
 0x1db   : > { %v2563_v39 = vsel %vm2051_vm4, %v1795_v22, %v2307_v31  ;;  %vm2053_vm6 = vcmp.ge.f32.partialorder %v1797_v41, 0.0  ;;  %v2308_v18 = vmul.f32 0.2, %v1796_v32  ;;  %v2309_v43 = vmul.f32 0.2, %v1797_v41 }
 0x1dc   : > { %v4860_v30 = vpack.c.bf16 %v2563_v39, %v2562_v37  ;;  %5427 = vst [vmem:[%s7116_s5 + $0x80] sm:$0xff] %v4855_v13   ;;  %v1537_v45 = vmul.f32 %v6202_v56, %v1275_v33  ;;  %v1798_v52 = vadd.f32 %v6211_v28, %v1536_v20  ;;  %v1538_v55 = vmul.f32 %v6202_v56, %v1276_v35 }
 0x1dd   : > { %v2564_v46 = vsel %vm2052_vm5, %v1796_v32, %v2308_v18  ;;  %v1539_v48 = vmul.f32 %v6202_v56, %v1277_v40  ;;  %v1540_v50 = vmul.f32 %v6202_v56, %v1278_v5  ;;  %v1541_v4 = vmul.f32 %v6202_v56, %v1279_v42  ;;  %v1288_v40 = vld [vmem:[#allocation2 + $0x1a0] sm:$0xff]  ;;  %v1289_v5 = vld [vmem:[#allocation2 + $0x1a8] sm:$0xff] }
 0x1de   : > { %5428 = vst [vmem:[%s7116_s5 + $0x88] sm:$0xff] %v4860_v30   ;;  %v2565_v53 = vsel %vm2053_vm6, %v1797_v41, %v2309_v43  ;;  %v1799_v63 = vadd.f32 %v6211_v28, %v1537_v45  ;;  %vm2054_vm7 = vcmp.ge.f32.partialorder %v1798_v52, 0.0  ;;  %v2310_v49 = vmul.f32 0.2, %v1798_v52  ;;  %v1290_v45 = vld [vmem:[#allocation2 + $0x1b0] sm:$0xff] }
 0x1df   : > { %v4865_v57 = vpack.c.bf16 %v2565_v53, %v2564_v46  ;;  %v1800_v58 = vadd.f32 %v6211_v28, %v1538_v55  ;;  %v1801_v60 = vadd.f32 %v6211_v28, %v1539_v48  ;;  %v1802_v44 = vadd.f32 %v6211_v28, %v1540_v50 }
 0x1e0   : > { %vm2055_vm8 = vcmp.ge.f32.partialorder %v1799_v63, 0.0  ;;  %v2311_v61 = vmul.f32 0.2, %v1799_v63  ;;  %v2566_v0 = vsel %vm2054_vm7, %v1798_v52, %v2310_v49  ;;  %v1803_v24 = vadd.f32 %v6211_v28, %v1541_v4  ;;  %v1291_v52 = vld [vmem:[#allocation2 + $0x1b8] sm:$0xff] }
 0x1e1   : > { %5429 = vst [vmem:[%s7116_s5 + $0x90] sm:$0xff] %v4865_v57   ;;  %vm2056_vm9 = vcmp.ge.f32.partialorder %v1800_v58, 0.0  ;;  %vm2057_vm10 = vcmp.ge.f32.partialorder %v1801_v60, 0.0  ;;  %v2312_v7 = vmul.f32 0.2, %v1800_v58  ;;  %vm2058_vm11 = vcmp.ge.f32.partialorder %v1802_v44, 0.0 }
 0x1e2   : > { %v2313_v38 = vmul.f32 0.2, %v1801_v60  ;;  %v2567_v62 = vsel %vm2055_vm8, %v1799_v63, %v2311_v61  ;;  %vm2059_vm12 = vcmp.ge.f32.partialorder %v1803_v24, 0.0  ;;  %v2314_v17 = vmul.f32 0.2, %v1802_v44 }
 0x1e3   : > { %v4870_v29 = vpack.c.bf16 %v2567_v62, %v2566_v0  ;;  %v2568_v11 = vsel %vm2056_vm9, %v1800_v58, %v2312_v7  ;;  %v2315_v59 = vmul.f32 0.2, %v1803_v24  ;;  %v1542_v10 = vmul.f32 %v6202_v56, %v1280_v3  ;;  %v1292_v62 = vld [vmem:[#allocation2 + $0x1c0] sm:$0xff] }
 0x1e4   : > { %v2569_v12 = vsel %vm2057_vm10, %v1801_v60, %v2313_v38  ;;  %v2570_v8 = vsel %vm2058_vm11, %v1802_v44, %v2314_v17  ;;  %v1543_v16 = vmul.f32 %v6202_v56, %v1281_v54  ;;  %v1544_v21 = vmul.f32 %v6202_v56, %v1282_v6  ;;  %v1293_v17 = vld [vmem:[#allocation2 + $0x1c8] sm:$0xff] }
 0x1e5   : > { %v4875_v15 = vpack.c.bf16 %v2569_v12, %v2568_v11  ;;  %5430 = vst [vmem:[%s7116_s5 + $0x98] sm:$0xff] %v4870_v29   ;;  %v2571_v19 = vsel %vm2059_vm12, %v1803_v24, %v2315_v59  ;;  %v1545_v1 = vmul.f32 %v6202_v56, %v1283_v9  ;;  %v1546_v22 = vmul.f32 %v6202_v56, %v1284_v36  ;;  %v1294_v29 = vld [vmem:[#allocation2 + $0x1d0] sm:$0xff]  ;;  %v1295_v11 = vld [vmem:[#allocation2 + $0x1d8] sm:$0xff] }
 0x1e6   : > { %v4880_v34 = vpack.c.bf16 %v2571_v19, %v2570_v8  ;;  %v1804_v23 = vadd.f32 %v6211_v28, %v1542_v10  ;;  %v1805_v2 = vadd.f32 %v6211_v28, %v1543_v16  ;;  %v1547_v27 = vmul.f32 %v6202_v56, %v1285_v14  ;;  %v1297_v19 = vld [vmem:[#allocation2 + $0x1e8] sm:$0xff] }
 0x1e7   : > { %5431 = vst [vmem:[%s7116_s5 + $0xa0] sm:$0xff] %v4875_v15   ;;  %v1806_v47 = vadd.f32 %v6211_v28, %v1544_v21  ;;  %v1807_v31 = vadd.f32 %v6211_v28, %v1545_v1  ;;  %v1808_v25 = vadd.f32 %v6211_v28, %v1546_v22  ;;  %v1548_v32 = vmul.f32 %v6202_v56, %v1286_v51  ;;  %v1296_v15 = vld [vmem:[#allocation2 + $0x1e0] sm:$0xff] }
 0x1e8   : > { %5432 = vst [vmem:[%s7116_s5 + $0xa8] sm:$0xff] %v4880_v34   ;;  %vm2060_vm13 = vcmp.ge.f32.partialorder %v1804_v23, 0.0  ;;  %vm2061_vm14 = vcmp.ge.f32.partialorder %v1805_v2, 0.0  ;;  %v2316_v41 = vmul.f32 0.2, %v1804_v23  ;;  %v1809_v20 = vadd.f32 %v6211_v28, %v1547_v27 }
 0x1e9   : > { %v2317_v33 = vmul.f32 0.2, %v1805_v2  ;;  %vm2062_vm15 = vcmp.ge.f32.partialorder %v1806_v47, 0.0  ;;  %vm2063_vm0 = vcmp.ge.f32.partialorder %v1807_v31, 0.0  ;;  %v2318_v35 = vmul.f32 0.2, %v1806_v47 }
 0x1ea   : > { %v2319_v13 = vmul.f32 0.2, %v1807_v31  ;;  %v2572_v37 = vsel %vm2060_vm13, %v1804_v23, %v2316_v41  ;;  %vm2064_vm1 = vcmp.ge.f32.partialorder %v1808_v25, 0.0  ;;  %v2320_v43 = vmul.f32 0.2, %v1808_v25  ;;  %v1298_v41 = vld [vmem:[#allocation2 + $0x1f0] sm:$0xff] }
 0x1eb   : > { %v2573_v39 = vsel %vm2061_vm14, %v1805_v2, %v2317_v33  ;;  %v2574_v30 = vsel %vm2062_vm15, %v1806_v47, %v2318_v35  ;;  %vm2065_vm2 = vcmp.ge.f32.partialorder %v1809_v20, 0.0  ;;  %v2321_v46 = vmul.f32 0.2, %v1809_v20 }
 0x1ec   : > { %v4885_v42 = vpack.c.bf16 %v2573_v39, %v2572_v37  ;;  %v2575_v18 = vsel %vm2063_vm0, %v1807_v31, %v2319_v13  ;;  %v1549_v48 = vmul.f32 %v6202_v56, %v1287_v26  ;;  %v2576_v50 = vsel %vm2064_vm1, %v1808_v25, %v2320_v43 }
 0x1ed   : > { %v4890_v55 = vpack.c.bf16 %v2575_v18, %v2574_v30  ;;  %v1810_v4 = vadd.f32 %v6211_v28, %v1548_v32  ;;  %v1550_v53 = vmul.f32 %v6202_v56, %v1288_v40  ;;  %v1551_v63 = vmul.f32 %v6202_v56, %v1289_v5  ;;  %v1300_v30 = vld [vmem:[#allocation2 + $0x200] sm:$0xff] }
 0x1ee   : > { %5433 = vst [vmem:[%s7116_s5 + $0xb0] sm:$0xff] %v4885_v42   ;;  %v2577_v49 = vsel %vm2065_vm2, %v1809_v20, %v2321_v46  ;;  %v1811_v57 = vadd.f32 %v6211_v28, %v1549_v48  ;;  %v1552_v58 = vmul.f32 %v6202_v56, %v1290_v45  ;;  %v1553_v60 = vmul.f32 %v6202_v56, %v1291_v52  ;;  %v1299_v42 = vld [vmem:[#allocation2 + $0x1f8] sm:$0xff]  ;;  %v1302_v46 = vld [vmem:[#allocation2 + $0x210] sm:$0xff] }
 0x1ef   : > { %5434 = vst [vmem:[%s7116_s5 + $0xb8] sm:$0xff] %v4890_v55   ;;  %v4895_v44 = vpack.c.bf16 %v2577_v49, %v2576_v50  ;;  %vm2066_vm3 = vcmp.ge.f32.partialorder %v1810_v4, 0.0  ;;  %v2322_v61 = vmul.f32 0.2, %v1810_v4  ;;  %v1812_v0 = vadd.f32 %v6211_v28, %v1550_v53  ;;  %v1301_v55 = vld [vmem:[#allocation2 + $0x208] sm:$0xff]  ;;  %v1303_v48 = vld [vmem:[#allocation2 + $0x218] sm:$0xff] }
 0x1f0   : > { %vm2067_vm4 = vcmp.ge.f32.partialorder %v1811_v57, 0.0  ;;  %v2323_v24 = vmul.f32 0.2, %v1811_v57  ;;  %v1813_v3 = vadd.f32 %v6211_v28, %v1551_v63  ;;  %v1814_v54 = vadd.f32 %v6211_v28, %v1552_v58 }
 0x1f1   : > { %5435 = vst [vmem:[%s7116_s5 + $0xc0] sm:$0xff] %v4895_v44   ;;  %v2578_v6 = vsel %vm2066_vm3, %v1810_v4, %v2322_v61  ;;  %vm2068_vm5 = vcmp.ge.f32.partialorder %v1812_v0, 0.0  ;;  %v2324_v7 = vmul.f32 0.2, %v1812_v0  ;;  %v1815_v38 = vadd.f32 %v6211_v28, %v1553_v60 }
 0x1f2   : > { %v2579_v9 = vsel %vm2067_vm4, %v1811_v57, %v2323_v24  ;;  %vm2069_vm6 = vcmp.ge.f32.partialorder %v1813_v3, 0.0  ;;  %v2325_v36 = vmul.f32 0.2, %v1813_v3  ;;  %vm2070_vm7 = vcmp.ge.f32.partialorder %v1814_v54, 0.0 }
 0x1f3   : > { %v4900_v12 = vpack.c.bf16 %v2579_v9, %v2578_v6  ;;  %v2580_v59 = vsel %vm2068_vm5, %v1812_v0, %v2324_v7  ;;  %vm2071_vm8 = vcmp.ge.f32.partialorder %v1815_v38, 0.0  ;;  %v2326_v14 = vmul.f32 0.2, %v1814_v54 }
 0x1f4   : > { %v2581_v8 = vsel %vm2069_vm6, %v1813_v3, %v2325_v36  ;;  %v2327_v10 = vmul.f32 0.2, %v1815_v38  ;;  %v1554_v16 = vmul.f32 %v6202_v56, %v1292_v62  ;;  %v1555_v51 = vmul.f32 %v6202_v56, %v1293_v17  ;;  %v1304_v36 = vld [vmem:[#allocation2 + $0x220] sm:$0xff] }
 0x1f5   : > { %5436 = vst [vmem:[%s7116_s5 + $0xc8] sm:$0xff] %v4900_v12   ;;  %v4905_v21 = vpack.c.bf16 %v2581_v8, %v2580_v59  ;;  %v2582_v1 = vsel %vm2070_vm7, %v1814_v54, %v2326_v14  ;;  %v1556_v22 = vmul.f32 %v6202_v56, %v1294_v29  ;;  %v1557_v34 = vmul.f32 %v6202_v56, %v1295_v11  ;;  %v1305_v29 = vld [vmem:[#allocation2 + $0x228] sm:$0xff]  ;;  %v1306_v11 = vld [vmem:[#allocation2 + $0x230] sm:$0xff]  ;;  %v1307_v8 = vld [vmem:[#allocation2 + $0x238] sm:$0xff] }
 0x1f6   : > { %v2583_v23 = vsel %vm2071_vm8, %v1815_v38, %v2327_v10  ;;  %v1816_v2 = vadd.f32 %v6211_v28, %v1554_v16  ;;  %v1817_v27 = vadd.f32 %v6211_v28, %v1555_v51  ;;  %v1558_v47 = vmul.f32 %v6202_v56, %v1296_v15  ;;  %v1308_v10 = vld [vmem:[#allocation2 + $0x240] sm:$0xff] }
 0x1f7   : > { %5437 = vst [vmem:[%s7116_s5 + $0xd0] sm:$0xff] %v4905_v21   ;;  %v4910_v31 = vpack.c.bf16 %v2583_v23, %v2582_v1  ;;  %v1818_v25 = vadd.f32 %v6211_v28, %v1556_v22  ;;  %v1819_v26 = vadd.f32 %v6211_v28, %v1557_v34  ;;  %v1559_v32 = vmul.f32 %v6202_v56, %v1297_v19  ;;  %v1309_v1 = vld [vmem:[#allocation2 + $0x248] sm:$0xff] }
 0x1f8   : > { %vm2072_vm9 = vcmp.ge.f32.partialorder %v1816_v2, 0.0  ;;  %vm2073_vm10 = vcmp.ge.f32.partialorder %v1817_v27, 0.0  ;;  %v2328_v33 = vmul.f32 0.2, %v1816_v2  ;;  %v2329_v35 = vmul.f32 0.2, %v1817_v27 }
 0x1f9   : > { %5438 = vst [vmem:[%s7116_s5 + $0xd8] sm:$0xff] %v4910_v31   ;;  %vm2074_vm11 = vcmp.ge.f32.partialorder %v1818_v25, 0.0  ;;  %vm2075_vm12 = vcmp.ge.f32.partialorder %v1819_v26, 0.0  ;;  %v2330_v13 = vmul.f32 0.2, %v1818_v25  ;;  %v1820_v40 = vadd.f32 %v6211_v28, %v1558_v47 }
 0x1fa   : > { %v2331_v37 = vmul.f32 0.2, %v1819_v26  ;;  %v2584_v39 = vsel %vm2072_vm9, %v1816_v2, %v2328_v33  ;;  %v2585_v20 = vsel %vm2073_vm10, %v1817_v27, %v2329_v35  ;;  %v1821_v5 = vadd.f32 %v6211_v28, %v1559_v32  ;;  %v1310_v27 = vld [vmem:[#allocation2 + $0x250] sm:$0xff] }
 0x1fb   : > { %v4915_v18 = vpack.c.bf16 %v2585_v20, %v2584_v39  ;;  %v2586_v43 = vsel %vm2074_vm11, %v1818_v25, %v2330_v13  ;;  %v1560_v52 = vmul.f32 %v6202_v56, %v1298_v41  ;;  %vm2076_vm13 = vcmp.ge.f32.partialorder %v1820_v40, 0.0  ;;  %v1311_v20 = vld [vmem:[#allocation2 + $0x258] sm:$0xff] }
 0x1fc   : > { %v2587_v45 = vsel %vm2075_vm12, %v1819_v26, %v2331_v37  ;;  %vm2077_vm14 = vcmp.ge.f32.partialorder %v1821_v5, 0.0  ;;  %v2332_v4 = vmul.f32 0.2, %v1820_v40  ;;  %v2333_v53 = vmul.f32 0.2, %v1821_v5 }
 0x1fd   : > { %v4920_v50 = vpack.c.bf16 %v2587_v45, %v2586_v43  ;;  %5439 = vst [vmem:[%s7116_s5 + $0xe0] sm:$0xff] %v4915_v18   ;;  %v1561_v63 = vmul.f32 %v6202_v56, %v1299_v42  ;;  %v1822_v49 = vadd.f32 %v6211_v28, %v1560_v52  ;;  %v1562_v57 = vmul.f32 %v6202_v56, %v1300_v30 }
 0x1fe   : > { %v2588_v58 = vsel %vm2076_vm13, %v1820_v40, %v2332_v4  ;;  %v1563_v60 = vmul.f32 %v6202_v56, %v1301_v55  ;;  %v1564_v44 = vmul.f32 %v6202_v56, %v1302_v46  ;;  %v1565_v61 = vmul.f32 %v6202_v56, %v1303_v48  ;;  %v1312_v55 = vld [vmem:[#allocation2 + $0x260] sm:$0xff]  ;;  %v1313_v46 = vld [vmem:[#allocation2 + $0x268] sm:$0xff] }
 0x1ff   : > { %5440 = vst [vmem:[%s7116_s5 + $0xe8] sm:$0xff] %v4920_v50   ;;  %v2589_v0 = vsel %vm2077_vm14, %v1821_v5, %v2333_v53  ;;  %v1823_v24 = vadd.f32 %v6211_v28, %v1561_v63  ;;  %vm2078_vm15 = vcmp.ge.f32.partialorder %v1822_v49, 0.0  ;;  %v2334_v3 = vmul.f32 0.2, %v1822_v49  ;;  %v1314_v63 = vld [vmem:[#allocation2 + $0x270] sm:$0xff] }
 0x200   : > { %v4925_v54 = vpack.c.bf16 %v2589_v0, %v2588_v58  ;;  %v1824_v6 = vadd.f32 %v6211_v28, %v1562_v57  ;;  %v1825_v7 = vadd.f32 %v6211_v28, %v1563_v60  ;;  %v1826_v38 = vadd.f32 %v6211_v28, %v1564_v44 }
 0x201   : > { %vm2079_vm0 = vcmp.ge.f32.partialorder %v1823_v24, 0.0  ;;  %v2335_v62 = vmul.f32 0.2, %v1823_v24  ;;  %v2590_v17 = vsel %vm2078_vm15, %v1822_v49, %v2334_v3  ;;  %v1827_v9 = vadd.f32 %v6211_v28, %v1565_v61  ;;  %v1315_v49 = vld [vmem:[#allocation2 + $0x278] sm:$0xff] }
 0x202   : > { %5441 = vst [vmem:[%s7116_s5 + $0xf0] sm:$0xff] %v4925_v54   ;;  %vm2080_vm1 = vcmp.ge.f32.partialorder %v1824_v6, 0.0  ;;  %vm2081_vm2 = vcmp.ge.f32.partialorder %v1825_v7, 0.0  ;;  %v2336_v12 = vmul.f32 0.2, %v1824_v6  ;;  %vm2082_vm3 = vcmp.ge.f32.partialorder %v1826_v38, 0.0 }
 0x203   : > { %v2337_v59 = vmul.f32 0.2, %v1825_v7  ;;  %v2591_v14 = vsel %vm2079_vm0, %v1823_v24, %v2335_v62  ;;  %vm2083_vm4 = vcmp.ge.f32.partialorder %v1827_v9, 0.0  ;;  %v2338_v15 = vmul.f32 0.2, %v1826_v38 }
 0x204   : > { %v4930_v16 = vpack.c.bf16 %v2591_v14, %v2590_v17  ;;  %v2592_v51 = vsel %vm2080_vm1, %v1824_v6, %v2336_v12  ;;  %v2339_v21 = vmul.f32 0.2, %v1827_v9  ;;  %v1566_v23 = vmul.f32 %v6202_v56, %v1304_v36  ;;  %v1316_v14 = vld [vmem:[#allocation2 + $0x280] sm:$0xff] }
 0x205   : > { %v2593_v19 = vsel %vm2081_vm2, %v1825_v7, %v2337_v59  ;;  %v2594_v34 = vsel %vm2082_vm3, %v1826_v38, %v2338_v15  ;;  %v1567_v2 = vmul.f32 %v6202_v56, %v1305_v29  ;;  %v1568_v31 = vmul.f32 %v6202_v56, %v1306_v11  ;;  %v1317_v15 = vld [vmem:[#allocation2 + $0x288] sm:$0xff] }
 0x206   : > { %v4935_v22 = vpack.c.bf16 %v2593_v19, %v2592_v51  ;;  %5442 = vst [vmem:[%s7116_s5 + $0xf8] sm:$0xff] %v4930_v16   ;;  %v2595_v47 = vsel %vm2083_vm4, %v1827_v9, %v2339_v21  ;;  %v1569_v25 = vmul.f32 %v6202_v56, %v1307_v8  ;;  %v1570_v26 = vmul.f32 %v6202_v56, %v1308_v10  ;;  %v1318_v16 = vld [vmem:[#allocation2 + $0x290] sm:$0xff]  ;;  %v1319_v51 = vld [vmem:[#allocation2 + $0x298] sm:$0xff] }
 0x207   : > { %v4940_v32 = vpack.c.bf16 %v2595_v47, %v2594_v34  ;;  %v1828_v41 = vadd.f32 %v6211_v28, %v1566_v23  ;;  %v1829_v33 = vadd.f32 %v6211_v28, %v1567_v2  ;;  %v1571_v35 = vmul.f32 %v6202_v56, %v1309_v1  ;;  %v1321_v47 = vld [vmem:[#allocation2 + $0x2a8] sm:$0xff] }
 0x208   : > { %5443 = vst [vmem:[%s7116_s5 + $0x100] sm:$0xff] %v4935_v22   ;;  %v1830_v13 = vadd.f32 %v6211_v28, %v1568_v31  ;;  %v1831_v37 = vadd.f32 %v6211_v28, %v1569_v25  ;;  %v1832_v39 = vadd.f32 %v6211_v28, %v1570_v26  ;;  %v1572_v40 = vmul.f32 %v6202_v56, %v1310_v27  ;;  %v1320_v22 = vld [vmem:[#allocation2 + $0x2a0] sm:$0xff] }
 0x209   : > { %5444 = vst [vmem:[%s7116_s5 + $0x108] sm:$0xff] %v4940_v32   ;;  %vm2084_vm5 = vcmp.ge.f32.partialorder %v1828_v41, 0.0  ;;  %vm2085_vm6 = vcmp.ge.f32.partialorder %v1829_v33, 0.0  ;;  %v2340_v5 = vmul.f32 0.2, %v1828_v41  ;;  %v1833_v52 = vadd.f32 %v6211_v28, %v1571_v35 }
 0x20a   : > { %v2341_v42 = vmul.f32 0.2, %v1829_v33  ;;  %vm2086_vm7 = vcmp.ge.f32.partialorder %v1830_v13, 0.0  ;;  %vm2087_vm8 = vcmp.ge.f32.partialorder %v1831_v37, 0.0  ;;  %v2342_v30 = vmul.f32 0.2, %v1830_v13 }
 0x20b   : > { %v2343_v18 = vmul.f32 0.2, %v1831_v37  ;;  %v2596_v43 = vsel %vm2084_vm5, %v1828_v41, %v2340_v5  ;;  %vm2088_vm9 = vcmp.ge.f32.partialorder %v1832_v39, 0.0  ;;  %v2344_v53 = vmul.f32 0.2, %v1832_v39  ;;  %v1322_v5 = vld [vmem:[#allocation2 + $0x2b0] sm:$0xff] }
 0x20c   : > { %v2597_v45 = vsel %vm2085_vm6, %v1829_v33, %v2341_v42  ;;  %v2598_v50 = vsel %vm2086_vm7, %v1830_v13, %v2342_v30  ;;  %vm2089_vm10 = vcmp.ge.f32.partialorder %v1833_v52, 0.0  ;;  %v2345_v58 = vmul.f32 0.2, %v1833_v52 }
 0x20d   : > { %v4945_v48 = vpack.c.bf16 %v2597_v45, %v2596_v43  ;;  %v2599_v4 = vsel %vm2087_vm8, %v1831_v37, %v2343_v18  ;;  %v1573_v60 = vmul.f32 %v6202_v56, %v1311_v20  ;;  %v2600_v44 = vsel %vm2088_vm9, %v1832_v39, %v2344_v53 }
 0x20e   : > { %v4950_v57 = vpack.c.bf16 %v2599_v4, %v2598_v50  ;;  %v1834_v61 = vadd.f32 %v6211_v28, %v1572_v40  ;;  %v1574_v0 = vmul.f32 %v6202_v56, %v1312_v55  ;;  %v1575_v24 = vmul.f32 %v6202_v56, %v1313_v46  ;;  %v1324_v50 = vld [vmem:[#allocation2 + $0x2c0] sm:$0xff] }
 0x20f   : > { %5445 = vst [vmem:[%s7116_s5 + $0x110] sm:$0xff] %v4945_v48   ;;  %v2601_v3 = vsel %vm2089_vm10, %v1833_v52, %v2345_v58  ;;  %v1835_v54 = vadd.f32 %v6211_v28, %v1573_v60  ;;  %v1576_v6 = vmul.f32 %v6202_v56, %v1314_v63  ;;  %v1577_v7 = vmul.f32 %v6202_v56, %v1315_v49  ;;  %v1323_v48 = vld [vmem:[#allocation2 + $0x2b8] sm:$0xff]  ;;  %v1326_v58 = vld [vmem:[#allocation2 + $0x2d0] sm:$0xff] }
 0x210   : > { %5446 = vst [vmem:[%s7116_s5 + $0x118] sm:$0xff] %v4950_v57   ;;  %v4955_v38 = vpack.c.bf16 %v2601_v3, %v2600_v44  ;;  %vm2090_vm11 = vcmp.ge.f32.partialorder %v1834_v61, 0.0  ;;  %v2346_v62 = vmul.f32 0.2, %v1834_v61  ;;  %v1836_v17 = vadd.f32 %v6211_v28, %v1574_v0  ;;  %v1325_v57 = vld [vmem:[#allocation2 + $0x2c8] sm:$0xff]  ;;  %v1327_v60 = vld [vmem:[#allocation2 + $0x2d8] sm:$0xff] }
 0x211   : > { %vm2091_vm12 = vcmp.ge.f32.partialorder %v1835_v54, 0.0  ;;  %v2347_v9 = vmul.f32 0.2, %v1835_v54  ;;  %v1837_v36 = vadd.f32 %v6211_v28, %v1575_v24  ;;  %v1838_v29 = vadd.f32 %v6211_v28, %v1576_v6 }
 0x212   : > { %5447 = vst [vmem:[%s7116_s5 + $0x120] sm:$0xff] %v4955_v38   ;;  %v2602_v11 = vsel %vm2090_vm11, %v1834_v61, %v2346_v62  ;;  %vm2092_vm13 = vcmp.ge.f32.partialorder %v1836_v17, 0.0  ;;  %v2348_v12 = vmul.f32 0.2, %v1836_v17  ;;  %v1839_v59 = vadd.f32 %v6211_v28, %v1577_v7 }
 0x213   : > { %v2603_v8 = vsel %vm2091_vm12, %v1835_v54, %v2347_v9  ;;  %vm2093_vm14 = vcmp.ge.f32.partialorder %v1837_v36, 0.0  ;;  %v2349_v10 = vmul.f32 0.2, %v1837_v36  ;;  %vm2094_vm15 = vcmp.ge.f32.partialorder %v1838_v29, 0.0 }
 0x214   : > { %v4960_v19 = vpack.c.bf16 %v2603_v8, %v2602_v11  ;;  %v2604_v21 = vsel %vm2092_vm13, %v1836_v17, %v2348_v12  ;;  %vm2095_vm0 = vcmp.ge.f32.partialorder %v1839_v59, 0.0  ;;  %v2350_v1 = vmul.f32 0.2, %v1838_v29 }
 0x215   : > { %v2605_v34 = vsel %vm2093_vm14, %v1837_v36, %v2349_v10  ;;  %v2351_v23 = vmul.f32 0.2, %v1839_v59  ;;  %v1578_v2 = vmul.f32 %v6202_v56, %v1316_v14  ;;  %v1579_v27 = vmul.f32 %v6202_v56, %v1317_v15  ;;  %v1328_v10 = vld [vmem:[#allocation2 + $0x2e0] sm:$0xff] }
 0x216   : > { %5448 = vst [vmem:[%s7116_s5 + $0x128] sm:$0xff] %v4960_v19   ;;  %v4965_v31 = vpack.c.bf16 %v2605_v34, %v2604_v21  ;;  %v2606_v25 = vsel %vm2094_vm15, %v1838_v29, %v2350_v1  ;;  %v1580_v26 = vmul.f32 %v6202_v56, %v1318_v16  ;;  %v1581_v32 = vmul.f32 %v6202_v56, %v1319_v51  ;;  %v1329_v16 = vld [vmem:[#allocation2 + $0x2e8] sm:$0xff]  ;;  %v1330_v51 = vld [vmem:[#allocation2 + $0x2f0] sm:$0xff]  ;;  %v1331_v34 = vld [vmem:[#allocation2 + $0x2f8] sm:$0xff] }
 0x217   : > { %v2607_v41 = vsel %vm2095_vm0, %v1839_v59, %v2351_v23  ;;  %v1840_v33 = vadd.f32 %v6211_v28, %v1578_v2  ;;  %v1841_v35 = vadd.f32 %v6211_v28, %v1579_v27  ;;  %v1582_v13 = vmul.f32 %v6202_v56, %v1320_v22  ;;  %v1332_v23 = vld [vmem:[#allocation2 + $0x300] sm:$0xff] }
 0x218   : > { %5449 = vst [vmem:[%s7116_s5 + $0x130] sm:$0xff] %v4965_v31   ;;  %v4970_v37 = vpack.c.bf16 %v2607_v41, %v2606_v25  ;;  %v1842_v39 = vadd.f32 %v6211_v28, %v1580_v26  ;;  %v1843_v20 = vadd.f32 %v6211_v28, %v1581_v32  ;;  %v1583_v40 = vmul.f32 %v6202_v56, %v1321_v47  ;;  %v1333_v25 = vld [vmem:[#allocation2 + $0x308] sm:$0xff] }
 0x219   : > { %vm2096_vm1 = vcmp.ge.f32.partialorder %v1840_v33, 0.0  ;;  %vm2097_vm2 = vcmp.ge.f32.partialorder %v1841_v35, 0.0  ;;  %v2352_v42 = vmul.f32 0.2, %v1840_v33  ;;  %v2353_v30 = vmul.f32 0.2, %v1841_v35 }
 0x21a   : > { %5450 = vst [vmem:[%s7116_s5 + $0x138] sm:$0xff] %v4970_v37   ;;  %vm2098_vm3 = vcmp.ge.f32.partialorder %v1842_v39, 0.0  ;;  %vm2099_vm4 = vcmp.ge.f32.partialorder %v1843_v20, 0.0  ;;  %v2354_v18 = vmul.f32 0.2, %v1842_v39  ;;  %v1844_v55 = vadd.f32 %v6211_v28, %v1582_v13 }
 0x21b   : > { %v2355_v43 = vmul.f32 0.2, %v1843_v20  ;;  %v2608_v45 = vsel %vm2096_vm1, %v1840_v33, %v2352_v42  ;;  %v2609_v52 = vsel %vm2097_vm2, %v1841_v35, %v2353_v30  ;;  %v1845_v46 = vadd.f32 %v6211_v28, %v1583_v40  ;;  %v1334_v35 = vld [vmem:[#allocation2 + $0x310] sm:$0xff] }
 0x21c   : > { %v4975_v4 = vpack.c.bf16 %v2609_v52, %v2608_v45  ;;  %v2610_v53 = vsel %vm2098_vm3, %v1842_v39, %v2354_v18  ;;  %v1584_v49 = vmul.f32 %v6202_v56, %v1322_v5  ;;  %vm2100_vm5 = vcmp.ge.f32.partialorder %v1844_v55, 0.0  ;;  %v1335_v52 = vld [vmem:[#allocation2 + $0x318] sm:$0xff] }
 0x21d   : > { %v2611_v63 = vsel %vm2099_vm4, %v1843_v20, %v2355_v43  ;;  %vm2101_vm6 = vcmp.ge.f32.partialorder %v1845_v46, 0.0  ;;  %v2356_v61 = vmul.f32 0.2, %v1844_v55  ;;  %v2357_v0 = vmul.f32 0.2, %v1845_v46 }
 0x21e   : > { %v4980_v44 = vpack.c.bf16 %v2611_v63, %v2610_v53  ;;  %5451 = vst [vmem:[%s7116_s5 + $0x140] sm:$0xff] %v4975_v4   ;;  %v1585_v24 = vmul.f32 %v6202_v56, %v1323_v48  ;;  %v1846_v3 = vadd.f32 %v6211_v28, %v1584_v49  ;;  %v1586_v54 = vmul.f32 %v6202_v56, %v1324_v50 }
 0x21f   : > { %v2612_v6 = vsel %vm2100_vm5, %v1844_v55, %v2356_v61  ;;  %v1587_v7 = vmul.f32 %v6202_v56, %v1325_v57  ;;  %v1588_v38 = vmul.f32 %v6202_v56, %v1326_v58  ;;  %v1589_v62 = vmul.f32 %v6202_v56, %v1327_v60  ;;  %v1336_v57 = vld [vmem:[#allocation2 + $0x320] sm:$0xff]  ;;  %v1337_v58 = vld [vmem:[#allocation2 + $0x328] sm:$0xff] }
 0x220   : > { %5452 = vst [vmem:[%s7116_s5 + $0x148] sm:$0xff] %v4980_v44   ;;  %v2613_v17 = vsel %vm2101_vm6, %v1845_v46, %v2357_v0  ;;  %v1847_v9 = vadd.f32 %v6211_v28, %v1585_v24  ;;  %vm2102_vm7 = vcmp.ge.f32.partialorder %v1846_v3, 0.0  ;;  %v2358_v36 = vmul.f32 0.2, %v1846_v3  ;;  %v1338_v24 = vld [vmem:[#allocation2 + $0x330] sm:$0xff] }
 0x221   : > { %v4985_v29 = vpack.c.bf16 %v2613_v17, %v2612_v6  ;;  %v1848_v11 = vadd.f32 %v6211_v28, %v1586_v54  ;;  %v1849_v12 = vadd.f32 %v6211_v28, %v1587_v7  ;;  %v1850_v59 = vadd.f32 %v6211_v28, %v1588_v38 }
 0x222   : > { %vm2103_vm8 = vcmp.ge.f32.partialorder %v1847_v9, 0.0  ;;  %v2359_v14 = vmul.f32 0.2, %v1847_v9  ;;  %v2614_v15 = vsel %vm2102_vm7, %v1846_v3, %v2358_v36  ;;  %v1851_v8 = vadd.f32 %v6211_v28, %v1589_v62  ;;  %v1339_v3 = vld [vmem:[#allocation2 + $0x338] sm:$0xff] }
 0x223   : > { %5453 = vst [vmem:[%s7116_s5 + $0x150] sm:$0xff] %v4985_v29   ;;  %vm2104_vm9 = vcmp.ge.f32.partialorder %v1848_v11, 0.0  ;;  %vm2105_vm10 = vcmp.ge.f32.partialorder %v1849_v12, 0.0  ;;  %v2360_v19 = vmul.f32 0.2, %v1848_v11  ;;  %vm2106_vm11 = vcmp.ge.f32.partialorder %v1850_v59, 0.0 }
 0x224   : > { %v2361_v21 = vmul.f32 0.2, %v1849_v12  ;;  %v2615_v1 = vsel %vm2103_vm8, %v1847_v9, %v2359_v14  ;;  %vm2107_vm12 = vcmp.ge.f32.partialorder %v1851_v8, 0.0  ;;  %v2362_v22 = vmul.f32 0.2, %v1850_v59 }
 0x225   : > { %v4990_v2 = vpack.c.bf16 %v2615_v1, %v2614_v15  ;;  %v2616_v27 = vsel %vm2104_vm9, %v1848_v11, %v2360_v19  ;;  %v2363_v31 = vmul.f32 0.2, %v1851_v8  ;;  %v1590_v41 = vmul.f32 %v6202_v56, %v1328_v10  ;;  %v1340_v1 = vld [vmem:[#allocation2 + $0x340] sm:$0xff] }
 0x226   : > { %v2617_v47 = vsel %vm2105_vm10, %v1849_v12, %v2361_v21  ;;  %v2618_v32 = vsel %vm2106_vm11, %v1850_v59, %v2362_v22  ;;  %v1591_v33 = vmul.f32 %v6202_v56, %v1329_v16  ;;  %v1592_v37 = vmul.f32 %v6202_v56, %v1330_v51  ;;  %v1341_v22 = vld [vmem:[#allocation2 + $0x348] sm:$0xff] }
 0x227   : > { %v4995_v26 = vpack.c.bf16 %v2617_v47, %v2616_v27  ;;  %5454 = vst [vmem:[%s7116_s5 + $0x158] sm:$0xff] %v4990_v2   ;;  %v2619_v13 = vsel %vm2107_vm12, %v1851_v8, %v2363_v31  ;;  %v1593_v39 = vmul.f32 %v6202_v56, %v1331_v34  ;;  %v1594_v20 = vmul.f32 %v6202_v56, %v1332_v23  ;;  %v1342_v2 = vld [vmem:[#allocation2 + $0x350] sm:$0xff]  ;;  %v1343_v27 = vld [vmem:[#allocation2 + $0x358] sm:$0xff] }
 0x228   : > { %v5000_v40 = vpack.c.bf16 %v2619_v13, %v2618_v32  ;;  %v1852_v5 = vadd.f32 %v6211_v28, %v1590_v41  ;;  %v1853_v42 = vadd.f32 %v6211_v28, %v1591_v33  ;;  %v1595_v30 = vmul.f32 %v6202_v56, %v1333_v25  ;;  %v1345_v13 = vld [vmem:[#allocation2 + $0x368] sm:$0xff] }
 0x229   : > { %5455 = vst [vmem:[%s7116_s5 + $0x160] sm:$0xff] %v4995_v26   ;;  %v1854_v18 = vadd.f32 %v6211_v28, %v1592_v37  ;;  %v1855_v43 = vadd.f32 %v6211_v28, %v1593_v39  ;;  %v1856_v45 = vadd.f32 %v6211_v28, %v1594_v20  ;;  %v1596_v55 = vmul.f32 %v6202_v56, %v1334_v35  ;;  %v1344_v26 = vld [vmem:[#allocation2 + $0x360] sm:$0xff] }
 0x22a   : > { %5456 = vst [vmem:[%s7116_s5 + $0x168] sm:$0xff] %v5000_v40   ;;  %vm2108_vm13 = vcmp.ge.f32.partialorder %v1852_v5, 0.0  ;;  %vm2109_vm14 = vcmp.ge.f32.partialorder %v1853_v42, 0.0  ;;  %v2364_v46 = vmul.f32 0.2, %v1852_v5  ;;  %v1857_v49 = vadd.f32 %v6211_v28, %v1595_v30 }
 0x22b   : > { %v2365_v48 = vmul.f32 0.2, %v1853_v42  ;;  %vm2110_vm15 = vcmp.ge.f32.partialorder %v1854_v18, 0.0  ;;  %vm2111_vm0 = vcmp.ge.f32.partialorder %v1855_v43, 0.0  ;;  %v2366_v50 = vmul.f32 0.2, %v1854_v18 }
 0x22c   : > { %v2367_v4 = vmul.f32 0.2, %v1855_v43  ;;  %v2620_v53 = vsel %vm2108_vm13, %v1852_v5, %v2364_v46  ;;  %vm2112_vm1 = vcmp.ge.f32.partialorder %v1856_v45, 0.0  ;;  %v2368_v0 = vmul.f32 0.2, %v1856_v45  ;;  %v1346_v46 = vld [vmem:[#allocation2 + $0x370] sm:$0xff] }
 0x22d   : > { %v2621_v63 = vsel %vm2109_vm14, %v1853_v42, %v2365_v48  ;;  %v2622_v44 = vsel %vm2110_vm15, %v1854_v18, %v2366_v50  ;;  %vm2113_vm2 = vcmp.ge.f32.partialorder %v1857_v49, 0.0  ;;  %v2369_v6 = vmul.f32 0.2, %v1857_v49 }
 0x22e   : > { %v5005_v60 = vpack.c.bf16 %v2621_v63, %v2620_v53  ;;  %v2623_v61 = vsel %vm2111_vm0, %v1855_v43, %v2367_v4  ;;  %v1597_v7 = vmul.f32 %v6202_v56, %v1335_v52  ;;  %v2624_v38 = vsel %vm2112_vm1, %v1856_v45, %v2368_v0 }
 0x22f   : > { %v5010_v54 = vpack.c.bf16 %v2623_v61, %v2622_v44  ;;  %v1858_v62 = vadd.f32 %v6211_v28, %v1596_v55  ;;  %v1598_v17 = vmul.f32 %v6202_v56, %v1336_v57  ;;  %v1599_v9 = vmul.f32 %v6202_v56, %v1337_v58  ;;  %v1348_v44 = vld [vmem:[#allocation2 + $0x380] sm:$0xff] }
 0x230   : > { %5457 = vst [vmem:[%s7116_s5 + $0x170] sm:$0xff] %v5005_v60   ;;  %v2625_v36 = vsel %vm2113_vm2, %v1857_v49, %v2369_v6  ;;  %v1859_v29 = vadd.f32 %v6211_v28, %v1597_v7  ;;  %v1600_v11 = vmul.f32 %v6202_v56, %v1338_v24  ;;  %v1601_v12 = vmul.f32 %v6202_v56, %v1339_v3  ;;  %v1347_v60 = vld [vmem:[#allocation2 + $0x378] sm:$0xff]  ;;  %v1350_v6 = vld [vmem:[#allocation2 + $0x390] sm:$0xff] }
 0x231   : > { %5458 = vst [vmem:[%s7116_s5 + $0x178] sm:$0xff] %v5010_v54   ;;  %v5015_v59 = vpack.c.bf16 %v2625_v36, %v2624_v38  ;;  %vm2114_vm3 = vcmp.ge.f32.partialorder %v1858_v62, 0.0  ;;  %v2370_v14 = vmul.f32 0.2, %v1858_v62  ;;  %v1860_v15 = vadd.f32 %v6211_v28, %v1598_v17  ;;  %v1349_v54 = vld [vmem:[#allocation2 + $0x388] sm:$0xff]  ;;  %v1351_v7 = vld [vmem:[#allocation2 + $0x398] sm:$0xff] }
 0x232   : > { %vm2115_vm4 = vcmp.ge.f32.partialorder %v1859_v29, 0.0  ;;  %v2371_v8 = vmul.f32 0.2, %v1859_v29  ;;  %v1861_v10 = vadd.f32 %v6211_v28, %v1599_v9  ;;  %v1862_v16 = vadd.f32 %v6211_v28, %v1600_v11 }
 0x233   : > { %5459 = vst [vmem:[%s7116_s5 + $0x180] sm:$0xff] %v5015_v59   ;;  %v2626_v51 = vsel %vm2114_vm3, %v1858_v62, %v2370_v14  ;;  %vm2116_vm5 = vcmp.ge.f32.partialorder %v1860_v15, 0.0  ;;  %v2372_v19 = vmul.f32 0.2, %v1860_v15  ;;  %v1863_v21 = vadd.f32 %v6211_v28, %v1601_v12 }
 0x234   : > { %v2627_v34 = vsel %vm2115_vm4, %v1859_v29, %v2371_v8  ;;  %vm2117_vm6 = vcmp.ge.f32.partialorder %v1861_v10, 0.0  ;;  %v2373_v23 = vmul.f32 0.2, %v1861_v10  ;;  %vm2118_vm7 = vcmp.ge.f32.partialorder %v1862_v16, 0.0 }
 0x235   : > { %v5020_v47 = vpack.c.bf16 %v2627_v34, %v2626_v51  ;;  %v2628_v31 = vsel %vm2116_vm5, %v1860_v15, %v2372_v19  ;;  %vm2119_vm8 = vcmp.ge.f32.partialorder %v1863_v21, 0.0  ;;  %v2374_v25 = vmul.f32 0.2, %v1862_v16 }
 0x236   : > { %v2629_v32 = vsel %vm2117_vm6, %v1861_v10, %v2373_v23  ;;  %v2375_v41 = vmul.f32 0.2, %v1863_v21  ;;  %v1602_v33 = vmul.f32 %v6202_v56, %v1340_v1  ;;  %v1603_v35 = vmul.f32 %v6202_v56, %v1341_v22  ;;  %v1352_v23 = vld [vmem:[#allocation2 + $0x3a0] sm:$0xff] }
 0x237   : > { %5460 = vst [vmem:[%s7116_s5 + $0x188] sm:$0xff] %v5020_v47   ;;  %v5025_v37 = vpack.c.bf16 %v2629_v32, %v2628_v31  ;;  %v2630_v39 = vsel %vm2118_vm7, %v1862_v16, %v2374_v25  ;;  %v1604_v20 = vmul.f32 %v6202_v56, %v1342_v2  ;;  %v1605_v40 = vmul.f32 %v6202_v56, %v1343_v27  ;;  %v1353_v2 = vld [vmem:[#allocation2 + $0x3a8] sm:$0xff]  ;;  %v1354_v27 = vld [vmem:[#allocation2 + $0x3b0] sm:$0xff]  ;;  %v1355_v32 = vld [vmem:[#allocation2 + $0x3b8] sm:$0xff] }
 0x238   : > { %v2631_v5 = vsel %vm2119_vm8, %v1863_v21, %v2375_v41  ;;  %v1864_v42 = vadd.f32 %v6211_v28, %v1602_v33  ;;  %v1865_v30 = vadd.f32 %v6211_v28, %v1603_v35  ;;  %v1606_v18 = vmul.f32 %v6202_v56, %v1344_v26  ;;  %v1356_v41 = vld [vmem:[#allocation2 + $0x3c0] sm:$0xff] }
 0x239   : > { %5461 = vst [vmem:[%s7116_s5 + $0x190] sm:$0xff] %v5025_v37   ;;  %v5030_v43 = vpack.c.bf16 %v2631_v5, %v2630_v39  ;;  %v1866_v45 = vadd.f32 %v6211_v28, %v1604_v20  ;;  %v1867_v52 = vadd.f32 %v6211_v28, %v1605_v40  ;;  %v1607_v55 = vmul.f32 %v6202_v56, %v1345_v13  ;;  %v1357_v39 = vld [vmem:[#allocation2 + $0x3c8] sm:$0xff] }
 0x23a   : > { %vm2120_vm9 = vcmp.ge.f32.partialorder %v1864_v42, 0.0  ;;  %vm2121_vm10 = vcmp.ge.f32.partialorder %v1865_v30, 0.0  ;;  %v2376_v48 = vmul.f32 0.2, %v1864_v42  ;;  %v2377_v50 = vmul.f32 0.2, %v1865_v30 }
 0x23b   : > { %5462 = vst [vmem:[%s7116_s5 + $0x198] sm:$0xff] %v5030_v43   ;;  %vm2122_vm11 = vcmp.ge.f32.partialorder %v1866_v45, 0.0  ;;  %vm2123_vm12 = vcmp.ge.f32.partialorder %v1867_v52, 0.0  ;;  %v2378_v4 = vmul.f32 0.2, %v1866_v45  ;;  %v1868_v57 = vadd.f32 %v6211_v28, %v1606_v18 }
 0x23c   : > { %v2379_v53 = vmul.f32 0.2, %v1867_v52  ;;  %v2632_v63 = vsel %vm2120_vm9, %v1864_v42, %v2376_v48  ;;  %v2633_v49 = vsel %vm2121_vm10, %v1865_v30, %v2377_v50  ;;  %v1869_v58 = vadd.f32 %v6211_v28, %v1607_v55  ;;  %v1358_v30 = vld [vmem:[#allocation2 + $0x3d0] sm:$0xff] }
 0x23d   : > { %v5035_v61 = vpack.c.bf16 %v2633_v49, %v2632_v63  ;;  %v2634_v0 = vsel %vm2122_vm11, %v1866_v45, %v2378_v4  ;;  %v1608_v3 = vmul.f32 %v6202_v56, %v1346_v46  ;;  %vm2124_vm13 = vcmp.ge.f32.partialorder %v1868_v57, 0.0  ;;  %v1359_v49 = vld [vmem:[#allocation2 + $0x3d8] sm:$0xff] }
 0x23e   : > { %v2635_v24 = vsel %vm2123_vm12, %v1867_v52, %v2379_v53  ;;  %vm2125_vm14 = vcmp.ge.f32.partialorder %v1869_v58, 0.0  ;;  %v2380_v62 = vmul.f32 0.2, %v1868_v57  ;;  %v2381_v17 = vmul.f32 0.2, %v1869_v58 }
 0x23f   : > { %v5040_v38 = vpack.c.bf16 %v2635_v24, %v2634_v0  ;;  %5463 = vst [vmem:[%s7116_s5 + $0x1a0] sm:$0xff] %v5035_v61   ;;  %v1609_v9 = vmul.f32 %v6202_v56, %v1347_v60  ;;  %v1870_v36 = vadd.f32 %v6211_v28, %v1608_v3  ;;  %v1610_v29 = vmul.f32 %v6202_v56, %v1348_v44 }
 0x240   : > { %v2636_v11 = vsel %vm2124_vm13, %v1868_v57, %v2380_v62  ;;  %v1611_v12 = vmul.f32 %v6202_v56, %v1349_v54  ;;  %v1612_v59 = vmul.f32 %v6202_v56, %v1350_v6  ;;  %v1613_v14 = vmul.f32 %v6202_v56, %v1351_v7  ;;  %v1360_v54 = vld [vmem:[#allocation2 + $0x3e0] sm:$0xff]  ;;  %v1361_v6 = vld [vmem:[#allocation2 + $0x3e8] sm:$0xff] }
 0x241   : > { %5464 = vst [vmem:[%s7116_s5 + $0x1a8] sm:$0xff] %v5040_v38   ;;  %v2637_v15 = vsel %vm2125_vm14, %v1869_v58, %v2381_v17  ;;  %v1871_v8 = vadd.f32 %v6211_v28, %v1609_v9  ;;  %vm2126_vm15 = vcmp.ge.f32.partialorder %v1870_v36, 0.0  ;;  %v2382_v10 = vmul.f32 0.2, %v1870_v36  ;;  %v1362_v9 = vld [vmem:[#allocation2 + $0x3f0] sm:$0xff] }
 0x242   : > { %v5045_v16 = vpack.c.bf16 %v2637_v15, %v2636_v11  ;;  %v1872_v51 = vadd.f32 %v6211_v28, %v1610_v29  ;;  %v1873_v19 = vadd.f32 %v6211_v28, %v1611_v12  ;;  %v1874_v21 = vadd.f32 %v6211_v28, %v1612_v59 }
 0x243   : > { %vm2127_vm0 = vcmp.ge.f32.partialorder %v1871_v8, 0.0  ;;  %v2383_v1 = vmul.f32 0.2, %v1871_v8  ;;  %v2638_v22 = vsel %vm2126_vm15, %v1870_v36, %v2382_v10  ;;  %v1875_v34 = vadd.f32 %v6211_v28, %v1613_v14  ;;  %v1363_v36 = vld [vmem:[#allocation2 + $0x3f8] sm:$0xff] }
 0x244   : > { %5465 = vst [vmem:[%s7116_s5 + $0x1b0] sm:$0xff] %v5045_v16   ;;  %vm2128_vm1 = vcmp.ge.f32.partialorder %v1872_v51, 0.0  ;;  %vm2129_vm2 = vcmp.ge.f32.partialorder %v1873_v19, 0.0  ;;  %v2384_v47 = vmul.f32 0.2, %v1872_v51  ;;  %vm2130_vm3 = vcmp.ge.f32.partialorder %v1874_v21, 0.0 }
 0x245   : > { %v2385_v31 = vmul.f32 0.2, %v1873_v19  ;;  %v2639_v25 = vsel %vm2127_vm0, %v1871_v8, %v2383_v1  ;;  %vm2131_vm4 = vcmp.ge.f32.partialorder %v1875_v34, 0.0  ;;  %v2386_v26 = vmul.f32 0.2, %v1874_v21 }
 0x246   : > { %v5050_v33 = vpack.c.bf16 %v2639_v25, %v2638_v22  ;;  %v2640_v35 = vsel %vm2128_vm1, %v1872_v51, %v2384_v47  ;;  %v2387_v37 = vmul.f32 0.2, %v1875_v34  ;;  %v1614_v5 = vmul.f32 %v6202_v56, %v1352_v23  ;;  %v1364_v25 = vld [vmem:[#allocation2 + $0x400] sm:$0xff] }
 0x247   : > { %v2641_v13 = vsel %vm2129_vm2, %v1873_v19, %v2385_v31  ;;  %v2642_v40 = vsel %vm2130_vm3, %v1874_v21, %v2386_v26  ;;  %v1615_v42 = vmul.f32 %v6202_v56, %v1353_v2  ;;  %v1616_v43 = vmul.f32 %v6202_v56, %v1354_v27  ;;  %v1365_v26 = vld [vmem:[#allocation2 + $0x408] sm:$0xff] }
 0x248   : > { %v5055_v20 = vpack.c.bf16 %v2641_v13, %v2640_v35  ;;  %5466 = vst [vmem:[%s7116_s5 + $0x1b8] sm:$0xff] %v5050_v33   ;;  %v2643_v18 = vsel %vm2131_vm4, %v1875_v34, %v2387_v37  ;;  %v1617_v45 = vmul.f32 %v6202_v56, %v1355_v32  ;;  %v1618_v52 = vmul.f32 %v6202_v56, %v1356_v41  ;;  %v1366_v33 = vld [vmem:[#allocation2 + $0x410] sm:$0xff]  ;;  %v1367_v35 = vld [vmem:[#allocation2 + $0x418] sm:$0xff] }
 0x249   : > { %v5060_v55 = vpack.c.bf16 %v2643_v18, %v2642_v40  ;;  %v1876_v46 = vadd.f32 %v6211_v28, %v1614_v5  ;;  %v1877_v48 = vadd.f32 %v6211_v28, %v1615_v42  ;;  %v1619_v50 = vmul.f32 %v6202_v56, %v1357_v39  ;;  %v1369_v18 = vld [vmem:[#allocation2 + $0x428] sm:$0xff] }
 0x24a   : > { %5467 = vst [vmem:[%s7116_s5 + $0x1c0] sm:$0xff] %v5055_v20   ;;  %v1878_v4 = vadd.f32 %v6211_v28, %v1616_v43  ;;  %v1879_v53 = vadd.f32 %v6211_v28, %v1617_v45  ;;  %v1880_v63 = vadd.f32 %v6211_v28, %v1618_v52  ;;  %v1620_v57 = vmul.f32 %v6202_v56, %v1358_v30  ;;  %v1368_v20 = vld [vmem:[#allocation2 + $0x420] sm:$0xff] }
 0x24b   : > { %5468 = vst [vmem:[%s7116_s5 + $0x1c8] sm:$0xff] %v5060_v55   ;;  %vm2132_vm5 = vcmp.ge.f32.partialorder %v1876_v46, 0.0  ;;  %vm2133_vm6 = vcmp.ge.f32.partialorder %v1877_v48, 0.0  ;;  %v2388_v58 = vmul.f32 0.2, %v1876_v46  ;;  %v1881_v3 = vadd.f32 %v6211_v28, %v1619_v50 }
 0x24c   : > { %v2389_v60 = vmul.f32 0.2, %v1877_v48  ;;  %vm2134_vm7 = vcmp.ge.f32.partialorder %v1878_v4, 0.0  ;;  %vm2135_vm8 = vcmp.ge.f32.partialorder %v1879_v53, 0.0  ;;  %v2390_v44 = vmul.f32 0.2, %v1878_v4 }
 0x24d   : > { %v2391_v61 = vmul.f32 0.2, %v1879_v53  ;;  %v2644_v0 = vsel %vm2132_vm5, %v1876_v46, %v2388_v58  ;;  %vm2136_vm9 = vcmp.ge.f32.partialorder %v1880_v63, 0.0  ;;  %v2392_v17 = vmul.f32 0.2, %v1880_v63  ;;  %v1370_v58 = vld [vmem:[#allocation2 + $0x430] sm:$0xff] }
 0x24e   : > { %v2645_v24 = vsel %vm2133_vm6, %v1877_v48, %v2389_v60  ;;  %v2646_v38 = vsel %vm2134_vm7, %v1878_v4, %v2390_v44  ;;  %vm2137_vm10 = vcmp.ge.f32.partialorder %v1881_v3, 0.0  ;;  %v2393_v11 = vmul.f32 0.2, %v1881_v3 }
 0x24f   : > { %v5065_v7 = vpack.c.bf16 %v2645_v24, %v2644_v0  ;;  %v2647_v62 = vsel %vm2135_vm8, %v1879_v53, %v2391_v61  ;;  %v1621_v12 = vmul.f32 %v6202_v56, %v1359_v49  ;;  %v2648_v59 = vsel %vm2136_vm9, %v1880_v63, %v2392_v17 }
 0x250   : > { %v5070_v29 = vpack.c.bf16 %v2647_v62, %v2646_v38  ;;  %v1882_v14 = vadd.f32 %v6211_v28, %v1620_v57  ;;  %v1622_v15 = vmul.f32 %v6202_v56, %v1360_v54  ;;  %v1623_v8 = vmul.f32 %v6202_v56, %v1361_v6  ;;  %v1372_v38 = vld [vmem:[#allocation2 + $0x440] sm:$0xff] }
 0x251   : > { %5469 = vst [vmem:[%s7116_s5 + $0x1d0] sm:$0xff] %v5065_v7   ;;  %v2649_v10 = vsel %vm2137_vm10, %v1881_v3, %v2393_v11  ;;  %v1883_v16 = vadd.f32 %v6211_v28, %v1621_v12  ;;  %v1624_v51 = vmul.f32 %v6202_v56, %v1362_v9  ;;  %v1625_v19 = vmul.f32 %v6202_v56, %v1363_v36  ;;  %v1371_v7 = vld [vmem:[#allocation2 + $0x438] sm:$0xff]  ;;  %v1374_v11 = vld [vmem:[#allocation2 + $0x450] sm:$0xff] }
 0x252   : > { %5470 = vst [vmem:[%s7116_s5 + $0x1d8] sm:$0xff] %v5070_v29   ;;  %v5075_v21 = vpack.c.bf16 %v2649_v10, %v2648_v59  ;;  %vm2138_vm11 = vcmp.ge.f32.partialorder %v1882_v14, 0.0  ;;  %v2394_v1 = vmul.f32 0.2, %v1882_v14  ;;  %v1884_v22 = vadd.f32 %v6211_v28, %v1622_v15  ;;  %v1373_v29 = vld [vmem:[#allocation2 + $0x448] sm:$0xff]  ;;  %v1375_v12 = vld [vmem:[#allocation2 + $0x458] sm:$0xff] }
 0x253   : > { %vm2139_vm12 = vcmp.ge.f32.partialorder %v1883_v16, 0.0  ;;  %v2395_v34 = vmul.f32 0.2, %v1883_v16  ;;  %v1885_v23 = vadd.f32 %v6211_v28, %v1623_v8  ;;  %v1886_v2 = vadd.f32 %v6211_v28, %v1624_v51 }
 0x254   : > { %5471 = vst [vmem:[%s7116_s5 + $0x1e0] sm:$0xff] %v5075_v21   ;;  %v2650_v27 = vsel %vm2138_vm11, %v1882_v14, %v2394_v1  ;;  %vm2140_vm13 = vcmp.ge.f32.partialorder %v1884_v22, 0.0  ;;  %v2396_v47 = vmul.f32 0.2, %v1884_v22  ;;  %v1887_v31 = vadd.f32 %v6211_v28, %v1625_v19 }
 0x255   : > { %v2651_v32 = vsel %vm2139_vm12, %v1883_v16, %v2395_v34  ;;  %vm2141_vm14 = vcmp.ge.f32.partialorder %v1885_v23, 0.0  ;;  %v2397_v41 = vmul.f32 0.2, %v1885_v23  ;;  %vm2142_vm15 = vcmp.ge.f32.partialorder %v1886_v2, 0.0 }
 0x256   : > { %v5080_v13 = vpack.c.bf16 %v2651_v32, %v2650_v27  ;;  %v2652_v37 = vsel %vm2140_vm13, %v1884_v22, %v2396_v47  ;;  %vm2143_vm0 = vcmp.ge.f32.partialorder %v1887_v31, 0.0  ;;  %v2398_v39 = vmul.f32 0.2, %v1886_v2 }
 0x257   : > { %v2653_v40 = vsel %vm2141_vm14, %v1885_v23, %v2397_v41  ;;  %v2399_v5 = vmul.f32 0.2, %v1887_v31  ;;  %v1626_v42 = vmul.f32 %v6202_v56, %v1364_v25  ;;  %v1627_v30 = vmul.f32 %v6202_v56, %v1365_v26  ;;  %v1376_v41 = vld [vmem:[#allocation2 + $0x460] sm:$0xff] }
 0x258   : > { %5472 = vst [vmem:[%s7116_s5 + $0x1e8] sm:$0xff] %v5080_v13   ;;  %v5085_v43 = vpack.c.bf16 %v2653_v40, %v2652_v37  ;;  %v2654_v45 = vsel %vm2142_vm15, %v1886_v2, %v2398_v39  ;;  %v1628_v52 = vmul.f32 %v6202_v56, %v1366_v33  ;;  %v1629_v55 = vmul.f32 %v6202_v56, %v1367_v35  ;;  %v1377_v33 = vld [vmem:[#allocation2 + $0x468] sm:$0xff]  ;;  %v1378_v35 = vld [vmem:[#allocation2 + $0x470] sm:$0xff]  ;;  %v1379_v40 = vld [vmem:[#allocation2 + $0x478] sm:$0xff] }
 0x259   : > { %v2655_v46 = vsel %vm2143_vm0, %v1887_v31, %v2399_v5  ;;  %v1888_v48 = vadd.f32 %v6211_v28, %v1626_v42  ;;  %v1889_v50 = vadd.f32 %v6211_v28, %v1627_v30  ;;  %v1630_v4 = vmul.f32 %v6202_v56, %v1368_v20  ;;  %v1380_v5 = vld [vmem:[#allocation2 + $0x480] sm:$0xff] }
 0x25a   : > { %5473 = vst [vmem:[%s7116_s5 + $0x1f0] sm:$0xff] %v5085_v43   ;;  %v5090_v53 = vpack.c.bf16 %v2655_v46, %v2654_v45  ;;  %v1890_v63 = vadd.f32 %v6211_v28, %v1628_v52  ;;  %v1891_v49 = vadd.f32 %v6211_v28, %v1629_v55  ;;  %v1631_v57 = vmul.f32 %v6202_v56, %v1369_v18  ;;  %v1381_v45 = vld [vmem:[#allocation2 + $0x488] sm:$0xff] }
 0x25b   : > { %vm2144_vm1 = vcmp.ge.f32.partialorder %v1888_v48, 0.0  ;;  %vm2145_vm2 = vcmp.ge.f32.partialorder %v1889_v50, 0.0  ;;  %v2400_v60 = vmul.f32 0.2, %v1888_v48  ;;  %v2401_v44 = vmul.f32 0.2, %v1889_v50 }
 0x25c   : > { %5474 = vst [vmem:[%s7116_s5 + $0x1f8] sm:$0xff] %v5090_v53   ;;  %vm2146_vm3 = vcmp.ge.f32.partialorder %v1890_v63, 0.0  ;;  %vm2147_vm4 = vcmp.ge.f32.partialorder %v1891_v49, 0.0  ;;  %v2402_v61 = vmul.f32 0.2, %v1890_v63  ;;  %v1892_v54 = vadd.f32 %v6211_v28, %v1630_v4 }
 0x25d   : > { %v2403_v0 = vmul.f32 0.2, %v1891_v49  ;;  %v2656_v24 = vsel %vm2144_vm1, %v1888_v48, %v2400_v60  ;;  %v2657_v3 = vsel %vm2145_vm2, %v1889_v50, %v2401_v44  ;;  %v1893_v6 = vadd.f32 %v6211_v28, %v1631_v57  ;;  %v1382_v50 = vld [vmem:[#allocation2 + $0x490] sm:$0xff] }
 0x25e   : > { %v5095_v62 = vpack.c.bf16 %v2657_v3, %v2656_v24  ;;  %v2658_v17 = vsel %vm2146_vm3, %v1890_v63, %v2402_v61  ;;  %v1632_v36 = vmul.f32 %v6202_v56, %v1370_v58  ;;  %vm2148_vm5 = vcmp.ge.f32.partialorder %v1892_v54, 0.0  ;;  %v1383_v3 = vld [vmem:[#allocation2 + $0x498] sm:$0xff] }
 0x25f   : > { %v2659_v9 = vsel %vm2147_vm4, %v1891_v49, %v2403_v0  ;;  %vm2149_vm6 = vcmp.ge.f32.partialorder %v1893_v6, 0.0  ;;  %v2404_v14 = vmul.f32 0.2, %v1892_v54  ;;  %v2405_v15 = vmul.f32 0.2, %v1893_v6 }
 0x260   : > { %v5100_v59 = vpack.c.bf16 %v2659_v9, %v2658_v17  ;;  %5475 = vst [vmem:[%s7116_s5 + $0x200] sm:$0xff] %v5095_v62   ;;  %v1633_v8 = vmul.f32 %v6202_v56, %v1371_v7  ;;  %v1894_v10 = vadd.f32 %v6211_v28, %v1632_v36  ;;  %v1634_v16 = vmul.f32 %v6202_v56, %v1372_v38 }
 0x261   : > { %v2660_v51 = vsel %vm2148_vm5, %v1892_v54, %v2404_v14  ;;  %v1635_v19 = vmul.f32 %v6202_v56, %v1373_v29  ;;  %v1636_v21 = vmul.f32 %v6202_v56, %v1374_v11  ;;  %v1637_v1 = vmul.f32 %v6202_v56, %v1375_v12  ;;  %v1384_v29 = vld [vmem:[#allocation2 + $0x4a0] sm:$0xff]  ;;  %v1385_v11 = vld [vmem:[#allocation2 + $0x4a8] sm:$0xff] }
 0x262   : > { %5476 = vst [vmem:[%s7116_s5 + $0x208] sm:$0xff] %v5100_v59   ;;  %v2661_v22 = vsel %vm2149_vm6, %v1893_v6, %v2405_v15  ;;  %v1895_v34 = vadd.f32 %v6211_v28, %v1633_v8  ;;  %vm2150_vm7 = vcmp.ge.f32.partialorder %v1894_v10, 0.0  ;;  %v2406_v23 = vmul.f32 0.2, %v1894_v10  ;;  %v1386_v8 = vld [vmem:[#allocation2 + $0x4b0] sm:$0xff] }
 0x263   : > { %v5105_v2 = vpack.c.bf16 %v2661_v22, %v2660_v51  ;;  %v1896_v27 = vadd.f32 %v6211_v28, %v1634_v16  ;;  %v1897_v47 = vadd.f32 %v6211_v28, %v1635_v19  ;;  %v1898_v31 = vadd.f32 %v6211_v28, %v1636_v21 }
 0x264   : > { %vm2151_vm8 = vcmp.ge.f32.partialorder %v1895_v34, 0.0  ;;  %v2407_v25 = vmul.f32 0.2, %v1895_v34  ;;  %v2662_v26 = vsel %vm2150_vm7, %v1894_v10, %v2406_v23  ;;  %v1899_v32 = vadd.f32 %v6211_v28, %v1637_v1  ;;  %v1387_v10 = vld [vmem:[#allocation2 + $0x4b8] sm:$0xff] }
 0x265   : > { %5477 = vst [vmem:[%s7116_s5 + $0x210] sm:$0xff] %v5105_v2   ;;  %vm2152_vm9 = vcmp.ge.f32.partialorder %v1896_v27, 0.0  ;;  %vm2153_vm10 = vcmp.ge.f32.partialorder %v1897_v47, 0.0  ;;  %v2408_v13 = vmul.f32 0.2, %v1896_v27  ;;  %vm2154_vm11 = vcmp.ge.f32.partialorder %v1898_v31, 0.0 }
 0x266   : > { %v2409_v37 = vmul.f32 0.2, %v1897_v47  ;;  %v2663_v39 = vsel %vm2151_vm8, %v1895_v34, %v2407_v25  ;;  %vm2155_vm12 = vcmp.ge.f32.partialorder %v1899_v32, 0.0  ;;  %v2410_v20 = vmul.f32 0.2, %v1898_v31 }
 0x267   : > { %v5110_v42 = vpack.c.bf16 %v2663_v39, %v2662_v26  ;;  %v2664_v30 = vsel %vm2152_vm9, %v1896_v27, %v2408_v13  ;;  %v2411_v43 = vmul.f32 0.2, %v1899_v32  ;;  %v1638_v46 = vmul.f32 %v6202_v56, %v1376_v41  ;;  %v1388_v39 = vld [vmem:[#allocation2 + $0x4c0] sm:$0xff] }
 0x268   : > { %v2665_v18 = vsel %vm2153_vm10, %v1897_v47, %v2409_v37  ;;  %v2666_v55 = vsel %vm2154_vm11, %v1898_v31, %v2410_v20  ;;  %v1639_v48 = vmul.f32 %v6202_v56, %v1377_v33  ;;  %v1640_v53 = vmul.f32 %v6202_v56, %v1378_v35  ;;  %v1389_v20 = vld [vmem:[#allocation2 + $0x4c8] sm:$0xff] }
 0x269   : > { %v5115_v52 = vpack.c.bf16 %v2665_v18, %v2664_v30  ;;  %5478 = vst [vmem:[%s7116_s5 + $0x218] sm:$0xff] %v5110_v42   ;;  %v2667_v4 = vsel %vm2155_vm12, %v1899_v32, %v2411_v43  ;;  %v1641_v63 = vmul.f32 %v6202_v56, %v1379_v40  ;;  %v1642_v49 = vmul.f32 %v6202_v56, %v1380_v5  ;;  %v1390_v42 = vld [vmem:[#allocation2 + $0x4d0] sm:$0xff]  ;;  %v1391_v30 = vld [vmem:[#allocation2 + $0x4d8] sm:$0xff] }
 0x26a   : > { %v5120_v57 = vpack.c.bf16 %v2667_v4, %v2666_v55  ;;  %v1900_v58 = vadd.f32 %v6211_v28, %v1638_v46  ;;  %v1901_v60 = vadd.f32 %v6211_v28, %v1639_v48  ;;  %v1643_v44 = vmul.f32 %v6202_v56, %v1381_v45  ;;  %v1393_v4 = vld [vmem:[#allocation2 + $0x4e8] sm:$0xff] }
 0x26b   : > { %5479 = vst [vmem:[%s7116_s5 + $0x220] sm:$0xff] %v5115_v52   ;;  %v1902_v61 = vadd.f32 %v6211_v28, %v1640_v53  ;;  %v1903_v0 = vadd.f32 %v6211_v28, %v1641_v63  ;;  %v1904_v24 = vadd.f32 %v6211_v28, %v1642_v49  ;;  %v1644_v54 = vmul.f32 %v6202_v56, %v1382_v50  ;;  %v1392_v52 = vld [vmem:[#allocation2 + $0x4e0] sm:$0xff] }
 0x26c   : > { %5480 = vst [vmem:[%s7116_s5 + $0x228] sm:$0xff] %v5120_v57   ;;  %vm2156_vm13 = vcmp.ge.f32.partialorder %v1900_v58, 0.0  ;;  %vm2157_vm14 = vcmp.ge.f32.partialorder %v1901_v60, 0.0  ;;  %v2412_v6 = vmul.f32 0.2, %v1900_v58  ;;  %v1905_v36 = vadd.f32 %v6211_v28, %v1643_v44 }
 0x26d   : > { %v2413_v7 = vmul.f32 0.2, %v1901_v60  ;;  %vm2158_vm15 = vcmp.ge.f32.partialorder %v1902_v61, 0.0  ;;  %vm2159_vm0 = vcmp.ge.f32.partialorder %v1903_v0, 0.0  ;;  %v2414_v38 = vmul.f32 0.2, %v1902_v61 }
 0x26e   : > { %v2415_v62 = vmul.f32 0.2, %v1903_v0  ;;  %v2668_v17 = vsel %vm2156_vm13, %v1900_v58, %v2412_v6  ;;  %vm2160_vm1 = vcmp.ge.f32.partialorder %v1904_v24, 0.0  ;;  %v2416_v15 = vmul.f32 0.2, %v1904_v24  ;;  %v1394_v6 = vld [vmem:[#allocation2 + $0x4f0] sm:$0xff] }
 0x26f   : > { %v2669_v9 = vsel %vm2157_vm14, %v1901_v60, %v2413_v7  ;;  %v2670_v59 = vsel %vm2158_vm15, %v1902_v61, %v2414_v38  ;;  %vm2161_vm2 = vcmp.ge.f32.partialorder %v1905_v36, 0.0  ;;  %v2417_v51 = vmul.f32 0.2, %v1905_v36 }
 0x270   : > { %v5125_v12 = vpack.c.bf16 %v2669_v9, %v2668_v17  ;;  %v2671_v14 = vsel %vm2159_vm0, %v1903_v0, %v2415_v62  ;;  %v1645_v19 = vmul.f32 %v6202_v56, %v1383_v3  ;;  %v2672_v21 = vsel %vm2160_vm1, %v1904_v24, %v2416_v15 }
 0x271   : > { %v5130_v16 = vpack.c.bf16 %v2671_v14, %v2670_v59  ;;  %v1906_v1 = vadd.f32 %v6211_v28, %v1644_v54  ;;  %v1646_v22 = vmul.f32 %v6202_v56, %v1384_v29  ;;  %v1647_v34 = vmul.f32 %v6202_v56, %v1385_v11  ;;  %v1396_v59 = vld [vmem:[#allocation2 + $0x500] sm:$0xff] }
 0x272   : > { %5481 = vst [vmem:[%s7116_s5 + $0x230] sm:$0xff] %v5125_v12   ;;  %v2673_v23 = vsel %vm2161_vm2, %v1905_v36, %v2417_v51  ;;  %v1907_v2 = vadd.f32 %v6211_v28, %v1645_v19  ;;  %v1648_v27 = vmul.f32 %v6202_v56, %v1386_v8  ;;  %v1649_v47 = vmul.f32 %v6202_v56, %v1387_v10  ;;  %v1395_v12 = vld [vmem:[#allocation2 + $0x4f8] sm:$0xff]  ;;  %v1398_v51 = vld [vmem:[#allocation2 + $0x510] sm:$0xff] }
 0x273   : > { %5482 = vst [vmem:[%s7116_s5 + $0x238] sm:$0xff] %v5130_v16   ;;  %v5135_v31 = vpack.c.bf16 %v2673_v23, %v2672_v21  ;;  %vm2162_vm3 = vcmp.ge.f32.partialorder %v1906_v1, 0.0  ;;  %v2418_v25 = vmul.f32 0.2, %v1906_v1  ;;  %v1908_v26 = vadd.f32 %v6211_v28, %v1646_v22  ;;  %v1397_v16 = vld [vmem:[#allocation2 + $0x508] sm:$0xff]  ;;  %v1399_v19 = vld [vmem:[#allocation2 + $0x518] sm:$0xff] }
 0x274   : > { %vm2163_vm4 = vcmp.ge.f32.partialorder %v1907_v2, 0.0  ;;  %v2419_v32 = vmul.f32 0.2, %v1907_v2  ;;  %v1909_v41 = vadd.f32 %v6211_v28, %v1647_v34  ;;  %v1910_v33 = vadd.f32 %v6211_v28, %v1648_v27 }
 0x275   : > { %5483 = vst [vmem:[%s7116_s5 + $0x240] sm:$0xff] %v5135_v31   ;;  %v2674_v35 = vsel %vm2162_vm3, %v1906_v1, %v2418_v25  ;;  %vm2164_vm5 = vcmp.ge.f32.partialorder %v1908_v26, 0.0  ;;  %v2420_v13 = vmul.f32 0.2, %v1908_v26  ;;  %v1911_v37 = vadd.f32 %v6211_v28, %v1649_v47 }
 0x276   : > { %v2675_v40 = vsel %vm2163_vm4, %v1907_v2, %v2419_v32  ;;  %vm2165_vm6 = vcmp.ge.f32.partialorder %v1909_v41, 0.0  ;;  %v2421_v5 = vmul.f32 0.2, %v1909_v41  ;;  %vm2166_vm7 = vcmp.ge.f32.partialorder %v1910_v33, 0.0 }
 0x277   : > { %v5140_v18 = vpack.c.bf16 %v2675_v40, %v2674_v35  ;;  %v2676_v43 = vsel %vm2164_vm5, %v1908_v26, %v2420_v13  ;;  %vm2167_vm8 = vcmp.ge.f32.partialorder %v1911_v37, 0.0  ;;  %v2422_v45 = vmul.f32 0.2, %v1910_v33 }
 0x278   : > { %v2677_v55 = vsel %vm2165_vm6, %v1909_v41, %v2421_v5  ;;  %v2423_v46 = vmul.f32 0.2, %v1911_v37  ;;  %v1650_v48 = vmul.f32 %v6202_v56, %v1388_v39  ;;  %v1651_v50 = vmul.f32 %v6202_v56, %v1389_v20  ;;  %v1400_v5 = vld [vmem:[#allocation2 + $0x520] sm:$0xff] }
 0x279   : > { %5484 = vst [vmem:[%s7116_s5 + $0x248] sm:$0xff] %v5140_v18   ;;  %v5145_v53 = vpack.c.bf16 %v2677_v55, %v2676_v43  ;;  %v2678_v63 = vsel %vm2166_vm7, %v1910_v33, %v2422_v45  ;;  %v1652_v49 = vmul.f32 %v6202_v56, %v1390_v42  ;;  %v1653_v57 = vmul.f32 %v6202_v56, %v1391_v30  ;;  %v1401_v42 = vld [vmem:[#allocation2 + $0x528] sm:$0xff]  ;;  %v1402_v30 = vld [vmem:[#allocation2 + $0x530] sm:$0xff]  ;;  %v1403_v55 = vld [vmem:[#allocation2 + $0x538] sm:$0xff] }
 0x27a   : > { %v2679_v58 = vsel %vm2167_vm8, %v1911_v37, %v2423_v46  ;;  %v1912_v60 = vadd.f32 %v6211_v28, %v1650_v48  ;;  %v1913_v44 = vadd.f32 %v6211_v28, %v1651_v50  ;;  %v1654_v61 = vmul.f32 %v6202_v56, %v1392_v52  ;;  %v1404_v46 = vld [vmem:[#allocation2 + $0x540] sm:$0xff] }
 0x27b   : > { %5485 = vst [vmem:[%s7116_s5 + $0x250] sm:$0xff] %v5145_v53   ;;  %v5150_v0 = vpack.c.bf16 %v2679_v58, %v2678_v63  ;;  %v1914_v24 = vadd.f32 %v6211_v28, %v1652_v49  ;;  %v1915_v3 = vadd.f32 %v6211_v28, %v1653_v57  ;;  %v1655_v54 = vmul.f32 %v6202_v56, %v1393_v4  ;;  %v1405_v63 = vld [vmem:[#allocation2 + $0x548] sm:$0xff] }
 0x27c   : > { %vm2168_vm9 = vcmp.ge.f32.partialorder %v1912_v60, 0.0  ;;  %vm2169_vm10 = vcmp.ge.f32.partialorder %v1913_v44, 0.0  ;;  %v2424_v7 = vmul.f32 0.2, %v1912_v60  ;;  %v2425_v38 = vmul.f32 0.2, %v1913_v44 }
 0x27d   : > { %5486 = vst [vmem:[%s7116_s5 + $0x258] sm:$0xff] %v5150_v0   ;;  %vm2170_vm11 = vcmp.ge.f32.partialorder %v1914_v24, 0.0  ;;  %vm2171_vm12 = vcmp.ge.f32.partialorder %v1915_v3, 0.0  ;;  %v2426_v62 = vmul.f32 0.2, %v1914_v24  ;;  %v1916_v29 = vadd.f32 %v6211_v28, %v1654_v61 }
 0x27e   : > { %v2427_v17 = vmul.f32 0.2, %v1915_v3  ;;  %v2680_v9 = vsel %vm2168_vm9, %v1912_v60, %v2424_v7  ;;  %v2681_v36 = vsel %vm2169_vm10, %v1913_v44, %v2425_v38  ;;  %v1917_v11 = vadd.f32 %v6211_v28, %v1655_v54  ;;  %v1406_v44 = vld [vmem:[#allocation2 + $0x550] sm:$0xff] }
 0x27f   : > { %v5155_v14 = vpack.c.bf16 %v2681_v36, %v2680_v9  ;;  %v2682_v15 = vsel %vm2170_vm11, %v1914_v24, %v2426_v62  ;;  %v1656_v10 = vmul.f32 %v6202_v56, %v1394_v6  ;;  %vm2172_vm13 = vcmp.ge.f32.partialorder %v1916_v29, 0.0  ;;  %v1407_v36 = vld [vmem:[#allocation2 + $0x558] sm:$0xff] }
 0x280   : > { %v2683_v8 = vsel %vm2171_vm12, %v1915_v3, %v2427_v17  ;;  %vm2173_vm14 = vcmp.ge.f32.partialorder %v1917_v11, 0.0  ;;  %v2428_v1 = vmul.f32 0.2, %v1916_v29  ;;  %v2429_v22 = vmul.f32 0.2, %v1917_v11 }
 0x281   : > { %v5160_v21 = vpack.c.bf16 %v2683_v8, %v2682_v15  ;;  %5487 = vst [vmem:[%s7116_s5 + $0x260] sm:$0xff] %v5155_v14   ;;  %v1657_v34 = vmul.f32 %v6202_v56, %v1395_v12  ;;  %v1918_v23 = vadd.f32 %v6211_v28, %v1656_v10  ;;  %v1658_v2 = vmul.f32 %v6202_v56, %v1396_v59 }
 0x282   : > { %v2684_v27 = vsel %vm2172_vm13, %v1916_v29, %v2428_v1  ;;  %v1659_v47 = vmul.f32 %v6202_v56, %v1397_v16  ;;  %v1660_v31 = vmul.f32 %v6202_v56, %v1398_v51  ;;  %v1661_v25 = vmul.f32 %v6202_v56, %v1399_v19  ;;  %v1408_v16 = vld [vmem:[#allocation2 + $0x560] sm:$0xff]  ;;  %v1409_v51 = vld [vmem:[#allocation2 + $0x568] sm:$0xff] }
 0x283   : > { %5488 = vst [vmem:[%s7116_s5 + $0x268] sm:$0xff] %v5160_v21   ;;  %v2685_v26 = vsel %vm2173_vm14, %v1917_v11, %v2429_v22  ;;  %v1919_v32 = vadd.f32 %v6211_v28, %v1657_v34  ;;  %vm2174_vm15 = vcmp.ge.f32.partialorder %v1918_v23, 0.0  ;;  %v2430_v41 = vmul.f32 0.2, %v1918_v23  ;;  %v1410_v34 = vld [vmem:[#allocation2 + $0x570] sm:$0xff] }
 0x284   : > { %v5165_v33 = vpack.c.bf16 %v2685_v26, %v2684_v27  ;;  %v1920_v35 = vadd.f32 %v6211_v28, %v1658_v2  ;;  %v1921_v13 = vadd.f32 %v6211_v28, %v1659_v47  ;;  %v1922_v37 = vadd.f32 %v6211_v28, %v1660_v31 }
 0x285   : > { %vm2175_vm0 = vcmp.ge.f32.partialorder %v1919_v32, 0.0  ;;  %v2431_v39 = vmul.f32 0.2, %v1919_v32  ;;  %v2686_v20 = vsel %vm2174_vm15, %v1918_v23, %v2430_v41  ;;  %v1923_v40 = vadd.f32 %v6211_v28, %v1661_v25  ;;  %v1411_v23 = vld [vmem:[#allocation2 + $0x578] sm:$0xff] }
 0x286   : > { %5489 = vst [vmem:[%s7116_s5 + $0x270] sm:$0xff] %v5165_v33   ;;  %vm2176_vm1 = vcmp.ge.f32.partialorder %v1920_v35, 0.0  ;;  %vm2177_vm2 = vcmp.ge.f32.partialorder %v1921_v13, 0.0  ;;  %v2432_v18 = vmul.f32 0.2, %v1920_v35  ;;  %vm2178_vm3 = vcmp.ge.f32.partialorder %v1922_v37, 0.0 }
 0x287   : > { %v2433_v43 = vmul.f32 0.2, %v1921_v13  ;;  %v2687_v45 = vsel %vm2175_vm0, %v1919_v32, %v2431_v39  ;;  %vm2179_vm4 = vcmp.ge.f32.partialorder %v1923_v40, 0.0  ;;  %v2434_v52 = vmul.f32 0.2, %v1922_v37 }
 0x288   : > { %v5170_v48 = vpack.c.bf16 %v2687_v45, %v2686_v20  ;;  %v2688_v50 = vsel %vm2176_vm1, %v1920_v35, %v2432_v18  ;;  %v2435_v53 = vmul.f32 0.2, %v1923_v40  ;;  %v1662_v58 = vmul.f32 %v6202_v56, %v1400_v5  ;;  %v1412_v45 = vld [vmem:[#allocation2 + $0x580] sm:$0xff] }
 0x289   : > { %v2689_v4 = vsel %vm2177_vm2, %v1921_v13, %v2433_v43  ;;  %v2690_v57 = vsel %vm2178_vm3, %v1922_v37, %v2434_v52  ;;  %v1663_v60 = vmul.f32 %v6202_v56, %v1401_v42  ;;  %v1664_v0 = vmul.f32 %v6202_v56, %v1402_v30  ;;  %v1413_v52 = vld [vmem:[#allocation2 + $0x588] sm:$0xff] }
 0x28a   : > { %v5175_v49 = vpack.c.bf16 %v2689_v4, %v2688_v50  ;;  %5490 = vst [vmem:[%s7116_s5 + $0x278] sm:$0xff] %v5170_v48   ;;  %v2691_v61 = vsel %vm2179_vm4, %v1923_v40, %v2435_v53  ;;  %v1665_v24 = vmul.f32 %v6202_v56, %v1403_v55  ;;  %v1666_v3 = vmul.f32 %v6202_v56, %v1404_v46  ;;  %v1414_v48 = vld [vmem:[#allocation2 + $0x590] sm:$0xff]  ;;  %v1415_v50 = vld [vmem:[#allocation2 + $0x598] sm:$0xff] }
 0x28b   : > { %v5180_v54 = vpack.c.bf16 %v2691_v61, %v2690_v57  ;;  %v1924_v6 = vadd.f32 %v6211_v28, %v1662_v58  ;;  %v1925_v7 = vadd.f32 %v6211_v28, %v1663_v60  ;;  %v1667_v38 = vmul.f32 %v6202_v56, %v1405_v63  ;;  %v1417_v61 = vld [vmem:[#allocation2 + $0x5a8] sm:$0xff] }
 0x28c   : > { %5491 = vst [vmem:[%s7116_s5 + $0x280] sm:$0xff] %v5175_v49   ;;  %v1926_v62 = vadd.f32 %v6211_v28, %v1664_v0  ;;  %v1927_v17 = vadd.f32 %v6211_v28, %v1665_v24  ;;  %v1928_v9 = vadd.f32 %v6211_v28, %v1666_v3  ;;  %v1668_v29 = vmul.f32 %v6202_v56, %v1406_v44  ;;  %v1416_v49 = vld [vmem:[#allocation2 + $0x5a0] sm:$0xff] }
 0x28d   : > { %5492 = vst [vmem:[%s7116_s5 + $0x288] sm:$0xff] %v5180_v54   ;;  %vm2180_vm5 = vcmp.ge.f32.partialorder %v1924_v6, 0.0  ;;  %vm2181_vm6 = vcmp.ge.f32.partialorder %v1925_v7, 0.0  ;;  %v2436_v11 = vmul.f32 0.2, %v1924_v6  ;;  %v1929_v10 = vadd.f32 %v6211_v28, %v1667_v38 }
 0x28e   : > { %v2437_v12 = vmul.f32 0.2, %v1925_v7  ;;  %vm2182_vm7 = vcmp.ge.f32.partialorder %v1926_v62, 0.0  ;;  %vm2183_vm8 = vcmp.ge.f32.partialorder %v1927_v17, 0.0  ;;  %v2438_v59 = vmul.f32 0.2, %v1926_v62 }
 0x28f   : > { %v2439_v14 = vmul.f32 0.2, %v1927_v17  ;;  %v2692_v15 = vsel %vm2180_vm5, %v1924_v6, %v2436_v11  ;;  %vm2184_vm9 = vcmp.ge.f32.partialorder %v1928_v9, 0.0  ;;  %v2440_v22 = vmul.f32 0.2, %v1928_v9  ;;  %v1418_v11 = vld [vmem:[#allocation2 + $0x5b0] sm:$0xff] }
 0x290   : > { %v2693_v8 = vsel %vm2181_vm6, %v1925_v7, %v2437_v12  ;;  %v2694_v21 = vsel %vm2182_vm7, %v1926_v62, %v2438_v59  ;;  %vm2185_vm10 = vcmp.ge.f32.partialorder %v1929_v10, 0.0  ;;  %v2441_v27 = vmul.f32 0.2, %v1929_v10 }
 0x291   : > { %v5185_v19 = vpack.c.bf16 %v2693_v8, %v2692_v15  ;;  %v2695_v1 = vsel %vm2183_vm8, %v1927_v17, %v2439_v14  ;;  %v1669_v47 = vmul.f32 %v6202_v56, %v1407_v36  ;;  %v2696_v31 = vsel %vm2184_vm9, %v1928_v9, %v2440_v22 }
 0x292   : > { %v5190_v2 = vpack.c.bf16 %v2695_v1, %v2694_v21  ;;  %v1930_v25 = vadd.f32 %v6211_v28, %v1668_v29  ;;  %v1670_v26 = vmul.f32 %v6202_v56, %v1408_v16  ;;  %v1671_v32 = vmul.f32 %v6202_v56, %v1409_v51  ;;  %v1420_v21 = vld [vmem:[#allocation2 + $0x5c0] sm:$0xff] }
 0x293   : > { %5493 = vst [vmem:[%s7116_s5 + $0x290] sm:$0xff] %v5185_v19   ;;  %v2697_v41 = vsel %vm2185_vm10, %v1929_v10, %v2441_v27  ;;  %v1931_v33 = vadd.f32 %v6211_v28, %v1669_v47  ;;  %v1672_v35 = vmul.f32 %v6202_v56, %v1410_v34  ;;  %v1673_v13 = vmul.f32 %v6202_v56, %v1411_v23  ;;  %v1419_v19 = vld [vmem:[#allocation2 + $0x5b8] sm:$0xff]  ;;  %v1422_v27 = vld [vmem:[#allocation2 + $0x5d0] sm:$0xff] }
 0x294   : > { %5494 = vst [vmem:[%s7116_s5 + $0x298] sm:$0xff] %v5190_v2   ;;  %v5195_v37 = vpack.c.bf16 %v2697_v41, %v2696_v31  ;;  %vm2186_vm11 = vcmp.ge.f32.partialorder %v1930_v25, 0.0  ;;  %v2442_v39 = vmul.f32 0.2, %v1930_v25  ;;  %v1932_v20 = vadd.f32 %v6211_v28, %v1670_v26  ;;  %v1421_v2 = vld [vmem:[#allocation2 + $0x5c8] sm:$0xff]  ;;  %v1423_v47 = vld [vmem:[#allocation2 + $0x5d8] sm:$0xff] }
 0x295   : > { %vm2187_vm12 = vcmp.ge.f32.partialorder %v1931_v33, 0.0  ;;  %v2443_v40 = vmul.f32 0.2, %v1931_v33  ;;  %v1933_v5 = vadd.f32 %v6211_v28, %v1671_v32  ;;  %v1934_v42 = vadd.f32 %v6211_v28, %v1672_v35 }
 0x296   : > { %5495 = vst [vmem:[%s7116_s5 + $0x2a0] sm:$0xff] %v5195_v37   ;;  %v2698_v30 = vsel %vm2186_vm11, %v1930_v25, %v2442_v39  ;;  %vm2188_vm13 = vcmp.ge.f32.partialorder %v1932_v20, 0.0  ;;  %v2444_v18 = vmul.f32 0.2, %v1932_v20  ;;  %v1935_v43 = vadd.f32 %v6211_v28, %v1673_v13 }
 0x297   : > { %v2699_v55 = vsel %vm2187_vm12, %v1931_v33, %v2443_v40  ;;  %vm2189_vm14 = vcmp.ge.f32.partialorder %v1933_v5, 0.0  ;;  %v2445_v46 = vmul.f32 0.2, %v1933_v5  ;;  %vm2190_vm15 = vcmp.ge.f32.partialorder %v1934_v42, 0.0 }
 0x298   : > { %v5200_v4 = vpack.c.bf16 %v2699_v55, %v2698_v30  ;;  %v2700_v53 = vsel %vm2188_vm13, %v1932_v20, %v2444_v18  ;;  %vm2191_vm0 = vcmp.ge.f32.partialorder %v1935_v43, 0.0  ;;  %v2446_v63 = vmul.f32 0.2, %v1934_v42 }
 0x299   : > { %v2701_v57 = vsel %vm2189_vm14, %v1933_v5, %v2445_v46  ;;  %v2447_v58 = vmul.f32 0.2, %v1935_v43  ;;  %v1674_v60 = vmul.f32 %v6202_v56, %v1412_v45  ;;  %v1675_v44 = vmul.f32 %v6202_v56, %v1413_v52  ;;  %v1424_v46 = vld [vmem:[#allocation2 + $0x5e0] sm:$0xff] }
 0x29a   : > { %5496 = vst [vmem:[%s7116_s5 + $0x2a8] sm:$0xff] %v5200_v4   ;;  %v5205_v0 = vpack.c.bf16 %v2701_v57, %v2700_v53  ;;  %v2702_v24 = vsel %vm2190_vm15, %v1934_v42, %v2446_v63  ;;  %v1676_v3 = vmul.f32 %v6202_v56, %v1414_v48  ;;  %v1677_v54 = vmul.f32 %v6202_v56, %v1415_v50  ;;  %v1425_v48 = vld [vmem:[#allocation2 + $0x5e8] sm:$0xff]  ;;  %v1426_v50 = vld [vmem:[#allocation2 + $0x5f0] sm:$0xff]  ;;  %v1427_v57 = vld [vmem:[#allocation2 + $0x5f8] sm:$0xff] }
 0x29b   : > { %v2703_v6 = vsel %vm2191_vm0, %v1935_v43, %v2447_v58  ;;  %v1936_v7 = vadd.f32 %v6211_v28, %v1674_v60  ;;  %v1937_v38 = vadd.f32 %v6211_v28, %v1675_v44  ;;  %v1678_v62 = vmul.f32 %v6202_v56, %v1416_v49  ;;  %v1428_v58 = vld [vmem:[#allocation2 + $0x600] sm:$0xff] }
 0x29c   : > { %5497 = vst [vmem:[%s7116_s5 + $0x2b0] sm:$0xff] %v5205_v0   ;;  %v5210_v17 = vpack.c.bf16 %v2703_v6, %v2702_v24  ;;  %v1938_v9 = vadd.f32 %v6211_v28, %v1676_v3  ;;  %v1939_v36 = vadd.f32 %v6211_v28, %v1677_v54  ;;  %v1679_v29 = vmul.f32 %v6202_v56, %v1417_v61  ;;  %v1429_v24 = vld [vmem:[#allocation2 + $0x608] sm:$0xff] }
 0x29d   : > { %vm2192_vm1 = vcmp.ge.f32.partialorder %v1936_v7, 0.0  ;;  %vm2193_vm2 = vcmp.ge.f32.partialorder %v1937_v38, 0.0  ;;  %v2448_v12 = vmul.f32 0.2, %v1936_v7  ;;  %v2449_v59 = vmul.f32 0.2, %v1937_v38 }
 0x29e   : > { %5498 = vst [vmem:[%s7116_s5 + $0x2b8] sm:$0xff] %v5210_v17   ;;  %vm2194_vm3 = vcmp.ge.f32.partialorder %v1938_v9, 0.0  ;;  %vm2195_vm4 = vcmp.ge.f32.partialorder %v1939_v36, 0.0  ;;  %v2450_v14 = vmul.f32 0.2, %v1938_v9  ;;  %v1940_v16 = vadd.f32 %v6211_v28, %v1678_v62 }
 0x29f   : > { %v2451_v15 = vmul.f32 0.2, %v1939_v36  ;;  %v2704_v8 = vsel %vm2192_vm1, %v1936_v7, %v2448_v12  ;;  %v2705_v10 = vsel %vm2193_vm2, %v1937_v38, %v2449_v59  ;;  %v1941_v51 = vadd.f32 %v6211_v28, %v1679_v29  ;;  %v1430_v38 = vld [vmem:[#allocation2 + $0x610] sm:$0xff] }
 0x2a0   : > { %v5215_v1 = vpack.c.bf16 %v2705_v10, %v2704_v8  ;;  %v2706_v22 = vsel %vm2194_vm3, %v1938_v9, %v2450_v14  ;;  %v1680_v23 = vmul.f32 %v6202_v56, %v1418_v11  ;;  %vm2196_vm5 = vcmp.ge.f32.partialorder %v1940_v16, 0.0  ;;  %v1431_v10 = vld [vmem:[#allocation2 + $0x618] sm:$0xff] }
 0x2a1   : > { %v2707_v34 = vsel %vm2195_vm4, %v1939_v36, %v2451_v15  ;;  %vm2197_vm6 = vcmp.ge.f32.partialorder %v1941_v51, 0.0  ;;  %v2452_v25 = vmul.f32 0.2, %v1940_v16  ;;  %v2453_v26 = vmul.f32 0.2, %v1941_v51 }
 0x2a2   : > { %v5220_v31 = vpack.c.bf16 %v2707_v34, %v2706_v22  ;;  %5499 = vst [vmem:[%s7116_s5 + $0x2c0] sm:$0xff] %v5215_v1   ;;  %v1681_v32 = vmul.f32 %v6202_v56, %v1419_v19  ;;  %v1942_v41 = vadd.f32 %v6211_v28, %v1680_v23  ;;  %v1682_v33 = vmul.f32 %v6202_v56, %v1420_v21 }
 0x2a3   : > { %v2708_v35 = vsel %vm2196_vm5, %v1940_v16, %v2452_v25  ;;  %v1683_v13 = vmul.f32 %v6202_v56, %v1421_v2  ;;  %v1684_v37 = vmul.f32 %v6202_v56, %v1422_v27  ;;  %v1685_v39 = vmul.f32 %v6202_v56, %v1423_v47  ;;  %v1432_v2 = vld [vmem:[#allocation2 + $0x620] sm:$0xff]  ;;  %v1433_v27 = vld [vmem:[#allocation2 + $0x628] sm:$0xff] }
 0x2a4   : > { %5500 = vst [vmem:[%s7116_s5 + $0x2c8] sm:$0xff] %v5220_v31   ;;  %v2709_v20 = vsel %vm2197_vm6, %v1941_v51, %v2453_v26  ;;  %v1943_v40 = vadd.f32 %v6211_v28, %v1681_v32  ;;  %vm2198_vm7 = vcmp.ge.f32.partialorder %v1942_v41, 0.0  ;;  %v2454_v5 = vmul.f32 0.2, %v1942_v41  ;;  %v1434_v32 = vld [vmem:[#allocation2 + $0x630] sm:$0xff] }
 0x2a5   : > { %v5225_v42 = vpack.c.bf16 %v2709_v20, %v2708_v35  ;;  %v1944_v30 = vadd.f32 %v6211_v28, %v1682_v33  ;;  %v1945_v18 = vadd.f32 %v6211_v28, %v1683_v13  ;;  %v1946_v43 = vadd.f32 %v6211_v28, %v1684_v37 }
 0x2a6   : > { %vm2199_vm8 = vcmp.ge.f32.partialorder %v1943_v40, 0.0  ;;  %v2455_v45 = vmul.f32 0.2, %v1943_v40  ;;  %v2710_v52 = vsel %vm2198_vm7, %v1942_v41, %v2454_v5  ;;  %v1947_v55 = vadd.f32 %v6211_v28, %v1685_v39  ;;  %v1435_v41 = vld [vmem:[#allocation2 + $0x638] sm:$0xff] }
 0x2a7   : > { %5501 = vst [vmem:[%s7116_s5 + $0x2d0] sm:$0xff] %v5225_v42   ;;  %vm2200_vm9 = vcmp.ge.f32.partialorder %v1944_v30, 0.0  ;;  %vm2201_vm10 = vcmp.ge.f32.partialorder %v1945_v18, 0.0  ;;  %v2456_v4 = vmul.f32 0.2, %v1944_v30  ;;  %vm2202_vm11 = vcmp.ge.f32.partialorder %v1946_v43, 0.0 }
 0x2a8   : > { %v2457_v53 = vmul.f32 0.2, %v1945_v18  ;;  %v2711_v63 = vsel %vm2199_vm8, %v1943_v40, %v2455_v45  ;;  %vm2203_vm12 = vcmp.ge.f32.partialorder %v1947_v55, 0.0  ;;  %v2458_v49 = vmul.f32 0.2, %v1946_v43 }
 0x2a9   : > { %v5230_v60 = vpack.c.bf16 %v2711_v63, %v2710_v52  ;;  %v2712_v44 = vsel %vm2200_vm9, %v1944_v30, %v2456_v4  ;;  %v2459_v0 = vmul.f32 0.2, %v1947_v55  ;;  %v1686_v6 = vmul.f32 %v6202_v56, %v1424_v46  ;;  %v1436_v63 = vld [vmem:[#allocation2 + $0x640] sm:$0xff] }
 0x2aa   : > { %v2713_v61 = vsel %vm2201_vm10, %v1945_v18, %v2457_v53  ;;  %v2714_v54 = vsel %vm2202_vm11, %v1946_v43, %v2458_v49  ;;  %v1687_v7 = vmul.f32 %v6202_v56, %v1425_v48  ;;  %v1688_v17 = vmul.f32 %v6202_v56, %v1426_v50  ;;  %v1437_v49 = vld [vmem:[#allocation2 + $0x648] sm:$0xff] }
 0x2ab   : > { %v5235_v3 = vpack.c.bf16 %v2713_v61, %v2712_v44  ;;  %5502 = vst [vmem:[%s7116_s5 + $0x2d8] sm:$0xff] %v5230_v60   ;;  %v2715_v62 = vsel %vm2203_vm12, %v1947_v55, %v2459_v0  ;;  %v1689_v9 = vmul.f32 %v6202_v56, %v1427_v57  ;;  %v1690_v36 = vmul.f32 %v6202_v56, %v1428_v58  ;;  %v1438_v60 = vld [vmem:[#allocation2 + $0x650] sm:$0xff]  ;;  %v1439_v44 = vld [vmem:[#allocation2 + $0x658] sm:$0xff] }
 0x2ac   : > { %v5240_v29 = vpack.c.bf16 %v2715_v62, %v2714_v54  ;;  %v1948_v11 = vadd.f32 %v6211_v28, %v1686_v6  ;;  %v1949_v12 = vadd.f32 %v6211_v28, %v1687_v7  ;;  %v1691_v59 = vmul.f32 %v6202_v56, %v1429_v24  ;;  %v1441_v62 = vld [vmem:[#allocation2 + $0x668] sm:$0xff] }
 0x2ad   : > { %5503 = vst [vmem:[%s7116_s5 + $0x2e0] sm:$0xff] %v5235_v3   ;;  %v1950_v14 = vadd.f32 %v6211_v28, %v1688_v17  ;;  %v1951_v15 = vadd.f32 %v6211_v28, %v1689_v9  ;;  %v1952_v8 = vadd.f32 %v6211_v28, %v1690_v36  ;;  %v1692_v16 = vmul.f32 %v6202_v56, %v1430_v38  ;;  %v1440_v3 = vld [vmem:[#allocation2 + $0x660] sm:$0xff] }
 0x2ae   : > { %5504 = vst [vmem:[%s7116_s5 + $0x2e8] sm:$0xff] %v5240_v29   ;;  %vm2204_vm13 = vcmp.ge.f32.partialorder %v1948_v11, 0.0  ;;  %vm2205_vm14 = vcmp.ge.f32.partialorder %v1949_v12, 0.0  ;;  %v2460_v51 = vmul.f32 0.2, %v1948_v11  ;;  %v1953_v23 = vadd.f32 %v6211_v28, %v1691_v59 }
 0x2af   : > { %v2461_v19 = vmul.f32 0.2, %v1949_v12  ;;  %vm2206_vm15 = vcmp.ge.f32.partialorder %v1950_v14, 0.0  ;;  %vm2207_vm0 = vcmp.ge.f32.partialorder %v1951_v15, 0.0  ;;  %v2462_v21 = vmul.f32 0.2, %v1950_v14 }
 0x2b0   : > { %v2463_v1 = vmul.f32 0.2, %v1951_v15  ;;  %v2716_v22 = vsel %vm2204_vm13, %v1948_v11, %v2460_v51  ;;  %vm2208_vm1 = vcmp.ge.f32.partialorder %v1952_v8, 0.0  ;;  %v2464_v26 = vmul.f32 0.2, %v1952_v8  ;;  %v1442_v51 = vld [vmem:[#allocation2 + $0x670] sm:$0xff] }
 0x2b1   : > { %v2717_v34 = vsel %vm2205_vm14, %v1949_v12, %v2461_v19  ;;  %v2718_v31 = vsel %vm2206_vm15, %v1950_v14, %v2462_v21  ;;  %vm2209_vm2 = vcmp.ge.f32.partialorder %v1953_v23, 0.0  ;;  %v2465_v35 = vmul.f32 0.2, %v1953_v23 }
 0x2b2   : > { %v5245_v47 = vpack.c.bf16 %v2717_v34, %v2716_v22  ;;  %v2719_v25 = vsel %vm2207_vm0, %v1951_v15, %v2463_v1  ;;  %v1693_v13 = vmul.f32 %v6202_v56, %v1431_v10  ;;  %v2720_v37 = vsel %vm2208_vm1, %v1952_v8, %v2464_v26 }
 0x2b3   : > { %v5250_v33 = vpack.c.bf16 %v2719_v25, %v2718_v31  ;;  %v1954_v39 = vadd.f32 %v6211_v28, %v1692_v16  ;;  %v1694_v20 = vmul.f32 %v6202_v56, %v1432_v2  ;;  %v1695_v40 = vmul.f32 %v6202_v56, %v1433_v27  ;;  %v1444_v31 = vld [vmem:[#allocation2 + $0x680] sm:$0xff] }
 0x2b4   : > { %5505 = vst [vmem:[%s7116_s5 + $0x2f0] sm:$0xff] %v5245_v47   ;;  %v2721_v5 = vsel %vm2209_vm2, %v1953_v23, %v2465_v35  ;;  %v1955_v42 = vadd.f32 %v6211_v28, %v1693_v13  ;;  %v1696_v30 = vmul.f32 %v6202_v56, %v1434_v32  ;;  %v1697_v18 = vmul.f32 %v6202_v56, %v1435_v41  ;;  %v1443_v47 = vld [vmem:[#allocation2 + $0x678] sm:$0xff]  ;;  %v1446_v35 = vld [vmem:[#allocation2 + $0x690] sm:$0xff] }
 0x2b5   : > { %5506 = vst [vmem:[%s7116_s5 + $0x2f8] sm:$0xff] %v5250_v33   ;;  %v5255_v43 = vpack.c.bf16 %v2721_v5, %v2720_v37  ;;  %vm2210_vm3 = vcmp.ge.f32.partialorder %v1954_v39, 0.0  ;;  %v2466_v45 = vmul.f32 0.2, %v1954_v39  ;;  %v1956_v52 = vadd.f32 %v6211_v28, %v1694_v20  ;;  %v1445_v33 = vld [vmem:[#allocation2 + $0x688] sm:$0xff]  ;;  %v1447_v13 = vld [vmem:[#allocation2 + $0x698] sm:$0xff] }
 0x2b6   : > { %vm2211_vm4 = vcmp.ge.f32.partialorder %v1955_v42, 0.0  ;;  %v2467_v55 = vmul.f32 0.2, %v1955_v42  ;;  %v1957_v46 = vadd.f32 %v6211_v28, %v1695_v40  ;;  %v1958_v48 = vadd.f32 %v6211_v28, %v1696_v30 }
 0x2b7   : > { %5507 = vst [vmem:[%s7116_s5 + $0x300] sm:$0xff] %v5255_v43   ;;  %v2722_v50 = vsel %vm2210_vm3, %v1954_v39, %v2466_v45  ;;  %vm2212_vm5 = vcmp.ge.f32.partialorder %v1956_v52, 0.0  ;;  %v2468_v4 = vmul.f32 0.2, %v1956_v52  ;;  %v1959_v53 = vadd.f32 %v6211_v28, %v1697_v18 }
 0x2b8   : > { %v2723_v57 = vsel %vm2211_vm4, %v1955_v42, %v2467_v55  ;;  %vm2213_vm6 = vcmp.ge.f32.partialorder %v1957_v46, 0.0  ;;  %v2469_v58 = vmul.f32 0.2, %v1957_v46  ;;  %vm2214_vm7 = vcmp.ge.f32.partialorder %v1958_v48, 0.0 }
 0x2b9   : > { %v5260_v61 = vpack.c.bf16 %v2723_v57, %v2722_v50  ;;  %v2724_v0 = vsel %vm2212_vm5, %v1956_v52, %v2468_v4  ;;  %vm2215_vm8 = vcmp.ge.f32.partialorder %v1959_v53, 0.0  ;;  %v2470_v24 = vmul.f32 0.2, %v1958_v48 }
 0x2ba   : > { %v2725_v54 = vsel %vm2213_vm6, %v1957_v46, %v2469_v58  ;;  %v2471_v6 = vmul.f32 0.2, %v1959_v53  ;;  %v1698_v7 = vmul.f32 %v6202_v56, %v1436_v63  ;;  %v1699_v38 = vmul.f32 %v6202_v56, %v1437_v49  ;;  %v1448_v58 = vld [vmem:[#allocation2 + $0x6a0] sm:$0xff] }
 0x2bb   : > { %5508 = vst [vmem:[%s7116_s5 + $0x308] sm:$0xff] %v5260_v61   ;;  %v5265_v17 = vpack.c.bf16 %v2725_v54, %v2724_v0  ;;  %v2726_v9 = vsel %vm2214_vm7, %v1958_v48, %v2470_v24  ;;  %v1700_v36 = vmul.f32 %v6202_v56, %v1438_v60  ;;  %v1701_v29 = vmul.f32 %v6202_v56, %v1439_v44  ;;  %v1449_v60 = vld [vmem:[#allocation2 + $0x6a8] sm:$0xff]  ;;  %v1450_v44 = vld [vmem:[#allocation2 + $0x6b0] sm:$0xff]  ;;  %v1451_v54 = vld [vmem:[#allocation2 + $0x6b8] sm:$0xff] }
 0x2bc   : > { %v2727_v11 = vsel %vm2215_vm8, %v1959_v53, %v2471_v6  ;;  %v1960_v12 = vadd.f32 %v6211_v28, %v1698_v7  ;;  %v1961_v59 = vadd.f32 %v6211_v28, %v1699_v38  ;;  %v1702_v14 = vmul.f32 %v6202_v56, %v1440_v3  ;;  %v1452_v6 = vld [vmem:[#allocation2 + $0x6c0] sm:$0xff] }
 0x2bd   : > { %5509 = vst [vmem:[%s7116_s5 + $0x310] sm:$0xff] %v5265_v17   ;;  %v5270_v15 = vpack.c.bf16 %v2727_v11, %v2726_v9  ;;  %v1962_v8 = vadd.f32 %v6211_v28, %v1700_v36  ;;  %v1963_v10 = vadd.f32 %v6211_v28, %v1701_v29  ;;  %v1703_v16 = vmul.f32 %v6202_v56, %v1441_v62  ;;  %v1453_v9 = vld [vmem:[#allocation2 + $0x6c8] sm:$0xff] }
 0x2be   : > { %vm2216_vm9 = vcmp.ge.f32.partialorder %v1960_v12, 0.0  ;;  %vm2217_vm10 = vcmp.ge.f32.partialorder %v1961_v59, 0.0  ;;  %v2472_v19 = vmul.f32 0.2, %v1960_v12  ;;  %v2473_v21 = vmul.f32 0.2, %v1961_v59 }
 0x2bf   : > { %5510 = vst [vmem:[%s7116_s5 + $0x318] sm:$0xff] %v5270_v15   ;;  %vm2218_vm11 = vcmp.ge.f32.partialorder %v1962_v8, 0.0  ;;  %vm2219_vm12 = vcmp.ge.f32.partialorder %v1963_v10, 0.0  ;;  %v2474_v1 = vmul.f32 0.2, %v1962_v8  ;;  %v1964_v2 = vadd.f32 %v6211_v28, %v1702_v14 }
 0x2c0   : > { %v2475_v22 = vmul.f32 0.2, %v1963_v10  ;;  %v2728_v34 = vsel %vm2216_vm9, %v1960_v12, %v2472_v19  ;;  %v2729_v23 = vsel %vm2217_vm10, %v1961_v59, %v2473_v21  ;;  %v1965_v27 = vadd.f32 %v6211_v28, %v1703_v16  ;;  %v1454_v59 = vld [vmem:[#allocation2 + $0x6d0] sm:$0xff] }
 0x2c1   : > { %v5275_v25 = vpack.c.bf16 %v2729_v23, %v2728_v34  ;;  %v2730_v26 = vsel %vm2218_vm11, %v1962_v8, %v2474_v1  ;;  %v1704_v41 = vmul.f32 %v6202_v56, %v1442_v51  ;;  %vm2220_vm13 = vcmp.ge.f32.partialorder %v1964_v2, 0.0  ;;  %v1455_v23 = vld [vmem:[#allocation2 + $0x6d8] sm:$0xff] }
 0x2c2   : > { %v2731_v32 = vsel %vm2219_vm12, %v1963_v10, %v2475_v22  ;;  %vm2221_vm14 = vcmp.ge.f32.partialorder %v1965_v27, 0.0  ;;  %v2476_v39 = vmul.f32 0.2, %v1964_v2  ;;  %v2477_v20 = vmul.f32 0.2, %v1965_v27 }
 0x2c3   : > { %v5280_v37 = vpack.c.bf16 %v2731_v32, %v2730_v26  ;;  %5511 = vst [vmem:[%s7116_s5 + $0x320] sm:$0xff] %v5275_v25   ;;  %v1705_v40 = vmul.f32 %v6202_v56, %v1443_v47  ;;  %v1966_v5 = vadd.f32 %v6211_v28, %v1704_v41  ;;  %v1706_v42 = vmul.f32 %v6202_v56, %v1444_v31 }
 0x2c4   : > { %v2732_v30 = vsel %vm2220_vm13, %v1964_v2, %v2476_v39  ;;  %v1707_v18 = vmul.f32 %v6202_v56, %v1445_v33  ;;  %v1708_v43 = vmul.f32 %v6202_v56, %v1446_v35  ;;  %v1709_v45 = vmul.f32 %v6202_v56, %v1447_v13  ;;  %v1456_v33 = vld [vmem:[#allocation2 + $0x6e0] sm:$0xff]  ;;  %v1457_v35 = vld [vmem:[#allocation2 + $0x6e8] sm:$0xff] }
 0x2c5   : > { %5512 = vst [vmem:[%s7116_s5 + $0x328] sm:$0xff] %v5280_v37   ;;  %v2733_v52 = vsel %vm2221_vm14, %v1965_v27, %v2477_v20  ;;  %v1967_v55 = vadd.f32 %v6211_v28, %v1705_v40  ;;  %vm2222_vm15 = vcmp.ge.f32.partialorder %v1966_v5, 0.0  ;;  %v2478_v46 = vmul.f32 0.2, %v1966_v5  ;;  %v1458_v40 = vld [vmem:[#allocation2 + $0x6f0] sm:$0xff] }
 0x2c6   : > { %v5285_v48 = vpack.c.bf16 %v2733_v52, %v2732_v30  ;;  %v1968_v50 = vadd.f32 %v6211_v28, %v1706_v42  ;;  %v1969_v4 = vadd.f32 %v6211_v28, %v1707_v18  ;;  %v1970_v53 = vadd.f32 %v6211_v28, %v1708_v43 }
 0x2c7   : > { %vm2223_vm0 = vcmp.ge.f32.partialorder %v1967_v55, 0.0  ;;  %v2479_v63 = vmul.f32 0.2, %v1967_v55  ;;  %v2734_v49 = vsel %vm2222_vm15, %v1966_v5, %v2478_v46  ;;  %v1971_v57 = vadd.f32 %v6211_v28, %v1709_v45  ;;  %v1459_v5 = vld [vmem:[#allocation2 + $0x6f8] sm:$0xff] }
 0x2c8   : > { %5513 = vst [vmem:[%s7116_s5 + $0x330] sm:$0xff] %v5285_v48   ;;  %vm2224_vm1 = vcmp.ge.f32.partialorder %v1968_v50, 0.0  ;;  %vm2225_vm2 = vcmp.ge.f32.partialorder %v1969_v4, 0.0  ;;  %v2480_v61 = vmul.f32 0.2, %v1968_v50  ;;  %vm2226_vm3 = vcmp.ge.f32.partialorder %v1970_v53, 0.0 }
 0x2c9   : > { %v2481_v0 = vmul.f32 0.2, %v1969_v4  ;;  %v2735_v24 = vsel %vm2223_vm0, %v1967_v55, %v2479_v63  ;;  %vm2227_vm4 = vcmp.ge.f32.partialorder %v1971_v57, 0.0  ;;  %v2482_v3 = vmul.f32 0.2, %v1970_v53 }
 0x2ca   : > { %v5290_v7 = vpack.c.bf16 %v2735_v24, %v2734_v49  ;;  %v2736_v38 = vsel %vm2224_vm1, %v1968_v50, %v2480_v61  ;;  %v2483_v17 = vmul.f32 0.2, %v1971_v57  ;;  %v1710_v11 = vmul.f32 %v6202_v56, %v1448_v58  ;;  %v1460_v24 = vld [vmem:[#allocation2 + $0x700] sm:$0xff] }
 0x2cb   : > { %v2737_v62 = vsel %vm2225_vm2, %v1969_v4, %v2481_v0  ;;  %v2738_v29 = vsel %vm2226_vm3, %v1970_v53, %v2482_v3  ;;  %v1711_v12 = vmul.f32 %v6202_v56, %v1449_v60  ;;  %v1712_v15 = vmul.f32 %v6202_v56, %v1450_v44  ;;  %v1461_v3 = vld [vmem:[#allocation2 + $0x708] sm:$0xff] }
 0x2cc   : > { %v5295_v36 = vpack.c.bf16 %v2737_v62, %v2736_v38  ;;  %5514 = vst [vmem:[%s7116_s5 + $0x338] sm:$0xff] %v5290_v7   ;;  %v2739_v14 = vsel %vm2227_vm4, %v1971_v57, %v2483_v17  ;;  %v1713_v8 = vmul.f32 %v6202_v56, %v1451_v54  ;;  %v1714_v10 = vmul.f32 %v6202_v56, %v1452_v6  ;;  %v1462_v7 = vld [vmem:[#allocation2 + $0x710] sm:$0xff]  ;;  %v1463_v38 = vld [vmem:[#allocation2 + $0x718] sm:$0xff] }
 0x2cd   : > { %v5300_v16 = vpack.c.bf16 %v2739_v14, %v2738_v29  ;;  %v1972_v51 = vadd.f32 %v6211_v28, %v1710_v11  ;;  %v1973_v19 = vadd.f32 %v6211_v28, %v1711_v12  ;;  %v1715_v21 = vmul.f32 %v6202_v56, %v1453_v9  ;;  %v1465_v14 = vld [vmem:[#allocation2 + $0x728] sm:$0xff] }
 0x2ce   : > { %5515 = vst [vmem:[%s7116_s5 + $0x340] sm:$0xff] %v5295_v36   ;;  %v1974_v1 = vadd.f32 %v6211_v28, %v1712_v15  ;;  %v1975_v22 = vadd.f32 %v6211_v28, %v1713_v8  ;;  %v1976_v34 = vadd.f32 %v6211_v28, %v1714_v10  ;;  %v1716_v2 = vmul.f32 %v6202_v56, %v1454_v59  ;;  %v1464_v36 = vld [vmem:[#allocation2 + $0x720] sm:$0xff] }
 0x2cf   : > { %5516 = vst [vmem:[%s7116_s5 + $0x348] sm:$0xff] %v5300_v16   ;;  %vm2228_vm5 = vcmp.ge.f32.partialorder %v1972_v51, 0.0  ;;  %vm2229_vm6 = vcmp.ge.f32.partialorder %v1973_v19, 0.0  ;;  %v2484_v27 = vmul.f32 0.2, %v1972_v51  ;;  %v1977_v41 = vadd.f32 %v6211_v28, %v1715_v21 }
 0x2d0   : > { %v2485_v47 = vmul.f32 0.2, %v1973_v19  ;;  %vm2230_vm7 = vcmp.ge.f32.partialorder %v1974_v1, 0.0  ;;  %vm2231_vm8 = vcmp.ge.f32.partialorder %v1975_v22, 0.0  ;;  %v2486_v31 = vmul.f32 0.2, %v1974_v1 }
 0x2d1   : > { %v2487_v25 = vmul.f32 0.2, %v1975_v22  ;;  %v2740_v26 = vsel %vm2228_vm5, %v1972_v51, %v2484_v27  ;;  %vm2232_vm9 = vcmp.ge.f32.partialorder %v1976_v34, 0.0  ;;  %v2488_v20 = vmul.f32 0.2, %v1976_v34  ;;  %v1466_v27 = vld [vmem:[#allocation2 + $0x730] sm:$0xff] }
 0x2d2   : > { %v2741_v32 = vsel %vm2229_vm6, %v1973_v19, %v2485_v47  ;;  %v2742_v37 = vsel %vm2230_vm7, %v1974_v1, %v2486_v31  ;;  %vm2233_vm10 = vcmp.ge.f32.partialorder %v1977_v41, 0.0  ;;  %v2489_v30 = vmul.f32 0.2, %v1977_v41 }
 0x2d3   : > { %v5305_v13 = vpack.c.bf16 %v2741_v32, %v2740_v26  ;;  %v2743_v39 = vsel %vm2231_vm8, %v1975_v22, %v2487_v25  ;;  %v1717_v18 = vmul.f32 %v6202_v56, %v1455_v23  ;;  %v2744_v43 = vsel %vm2232_vm9, %v1976_v34, %v2488_v20 }
 0x2d4   : > { %v5310_v42 = vpack.c.bf16 %v2743_v39, %v2742_v37  ;;  %v1978_v45 = vadd.f32 %v6211_v28, %v1716_v2  ;;  %v1718_v52 = vmul.f32 %v6202_v56, %v1456_v33  ;;  %v1719_v55 = vmul.f32 %v6202_v56, %v1457_v35  ;;  %v1468_v37 = vld [vmem:[#allocation2 + $0x740] sm:$0xff] }
 0x2d5   : > { %5517 = vst [vmem:[%s7116_s5 + $0x350] sm:$0xff] %v5305_v13   ;;  %v2745_v46 = vsel %vm2233_vm10, %v1977_v41, %v2489_v30  ;;  %v1979_v48 = vadd.f32 %v6211_v28, %v1717_v18  ;;  %v1720_v50 = vmul.f32 %v6202_v56, %v1458_v40  ;;  %v1721_v4 = vmul.f32 %v6202_v56, %v1459_v5  ;;  %v1467_v13 = vld [vmem:[#allocation2 + $0x738] sm:$0xff]  ;;  %v1470_v30 = vld [vmem:[#allocation2 + $0x750] sm:$0xff] }
 0x2d6   : > { %5518 = vst [vmem:[%s7116_s5 + $0x358] sm:$0xff] %v5310_v42   ;;  %v5315_v53 = vpack.c.bf16 %v2745_v46, %v2744_v43  ;;  %vm2234_vm11 = vcmp.ge.f32.partialorder %v1978_v45, 0.0  ;;  %v2490_v63 = vmul.f32 0.2, %v1978_v45  ;;  %v1980_v49 = vadd.f32 %v6211_v28, %v1718_v52  ;;  %v1469_v42 = vld [vmem:[#allocation2 + $0x748] sm:$0xff]  ;;  %v1471_v18 = vld [vmem:[#allocation2 + $0x758] sm:$0xff] }
 0x2d7   : > { %vm2235_vm12 = vcmp.ge.f32.partialorder %v1979_v48, 0.0  ;;  %v2491_v57 = vmul.f32 0.2, %v1979_v48  ;;  %v1981_v58 = vadd.f32 %v6211_v28, %v1719_v55  ;;  %v1982_v60 = vadd.f32 %v6211_v28, %v1720_v50 }
 0x2d8   : > { %5519 = vst [vmem:[%s7116_s5 + $0x360] sm:$0xff] %v5315_v53   ;;  %v2746_v44 = vsel %vm2234_vm11, %v1978_v45, %v2490_v63  ;;  %vm2236_vm13 = vcmp.ge.f32.partialorder %v1980_v49, 0.0  ;;  %v2492_v61 = vmul.f32 0.2, %v1980_v49  ;;  %v1983_v0 = vadd.f32 %v6211_v28, %v1721_v4 }
 0x2d9   : > { %v2747_v54 = vsel %vm2235_vm12, %v1979_v48, %v2491_v57  ;;  %vm2237_vm14 = vcmp.ge.f32.partialorder %v1981_v58, 0.0  ;;  %v2493_v6 = vmul.f32 0.2, %v1981_v58  ;;  %vm2238_vm15 = vcmp.ge.f32.partialorder %v1982_v60, 0.0 }
 0x2da   : > { %v5320_v62 = vpack.c.bf16 %v2747_v54, %v2746_v44  ;;  %v2748_v17 = vsel %vm2236_vm13, %v1980_v49, %v2492_v61  ;;  %vm2239_vm0 = vcmp.ge.f32.partialorder %v1983_v0, 0.0  ;;  %v2494_v9 = vmul.f32 0.2, %v1982_v60 }
 0x2db   : > { %v2749_v29 = vsel %vm2237_vm14, %v1981_v58, %v2493_v6  ;;  %v2495_v11 = vmul.f32 0.2, %v1983_v0  ;;  %v1722_v12 = vmul.f32 %v6202_v56, %v1460_v24  ;;  %v1723_v59 = vmul.f32 %v6202_v56, %v1461_v3  ;;  %v1472_v6 = vld [vmem:[#allocation2 + $0x760] sm:$0xff] }
 0x2dc   : > { %5520 = vst [vmem:[%s7116_s5 + $0x368] sm:$0xff] %v5320_v62   ;;  %v5325_v15 = vpack.c.bf16 %v2749_v29, %v2748_v17  ;;  %v2750_v8 = vsel %vm2238_vm15, %v1982_v60, %v2494_v9  ;;  %v1724_v10 = vmul.f32 %v6202_v56, %v1462_v7  ;;  %v1725_v16 = vmul.f32 %v6202_v56, %v1463_v38  ;;  %v1473_v7 = vld [vmem:[#allocation2 + $0x768] sm:$0xff]  ;;  %v1474_v38 = vld [vmem:[#allocation2 + $0x770] sm:$0xff]  ;;  %v1475_v29 = vld [vmem:[#allocation2 + $0x778] sm:$0xff] }
 0x2dd   : > { %v2751_v51 = vsel %vm2239_vm0, %v1983_v0, %v2495_v11  ;;  %v1984_v19 = vadd.f32 %v6211_v28, %v1722_v12  ;;  %v1985_v21 = vadd.f32 %v6211_v28, %v1723_v59  ;;  %v1726_v1 = vmul.f32 %v6202_v56, %v1464_v36  ;;  %v1476_v11 = vld [vmem:[#allocation2 + $0x780] sm:$0xff] }
 0x2de   : > { %5521 = vst [vmem:[%s7116_s5 + $0x370] sm:$0xff] %v5325_v15   ;;  %v5330_v22 = vpack.c.bf16 %v2751_v51, %v2750_v8  ;;  %v1986_v34 = vadd.f32 %v6211_v28, %v1724_v10  ;;  %v1987_v23 = vadd.f32 %v6211_v28, %v1725_v16  ;;  %v1727_v2 = vmul.f32 %v6202_v56, %v1465_v14  ;;  %v1477_v8 = vld [vmem:[#allocation2 + $0x788] sm:$0xff] }
 0x2df   : > { %vm2240_vm1 = vcmp.ge.f32.partialorder %v1984_v19, 0.0  ;;  %vm2241_vm2 = vcmp.ge.f32.partialorder %v1985_v21, 0.0  ;;  %v2496_v47 = vmul.f32 0.2, %v1984_v19  ;;  %v2497_v31 = vmul.f32 0.2, %v1985_v21 }
 0x2e0   : > { %5522 = vst [vmem:[%s7116_s5 + $0x378] sm:$0xff] %v5330_v22   ;;  %vm2242_vm3 = vcmp.ge.f32.partialorder %v1986_v34, 0.0  ;;  %vm2243_vm4 = vcmp.ge.f32.partialorder %v1987_v23, 0.0  ;;  %v2498_v25 = vmul.f32 0.2, %v1986_v34  ;;  %v1988_v33 = vadd.f32 %v6211_v28, %v1726_v1 }
 0x2e1   : > { %v2499_v26 = vmul.f32 0.2, %v1987_v23  ;;  %v2752_v32 = vsel %vm2240_vm1, %v1984_v19, %v2496_v47  ;;  %v2753_v41 = vsel %vm2241_vm2, %v1985_v21, %v2497_v31  ;;  %v1989_v35 = vadd.f32 %v6211_v28, %v1727_v2  ;;  %v1478_v21 = vld [vmem:[#allocation2 + $0x790] sm:$0xff] }
 0x2e2   : > { %v5335_v39 = vpack.c.bf16 %v2753_v41, %v2752_v32  ;;  %v2754_v20 = vsel %vm2242_vm3, %v1986_v34, %v2498_v25  ;;  %v1728_v5 = vmul.f32 %v6202_v56, %v1466_v27  ;;  %vm2244_vm5 = vcmp.ge.f32.partialorder %v1988_v33, 0.0  ;;  %v1479_v41 = vld [vmem:[#allocation2 + $0x798] sm:$0xff] }
 0x2e3   : > { %v2755_v40 = vsel %vm2243_vm4, %v1987_v23, %v2499_v26  ;;  %vm2245_vm6 = vcmp.ge.f32.partialorder %v1989_v35, 0.0  ;;  %v2500_v45 = vmul.f32 0.2, %v1988_v33  ;;  %v2501_v52 = vmul.f32 0.2, %v1989_v35 }
 0x2e4   : > { %v5340_v43 = vpack.c.bf16 %v2755_v40, %v2754_v20  ;;  %5523 = vst [vmem:[%s7116_s5 + $0x380] sm:$0xff] %v5335_v39   ;;  %v1729_v55 = vmul.f32 %v6202_v56, %v1467_v13  ;;  %v1990_v46 = vadd.f32 %v6211_v28, %v1728_v5  ;;  %v1730_v48 = vmul.f32 %v6202_v56, %v1468_v37 }
 0x2e5   : > { %v2756_v50 = vsel %vm2244_vm5, %v1988_v33, %v2500_v45  ;;  %v1731_v4 = vmul.f32 %v6202_v56, %v1469_v42  ;;  %v1732_v53 = vmul.f32 %v6202_v56, %v1470_v30  ;;  %v1733_v63 = vmul.f32 %v6202_v56, %v1471_v18  ;;  %v1480_v42 = vld [vmem:[#allocation2 + $0x7a0] sm:$0xff]  ;;  %v1481_v30 = vld [vmem:[#allocation2 + $0x7a8] sm:$0xff] }
 0x2e6   : > { %5524 = vst [vmem:[%s7116_s5 + $0x388] sm:$0xff] %v5340_v43   ;;  %v2757_v49 = vsel %vm2245_vm6, %v1989_v35, %v2501_v52  ;;  %v1991_v57 = vadd.f32 %v6211_v28, %v1729_v55  ;;  %vm2246_vm7 = vcmp.ge.f32.partialorder %v1990_v46, 0.0  ;;  %v2502_v58 = vmul.f32 0.2, %v1990_v46  ;;  %v1482_v55 = vld [vmem:[#allocation2 + $0x7b0] sm:$0xff] }
 0x2e7   : > { %v5345_v60 = vpack.c.bf16 %v2757_v49, %v2756_v50  ;;  %v1992_v44 = vadd.f32 %v6211_v28, %v1730_v48  ;;  %v1993_v61 = vadd.f32 %v6211_v28, %v1731_v4  ;;  %v1994_v0 = vadd.f32 %v6211_v28, %v1732_v53 }
 0x2e8   : > { %vm2247_vm8 = vcmp.ge.f32.partialorder %v1991_v57, 0.0  ;;  %v2503_v24 = vmul.f32 0.2, %v1991_v57  ;;  %v2758_v3 = vsel %vm2246_vm7, %v1990_v46, %v2502_v58  ;;  %v1995_v54 = vadd.f32 %v6211_v28, %v1733_v63  ;;  %v1483_v46 = vld [vmem:[#allocation2 + $0x7b8] sm:$0xff] }
 0x2e9   : > { %5525 = vst [vmem:[%s7116_s5 + $0x390] sm:$0xff] %v5345_v60   ;;  %vm2248_vm9 = vcmp.ge.f32.partialorder %v1992_v44, 0.0  ;;  %vm2249_vm10 = vcmp.ge.f32.partialorder %v1993_v61, 0.0  ;;  %v2504_v62 = vmul.f32 0.2, %v1992_v44  ;;  %vm2250_vm11 = vcmp.ge.f32.partialorder %v1994_v0, 0.0 }
 0x2ea   : > { %v2505_v17 = vmul.f32 0.2, %v1993_v61  ;;  %v2759_v9 = vsel %vm2247_vm8, %v1991_v57, %v2503_v24  ;;  %vm2251_vm12 = vcmp.ge.f32.partialorder %v1995_v54, 0.0  ;;  %v2506_v36 = vmul.f32 0.2, %v1994_v0 }
 0x2eb   : > { %v5350_v12 = vpack.c.bf16 %v2759_v9, %v2758_v3  ;;  %v2760_v59 = vsel %vm2248_vm9, %v1992_v44, %v2504_v62  ;;  %v2507_v15 = vmul.f32 0.2, %v1995_v54  ;;  %v1734_v51 = vmul.f32 %v6202_v56, %v1472_v6  ;;  %v1484_v9 = vld [vmem:[#allocation2 + $0x7c0] sm:$0xff] }
 0x2ec   : > { %v2761_v14 = vsel %vm2249_vm10, %v1993_v61, %v2505_v17  ;;  %v2762_v16 = vsel %vm2250_vm11, %v1994_v0, %v2506_v36  ;;  %v1735_v19 = vmul.f32 %v6202_v56, %v1473_v7  ;;  %v1736_v22 = vmul.f32 %v6202_v56, %v1474_v38  ;;  %v1485_v36 = vld [vmem:[#allocation2 + $0x7c8] sm:$0xff] }
 0x2ed   : > { %v5355_v10 = vpack.c.bf16 %v2761_v14, %v2760_v59  ;;  %5526 = vst [vmem:[%s7116_s5 + $0x398] sm:$0xff] %v5350_v12   ;;  %v2763_v1 = vsel %vm2251_vm12, %v1995_v54, %v2507_v15  ;;  %v1737_v34 = vmul.f32 %v6202_v56, %v1475_v29  ;;  %v1738_v23 = vmul.f32 %v6202_v56, %v1476_v11  ;;  %v1486_v12 = vld [vmem:[#allocation2 + $0x7d0] sm:$0xff]  ;;  %v1487_v59 = vld [vmem:[#allocation2 + $0x7d8] sm:$0xff] }
 0x2ee   : > { %v5360_v2 = vpack.c.bf16 %v2763_v1, %v2762_v16  ;;  %v1996_v27 = vadd.f32 %v6211_v28, %v1734_v51  ;;  %v1997_v47 = vadd.f32 %v6211_v28, %v1735_v19  ;;  %v1739_v31 = vmul.f32 %v6202_v56, %v1477_v8  ;;  %v1489_v1 = vld [vmem:[#allocation2 + $0x7e8] sm:$0xff] }
 0x2ef   : > { %5527 = vst [vmem:[%s7116_s5 + $0x3a0] sm:$0xff] %v5355_v10   ;;  %v1998_v25 = vadd.f32 %v6211_v28, %v1736_v22  ;;  %v1999_v26 = vadd.f32 %v6211_v28, %v1737_v34  ;;  %v2000_v32 = vadd.f32 %v6211_v28, %v1738_v23  ;;  %v1740_v33 = vmul.f32 %v6202_v56, %v1478_v21  ;;  %v1488_v10 = vld [vmem:[#allocation2 + $0x7e0] sm:$0xff] }
 0x2f0   : > { %5528 = vst [vmem:[%s7116_s5 + $0x3a8] sm:$0xff] %v5360_v2   ;;  %vm2252_vm13 = vcmp.ge.f32.partialorder %v1996_v27, 0.0  ;;  %vm2253_vm14 = vcmp.ge.f32.partialorder %v1997_v47, 0.0  ;;  %v2508_v35 = vmul.f32 0.2, %v1996_v27  ;;  %v2001_v5 = vadd.f32 %v6211_v28, %v1739_v31 }
 0x2f1   : > { %v2509_v13 = vmul.f32 0.2, %v1997_v47  ;;  %vm2254_vm15 = vcmp.ge.f32.partialorder %v1998_v25, 0.0  ;;  %vm2255_vm0 = vcmp.ge.f32.partialorder %v1999_v26, 0.0  ;;  %v2510_v37 = vmul.f32 0.2, %v1998_v25 }
 0x2f2   : > { %v2511_v39 = vmul.f32 0.2, %v1999_v26  ;;  %v2764_v20 = vsel %vm2252_vm13, %v1996_v27, %v2508_v35  ;;  %vm2256_vm1 = vcmp.ge.f32.partialorder %v2000_v32, 0.0  ;;  %v2512_v52 = vmul.f32 0.2, %v2000_v32  ;;  %v1490_v35 = vld [vmem:[#allocation2 + $0x7f0] sm:$0xff] }
 0x2f3   : > { %v2765_v40 = vsel %vm2253_vm14, %v1997_v47, %v2509_v13  ;;  %v2766_v43 = vsel %vm2254_vm15, %v1998_v25, %v2510_v37  ;;  %vm2257_vm2 = vcmp.ge.f32.partialorder %v2001_v5, 0.0  ;;  %v2513_v50 = vmul.f32 0.2, %v2001_v5 }
 0x2f4   : > { %v5365_v18 = vpack.c.bf16 %v2765_v40, %v2764_v20  ;;  %v2767_v45 = vsel %vm2255_vm0, %v1999_v26, %v2511_v39  ;;  %v1741_v4 = vmul.f32 %v6202_v56, %v1479_v41  ;;  %v2768_v53 = vsel %vm2256_vm1, %v2000_v32, %v2512_v52 }
 0x2f5   : > { %v5370_v48 = vpack.c.bf16 %v2767_v45, %v2766_v43  ;;  %v2002_v63 = vadd.f32 %v6211_v28, %v1740_v33  ;;  %v1742_v49 = vmul.f32 %v6202_v56, %v1480_v42  ;;  %v1743_v57 = vmul.f32 %v6202_v56, %v1481_v30 }
 0x2f6   : > { %5529 = vst [vmem:[%s7116_s5 + $0x3b0] sm:$0xff] %v5365_v18   ;;  %v2769_v58 = vsel %vm2257_vm2, %v2001_v5, %v2513_v50  ;;  %v2003_v60 = vadd.f32 %v6211_v28, %v1741_v4  ;;  %v1744_v44 = vmul.f32 %v6202_v56, %v1482_v55  ;;  %v1745_v61 = vmul.f32 %v6202_v56, %v1483_v46  ;;  %v1491_v18 = vld [vmem:[#allocation2 + $0x7f8] sm:$0xff] }
 0x2f7   : > { %5530 = vst [vmem:[%s7116_s5 + $0x3b8] sm:$0xff] %v5370_v48   ;;  %v5375_v0 = vpack.c.bf16 %v2769_v58, %v2768_v53  ;;  %vm2258_vm3 = vcmp.ge.f32.partialorder %v2002_v63, 0.0  ;;  %v2514_v24 = vmul.f32 0.2, %v2002_v63  ;;  %v2004_v3 = vadd.f32 %v6211_v28, %v1742_v49 }
 0x2f8   : > { %vm2259_vm4 = vcmp.ge.f32.partialorder %v2003_v60, 0.0  ;;  %v2515_v54 = vmul.f32 0.2, %v2003_v60  ;;  %v2005_v6 = vadd.f32 %v6211_v28, %v1743_v57  ;;  %v2006_v7 = vadd.f32 %v6211_v28, %v1744_v44 }
 0x2f9   : > { %5531 = vst [vmem:[%s7116_s5 + $0x3c0] sm:$0xff] %v5375_v0   ;;  %v2770_v38 = vsel %vm2258_vm3, %v2002_v63, %v2514_v24  ;;  %vm2260_vm5 = vcmp.ge.f32.partialorder %v2004_v3, 0.0  ;;  %v2516_v62 = vmul.f32 0.2, %v2004_v3  ;;  %v2007_v17 = vadd.f32 %v6211_v28, %v1745_v61 }
 0x2fa   : > { %v2771_v29 = vsel %vm2259_vm4, %v2003_v60, %v2515_v54  ;;  %vm2261_vm6 = vcmp.ge.f32.partialorder %v2005_v6, 0.0  ;;  %v2517_v11 = vmul.f32 0.2, %v2005_v6  ;;  %vm2262_vm7 = vcmp.ge.f32.partialorder %v2006_v7, 0.0 }
 0x2fb   : > { %v5380_v14 = vpack.c.bf16 %v2771_v29, %v2770_v38  ;;  %v2772_v15 = vsel %vm2260_vm5, %v2004_v3, %v2516_v62  ;;  %vm2263_vm8 = vcmp.ge.f32.partialorder %v2007_v17, 0.0  ;;  %v2518_v8 = vmul.f32 0.2, %v2006_v7 }
 0x2fc   : > { %v2773_v16 = vsel %vm2261_vm6, %v2005_v6, %v2517_v11  ;;  %v2519_v51 = vmul.f32 0.2, %v2007_v17  ;;  %v1746_v19 = vmul.f32 %v6202_v56, %v1484_v9  ;;  %v1747_v21 = vmul.f32 %v6202_v56, %v1485_v36 }
 0x2fd   : > { %5532 = vst [vmem:[%s7116_s5 + $0x3c8] sm:$0xff] %v5380_v14   ;;  %v5385_v22 = vpack.c.bf16 %v2773_v16, %v2772_v15  ;;  %v2774_v34 = vsel %vm2262_vm7, %v2006_v7, %v2518_v8  ;;  %v1748_v23 = vmul.f32 %v6202_v56, %v1486_v12  ;;  %v1749_v2 = vmul.f32 %v6202_v56, %v1487_v59 }
 0x2fe   : > { %v2775_v27 = vsel %vm2263_vm8, %v2007_v17, %v2519_v51  ;;  %v2008_v47 = vadd.f32 %v6211_v28, %v1746_v19  ;;  %v2009_v31 = vadd.f32 %v6211_v28, %v1747_v21  ;;  %v1750_v25 = vmul.f32 %v6202_v56, %v1488_v10 }
 0x2ff   : > { %5533 = vst [vmem:[%s7116_s5 + $0x3d0] sm:$0xff] %v5385_v22   ;;  %v5390_v26 = vpack.c.bf16 %v2775_v27, %v2774_v34  ;;  %v2010_v32 = vadd.f32 %v6211_v28, %v1748_v23  ;;  %v2011_v41 = vadd.f32 %v6211_v28, %v1749_v2  ;;  %v1751_v33 = vmul.f32 %v6202_v56, %v1489_v1 }
 0x300   : > { %vm2264_vm9 = vcmp.ge.f32.partialorder %v2008_v47, 0.0  ;;  %vm2265_vm10 = vcmp.ge.f32.partialorder %v2009_v31, 0.0  ;;  %v2520_v13 = vmul.f32 0.2, %v2008_v47  ;;  %v2521_v37 = vmul.f32 0.2, %v2009_v31 }
 0x301   : > { %5534 = vst [vmem:[%s7116_s5 + $0x3d8] sm:$0xff] %v5390_v26   ;;  %vm2266_vm11 = vcmp.ge.f32.partialorder %v2010_v32, 0.0  ;;  %vm2267_vm12 = vcmp.ge.f32.partialorder %v2011_v41, 0.0  ;;  %v2522_v39 = vmul.f32 0.2, %v2010_v32  ;;  %v2012_v42 = vadd.f32 %v6211_v28, %v1750_v25 }
 0x302   : > { %v2523_v20 = vmul.f32 0.2, %v2011_v41  ;;  %v2776_v40 = vsel %vm2264_vm9, %v2008_v47, %v2520_v13  ;;  %v2777_v5 = vsel %vm2265_vm10, %v2009_v31, %v2521_v37  ;;  %v2013_v30 = vadd.f32 %v6211_v28, %v1751_v33 }
 0x303   : > { %v5395_v43 = vpack.c.bf16 %v2777_v5, %v2776_v40  ;;  %v2778_v45 = vsel %vm2266_vm11, %v2010_v32, %v2522_v39  ;;  %v1752_v55 = vmul.f32 %v6202_v56, %v1490_v35  ;;  %vm2268_vm13 = vcmp.ge.f32.partialorder %v2012_v42, 0.0 }
 0x304   : > { %v2779_v52 = vsel %vm2267_vm12, %v2011_v41, %v2523_v20  ;;  %vm2269_vm14 = vcmp.ge.f32.partialorder %v2013_v30, 0.0  ;;  %v2524_v48 = vmul.f32 0.2, %v2012_v42  ;;  %v2525_v50 = vmul.f32 0.2, %v2013_v30 }
 0x305   : > { %v5400_v46 = vpack.c.bf16 %v2779_v52, %v2778_v45  ;;  %5535 = vst [vmem:[%s7116_s5 + $0x3e0] sm:$0xff] %v5395_v43   ;;  %v1753_v4 = vmul.f32 %v6202_v56, %v1491_v18  ;;  %v2014_v53 = vadd.f32 %v6211_v28, %v1752_v55 }
 0x306   : > { %v2780_v63 = vsel %vm2268_vm13, %v2012_v42, %v2524_v48  ;;  %v2781_v49 = vsel %vm2269_vm14, %v2013_v30, %v2525_v50 }
 0x307   : > { %5536 = vst [vmem:[%s7116_s5 + $0x3e8] sm:$0xff] %v5400_v46   ;;  %v2015_v57 = vadd.f32 %v6211_v28, %v1753_v4  ;;  %vm2270_vm15 = vcmp.ge.f32.partialorder %v2014_v53, 0.0  ;;  %v2526_v58 = vmul.f32 0.2, %v2014_v53  ;;  %v5405_v60 = vpack.c.bf16 %v2781_v49, %v2780_v63 }
 0x309   : > { %vm2271_vm0 = vcmp.ge.f32.partialorder %v2015_v57, 0.0  ;;  %v2527_v44 = vmul.f32 0.2, %v2015_v57  ;;  %v2782_v61 = vsel %vm2270_vm15, %v2014_v53, %v2526_v58  ;;  %5537 = vst [vmem:[%s7116_s5 + $0x3f0] sm:$0xff] %v5405_v60  }
 0x30b   : > { %v2783_v56 = vsel %vm2271_vm0, %v2015_v57, %v2527_v44 }
 0x30c   : > { %v5410_v0 = vpack.c.bf16 %v2783_v56, %v2782_v61 }
 0x30e   : > { %5538 = vst [vmem:[%s7116_s5 + $0x3f8] sm:$0xff] %v5410_v0  }
 0x30f PF: > { %s15_s20 = sadd.s32 1, %s5734_s20   ;;  %s7117_s18 = smov %s5730_s19 }
 0x310   : > { %p12_p7 = scmp.ge.s32.totalorder %s15_s20, 6   ;;  %s7118_s19 = smov %s7120_s21 }
 0x312   :  { %14 = sbr.rel (!%p12_p7) target bundleno = 2 (0x2), region = 91 }

// kernel: e1_forward.7
= control target key start
LH: loop header
LB: loop body
LE: loop exit
PB: predicated region body
PF: predicated region fallthrough
CT: control target
= control target key end

     0   :  { %s2575_s18 = smov 0   ;;  %s2577_s19 = smov 0   ;;  %s3014_s0 = inlined_call_operand.vmem [shape: bf16[512,512], index: 0, kind: input, shape index: {}]   ;;  %s3015_s1 = inlined_call_operand.vmem [shape: bf16[512,128], index: 1, kind: input, shape index: {}]   ;;  %s3016_s2 = inlined_call_operand.vmem [shape: f32[1,128], index: 2, kind: input, shape index: {}]   ;;  %s3017_s3 = inlined_call_operand.vmem [shape: f32[1,128], index: 3, kind: input, shape index: {}]   ;;  %s3018_s4 = inlined_call_operand.vmem [shape: f32[1,128], index: 4, kind: input, shape index: {}]   ;;  %s3019_s5 = inlined_call_operand.vmem [shape: bf16[512,128], index: 5, kind: output, shape index: {}]  }
   0x1   :  { %s2579_s20 = smov 0  }
   0x2 LB: > { %s24_s21 = sadd.s32 1, %s2538_s19  ;;  %p1890_p0 = scmp.ge.s32.totalorder %s2542_s20, 1  ;;  %s2542_s20 = sphi %s2579_s20, %s15_s20   ;;  %s2538_s19 = sphi %s2577_s19, %s3021_s19   ;;  %s2534_s18 = sphi %s2575_s18, %s3020_s18  }
   0x3   : > { %p25_p1 = scmp.ge.s32.totalorder %s24_s21, 4  ;;  %p234_p2 = scmp.lt.s32.totalorder %s2542_s20, 5 }
   0x5   : > { %s3023_s21 = smov (%p25_p1, %s24_s21), 0  ;;  %p235_p3 = pnand %p1890_p0, %p234_p2 }
   0x6   : > { %s1891_s22 = sshll.u32 (!%p235_p3), %s2534_s18, 4  ;;  %p1894_p5 = scmp.ne.s32.totalorder (!%p235_p3), %s2534_s18, 0 }
   0x7   : > { %238 = sbr.rel (%p235_p3) target bundleno = 476 (0x1dc), region = 40  ;;  %p276_p4 = scmp.lt.s32.totalorder (!%p235_p3), %s1891_s22, 63 }
   0xe   : > { %s3025_s22 = smov (!%p276_p4, %s1891_s22), 63  ;;  %303 = sbr.rel (%p1894_p5) target bundleno = 21 (0x15), region = 44 }
   0xf   : > { %s2029_s23 = sshll.u32 %s3025_s22, 4  ;;  %v2544_v0 = vmov (!%p1894_p5), 0.0  }
  0x10   : > { %s2599_s26 = scalar_lea.vmem %s3014_s0, %s2029_s23  ;;  %304 = vst [vmem:[#allocation3] sm:$0x1] (!%p1894_p5), %v2544_v0  ;;  %305 = vst [vmem:[#allocation4] sm:$0x1] (!%p1894_p5), %v2544_v0 }
  0x15 PF: > { %v2438_v1 = vld [vmem:[%s3015_s1 + $0x40] sm:$0xff]   ;;  %v2442_v5 = vld [vmem:[%s3015_s1 + $0x48] sm:$0xff]   ;;  %v2446_v9 = vld [vmem:[%s3015_s1 + $0x50] sm:$0xff]   ;;  %s1960_s8 = sshll.u32 %s2534_s18, 7  ;;  %p1961_p6 = scmp.ne.s32.totalorder %s2534_s18, 3 }
  0x16   : > { %v2439_v2 = vld [vmem:[%s3015_s1 + $0xc0] sm:$0xff]   ;;  %2285 = vmatprep.subr.bf16.mxu0 %v2438_v1  ;;  %v2443_v6 = vld [vmem:[%s3015_s1 + $0xc8] sm:$0xff]   ;;  %v2447_v10 = vld [vmem:[%s3015_s1 + $0xd0] sm:$0xff]  }
  0x17   : > { %v2440_v3 = vld [vmem:[%s3015_s1] sm:$0xff]   ;;  %2349 = vmatprep.subr.bf16.mxu1 %v2439_v2  ;;  %v2444_v7 = vld [vmem:[%s3015_s1 + $0x8] sm:$0xff]   ;;  %v2448_v11 = vld [vmem:[%s3015_s1 + $0x10] sm:$0xff]  }
  0x18   : > { %v2441_v4 = vld [vmem:[%s3015_s1 + $0x80] sm:$0xff]   ;;  %2286 = vmatpush3.bf16.msra.mxu0 %v2440_v3  ;;  %v2445_v8 = vld [vmem:[%s3015_s1 + $0x88] sm:$0xff]   ;;  %v2449_v12 = vld [vmem:[%s3015_s1 + $0x90] sm:$0xff]  }
  0x19   : > { %2350 = vmatpush3.bf16.msra.mxu1 %v2441_v4  ;;  %2287 = vmatprep.subr.bf16.mxu0 %v2442_v5  ;;  %v2450_v13 = vld [vmem:[%s3015_s1 + $0x58] sm:$0xff]   ;;  %v2454_v17 = vld [vmem:[%s3015_s1 + $0x60] sm:$0xff]   ;;  %v2458_v21 = vld [vmem:[%s3015_s1 + $0x68] sm:$0xff]  }
  0x1a   : > { %2351 = vmatprep.subr.bf16.mxu1 %v2443_v6  ;;  %v2451_v14 = vld [vmem:[%s3015_s1 + $0xd8] sm:$0xff]   ;;  %v2455_v18 = vld [vmem:[%s3015_s1 + $0xe0] sm:$0xff]   ;;  %v2459_v22 = vld [vmem:[%s3015_s1 + $0xe8] sm:$0xff]  }
  0x1b   : > { %v2452_v15 = vld [vmem:[%s3015_s1 + $0x18] sm:$0xff]   ;;  %v2456_v19 = vld [vmem:[%s3015_s1 + $0x20] sm:$0xff]   ;;  %v2460_v23 = vld [vmem:[%s3015_s1 + $0x28] sm:$0xff]  }
  0x1c   : > { %2288 = vmatpush3.bf16.msra.mxu0 %v2444_v7  ;;  %v2453_v16 = vld [vmem:[%s3015_s1 + $0x98] sm:$0xff]   ;;  %v2457_v20 = vld [vmem:[%s3015_s1 + $0xa0] sm:$0xff]   ;;  %v2461_v24 = vld [vmem:[%s3015_s1 + $0xa8] sm:$0xff]  }
  0x1d   : > { %2352 = vmatpush3.bf16.msra.mxu1 %v2445_v8  ;;  %2289 = vmatprep.subr.bf16.mxu0 %v2446_v9  ;;  %v2462_v25 = vld [vmem:[%s3015_s1 + $0x70] sm:$0xff]   ;;  %v2466_v29 = vld [vmem:[%s3015_s1 + $0x78] sm:$0xff]   ;;  %v2733_v3 = vld [vmem:[%s3016_s2] ss:$0 sm:$0xff] }
  0x1e   : > { %2353 = vmatprep.subr.bf16.mxu1 %v2447_v10  ;;  %v2463_v26 = vld [vmem:[%s3015_s1 + $0xf0] sm:$0xff]   ;;  %v2467_v30 = vld [vmem:[%s3015_s1 + $0xf8] sm:$0xff]  }
  0x1f   : > { %v2464_v27 = vld [vmem:[%s3015_s1 + $0x30] sm:$0xff]   ;;  %v2468_v31 = vld [vmem:[%s3015_s1 + $0x38] sm:$0xff]  }
  0x20   : > { %2290 = vmatpush3.bf16.msra.mxu0 %v2448_v11  ;;  %v2465_v28 = vld [vmem:[%s3015_s1 + $0xb0] sm:$0xff]   ;;  %v2469_v32 = vld [vmem:[%s3015_s1 + $0xb8] sm:$0xff]  }
  0x21   : > { %2354 = vmatpush3.bf16.msra.mxu1 %v2449_v12  ;;  %2291 = vmatprep.subr.bf16.mxu0 %v2450_v13  ;;  %v2470_v33 = vld [vmem:[%s2599_s26] ss:$16 sps:$4 sm:$0xff]   ;;  %v2472_v34 = vld [vmem:[%s2599_s26 + $0x4] ss:$16 sps:$4 sm:$0xff]   ;;  %v2473_v35 = vld [vmem:[%s2599_s26 + $0x8] ss:$16 sps:$4 sm:$0xff]  }
  0x22   : > { %2355 = vmatprep.subr.bf16.mxu1 %v2451_v14  ;;  %v2475_v36 = vld [vmem:[%s2599_s26 + $0xc] ss:$16 sps:$4 sm:$0xff]   ;;  %793 = vmatprep.mubr.bf16.mxu0 %v2472_v34  ;;  %v2476_v37 = vld [vmem:[%s2599_s26 + $0x24] ss:$16 sps:$4 sm:$0xff]   ;;  %v2480_v39 = vld [vmem:[%s2599_s26 + $0x20] ss:$16 sps:$4 sm:$0xff]  }
  0x23   : > { %890 = vmatprep.mubr.bf16.mxu1 %v2475_v36  ;;  %v2478_v38 = vld [vmem:[%s2599_s26 + $0x2c] ss:$16 sps:$4 sm:$0xff]   ;;  %v2481_v40 = vld [vmem:[%s2599_s26 + $0x28] ss:$16 sps:$4 sm:$0xff]   ;;  %v2482_v41 = vld [vmem:[%s2599_s26 + $0x44] ss:$16 sps:$4 sm:$0xff]  }
  0x24   : > { %2292 = vmatpush3.bf16.msra.mxu0 %v2452_v15  ;;  %v2484_v42 = vld [vmem:[%s2599_s26 + $0x4c] ss:$16 sps:$4 sm:$0xff]   ;;  %v2486_v43 = vld [vmem:[%s2599_s26 + $0x40] ss:$16 sps:$4 sm:$0xff]   ;;  %v2487_v44 = vld [vmem:[%s2599_s26 + $0x48] ss:$16 sps:$4 sm:$0xff]  }
  0x25   : > { %2356 = vmatpush3.bf16.msra.mxu1 %v2453_v16  ;;  %2293 = vmatprep.subr.bf16.mxu0 %v2454_v17  ;;  %v2488_v45 = vld [vmem:[%s2599_s26 + $0x64] ss:$16 sps:$4 sm:$0xff]   ;;  %v2490_v46 = vld [vmem:[%s2599_s26 + $0x6c] ss:$16 sps:$4 sm:$0xff]   ;;  %v2492_v47 = vld [vmem:[%s2599_s26 + $0x60] ss:$16 sps:$4 sm:$0xff]  }
  0x26   : > { %2357 = vmatprep.subr.bf16.mxu1 %v2455_v18  ;;  %v2493_v48 = vld [vmem:[%s2599_s26 + $0x68] ss:$16 sps:$4 sm:$0xff]   ;;  %v2494_v49 = vld [vmem:[%s2599_s26 + $0x84] ss:$16 sps:$4 sm:$0xff]   ;;  %v2496_v50 = vld [vmem:[%s2599_s26 + $0x8c] ss:$16 sps:$4 sm:$0xff]  }
  0x27   : > { %v2498_v51 = vld [vmem:[%s2599_s26 + $0x80] ss:$16 sps:$4 sm:$0xff]   ;;  %v2499_v52 = vld [vmem:[%s2599_s26 + $0x88] ss:$16 sps:$4 sm:$0xff]   ;;  %v2500_v53 = vld [vmem:[%s2599_s26 + $0xa4] ss:$16 sps:$4 sm:$0xff]  }
  0x28   : > { %2294 = vmatpush3.bf16.msra.mxu0 %v2456_v19  ;;  %v2502_v54 = vld [vmem:[%s2599_s26 + $0xac] ss:$16 sps:$4 sm:$0xff]   ;;  %v2504_v55 = vld [vmem:[%s2599_s26 + $0xa0] ss:$16 sps:$4 sm:$0xff]   ;;  %v2505_v56 = vld [vmem:[%s2599_s26 + $0xa8] ss:$16 sps:$4 sm:$0xff]  }
  0x29   : > { %2358 = vmatpush3.bf16.msra.mxu1 %v2457_v20  ;;  %2295 = vmatprep.subr.bf16.mxu0 %v2458_v21  ;;  %v2506_v57 = vld [vmem:[%s2599_s26 + $0xc4] ss:$16 sps:$4 sm:$0xff]   ;;  %v2508_v58 = vld [vmem:[%s2599_s26 + $0xcc] ss:$16 sps:$4 sm:$0xff]   ;;  %v2510_v59 = vld [vmem:[%s2599_s26 + $0xc0] ss:$16 sps:$4 sm:$0xff]  }
  0x2a   : > { %2359 = vmatprep.subr.bf16.mxu1 %v2459_v22  ;;  %v2511_v60 = vld [vmem:[%s2599_s26 + $0xc8] ss:$16 sps:$4 sm:$0xff]   ;;  %v2512_v61 = vld [vmem:[%s2599_s26 + $0xe4] ss:$16 sps:$4 sm:$0xff]   ;;  %v2514_v62 = vld [vmem:[%s2599_s26 + $0xec] ss:$16 sps:$4 sm:$0xff]  }
  0x2b   : > { %v2516_v63 = vld [vmem:[%s2599_s26 + $0xe0] ss:$16 sps:$4 sm:$0xff]   ;;  %v2517_v0 = vld [vmem:[%s2599_s26 + $0xe8] ss:$16 sps:$4 sm:$0xff]   ;;  %s2738_s26 = scalar_lea.vmem [#allocation2], %s1960_s8 }
  0x2c   : > { %2296 = vmatpush3.bf16.msra.mxu0 %v2460_v23 }
  0x2d   : > { %2360 = vmatpush3.bf16.msra.mxu1 %v2461_v24  ;;  %2297 = vmatprep.subr.bf16.mxu0 %v2462_v25 }
  0x2e   : > { %2361 = vmatprep.subr.bf16.mxu1 %v2463_v26 }
  0x30   : > { %2298 = vmatpush3.bf16.msra.mxu0 %v2464_v27 }
  0x31   : > { %2362 = vmatpush3.bf16.msra.mxu1 %v2465_v28  ;;  %2299 = vmatprep.subr.bf16.mxu0 %v2466_v29 }
  0x32   : > { %2363 = vmatprep.subr.bf16.mxu1 %v2467_v30 }
  0x34   : > { %2300 = vmatpush3.bf16.msra.mxu0 %v2468_v31 }
  0x35   : > { %2364 = vmatpush3.bf16.msra.mxu1 %v2469_v32 }
  0x37   : > { %794 = vmatmul.mubr.bf16.vlgmr.msra.gmra.mrb[0].mxu0 %v2470_v33 }
  0x38   : > { %891 = vmatmul.mubr.bf16.vlgmr.msra.gmra.mrb[0].mxu1 %v2473_v35  ;;  %801 = vmatprep.mubr.bf16.mxu0 %v2476_v37 }
  0x39   : > { %898 = vmatprep.mubr.bf16.mxu1 %v2478_v38 }
  0x3f   : > { %802 = vmatmul.mubr.bf16.gmra.mrb[4].mxu0 %v2480_v39 }
  0x40   : > { %899 = vmatmul.mubr.bf16.gmra.mrb[4].mxu1 %v2481_v40  ;;  %809 = vmatprep.mubr.bf16.mxu0 %v2482_v41 }
  0x41   : > { %906 = vmatprep.mubr.bf16.mxu1 %v2484_v42 }
  0x47   : > { %810 = vmatmul.mubr.bf16.gmra.mrb[8].mxu0 %v2486_v43 }
  0x48   : > { %907 = vmatmul.mubr.bf16.gmra.mrb[8].mxu1 %v2487_v44  ;;  %817 = vmatprep.mubr.bf16.mxu0 %v2488_v45 }
  0x49   : > { %914 = vmatprep.mubr.bf16.mxu1 %v2490_v46 }
  0x4f   : > { %818 = vmatmul.mubr.bf16.gmra.mrb[12].mxu0 %v2492_v47 }
  0x50   : > { %915 = vmatmul.mubr.bf16.gmra.mrb[12].mxu1 %v2493_v48  ;;  %825 = vmatprep.mubr.bf16.mxu0 %v2494_v49 }
  0x51   : > { %922 = vmatprep.mubr.bf16.mxu1 %v2496_v50 }
  0x57   : > { %826 = vmatmul.mubr.bf16.gmra.mrb[16].mxu0 %v2498_v51 }
  0x58   : > { %923 = vmatmul.mubr.bf16.gmra.mrb[16].mxu1 %v2499_v52  ;;  %833 = vmatprep.mubr.bf16.mxu0 %v2500_v53 }
  0x59   : > { %930 = vmatprep.mubr.bf16.mxu1 %v2502_v54 }
  0x5f   : > { %834 = vmatmul.mubr.bf16.gmra.mrb[20].mxu0 %v2504_v55 }
  0x60   : > { %931 = vmatmul.mubr.bf16.gmra.mrb[20].mxu1 %v2505_v56  ;;  %841 = vmatprep.mubr.bf16.mxu0 %v2506_v57 }
  0x61   : > { %938 = vmatprep.mubr.bf16.mxu1 %v2508_v58 }
  0x67   : > { %842 = vmatmul.mubr.bf16.gmra.mrb[24].mxu0 %v2510_v59 }
  0x68   : > { %939 = vmatmul.mubr.bf16.gmra.mrb[24].mxu1 %v2511_v60  ;;  %849 = vmatprep.mubr.bf16.mxu0 %v2512_v61 }
  0x69   : > { %946 = vmatprep.mubr.bf16.mxu1 %v2514_v62 }
  0x6f   : > { %850 = vmatmul.mubr.bf16.gmra.mrb[28].mxu0 %v2516_v63 }
  0x70   : > { %947 = vmatmul.mubr.bf16.gmra.mrb[28].mxu1 %v2517_v0 }
 0x10a   : > { %v2301_v1 = vpop.f32.mrb[0].mxu0 }
 0x10b   : > { %v2365_v2 = vpop.f32.mrb[0].mxu1  ;;  %v2302_v4 = vpop.f32.mrb[1].mxu0 }
 0x10c   : > { %v2303_v5 = vadd.f32 %v2302_v4, %v2301_v1  ;;  %v2366_v6 = vpop.f32.mrb[1].mxu1  ;;  %v2304_v7 = vpop.f32.mrb[2].mxu0 }
 0x10d   : > { %v2367_v8 = vadd.f32 %v2366_v6, %v2365_v2  ;;  %v2368_v9 = vpop.f32.mrb[2].mxu1  ;;  %v2305_v10 = vpop.f32.mrb[3].mxu0 }
 0x10e   : > { %v796_v11 = vadd.f32 %v2303_v5, %v2733_v3  ;;  %v2306_v12 = vadd.f32 %v2305_v10, %v2304_v7  ;;  %v2369_v13 = vpop.f32.mrb[3].mxu1 }
 0x10f   : > { %v2370_v14 = vadd.f32 %v2369_v13, %v2368_v9 }
 0x110   : > { %v893_v15 = vadd.f32 %v2367_v8, %v796_v11  ;;  %v799_v16 = vadd.f32 %v2306_v12, %v2733_v3 }
 0x112   : > { %957 = vst [vmem:[%s2738_s26] sm:$0xff] %v893_v15  ;;  %v896_v17 = vadd.f32 %v2370_v14, %v799_v16  ;;  %v2307_v18 = vpop.f32.mrb[4].mxu0  ;;  %v998_v21 = vmul.f32 %v893_v15, %v893_v15 }
 0x113   : > { %v2371_v19 = vpop.f32.mrb[4].mxu1  ;;  %v2308_v20 = vpop.f32.mrb[5].mxu0 }
 0x114   : > { %958 = vst [vmem:[%s2738_s26 + $0x8] sm:$0xff] %v896_v17  ;;  %v974_v22 = vadd.f32 %v896_v17, %v893_v15  ;;  %v999_v23 = vmul.f32 %v896_v17, %v896_v17  ;;  %v2309_v24 = vadd.f32 %v2308_v20, %v2307_v18  ;;  %v2372_v25 = vpop.f32.mrb[5].mxu1  ;;  %v2310_v26 = vpop.f32.mrb[6].mxu0 }
 0x115   : > { %v2373_v27 = vadd.f32 %v2372_v25, %v2371_v19  ;;  %v2374_v28 = vpop.f32.mrb[6].mxu1  ;;  %v2311_v29 = vpop.f32.mrb[7].mxu0 }
 0x116   : > { %v1014_v30 = vadd.f32 %v999_v23, %v998_v21  ;;  %v804_v31 = vadd.f32 %v2309_v24, %v2733_v3  ;;  %v2312_v32 = vadd.f32 %v2311_v29, %v2310_v26  ;;  %v2375_v33 = vpop.f32.mrb[7].mxu1 }
 0x117   : > { %v2376_v34 = vadd.f32 %v2375_v33, %v2374_v28 }
 0x118   : > { %v901_v35 = vadd.f32 %v2373_v27, %v804_v31  ;;  %v807_v36 = vadd.f32 %v2312_v32, %v2733_v3 }
 0x11a   : > { %959 = vst [vmem:[%s2738_s26 + $0x10] sm:$0xff] %v901_v35  ;;  %v975_v37 = vadd.f32 %v974_v22, %v901_v35  ;;  %v1000_v38 = vmul.f32 %v901_v35, %v901_v35  ;;  %v904_v39 = vadd.f32 %v2376_v34, %v807_v36  ;;  %v2313_v40 = vpop.f32.mrb[8].mxu0 }
 0x11b   : > { %v2377_v41 = vpop.f32.mrb[8].mxu1  ;;  %v2314_v42 = vpop.f32.mrb[9].mxu0 }
 0x11c   : > { %v1015_v43 = vadd.f32 %v1014_v30, %v1000_v38  ;;  %960 = vst [vmem:[%s2738_s26 + $0x18] sm:$0xff] %v904_v39  ;;  %v976_v44 = vadd.f32 %v975_v37, %v904_v39  ;;  %v1001_v45 = vmul.f32 %v904_v39, %v904_v39  ;;  %v2315_v46 = vadd.f32 %v2314_v42, %v2313_v40  ;;  %v2378_v47 = vpop.f32.mrb[9].mxu1  ;;  %v2316_v48 = vpop.f32.mrb[10].mxu0 }
 0x11d   : > { %v2379_v49 = vadd.f32 %v2378_v47, %v2377_v41  ;;  %v2380_v50 = vpop.f32.mrb[10].mxu1  ;;  %v2317_v51 = vpop.f32.mrb[11].mxu0 }
 0x11e   : > { %v1016_v52 = vadd.f32 %v1015_v43, %v1001_v45  ;;  %v812_v53 = vadd.f32 %v2315_v46, %v2733_v3  ;;  %v2318_v54 = vadd.f32 %v2317_v51, %v2316_v48  ;;  %v2381_v55 = vpop.f32.mrb[11].mxu1 }
 0x11f   : > { %v2382_v56 = vadd.f32 %v2381_v55, %v2380_v50 }
 0x120   : > { %v909_v57 = vadd.f32 %v2379_v49, %v812_v53  ;;  %v815_v58 = vadd.f32 %v2318_v54, %v2733_v3 }
 0x122   : > { %961 = vst [vmem:[%s2738_s26 + $0x20] sm:$0xff] %v909_v57  ;;  %v977_v59 = vadd.f32 %v976_v44, %v909_v57  ;;  %v1002_v60 = vmul.f32 %v909_v57, %v909_v57  ;;  %v912_v61 = vadd.f32 %v2382_v56, %v815_v58  ;;  %v2319_v62 = vpop.f32.mrb[12].mxu0 }
 0x123   : > { %v2383_v63 = vpop.f32.mrb[12].mxu1  ;;  %v2320_v0 = vpop.f32.mrb[13].mxu0 }
 0x124   : > { %v1017_v1 = vadd.f32 %v1016_v52, %v1002_v60  ;;  %962 = vst [vmem:[%s2738_s26 + $0x28] sm:$0xff] %v912_v61  ;;  %v978_v2 = vadd.f32 %v977_v59, %v912_v61  ;;  %v1003_v4 = vmul.f32 %v912_v61, %v912_v61  ;;  %v2321_v5 = vadd.f32 %v2320_v0, %v2319_v62  ;;  %v2384_v6 = vpop.f32.mrb[13].mxu1  ;;  %v2322_v7 = vpop.f32.mrb[14].mxu0 }
 0x125   : > { %v2385_v8 = vadd.f32 %v2384_v6, %v2383_v63  ;;  %v2386_v9 = vpop.f32.mrb[14].mxu1  ;;  %v2323_v10 = vpop.f32.mrb[15].mxu0 }
 0x126   : > { %v1018_v11 = vadd.f32 %v1017_v1, %v1003_v4  ;;  %v820_v12 = vadd.f32 %v2321_v5, %v2733_v3  ;;  %v2324_v13 = vadd.f32 %v2323_v10, %v2322_v7  ;;  %v2387_v14 = vpop.f32.mrb[15].mxu1 }
 0x127   : > { %v2388_v15 = vadd.f32 %v2387_v14, %v2386_v9 }
 0x128   : > { %v917_v16 = vadd.f32 %v2385_v8, %v820_v12  ;;  %v823_v17 = vadd.f32 %v2324_v13, %v2733_v3 }
 0x12a   : > { %963 = vst [vmem:[%s2738_s26 + $0x30] sm:$0xff] %v917_v16  ;;  %v979_v18 = vadd.f32 %v978_v2, %v917_v16  ;;  %v1004_v19 = vmul.f32 %v917_v16, %v917_v16  ;;  %v920_v20 = vadd.f32 %v2388_v15, %v823_v17  ;;  %v2325_v21 = vpop.f32.mrb[16].mxu0 }
 0x12b   : > { %v2389_v22 = vpop.f32.mrb[16].mxu1  ;;  %v2326_v23 = vpop.f32.mrb[17].mxu0 }
 0x12c   : > { %v1019_v24 = vadd.f32 %v1018_v11, %v1004_v19  ;;  %964 = vst [vmem:[%s2738_s26 + $0x38] sm:$0xff] %v920_v20  ;;  %v980_v25 = vadd.f32 %v979_v18, %v920_v20  ;;  %v1005_v26 = vmul.f32 %v920_v20, %v920_v20  ;;  %v2327_v27 = vadd.f32 %v2326_v23, %v2325_v21  ;;  %v2390_v28 = vpop.f32.mrb[17].mxu1  ;;  %v2328_v29 = vpop.f32.mrb[18].mxu0 }
 0x12d   : > { %v2391_v30 = vadd.f32 %v2390_v28, %v2389_v22  ;;  %v2392_v31 = vpop.f32.mrb[18].mxu1  ;;  %v2329_v32 = vpop.f32.mrb[19].mxu0 }
 0x12e   : > { %v1020_v33 = vadd.f32 %v1019_v24, %v1005_v26  ;;  %v828_v34 = vadd.f32 %v2327_v27, %v2733_v3  ;;  %v2330_v35 = vadd.f32 %v2329_v32, %v2328_v29  ;;  %v2393_v36 = vpop.f32.mrb[19].mxu1 }
 0x12f   : > { %v2394_v37 = vadd.f32 %v2393_v36, %v2392_v31 }
 0x130   : > { %v925_v38 = vadd.f32 %v2391_v30, %v828_v34  ;;  %v831_v39 = vadd.f32 %v2330_v35, %v2733_v3 }
 0x132   : > { %965 = vst [vmem:[%s2738_s26 + $0x40] sm:$0xff] %v925_v38  ;;  %v981_v40 = vadd.f32 %v980_v25, %v925_v38  ;;  %v1006_v41 = vmul.f32 %v925_v38, %v925_v38  ;;  %v928_v42 = vadd.f32 %v2394_v37, %v831_v39  ;;  %v2331_v43 = vpop.f32.mrb[20].mxu0 }
 0x133   : > { %v2395_v44 = vpop.f32.mrb[20].mxu1  ;;  %v2332_v45 = vpop.f32.mrb[21].mxu0 }
 0x134   : > { %v1021_v46 = vadd.f32 %v1020_v33, %v1006_v41  ;;  %966 = vst [vmem:[%s2738_s26 + $0x48] sm:$0xff] %v928_v42  ;;  %v982_v47 = vadd.f32 %v981_v40, %v928_v42  ;;  %v1007_v48 = vmul.f32 %v928_v42, %v928_v42  ;;  %v2333_v49 = vadd.f32 %v2332_v45, %v2331_v43  ;;  %v2396_v50 = vpop.f32.mrb[21].mxu1  ;;  %v2334_v51 = vpop.f32.mrb[22].mxu0 }
 0x135   : > { %v2397_v52 = vadd.f32 %v2396_v50, %v2395_v44  ;;  %v2398_v53 = vpop.f32.mrb[22].mxu1  ;;  %v2335_v54 = vpop.f32.mrb[23].mxu0 }
 0x136   : > { %v1022_v55 = vadd.f32 %v1021_v46, %v1007_v48  ;;  %v836_v56 = vadd.f32 %v2333_v49, %v2733_v3  ;;  %v2336_v57 = vadd.f32 %v2335_v54, %v2334_v51  ;;  %v2399_v58 = vpop.f32.mrb[23].mxu1 }
 0x137   : > { %v2400_v59 = vadd.f32 %v2399_v58, %v2398_v53 }
 0x138   : > { %v933_v60 = vadd.f32 %v2397_v52, %v836_v56  ;;  %v839_v61 = vadd.f32 %v2336_v57, %v2733_v3 }
 0x13a   : > { %967 = vst [vmem:[%s2738_s26 + $0x50] sm:$0xff] %v933_v60  ;;  %v983_v62 = vadd.f32 %v982_v47, %v933_v60  ;;  %v1008_v63 = vmul.f32 %v933_v60, %v933_v60  ;;  %v936_v0 = vadd.f32 %v2400_v59, %v839_v61  ;;  %v2337_v1 = vpop.f32.mrb[24].mxu0  ;;  %v973_v59 = vld [vmem:[#allocation3] sm:$0x1]  ;;  %v997_v61 = vld [vmem:[#allocation4] sm:$0x1] }
 0x13b   : > { %v2401_v2 = vpop.f32.mrb[24].mxu1  ;;  %v2338_v4 = vpop.f32.mrb[25].mxu0 }
 0x13c   : > { %v1023_v5 = vadd.f32 %v1022_v55, %v1008_v63  ;;  %968 = vst [vmem:[%s2738_s26 + $0x58] sm:$0xff] %v936_v0  ;;  %v984_v6 = vadd.f32 %v983_v62, %v936_v0  ;;  %v1009_v7 = vmul.f32 %v936_v0, %v936_v0  ;;  %v2339_v8 = vadd.f32 %v2338_v4, %v2337_v1  ;;  %v2402_v9 = vpop.f32.mrb[25].mxu1  ;;  %v2340_v10 = vpop.f32.mrb[26].mxu0 }
 0x13d   : > { %v2403_v11 = vadd.f32 %v2402_v9, %v2401_v2  ;;  %v2404_v12 = vpop.f32.mrb[26].mxu1  ;;  %v2341_v13 = vpop.f32.mrb[27].mxu0 }
 0x13e   : > { %v1024_v14 = vadd.f32 %v1023_v5, %v1009_v7  ;;  %v844_v15 = vadd.f32 %v2339_v8, %v2733_v3  ;;  %v2342_v16 = vadd.f32 %v2341_v13, %v2340_v10  ;;  %v2405_v17 = vpop.f32.mrb[27].mxu1  ;;  %v1120_v10 = vlaneseq (!%p1961_p6) }
 0x13f   : > { %v2406_v18 = vadd.f32 %v2405_v17, %v2404_v12  ;;  %v1048_v12 = vld [vmem:[%s3017_s3] sm:$0x1] (!%p1961_p6) }
 0x140   : > { %v941_v19 = vadd.f32 %v2403_v11, %v844_v15  ;;  %v847_v20 = vadd.f32 %v2342_v16, %v2733_v3  ;;  %v1121_v11 = vshrl.u32 (!%p1961_p6), %v1120_v10, 7  ;;  %v1052_v16 = vld [vmem:[%s3018_s4] sm:$0x1] (!%p1961_p6) }
 0x142   : > { %969 = vst [vmem:[%s2738_s26 + $0x60] sm:$0xff] %v941_v19  ;;  %v985_v21 = vadd.f32 %v984_v6, %v941_v19  ;;  %v1010_v22 = vmul.f32 %v941_v19, %v941_v19  ;;  %v944_v23 = vadd.f32 %v2406_v18, %v847_v20  ;;  %v2343_v24 = vpop.f32.mrb[28].mxu0  ;;  %v1122_v13 = vsub.s32 (!%p1961_p6), 0, %v1121_v11 }
 0x143   : > { %v2407_v25 = vpop.f32.mrb[28].mxu1  ;;  %v2344_v26 = vpop.f32.mrb[29].mxu0 }
 0x144   : > { %v1025_v27 = vadd.f32 %v1024_v14, %v1010_v22  ;;  %970 = vst [vmem:[%s2738_s26 + $0x68] sm:$0xff] %v944_v23  ;;  %v986_v28 = vadd.f32 %v985_v21, %v944_v23  ;;  %v1011_v29 = vmul.f32 %v944_v23, %v944_v23  ;;  %v2345_v30 = vadd.f32 %v2344_v26, %v2343_v24  ;;  %v2408_v31 = vpop.f32.mrb[29].mxu1  ;;  %v2346_v32 = vpop.f32.mrb[30].mxu0 }
 0x145   : > { %v2409_v33 = vadd.f32 %v2408_v31, %v2407_v25  ;;  %v2410_v34 = vpop.f32.mrb[30].mxu1  ;;  %v2347_v35 = vpop.f32.mrb[31].mxu0 }
 0x146   : > { %v1026_v36 = vadd.f32 %v1025_v27, %v1011_v29  ;;  %v852_v37 = vadd.f32 %v2345_v30, %v2733_v3  ;;  %v2348_v38 = vadd.f32 %v2347_v35, %v2346_v32  ;;  %v2411_v39 = vpop.f32.mrb[31].mxu1 }
 0x147   : > { %v2412_v40 = vadd.f32 %v2411_v39, %v2410_v34 }
 0x148   : > { %v949_v41 = vadd.f32 %v2409_v33, %v852_v37  ;;  %v855_v42 = vadd.f32 %v2348_v38, %v2733_v3 }
 0x14a   : > { %971 = vst [vmem:[%s2738_s26 + $0x70] sm:$0xff] %v949_v41  ;;  %v987_v43 = vadd.f32 %v986_v28, %v949_v41  ;;  %v1012_v44 = vmul.f32 %v949_v41, %v949_v41  ;;  %v952_v45 = vadd.f32 %v2412_v40, %v855_v42 }
 0x14c   : > { %v1027_v46 = vadd.f32 %v1026_v36, %v1012_v44  ;;  %972 = vst [vmem:[%s2738_s26 + $0x78] sm:$0xff] %v952_v45  ;;  %v988_v47 = vadd.f32 %v987_v43, %v952_v45  ;;  %v1013_v48 = vmul.f32 %v952_v45, %v952_v45 }
 0x14e   : > { %v989_v49 = vrot.slane %v988_v47, 4  ;;  %v1028_v50 = vadd.f32 %v1027_v46, %v1013_v48 }
 0x150   : > { %v990_v51 = vadd.f32 %v989_v49, %v988_v47  ;;  %v1029_v52 = vrot.slane %v1028_v50, 4 }
 0x152   : > { %v991_v53 = vrot.slane %v990_v51, 2  ;;  %v1030_v54 = vadd.f32 %v1029_v52, %v1028_v50 }
 0x153   : > { %v1055_v17 = vld [vmem:[#allocation2] sm:$0xff] (!%p1961_p6)  ;;  %v1056_v18 = vld [vmem:[#allocation2 + $0x8] sm:$0xff] (!%p1961_p6)  ;;  %v1057_v19 = vld [vmem:[#allocation2 + $0x10] sm:$0xff] (!%p1961_p6) }
 0x154   : > { %v992_v55 = vadd.f32 %v991_v53, %v990_v51  ;;  %v1031_v56 = vrot.slane %v1030_v54, 2  ;;  %v1058_v20 = vld [vmem:[#allocation2 + $0x18] sm:$0xff] (!%p1961_p6)  ;;  %v1059_v21 = vld [vmem:[#allocation2 + $0x20] sm:$0xff] (!%p1961_p6)  ;;  %v1060_v24 = vld [vmem:[#allocation2 + $0x28] sm:$0xff] (!%p1961_p6) }
 0x155   : > { %v1061_v25 = vld [vmem:[#allocation2 + $0x30] sm:$0xff] (!%p1961_p6)  ;;  %v1062_v26 = vld [vmem:[#allocation2 + $0x38] sm:$0xff] (!%p1961_p6)  ;;  %v1063_v27 = vld [vmem:[#allocation2 + $0x40] sm:$0xff] (!%p1961_p6) }
 0x156   : > { %v993_v57 = vrot.slane %v992_v55, 1  ;;  %v1032_v58 = vadd.f32 %v1031_v56, %v1030_v54  ;;  %v1064_v28 = vld [vmem:[#allocation2 + $0x48] sm:$0xff] (!%p1961_p6)  ;;  %v1065_v29 = vld [vmem:[#allocation2 + $0x50] sm:$0xff] (!%p1961_p6)  ;;  %v1066_v34 = vld [vmem:[#allocation2 + $0x58] sm:$0xff] (!%p1961_p6) }
 0x157   : > { %v1067_v35 = vld [vmem:[#allocation2 + $0x60] sm:$0xff] (!%p1961_p6)  ;;  %v1068_v36 = vld [vmem:[#allocation2 + $0x68] sm:$0xff] (!%p1961_p6) }
 0x158   : > { %v994_v3 = vadd.f32 %v993_v57, %v992_v55  ;;  %v1033_v60 = vrot.slane %v1032_v58, 1  ;;  %1040 = sbr.rel (%p1961_p6) target bundleno = 476 (0x1dc), region = 48 }
 0x15a   : > { %v995_v62 = vadd.f32 %v994_v3, %v973_v59  ;;  %v1034_v63 = vadd.f32 %v1033_v60, %v1032_v58 }
 0x15c   : > { %996 = vst [vmem:[#allocation3] sm:$0x1] %v995_v62  ;;  %v1035_v0 = vadd.f32 %v1034_v63, %v997_v61 }
 0x15e   : > { %1036 = vst [vmem:[#allocation4] sm:$0x1] %v1035_v0 }
 0x163   : > { %v1041_v1 = vld [vmem:[#allocation3] sm:$0x1] }
 0x164   : > { %v1042_v4 = vmul.f32 0.001953125, %v1041_v1 }
 0x165   : > { %v1043_v2 = vld [vmem:[#allocation4] sm:$0x1] }
 0x166   : > { %v1044_v5 = vmul.f32 0.001953125, %v1043_v2  ;;  %v1045_v6 = vmul.f32 %v1042_v4, %v1042_v4 }
 0x168   : > { %v1046_v7 = vsub.f32 %v1044_v5, %v1045_v6 }
 0x16a   : > { %v1047_v8 = vmax.f32 %v1046_v7, 0.0 }
 0x16c   : > { %v1049_v9 = vadd.f32 1e-05, %v1047_v8 }
 0x16e   : > { %2518 = vrsqrt.f32 %v1049_v9 }
 0x178   : > { %v2519_v14 = vpop.eup %2518 }
 0x179   : > { %v1051_v15 = vmul.f32 %v2519_v14, %v1048_v12 }
 0x17b   : > { %v1053_v22 = vmul.f32 %v1051_v15, %v1042_v4  ;;  %v2777_v23 = vrot.slane %v1051_v15, %v1122_v13 }
 0x17d   : > { %v1054_v30 = vsub.f32 %v1052_v16, %v1053_v22  ;;  %v1125_v31 = vmul.f32 %v2777_v23, %v1055_v17  ;;  %v1126_v32 = vmul.f32 %v2777_v23, %v1056_v18  ;;  %v1127_v33 = vmul.f32 %v2777_v23, %v1057_v19  ;;  %v1069_v19 = vld [vmem:[#allocation2 + $0x70] sm:$0xff] }
 0x17e   : > { %v1128_v37 = vmul.f32 %v2777_v23, %v1058_v20  ;;  %v1129_v38 = vmul.f32 %v2777_v23, %v1059_v21  ;;  %v1130_v39 = vmul.f32 %v2777_v23, %v1060_v24  ;;  %v1131_v40 = vmul.f32 %v2777_v23, %v1061_v25 }
 0x17f   : > { %v2786_v41 = vrot.slane %v1054_v30, %v1122_v13  ;;  %v1132_v42 = vmul.f32 %v2777_v23, %v1062_v26  ;;  %v1133_v43 = vmul.f32 %v2777_v23, %v1063_v27  ;;  %v1134_v44 = vmul.f32 %v2777_v23, %v1064_v28  ;;  %v1070_v27 = vld [vmem:[#allocation2 + $0x78] sm:$0xff]  ;;  %v1071_v28 = vld [vmem:[#allocation2 + $0x80] sm:$0xff] }
 0x180   : > { %v1135_v45 = vmul.f32 %v2777_v23, %v1065_v29  ;;  %v1136_v46 = vmul.f32 %v2777_v23, %v1066_v34  ;;  %v1137_v47 = vmul.f32 %v2777_v23, %v1067_v35  ;;  %v1138_v48 = vmul.f32 %v2777_v23, %v1068_v36  ;;  %v1073_v34 = vld [vmem:[#allocation2 + $0x90] sm:$0xff]  ;;  %v1074_v35 = vld [vmem:[#allocation2 + $0x98] sm:$0xff] }
 0x181   : > { %v1195_v49 = vadd.f32 %v2786_v41, %v1125_v31  ;;  %v1196_v50 = vadd.f32 %v2786_v41, %v1126_v32  ;;  %v1197_v51 = vadd.f32 %v2786_v41, %v1127_v33  ;;  %v1198_v52 = vadd.f32 %v2786_v41, %v1128_v37  ;;  %v1072_v33 = vld [vmem:[#allocation2 + $0x88] sm:$0xff] }
 0x182   : > { %v1199_v53 = vadd.f32 %v2786_v41, %v1129_v38  ;;  %v1200_v54 = vadd.f32 %v2786_v41, %v1130_v39  ;;  %v1201_v55 = vadd.f32 %v2786_v41, %v1131_v40  ;;  %v1202_v56 = vadd.f32 %v2786_v41, %v1132_v42 }
 0x183   : > { %vm1259_vm0 = vcmp.ge.f32.partialorder %v1195_v49, 0.0  ;;  %vm1260_vm1 = vcmp.ge.f32.partialorder %v1196_v50, 0.0  ;;  %v1323_v57 = vmul.f32 0.2, %v1195_v49  ;;  %v1324_v58 = vmul.f32 0.2, %v1196_v50 }
 0x184   : > { %vm1261_vm2 = vcmp.ge.f32.partialorder %v1197_v51, 0.0  ;;  %vm1262_vm3 = vcmp.ge.f32.partialorder %v1198_v52, 0.0  ;;  %v1325_v59 = vmul.f32 0.2, %v1197_v51  ;;  %v1326_v3 = vmul.f32 0.2, %v1198_v52 }
 0x185   : > { %v1387_v60 = vsel %vm1259_vm0, %v1195_v49, %v1323_v57  ;;  %v1388_v61 = vsel %vm1260_vm1, %v1196_v50, %v1324_v58  ;;  %vm1263_vm4 = vcmp.ge.f32.partialorder %v1199_v53, 0.0  ;;  %vm1264_vm5 = vcmp.ge.f32.partialorder %v1200_v54, 0.0  ;;  %v1075_v57 = vld [vmem:[#allocation2 + $0xa0] sm:$0xff]  ;;  %v1076_v58 = vld [vmem:[#allocation2 + $0xa8] sm:$0xff] }
 0x186   : > { %v2097_v62 = vpack.c.bf16 %v1388_v61, %v1387_v60  ;;  %v1389_v63 = vsel %vm1261_vm2, %v1197_v51, %v1325_v59  ;;  %v1390_v0 = vsel %vm1262_vm3, %v1198_v52, %v1326_v3  ;;  %v1327_v1 = vmul.f32 0.2, %v1199_v53  ;;  %v1077_v59 = vld [vmem:[#allocation2 + $0xb0] sm:$0xff] }
 0x187   : > { %v2102_v2 = vpack.c.bf16 %v1390_v0, %v1389_v63  ;;  %v1328_v4 = vmul.f32 0.2, %v1200_v54  ;;  %vm1265_vm6 = vcmp.ge.f32.partialorder %v1201_v55, 0.0  ;;  %vm1266_vm7 = vcmp.ge.f32.partialorder %v1202_v56, 0.0  ;;  %v1078_v63 = vld [vmem:[#allocation2 + $0xb8] sm:$0xff]  ;;  %v1079_v0 = vld [vmem:[#allocation2 + $0xc0] sm:$0xff] }
 0x188   : > { %2098 = vst [vmem:[%s3019_s5] sm:$0xff] %v2097_v62   ;;  %v1391_v5 = vsel %vm1263_vm4, %v1199_v53, %v1327_v1  ;;  %v1329_v6 = vmul.f32 0.2, %v1201_v55  ;;  %v1330_v7 = vmul.f32 0.2, %v1202_v56  ;;  %v1203_v8 = vadd.f32 %v2786_v41, %v1133_v43 }
 0x189   : > { %2254 = vst [vmem:[%s3019_s5 + $0x8] sm:$0xff] %v2102_v2   ;;  %v1392_v9 = vsel %vm1264_vm5, %v1200_v54, %v1328_v4  ;;  %v1204_v10 = vadd.f32 %v2786_v41, %v1134_v44  ;;  %v1205_v11 = vadd.f32 %v2786_v41, %v1135_v45  ;;  %v1206_v12 = vadd.f32 %v2786_v41, %v1136_v46 }
 0x18a   : > { %v2107_v13 = vpack.c.bf16 %v1392_v9, %v1391_v5  ;;  %v1393_v14 = vsel %vm1265_vm6, %v1201_v55, %v1329_v6  ;;  %v1394_v15 = vsel %vm1266_vm7, %v1202_v56, %v1330_v7  ;;  %vm1267_vm8 = vcmp.ge.f32.partialorder %v1203_v8, 0.0  ;;  %v1080_v6 = vld [vmem:[#allocation2 + $0xc8] sm:$0xff] }
 0x18b   : > { %v2112_v16 = vpack.c.bf16 %v1394_v15, %v1393_v14  ;;  %vm1268_vm9 = vcmp.ge.f32.partialorder %v1204_v10, 0.0  ;;  %v1331_v17 = vmul.f32 0.2, %v1203_v8  ;;  %v1332_v18 = vmul.f32 0.2, %v1204_v10 }
 0x18c   : > { %2255 = vst [vmem:[%s3019_s5 + $0x10] sm:$0xff] %v2107_v13   ;;  %vm1269_vm10 = vcmp.ge.f32.partialorder %v1205_v11, 0.0  ;;  %vm1270_vm11 = vcmp.ge.f32.partialorder %v1206_v12, 0.0  ;;  %v1333_v20 = vmul.f32 0.2, %v1205_v11  ;;  %v1207_v25 = vadd.f32 %v2786_v41, %v1137_v47 }
 0x18d   : > { %v1334_v21 = vmul.f32 0.2, %v1206_v12  ;;  %2256 = vst [vmem:[%s3019_s5 + $0x18] sm:$0xff] %v2112_v16   ;;  %v1395_v22 = vsel %vm1267_vm8, %v1203_v8, %v1331_v17  ;;  %v1396_v24 = vsel %vm1268_vm9, %v1204_v10, %v1332_v18  ;;  %v1208_v26 = vadd.f32 %v2786_v41, %v1138_v48 }
 0x18e   : > { %v2117_v29 = vpack.c.bf16 %v1396_v24, %v1395_v22  ;;  %v1397_v30 = vsel %vm1269_vm10, %v1205_v11, %v1333_v20  ;;  %v1139_v32 = vmul.f32 %v2777_v23, %v1069_v19  ;;  %vm1271_vm12 = vcmp.ge.f32.partialorder %v1207_v25, 0.0  ;;  %v1081_v11 = vld [vmem:[#allocation2 + $0xd0] sm:$0xff]  ;;  %v1082_v24 = vld [vmem:[#allocation2 + $0xd8] sm:$0xff] }
 0x18f   : > { %v1398_v31 = vsel %vm1270_vm11, %v1206_v12, %v1334_v21  ;;  %vm1272_vm13 = vcmp.ge.f32.partialorder %v1208_v26, 0.0  ;;  %v1335_v37 = vmul.f32 0.2, %v1207_v25  ;;  %v1336_v38 = vmul.f32 0.2, %v1208_v26 }
 0x190   : > { %v2122_v36 = vpack.c.bf16 %v1398_v31, %v1397_v30  ;;  %2257 = vst [vmem:[%s3019_s5 + $0x20] sm:$0xff] %v2117_v29   ;;  %v1140_v39 = vmul.f32 %v2777_v23, %v1070_v27  ;;  %v1209_v40 = vadd.f32 %v2786_v41, %v1139_v32  ;;  %v1141_v42 = vmul.f32 %v2777_v23, %v1071_v28 }
 0x191   : > { %v1399_v43 = vsel %vm1271_vm12, %v1207_v25, %v1335_v37  ;;  %v1142_v44 = vmul.f32 %v2777_v23, %v1072_v33  ;;  %v1143_v45 = vmul.f32 %v2777_v23, %v1073_v34  ;;  %v1144_v46 = vmul.f32 %v2777_v23, %v1074_v35  ;;  %v1083_v33 = vld [vmem:[#allocation2 + $0xe0] sm:$0xff]  ;;  %v1084_v34 = vld [vmem:[#allocation2 + $0xe8] sm:$0xff] }
 0x192   : > { %2258 = vst [vmem:[%s3019_s5 + $0x28] sm:$0xff] %v2122_v36   ;;  %v1400_v47 = vsel %vm1272_vm13, %v1208_v26, %v1336_v38  ;;  %v1210_v48 = vadd.f32 %v2786_v41, %v1140_v39  ;;  %vm1273_vm14 = vcmp.ge.f32.partialorder %v1209_v40, 0.0  ;;  %v1337_v49 = vmul.f32 0.2, %v1209_v40  ;;  %v1085_v39 = vld [vmem:[#allocation2 + $0xf0] sm:$0xff] }
 0x193   : > { %v2127_v50 = vpack.c.bf16 %v1400_v47, %v1399_v43  ;;  %v1211_v51 = vadd.f32 %v2786_v41, %v1141_v42  ;;  %v1212_v52 = vadd.f32 %v2786_v41, %v1142_v44  ;;  %v1213_v53 = vadd.f32 %v2786_v41, %v1143_v45 }
 0x194   : > { %vm1274_vm15 = vcmp.ge.f32.partialorder %v1210_v48, 0.0  ;;  %v1338_v54 = vmul.f32 0.2, %v1210_v48  ;;  %v1401_v55 = vsel %vm1273_vm14, %v1209_v40, %v1337_v49  ;;  %v1214_v56 = vadd.f32 %v2786_v41, %v1144_v46  ;;  %v1086_v40 = vld [vmem:[#allocation2 + $0xf8] sm:$0xff] }
 0x195   : > { %2259 = vst [vmem:[%s3019_s5 + $0x30] sm:$0xff] %v2127_v50   ;;  %vm1275_vm0 = vcmp.ge.f32.partialorder %v1211_v51, 0.0  ;;  %vm1276_vm1 = vcmp.ge.f32.partialorder %v1212_v52, 0.0  ;;  %v1339_v3 = vmul.f32 0.2, %v1211_v51  ;;  %vm1277_vm2 = vcmp.ge.f32.partialorder %v1213_v53, 0.0 }
 0x196   : > { %v1340_v60 = vmul.f32 0.2, %v1212_v52  ;;  %v1402_v61 = vsel %vm1274_vm15, %v1210_v48, %v1338_v54  ;;  %vm1278_vm3 = vcmp.ge.f32.partialorder %v1214_v56, 0.0  ;;  %v1341_v62 = vmul.f32 0.2, %v1213_v53 }
 0x197   : > { %v2132_v1 = vpack.c.bf16 %v1402_v61, %v1401_v55  ;;  %v1403_v2 = vsel %vm1275_vm0, %v1211_v51, %v1339_v3  ;;  %v1342_v5 = vmul.f32 0.2, %v1214_v56  ;;  %v1145_v9 = vmul.f32 %v2777_v23, %v1075_v57  ;;  %v1087_v61 = vld [vmem:[#allocation2 + $0x100] sm:$0xff] }
 0x198   : > { %v1404_v4 = vsel %vm1276_vm1, %v1212_v52, %v1340_v60  ;;  %v1405_v8 = vsel %vm1277_vm2, %v1213_v53, %v1341_v62  ;;  %v1146_v10 = vmul.f32 %v2777_v23, %v1076_v58  ;;  %v1147_v13 = vmul.f32 %v2777_v23, %v1077_v59  ;;  %v1088_v62 = vld [vmem:[#allocation2 + $0x108] sm:$0xff] }
 0x199   : > { %v2137_v7 = vpack.c.bf16 %v1404_v4, %v1403_v2  ;;  %2260 = vst [vmem:[%s3019_s5 + $0x38] sm:$0xff] %v2132_v1   ;;  %v1406_v12 = vsel %vm1278_vm3, %v1214_v56, %v1342_v5  ;;  %v1148_v14 = vmul.f32 %v2777_v23, %v1078_v63  ;;  %v1149_v15 = vmul.f32 %v2777_v23, %v1079_v0  ;;  %v1089_v1 = vld [vmem:[#allocation2 + $0x110] sm:$0xff]  ;;  %v1090_v2 = vld [vmem:[#allocation2 + $0x118] sm:$0xff] }
 0x19a   : > { %v2142_v16 = vpack.c.bf16 %v1406_v12, %v1405_v8  ;;  %v1215_v17 = vadd.f32 %v2786_v41, %v1145_v9  ;;  %v1216_v18 = vadd.f32 %v2786_v41, %v1146_v10  ;;  %v1150_v19 = vmul.f32 %v2777_v23, %v1080_v6  ;;  %v1092_v12 = vld [vmem:[#allocation2 + $0x128] sm:$0xff] }
 0x19b   : > { %2261 = vst [vmem:[%s3019_s5 + $0x40] sm:$0xff] %v2137_v7   ;;  %v1217_v20 = vadd.f32 %v2786_v41, %v1147_v13  ;;  %v1218_v21 = vadd.f32 %v2786_v41, %v1148_v14  ;;  %v1219_v22 = vadd.f32 %v2786_v41, %v1149_v15  ;;  %v1151_v25 = vmul.f32 %v2777_v23, %v1081_v11  ;;  %v1091_v7 = vld [vmem:[#allocation2 + $0x120] sm:$0xff] }
 0x19c   : > { %2262 = vst [vmem:[%s3019_s5 + $0x48] sm:$0xff] %v2142_v16   ;;  %vm1279_vm4 = vcmp.ge.f32.partialorder %v1215_v17, 0.0  ;;  %vm1280_vm5 = vcmp.ge.f32.partialorder %v1216_v18, 0.0  ;;  %v1343_v26 = vmul.f32 0.2, %v1215_v17  ;;  %v1220_v32 = vadd.f32 %v2786_v41, %v1150_v19 }
 0x19d   : > { %v1344_v27 = vmul.f32 0.2, %v1216_v18  ;;  %vm1281_vm6 = vcmp.ge.f32.partialorder %v1217_v20, 0.0  ;;  %vm1282_vm7 = vcmp.ge.f32.partialorder %v1218_v21, 0.0  ;;  %v1345_v28 = vmul.f32 0.2, %v1217_v20 }
 0x19e   : > { %v1346_v29 = vmul.f32 0.2, %v1218_v21  ;;  %v1407_v30 = vsel %vm1279_vm4, %v1215_v17, %v1343_v26  ;;  %vm1283_vm8 = vcmp.ge.f32.partialorder %v1219_v22, 0.0  ;;  %v1347_v38 = vmul.f32 0.2, %v1219_v22  ;;  %v1093_v26 = vld [vmem:[#allocation2 + $0x130] sm:$0xff] }
 0x19f   : > { %v1408_v31 = vsel %vm1280_vm5, %v1216_v18, %v1344_v27  ;;  %v1409_v36 = vsel %vm1281_vm6, %v1217_v20, %v1345_v28  ;;  %vm1284_vm9 = vcmp.ge.f32.partialorder %v1220_v32, 0.0  ;;  %v1348_v43 = vmul.f32 0.2, %v1220_v32 }
 0x1a0   : > { %v2147_v35 = vpack.c.bf16 %v1408_v31, %v1407_v30  ;;  %v1410_v37 = vsel %vm1282_vm7, %v1218_v21, %v1346_v29  ;;  %v1152_v44 = vmul.f32 %v2777_v23, %v1082_v24  ;;  %v1411_v45 = vsel %vm1283_vm8, %v1219_v22, %v1347_v38 }
 0x1a1   : > { %v2152_v42 = vpack.c.bf16 %v1410_v37, %v1409_v36  ;;  %v1221_v46 = vadd.f32 %v2786_v41, %v1151_v25  ;;  %v1153_v47 = vmul.f32 %v2777_v23, %v1083_v33  ;;  %v1154_v48 = vmul.f32 %v2777_v23, %v1084_v34  ;;  %v1095_v36 = vld [vmem:[#allocation2 + $0x140] sm:$0xff] }
 0x1a2   : > { %2263 = vst [vmem:[%s3019_s5 + $0x50] sm:$0xff] %v2147_v35   ;;  %v1412_v49 = vsel %vm1284_vm9, %v1220_v32, %v1348_v43  ;;  %v1222_v50 = vadd.f32 %v2786_v41, %v1152_v44  ;;  %v1155_v51 = vmul.f32 %v2777_v23, %v1085_v39  ;;  %v1156_v52 = vmul.f32 %v2777_v23, %v1086_v40  ;;  %v1094_v35 = vld [vmem:[#allocation2 + $0x138] sm:$0xff]  ;;  %v1097_v43 = vld [vmem:[#allocation2 + $0x150] sm:$0xff] }
 0x1a3   : > { %2264 = vst [vmem:[%s3019_s5 + $0x58] sm:$0xff] %v2152_v42   ;;  %v2157_v53 = vpack.c.bf16 %v1412_v49, %v1411_v45  ;;  %vm1285_vm10 = vcmp.ge.f32.partialorder %v1221_v46, 0.0  ;;  %v1349_v54 = vmul.f32 0.2, %v1221_v46  ;;  %v1223_v55 = vadd.f32 %v2786_v41, %v1153_v47  ;;  %v1096_v42 = vld [vmem:[#allocation2 + $0x148] sm:$0xff]  ;;  %v1098_v44 = vld [vmem:[#allocation2 + $0x158] sm:$0xff] }
 0x1a4   : > { %vm1286_vm11 = vcmp.ge.f32.partialorder %v1222_v50, 0.0  ;;  %v1350_v56 = vmul.f32 0.2, %v1222_v50  ;;  %v1224_v57 = vadd.f32 %v2786_v41, %v1154_v48  ;;  %v1225_v58 = vadd.f32 %v2786_v41, %v1155_v51 }
 0x1a5   : > { %2265 = vst [vmem:[%s3019_s5 + $0x60] sm:$0xff] %v2157_v53   ;;  %v1413_v59 = vsel %vm1285_vm10, %v1221_v46, %v1349_v54  ;;  %vm1287_vm12 = vcmp.ge.f32.partialorder %v1223_v55, 0.0  ;;  %v1351_v3 = vmul.f32 0.2, %v1223_v55  ;;  %v1226_v60 = vadd.f32 %v2786_v41, %v1156_v52 }
 0x1a6   : > { %v1414_v63 = vsel %vm1286_vm11, %v1222_v50, %v1350_v56  ;;  %vm1288_vm13 = vcmp.ge.f32.partialorder %v1224_v57, 0.0  ;;  %v1352_v0 = vmul.f32 0.2, %v1224_v57  ;;  %vm1289_vm14 = vcmp.ge.f32.partialorder %v1225_v58, 0.0 }
 0x1a7   : > { %v2162_v4 = vpack.c.bf16 %v1414_v63, %v1413_v59  ;;  %v1415_v5 = vsel %vm1287_vm12, %v1223_v55, %v1351_v3  ;;  %vm1290_vm15 = vcmp.ge.f32.partialorder %v1226_v60, 0.0  ;;  %v1353_v6 = vmul.f32 0.2, %v1225_v58 }
 0x1a8   : > { %v1416_v8 = vsel %vm1288_vm13, %v1224_v57, %v1352_v0  ;;  %v1354_v9 = vmul.f32 0.2, %v1226_v60  ;;  %v1157_v10 = vmul.f32 %v2777_v23, %v1087_v61  ;;  %v1158_v11 = vmul.f32 %v2777_v23, %v1088_v62  ;;  %v1099_v0 = vld [vmem:[#allocation2 + $0x160] sm:$0xff] }
 0x1a9   : > { %2266 = vst [vmem:[%s3019_s5 + $0x68] sm:$0xff] %v2162_v4   ;;  %v2167_v13 = vpack.c.bf16 %v1416_v8, %v1415_v5  ;;  %v1417_v14 = vsel %vm1289_vm14, %v1225_v58, %v1353_v6  ;;  %v1159_v15 = vmul.f32 %v2777_v23, %v1089_v1  ;;  %v1160_v16 = vmul.f32 %v2777_v23, %v1090_v2  ;;  %v1100_v1 = vld [vmem:[#allocation2 + $0x168] sm:$0xff]  ;;  %v1101_v2 = vld [vmem:[#allocation2 + $0x170] sm:$0xff]  ;;  %v1102_v8 = vld [vmem:[#allocation2 + $0x178] sm:$0xff] }
 0x1aa   : > { %v1418_v17 = vsel %vm1290_vm15, %v1226_v60, %v1354_v9  ;;  %v1227_v18 = vadd.f32 %v2786_v41, %v1157_v10  ;;  %v1228_v19 = vadd.f32 %v2786_v41, %v1158_v11  ;;  %v1161_v20 = vmul.f32 %v2777_v23, %v1091_v7  ;;  %v1103_v9 = vld [vmem:[#allocation2 + $0x180] sm:$0xff] }
 0x1ab   : > { %2267 = vst [vmem:[%s3019_s5 + $0x70] sm:$0xff] %v2167_v13   ;;  %v2172_v21 = vpack.c.bf16 %v1418_v17, %v1417_v14  ;;  %v1229_v22 = vadd.f32 %v2786_v41, %v1159_v15  ;;  %v1230_v24 = vadd.f32 %v2786_v41, %v1160_v16  ;;  %v1162_v25 = vmul.f32 %v2777_v23, %v1092_v12  ;;  %v1104_v14 = vld [vmem:[#allocation2 + $0x188] sm:$0xff] }
 0x1ac   : > { %vm1291_vm0 = vcmp.ge.f32.partialorder %v1227_v18, 0.0  ;;  %vm1292_vm1 = vcmp.ge.f32.partialorder %v1228_v19, 0.0  ;;  %v1355_v27 = vmul.f32 0.2, %v1227_v18  ;;  %v1356_v28 = vmul.f32 0.2, %v1228_v19 }
 0x1ad   : > { %2268 = vst [vmem:[%s3019_s5 + $0x78] sm:$0xff] %v2172_v21   ;;  %vm1293_vm2 = vcmp.ge.f32.partialorder %v1229_v22, 0.0  ;;  %vm1294_vm3 = vcmp.ge.f32.partialorder %v1230_v24, 0.0  ;;  %v1357_v29 = vmul.f32 0.2, %v1229_v22  ;;  %v1231_v33 = vadd.f32 %v2786_v41, %v1161_v20 }
 0x1ae   : > { %v1358_v30 = vmul.f32 0.2, %v1230_v24  ;;  %v1419_v31 = vsel %vm1291_vm0, %v1227_v18, %v1355_v27  ;;  %v1420_v32 = vsel %vm1292_vm1, %v1228_v19, %v1356_v28  ;;  %v1232_v34 = vadd.f32 %v2786_v41, %v1162_v25  ;;  %v1105_v19 = vld [vmem:[#allocation2 + $0x190] sm:$0xff] }
 0x1af   : > { %v2177_v37 = vpack.c.bf16 %v1420_v32, %v1419_v31  ;;  %v1421_v38 = vsel %vm1293_vm2, %v1229_v22, %v1357_v29  ;;  %v1163_v40 = vmul.f32 %v2777_v23, %v1093_v26  ;;  %vm1295_vm4 = vcmp.ge.f32.partialorder %v1231_v33, 0.0  ;;  %v1106_v32 = vld [vmem:[#allocation2 + $0x198] sm:$0xff] }
 0x1b0   : > { %v1422_v39 = vsel %vm1294_vm3, %v1230_v24, %v1358_v30  ;;  %vm1296_vm5 = vcmp.ge.f32.partialorder %v1232_v34, 0.0  ;;  %v1359_v46 = vmul.f32 0.2, %v1231_v33  ;;  %v1360_v47 = vmul.f32 0.2, %v1232_v34 }
 0x1b1   : > { %v2182_v45 = vpack.c.bf16 %v1422_v39, %v1421_v38  ;;  %2269 = vst [vmem:[%s3019_s5 + $0x80] sm:$0xff] %v2177_v37   ;;  %v1164_v48 = vmul.f32 %v2777_v23, %v1094_v35  ;;  %v1233_v49 = vadd.f32 %v2786_v41, %v1163_v40  ;;  %v1165_v50 = vmul.f32 %v2777_v23, %v1095_v36 }
 0x1b2   : > { %v1423_v51 = vsel %vm1295_vm4, %v1231_v33, %v1359_v46  ;;  %v1166_v52 = vmul.f32 %v2777_v23, %v1096_v42  ;;  %v1167_v53 = vmul.f32 %v2777_v23, %v1097_v43  ;;  %v1168_v54 = vmul.f32 %v2777_v23, %v1098_v44  ;;  %v1107_v42 = vld [vmem:[#allocation2 + $0x1a0] sm:$0xff]  ;;  %v1108_v43 = vld [vmem:[#allocation2 + $0x1a8] sm:$0xff] }
 0x1b3   : > { %2270 = vst [vmem:[%s3019_s5 + $0x88] sm:$0xff] %v2182_v45   ;;  %v1424_v55 = vsel %vm1296_vm5, %v1232_v34, %v1360_v47  ;;  %v1234_v56 = vadd.f32 %v2786_v41, %v1164_v48  ;;  %vm1297_vm6 = vcmp.ge.f32.partialorder %v1233_v49, 0.0  ;;  %v1361_v57 = vmul.f32 0.2, %v1233_v49  ;;  %v1109_v48 = vld [vmem:[#allocation2 + $0x1b0] sm:$0xff] }
 0x1b4   : > { %v2187_v58 = vpack.c.bf16 %v1424_v55, %v1423_v51  ;;  %v1235_v59 = vadd.f32 %v2786_v41, %v1165_v50  ;;  %v1236_v3 = vadd.f32 %v2786_v41, %v1166_v52  ;;  %v1237_v60 = vadd.f32 %v2786_v41, %v1167_v53 }
 0x1b5   : > { %vm1298_vm7 = vcmp.ge.f32.partialorder %v1234_v56, 0.0  ;;  %v1362_v61 = vmul.f32 0.2, %v1234_v56  ;;  %v1425_v62 = vsel %vm1297_vm6, %v1233_v49, %v1361_v57  ;;  %v1238_v63 = vadd.f32 %v2786_v41, %v1168_v54  ;;  %v1110_v49 = vld [vmem:[#allocation2 + $0x1b8] sm:$0xff] }
 0x1b6   : > { %2271 = vst [vmem:[%s3019_s5 + $0x90] sm:$0xff] %v2187_v58   ;;  %vm1299_vm8 = vcmp.ge.f32.partialorder %v1235_v59, 0.0  ;;  %vm1300_vm9 = vcmp.ge.f32.partialorder %v1236_v3, 0.0  ;;  %v1363_v4 = vmul.f32 0.2, %v1235_v59  ;;  %vm1301_vm10 = vcmp.ge.f32.partialorder %v1237_v60, 0.0 }
 0x1b7   : > { %v1364_v5 = vmul.f32 0.2, %v1236_v3  ;;  %v1426_v6 = vsel %vm1298_vm7, %v1234_v56, %v1362_v61  ;;  %vm1302_vm11 = vcmp.ge.f32.partialorder %v1238_v63, 0.0  ;;  %v1365_v7 = vmul.f32 0.2, %v1237_v60 }
 0x1b8   : > { %v2192_v10 = vpack.c.bf16 %v1426_v6, %v1425_v62  ;;  %v1427_v11 = vsel %vm1299_vm8, %v1235_v59, %v1363_v4  ;;  %v1366_v13 = vmul.f32 0.2, %v1238_v63  ;;  %v1169_v17 = vmul.f32 %v2777_v23, %v1099_v0  ;;  %v1111_v6 = vld [vmem:[#allocation2 + $0x1c0] sm:$0xff] }
 0x1b9   : > { %v1428_v12 = vsel %vm1300_vm9, %v1236_v3, %v1364_v5  ;;  %v1429_v16 = vsel %vm1301_vm10, %v1237_v60, %v1365_v7  ;;  %v1170_v18 = vmul.f32 %v2777_v23, %v1100_v1  ;;  %v1171_v21 = vmul.f32 %v2777_v23, %v1101_v2  ;;  %v1112_v7 = vld [vmem:[#allocation2 + $0x1c8] sm:$0xff] }
 0x1ba   : > { %v2197_v15 = vpack.c.bf16 %v1428_v12, %v1427_v11  ;;  %2272 = vst [vmem:[%s3019_s5 + $0x98] sm:$0xff] %v2192_v10   ;;  %v1430_v20 = vsel %vm1302_vm11, %v1238_v63, %v1366_v13  ;;  %v1172_v22 = vmul.f32 %v2777_v23, %v1102_v8  ;;  %v1173_v24 = vmul.f32 %v2777_v23, %v1103_v9  ;;  %v1113_v10 = vld [vmem:[#allocation2 + $0x1d0] sm:$0xff]  ;;  %v1114_v11 = vld [vmem:[#allocation2 + $0x1d8] sm:$0xff] }
 0x1bb   : > { %v2202_v25 = vpack.c.bf16 %v1430_v20, %v1429_v16  ;;  %v1239_v26 = vadd.f32 %v2786_v41, %v1169_v17  ;;  %v1240_v27 = vadd.f32 %v2786_v41, %v1170_v18  ;;  %v1174_v28 = vmul.f32 %v2777_v23, %v1104_v14  ;;  %v1116_v20 = vld [vmem:[#allocation2 + $0x1e8] sm:$0xff] }
 0x1bc   : > { %2273 = vst [vmem:[%s3019_s5 + $0xa0] sm:$0xff] %v2197_v15   ;;  %v1241_v29 = vadd.f32 %v2786_v41, %v1171_v21  ;;  %v1242_v30 = vadd.f32 %v2786_v41, %v1172_v22  ;;  %v1243_v31 = vadd.f32 %v2786_v41, %v1173_v24  ;;  %v1175_v33 = vmul.f32 %v2777_v23, %v1105_v19  ;;  %v1115_v15 = vld [vmem:[#allocation2 + $0x1e0] sm:$0xff] }
 0x1bd   : > { %2274 = vst [vmem:[%s3019_s5 + $0xa8] sm:$0xff] %v2202_v25   ;;  %vm1303_vm12 = vcmp.ge.f32.partialorder %v1239_v26, 0.0  ;;  %vm1304_vm13 = vcmp.ge.f32.partialorder %v1240_v27, 0.0  ;;  %v1367_v34 = vmul.f32 0.2, %v1239_v26  ;;  %v1244_v40 = vadd.f32 %v2786_v41, %v1174_v28 }
 0x1be   : > { %v1368_v35 = vmul.f32 0.2, %v1240_v27  ;;  %vm1305_vm14 = vcmp.ge.f32.partialorder %v1241_v29, 0.0  ;;  %vm1306_vm15 = vcmp.ge.f32.partialorder %v1242_v30, 0.0  ;;  %v1369_v36 = vmul.f32 0.2, %v1241_v29 }
 0x1bf   : > { %v1370_v37 = vmul.f32 0.2, %v1242_v30  ;;  %v1431_v38 = vsel %vm1303_vm12, %v1239_v26, %v1367_v34  ;;  %vm1307_vm0 = vcmp.ge.f32.partialorder %v1243_v31, 0.0  ;;  %v1371_v47 = vmul.f32 0.2, %v1243_v31  ;;  %v1117_v34 = vld [vmem:[#allocation2 + $0x1f0] sm:$0xff] }
 0x1c0   : > { %v1432_v39 = vsel %vm1304_vm13, %v1240_v27, %v1368_v35  ;;  %v1433_v45 = vsel %vm1305_vm14, %v1241_v29, %v1369_v36  ;;  %vm1308_vm1 = vcmp.ge.f32.partialorder %v1244_v40, 0.0  ;;  %v1372_v51 = vmul.f32 0.2, %v1244_v40 }
 0x1c1   : > { %v2207_v44 = vpack.c.bf16 %v1432_v39, %v1431_v38  ;;  %v1434_v46 = vsel %vm1306_vm15, %v1242_v30, %v1370_v37  ;;  %v1176_v52 = vmul.f32 %v2777_v23, %v1106_v32  ;;  %v1435_v53 = vsel %vm1307_vm0, %v1243_v31, %v1371_v47 }
 0x1c2   : > { %v2212_v50 = vpack.c.bf16 %v1434_v46, %v1433_v45  ;;  %v1245_v54 = vadd.f32 %v2786_v41, %v1175_v33  ;;  %v1177_v55 = vmul.f32 %v2777_v23, %v1107_v42  ;;  %v1178_v56 = vmul.f32 %v2777_v23, %v1108_v43 }
 0x1c3   : > { %2275 = vst [vmem:[%s3019_s5 + $0xb0] sm:$0xff] %v2207_v44   ;;  %v1436_v57 = vsel %vm1308_vm1, %v1244_v40, %v1372_v51  ;;  %v1246_v58 = vadd.f32 %v2786_v41, %v1176_v52  ;;  %v1179_v59 = vmul.f32 %v2777_v23, %v1109_v48  ;;  %v1180_v3 = vmul.f32 %v2777_v23, %v1110_v49  ;;  %v1118_v44 = vld [vmem:[#allocation2 + $0x1f8] sm:$0xff] }
 0x1c4   : > { %2276 = vst [vmem:[%s3019_s5 + $0xb8] sm:$0xff] %v2212_v50   ;;  %v2217_v60 = vpack.c.bf16 %v1436_v57, %v1435_v53  ;;  %vm1309_vm2 = vcmp.ge.f32.partialorder %v1245_v54, 0.0  ;;  %v1373_v61 = vmul.f32 0.2, %v1245_v54  ;;  %v1247_v62 = vadd.f32 %v2786_v41, %v1177_v55 }
 0x1c5   : > { %vm1310_vm3 = vcmp.ge.f32.partialorder %v1246_v58, 0.0  ;;  %v1374_v63 = vmul.f32 0.2, %v1246_v58  ;;  %v1248_v0 = vadd.f32 %v2786_v41, %v1178_v56  ;;  %v1249_v1 = vadd.f32 %v2786_v41, %v1179_v59 }
 0x1c6   : > { %2277 = vst [vmem:[%s3019_s5 + $0xc0] sm:$0xff] %v2217_v60   ;;  %v1437_v2 = vsel %vm1309_vm2, %v1245_v54, %v1373_v61  ;;  %vm1311_vm4 = vcmp.ge.f32.partialorder %v1247_v62, 0.0  ;;  %v1375_v4 = vmul.f32 0.2, %v1247_v62  ;;  %v1250_v5 = vadd.f32 %v2786_v41, %v1180_v3 }
 0x1c7   : > { %v1438_v8 = vsel %vm1310_vm3, %v1246_v58, %v1374_v63  ;;  %vm1312_vm5 = vcmp.ge.f32.partialorder %v1248_v0, 0.0  ;;  %v1376_v9 = vmul.f32 0.2, %v1248_v0  ;;  %vm1313_vm6 = vcmp.ge.f32.partialorder %v1249_v1, 0.0 }
 0x1c8   : > { %v2222_v12 = vpack.c.bf16 %v1438_v8, %v1437_v2  ;;  %v1439_v13 = vsel %vm1311_vm4, %v1247_v62, %v1375_v4  ;;  %vm1314_vm7 = vcmp.ge.f32.partialorder %v1250_v5, 0.0  ;;  %v1377_v14 = vmul.f32 0.2, %v1249_v1 }
 0x1c9   : > { %v1440_v16 = vsel %vm1312_vm5, %v1248_v0, %v1376_v9  ;;  %v1378_v17 = vmul.f32 0.2, %v1250_v5  ;;  %v1181_v18 = vmul.f32 %v2777_v23, %v1111_v6  ;;  %v1182_v19 = vmul.f32 %v2777_v23, %v1112_v7 }
 0x1ca   : > { %2278 = vst [vmem:[%s3019_s5 + $0xc8] sm:$0xff] %v2222_v12   ;;  %v2227_v21 = vpack.c.bf16 %v1440_v16, %v1439_v13  ;;  %v1441_v22 = vsel %vm1313_vm6, %v1249_v1, %v1377_v14  ;;  %v1183_v24 = vmul.f32 %v2777_v23, %v1113_v10  ;;  %v1184_v25 = vmul.f32 %v2777_v23, %v1114_v11 }
 0x1cb   : > { %v1442_v26 = vsel %vm1314_vm7, %v1250_v5, %v1378_v17  ;;  %v1251_v27 = vadd.f32 %v2786_v41, %v1181_v18  ;;  %v1252_v28 = vadd.f32 %v2786_v41, %v1182_v19  ;;  %v1185_v29 = vmul.f32 %v2777_v23, %v1115_v15 }
 0x1cc   : > { %2279 = vst [vmem:[%s3019_s5 + $0xd0] sm:$0xff] %v2227_v21   ;;  %v2232_v30 = vpack.c.bf16 %v1442_v26, %v1441_v22  ;;  %v1253_v31 = vadd.f32 %v2786_v41, %v1183_v24  ;;  %v1254_v32 = vadd.f32 %v2786_v41, %v1184_v25  ;;  %v1186_v33 = vmul.f32 %v2777_v23, %v1116_v20 }
 0x1cd   : > { %vm1315_vm8 = vcmp.ge.f32.partialorder %v1251_v27, 0.0  ;;  %vm1316_vm9 = vcmp.ge.f32.partialorder %v1252_v28, 0.0  ;;  %v1379_v35 = vmul.f32 0.2, %v1251_v27  ;;  %v1380_v36 = vmul.f32 0.2, %v1252_v28 }
 0x1ce   : > { %2280 = vst [vmem:[%s3019_s5 + $0xd8] sm:$0xff] %v2232_v30   ;;  %vm1317_vm10 = vcmp.ge.f32.partialorder %v1253_v31, 0.0  ;;  %vm1318_vm11 = vcmp.ge.f32.partialorder %v1254_v32, 0.0  ;;  %v1381_v37 = vmul.f32 0.2, %v1253_v31  ;;  %v1255_v42 = vadd.f32 %v2786_v41, %v1185_v29 }
 0x1cf   : > { %v1382_v38 = vmul.f32 0.2, %v1254_v32  ;;  %v1443_v39 = vsel %vm1315_vm8, %v1251_v27, %v1379_v35  ;;  %v1444_v40 = vsel %vm1316_vm9, %v1252_v28, %v1380_v36  ;;  %v1256_v43 = vadd.f32 %v2786_v41, %v1186_v33 }
 0x1d0   : > { %v2237_v45 = vpack.c.bf16 %v1444_v40, %v1443_v39  ;;  %v1445_v46 = vsel %vm1317_vm10, %v1253_v31, %v1381_v37  ;;  %v1187_v48 = vmul.f32 %v2777_v23, %v1117_v34  ;;  %vm1319_vm12 = vcmp.ge.f32.partialorder %v1255_v42, 0.0 }
 0x1d1   : > { %v1446_v47 = vsel %vm1318_vm11, %v1254_v32, %v1382_v38  ;;  %vm1320_vm13 = vcmp.ge.f32.partialorder %v1256_v43, 0.0  ;;  %v1383_v50 = vmul.f32 0.2, %v1255_v42  ;;  %v1384_v51 = vmul.f32 0.2, %v1256_v43 }
 0x1d2   : > { %v2242_v49 = vpack.c.bf16 %v1446_v47, %v1445_v46  ;;  %2281 = vst [vmem:[%s3019_s5 + $0xe0] sm:$0xff] %v2237_v45   ;;  %v1188_v52 = vmul.f32 %v2777_v23, %v1118_v44  ;;  %v1257_v53 = vadd.f32 %v2786_v41, %v1187_v48 }
 0x1d3   : > { %v1447_v54 = vsel %vm1319_vm12, %v1255_v42, %v1383_v50  ;;  %v1448_v55 = vsel %vm1320_vm13, %v1256_v43, %v1384_v51 }
 0x1d4   : > { %2282 = vst [vmem:[%s3019_s5 + $0xe8] sm:$0xff] %v2242_v49   ;;  %v1258_v56 = vadd.f32 %v2786_v41, %v1188_v52  ;;  %vm1321_vm14 = vcmp.ge.f32.partialorder %v1257_v53, 0.0  ;;  %v1385_v57 = vmul.f32 0.2, %v1257_v53  ;;  %v2247_v58 = vpack.c.bf16 %v1448_v55, %v1447_v54 }
 0x1d6   : > { %vm1322_vm15 = vcmp.ge.f32.partialorder %v1258_v56, 0.0  ;;  %v1386_v59 = vmul.f32 0.2, %v1258_v56  ;;  %v1449_v3 = vsel %vm1321_vm14, %v1257_v53, %v1385_v57  ;;  %2283 = vst [vmem:[%s3019_s5 + $0xf0] sm:$0xff] %v2247_v58  }
 0x1d8   : > { %v1450_v23 = vsel %vm1322_vm15, %v1258_v56, %v1386_v59 }
 0x1d9   : > { %v2252_v60 = vpack.c.bf16 %v1450_v23, %v1449_v3 }
 0x1db   : > { %2284 = vst [vmem:[%s3019_s5 + $0xf8] sm:$0xff] %v2252_v60  }
 0x1dc PF: > { %s15_s20 = sadd.s32 1, %s2542_s20   ;;  %s3020_s18 = smov %s2538_s19 }
 0x1dd   : > { %p12_p7 = scmp.ge.s32.totalorder %s15_s20, 6   ;;  %s3021_s19 = smov %s3023_s21 }
 0x1df   :  { %14 = sbr.rel (!%p12_p7) target bundleno = 2 (0x2), region = 91 }

// kernel: e1_forward.8
= control target key start
LH: loop header
LB: loop body
LE: loop exit
PB: predicated region body
PF: predicated region fallthrough
CT: control target
= control target key end

     0   :  { %s1905_s18 = smov 0   ;;  %s1907_s19 = smov 0   ;;  %s2220_s0 = inlined_call_operand.vmem [shape: bf16[128,1024], index: 0, kind: input, shape index: {}]   ;;  %s2221_s1 = inlined_call_operand.vmem [shape: bf16[1024,128], index: 1, kind: input, shape index: {}]   ;;  %s2222_s2 = inlined_call_operand.vmem [shape: f32[1,128], index: 2, kind: input, shape index: {}]   ;;  %s2223_s3 = inlined_call_operand.vmem [shape: f32[1,128], index: 3, kind: input, shape index: {}]   ;;  %s2224_s4 = inlined_call_operand.vmem [shape: f32[1,128], index: 4, kind: input, shape index: {}]   ;;  %s2225_s5 = inlined_call_operand.vmem [shape: bf16[128,128], index: 5, kind: output, shape index: {}]  }
   0x1   :  { %s1909_s20 = smov 0  }
   0x2 LB: > { %s24_s21 = sadd.s32 1, %s1868_s19  ;;  %p1476_p0 = scmp.ge.s32.totalorder %s1872_s20, 1  ;;  %s1872_s20 = sphi %s1909_s20, %s15_s20   ;;  %s1868_s19 = sphi %s1907_s19, %s2227_s19   ;;  %s1864_s18 = sphi %s1905_s18, %s2226_s18  }
   0x3   : > { %p25_p1 = scmp.ge.s32.totalorder %s24_s21, 4  ;;  %p234_p2 = scmp.lt.s32.totalorder %s1872_s20, 5 }
   0x5   : > { %s2229_s21 = smov (%p25_p1, %s24_s21), 0  ;;  %p235_p3 = pnand %p1476_p0, %p234_p2 }
   0x6   : > { %s1477_s22 = sshll.u32 (!%p235_p3), %s1864_s18, 2  ;;  %p1480_p5 = scmp.ne.s32.totalorder (!%p235_p3), %s1864_s18, 0 }
   0x7   : > { %238 = sbr.rel (%p235_p3) target bundleno = 394 (0x18a), region = 40  ;;  %p276_p4 = scmp.lt.s32.totalorder (!%p235_p3), %s1477_s22, 15 }
   0xe   : > { %s2231_s22 = smov (!%p276_p4, %s1477_s22), 15  ;;  %303 = sbr.rel (%p1480_p5) target bundleno = 21 (0x15), region = 44 }
   0xf   : > { %s1583_s23 = sshll.u32 %s2231_s22, 5  ;;  %v1874_v0 = vmov (!%p1480_p5), 0.0  }
  0x10   : > { %s1929_s26 = scalar_lea.vmem %s2220_s0, %s1583_s23  ;;  %304 = vst [vmem:[#allocation3] sm:$0x1] (!%p1480_p5), %v1874_v0  ;;  %305 = vst [vmem:[#allocation4] sm:$0x1] (!%p1480_p5), %v1874_v0 }
  0x15 PF: > { %v1784_v1 = vld [vmem:[%s2221_s1 + $0x40] sm:$0xff]   ;;  %v1788_v5 = vld [vmem:[%s2221_s1 + $0x48] sm:$0xff]   ;;  %v1792_v9 = vld [vmem:[%s2221_s1 + $0x50] sm:$0xff]   ;;  %p1563_p6 = scmp.ne.s32.totalorder %s1864_s18, 3 }
  0x16   : > { %v1785_v2 = vld [vmem:[%s2221_s1 + $0xc0] sm:$0xff]   ;;  %1647 = vmatprep.subr.bf16.mxu0 %v1784_v1  ;;  %v1789_v6 = vld [vmem:[%s2221_s1 + $0xc8] sm:$0xff]   ;;  %v1793_v10 = vld [vmem:[%s2221_s1 + $0xd0] sm:$0xff]  }
  0x17   : > { %v1786_v3 = vld [vmem:[%s2221_s1] sm:$0xff]   ;;  %1675 = vmatprep.subr.bf16.mxu1 %v1785_v2  ;;  %v1790_v7 = vld [vmem:[%s2221_s1 + $0x8] sm:$0xff]   ;;  %v1794_v11 = vld [vmem:[%s2221_s1 + $0x10] sm:$0xff]  }
  0x18   : > { %v1787_v4 = vld [vmem:[%s2221_s1 + $0x80] sm:$0xff]   ;;  %1648 = vmatpush3.bf16.msra.mxu0 %v1786_v3  ;;  %v1791_v8 = vld [vmem:[%s2221_s1 + $0x88] sm:$0xff]   ;;  %v1795_v12 = vld [vmem:[%s2221_s1 + $0x90] sm:$0xff]  }
  0x19   : > { %1676 = vmatpush3.bf16.msra.mxu1 %v1787_v4  ;;  %1649 = vmatprep.subr.bf16.mxu0 %v1788_v5  ;;  %v1796_v13 = vld [vmem:[%s2221_s1 + $0x58] sm:$0xff]   ;;  %v1800_v17 = vld [vmem:[%s2221_s1 + $0x60] sm:$0xff]   ;;  %v1804_v21 = vld [vmem:[%s2221_s1 + $0x68] sm:$0xff]  }
  0x1a   : > { %1677 = vmatprep.subr.bf16.mxu1 %v1789_v6  ;;  %v1797_v14 = vld [vmem:[%s2221_s1 + $0xd8] sm:$0xff]   ;;  %v1801_v18 = vld [vmem:[%s2221_s1 + $0xe0] sm:$0xff]   ;;  %v1805_v22 = vld [vmem:[%s2221_s1 + $0xe8] sm:$0xff]  }
  0x1b   : > { %v1798_v15 = vld [vmem:[%s2221_s1 + $0x18] sm:$0xff]   ;;  %v1802_v19 = vld [vmem:[%s2221_s1 + $0x20] sm:$0xff]   ;;  %v1806_v23 = vld [vmem:[%s2221_s1 + $0x28] sm:$0xff]  }
  0x1c   : > { %1650 = vmatpush3.bf16.msra.mxu0 %v1790_v7  ;;  %v1799_v16 = vld [vmem:[%s2221_s1 + $0x98] sm:$0xff]   ;;  %v1803_v20 = vld [vmem:[%s2221_s1 + $0xa0] sm:$0xff]   ;;  %v1807_v24 = vld [vmem:[%s2221_s1 + $0xa8] sm:$0xff]  }
  0x1d   : > { %1678 = vmatpush3.bf16.msra.mxu1 %v1791_v8  ;;  %1651 = vmatprep.subr.bf16.mxu0 %v1792_v9  ;;  %v1808_v25 = vld [vmem:[%s2221_s1 + $0x70] sm:$0xff]   ;;  %v1812_v29 = vld [vmem:[%s2221_s1 + $0x78] sm:$0xff]   ;;  %v306_v33 = vld [vmem:[%s1929_s26] sm:$0xff] }
  0x1e   : > { %1679 = vmatprep.subr.bf16.mxu1 %v1793_v10  ;;  %v1809_v26 = vld [vmem:[%s2221_s1 + $0xf0] sm:$0xff]   ;;  %v1813_v30 = vld [vmem:[%s2221_s1 + $0xf8] sm:$0xff]   ;;  %v310_v34 = vld [vmem:[%s1929_s26 + $0x20] sm:$0xff] }
  0x1f   : > { %v1810_v27 = vld [vmem:[%s2221_s1 + $0x30] sm:$0xff]   ;;  %v1814_v31 = vld [vmem:[%s2221_s1 + $0x38] sm:$0xff]   ;;  %v307_v35 = vld [vmem:[%s1929_s26 + $0x8] sm:$0xff]  ;;  %v1482_v36 = vcombine.low %v306_v33, %v310_v34  ;;  %v1483_v37 = vcombine.high %v306_v33, %v310_v34 }
  0x20   : > { %1652 = vmatpush3.bf16.msra.mxu0 %v1794_v11  ;;  %v1811_v28 = vld [vmem:[%s2221_s1 + $0xb0] sm:$0xff]   ;;  %v1815_v32 = vld [vmem:[%s2221_s1 + $0xb8] sm:$0xff]   ;;  %v311_v38 = vld [vmem:[%s1929_s26 + $0x28] sm:$0xff] }
  0x21   : > { %1680 = vmatpush3.bf16.msra.mxu1 %v1795_v12  ;;  %1653 = vmatprep.subr.bf16.mxu0 %v1796_v13  ;;  %v1484_v39 = vcombine.low %v307_v35, %v311_v38  ;;  %v1485_v40 = vcombine.high %v307_v35, %v311_v38  ;;  %v1816_v41 = vld [vmem:[%s2221_s1 + $0x140] sm:$0xff]   ;;  %v1820_v45 = vld [vmem:[%s2221_s1 + $0x148] sm:$0xff]   ;;  %v1824_v49 = vld [vmem:[%s2221_s1 + $0x150] sm:$0xff]  }
  0x22   : > { %1681 = vmatprep.subr.bf16.mxu1 %v1797_v14  ;;  %953 = vmatprep.mubr.bf16.mxu0 %v1483_v37  ;;  %v1817_v42 = vld [vmem:[%s2221_s1 + $0x1c0] sm:$0xff]   ;;  %v1821_v46 = vld [vmem:[%s2221_s1 + $0x1c8] sm:$0xff]   ;;  %v1825_v50 = vld [vmem:[%s2221_s1 + $0x1d0] sm:$0xff]  }
  0x23   : > { %1002 = vmatprep.mubr.bf16.mxu1 %v1485_v40  ;;  %v1818_v43 = vld [vmem:[%s2221_s1 + $0x100] sm:$0xff]   ;;  %v1822_v47 = vld [vmem:[%s2221_s1 + $0x108] sm:$0xff]   ;;  %v1826_v51 = vld [vmem:[%s2221_s1 + $0x110] sm:$0xff]  }
  0x24   : > { %1654 = vmatpush3.bf16.msra.mxu0 %v1798_v15  ;;  %v1819_v44 = vld [vmem:[%s2221_s1 + $0x180] sm:$0xff]   ;;  %v1823_v48 = vld [vmem:[%s2221_s1 + $0x188] sm:$0xff]   ;;  %v1827_v52 = vld [vmem:[%s2221_s1 + $0x190] sm:$0xff]  }
  0x25   : > { %1682 = vmatpush3.bf16.msra.mxu1 %v1799_v16  ;;  %1655 = vmatprep.subr.bf16.mxu0 %v1800_v17  ;;  %v1828_v53 = vld [vmem:[%s2221_s1 + $0x158] sm:$0xff]   ;;  %v1832_v57 = vld [vmem:[%s2221_s1 + $0x160] sm:$0xff]   ;;  %v1836_v0 = vld [vmem:[%s2221_s1 + $0x168] sm:$0xff]  }
  0x26   : > { %1683 = vmatprep.subr.bf16.mxu1 %v1801_v18  ;;  %v1829_v54 = vld [vmem:[%s2221_s1 + $0x1d8] sm:$0xff]   ;;  %v1833_v58 = vld [vmem:[%s2221_s1 + $0x1e0] sm:$0xff]   ;;  %v1837_v2 = vld [vmem:[%s2221_s1 + $0x1e8] sm:$0xff]  }
  0x27   : > { %v1830_v55 = vld [vmem:[%s2221_s1 + $0x118] sm:$0xff]   ;;  %v1834_v59 = vld [vmem:[%s2221_s1 + $0x120] sm:$0xff]   ;;  %v1838_v3 = vld [vmem:[%s2221_s1 + $0x128] sm:$0xff]  }
  0x28   : > { %1656 = vmatpush3.bf16.msra.mxu0 %v1802_v19  ;;  %v1831_v56 = vld [vmem:[%s2221_s1 + $0x198] sm:$0xff]   ;;  %v1835_v60 = vld [vmem:[%s2221_s1 + $0x1a0] sm:$0xff]   ;;  %v1839_v4 = vld [vmem:[%s2221_s1 + $0x1a8] sm:$0xff]  }
  0x29   : > { %1684 = vmatpush3.bf16.msra.mxu1 %v1803_v20  ;;  %1657 = vmatprep.subr.bf16.mxu0 %v1804_v21  ;;  %v314_v61 = vld [vmem:[%s1929_s26 + $0x40] sm:$0xff]  ;;  %v315_v5 = vld [vmem:[%s1929_s26 + $0x48] sm:$0xff]  ;;  %v1840_v9 = vld [vmem:[%s2221_s1 + $0x170] sm:$0xff]  }
  0x2a   : > { %1685 = vmatprep.subr.bf16.mxu1 %v1805_v22  ;;  %v318_v62 = vld [vmem:[%s1929_s26 + $0x60] sm:$0xff]  ;;  %v319_v6 = vld [vmem:[%s1929_s26 + $0x68] sm:$0xff]  ;;  %v1841_v10 = vld [vmem:[%s2221_s1 + $0x1f0] sm:$0xff]  }
  0x2b   : > { %v1491_v63 = vcombine.high %v314_v61, %v318_v62  ;;  %v1490_v1 = vcombine.low %v314_v61, %v318_v62  ;;  %v1493_v7 = vcombine.high %v315_v5, %v319_v6  ;;  %v1492_v8 = vcombine.low %v315_v5, %v319_v6  ;;  %v1842_v11 = vld [vmem:[%s2221_s1 + $0x130] sm:$0xff]   ;;  %v1844_v13 = vld [vmem:[%s2221_s1 + $0x178] sm:$0xff]   ;;  %v1481_v35 = vld [vmem:[%s2222_s2] ss:$0 sm:$0xff] }
  0x2c   : > { %1658 = vmatpush3.bf16.msra.mxu0 %v1806_v23  ;;  %v1843_v12 = vld [vmem:[%s2221_s1 + $0x1b0] sm:$0xff]   ;;  %v1845_v14 = vld [vmem:[%s2221_s1 + $0x1f8] sm:$0xff]  }
  0x2d   : > { %1686 = vmatpush3.bf16.msra.mxu1 %v1807_v24  ;;  %1659 = vmatprep.subr.bf16.mxu0 %v1808_v25  ;;  %v1846_v15 = vld [vmem:[%s2221_s1 + $0x138] sm:$0xff]   ;;  %v308_v17 = vld [vmem:[%s1929_s26 + $0x10] sm:$0xff] }
  0x2e   : > { %1687 = vmatprep.subr.bf16.mxu1 %v1809_v26  ;;  %v1847_v16 = vld [vmem:[%s2221_s1 + $0x1b8] sm:$0xff]   ;;  %v312_v18 = vld [vmem:[%s1929_s26 + $0x30] sm:$0xff] }
  0x2f   : > { %v309_v19 = vld [vmem:[%s1929_s26 + $0x18] sm:$0xff]  ;;  %v1486_v21 = vcombine.low %v308_v17, %v312_v18  ;;  %v1487_v22 = vcombine.high %v308_v17, %v312_v18  ;;  %v316_v25 = vld [vmem:[%s1929_s26 + $0x50] sm:$0xff] }
  0x30   : > { %1660 = vmatpush3.bf16.msra.mxu0 %v1810_v27  ;;  %v313_v20 = vld [vmem:[%s1929_s26 + $0x38] sm:$0xff]  ;;  %v320_v26 = vld [vmem:[%s1929_s26 + $0x70] sm:$0xff] }
  0x31   : > { %1688 = vmatpush3.bf16.msra.mxu1 %v1811_v28  ;;  %1661 = vmatprep.subr.bf16.mxu0 %v1812_v29  ;;  %v1488_v23 = vcombine.low %v309_v19, %v313_v20  ;;  %v1489_v24 = vcombine.high %v309_v19, %v313_v20  ;;  %v317_v27 = vld [vmem:[%s1929_s26 + $0x58] sm:$0xff]  ;;  %v1495_v28 = vcombine.high %v316_v25, %v320_v26 }
  0x32   : > { %1689 = vmatprep.subr.bf16.mxu1 %v1813_v30  ;;  %v321_v29 = vld [vmem:[%s1929_s26 + $0x78] sm:$0xff]  ;;  %s1562_s26 = sshll.u32 %s1864_s18, 5 }
  0x33   : > { %v1497_v30 = vcombine.high %v317_v27, %v321_v29  ;;  %s1118_s12 = scalar_lea.vmem [#allocation2], %s1562_s26 }
  0x34   : > { %1662 = vmatpush3.bf16.msra.mxu0 %v1814_v31  ;;  %v1494_v31 = vcombine.low %v316_v25, %v320_v26 }
  0x35   : > { %1690 = vmatpush3.bf16.msra.mxu1 %v1815_v32  ;;  %1703 = vmatprep.subr.bf16.mxu0 %v1816_v41  ;;  %v1496_v32 = vcombine.low %v317_v27, %v321_v29 }
  0x36   : > { %1731 = vmatprep.subr.bf16.mxu1 %v1817_v42 }
  0x37   : > { %954 = vmatmul.mubr.bf16.vlgmr.msra.gmra.mrb[0].mxu0 %v1482_v36 }
  0x38   : > { %1003 = vmatmul.mubr.bf16.vlgmr.msra.gmra.mrb[0].mxu1 %v1484_v39  ;;  %1704 = vmatpush3.bf16.msra.mxu0 %v1818_v43 }
  0x39   : > { %1732 = vmatpush3.bf16.msra.mxu1 %v1819_v44  ;;  %1705 = vmatprep.subr.bf16.mxu0 %v1820_v45 }
  0x3a   : > { %1733 = vmatprep.subr.bf16.mxu1 %v1821_v46  ;;  %961 = vmatprep.mubr.bf16.mxu0 %v1491_v63 }
  0x3b   : > { %1010 = vmatprep.mubr.bf16.mxu1 %v1493_v7 }
  0x3c   : > { %1706 = vmatpush3.bf16.msra.mxu0 %v1822_v47 }
  0x3d   : > { %1734 = vmatpush3.bf16.msra.mxu1 %v1823_v48  ;;  %1707 = vmatprep.subr.bf16.mxu0 %v1824_v49 }
  0x3e   : > { %1735 = vmatprep.subr.bf16.mxu1 %v1825_v50 }
  0x3f   : > { %962 = vmatmul.mubr.bf16.gmra.mrb[4].mxu0 %v1490_v1 }
  0x40   : > { %1708 = vmatpush3.bf16.msra.mxu0 %v1826_v51  ;;  %1011 = vmatmul.mubr.bf16.gmra.mrb[4].mxu1 %v1492_v8 }
  0x41   : > { %1736 = vmatpush3.bf16.msra.mxu1 %v1827_v52  ;;  %1709 = vmatprep.subr.bf16.mxu0 %v1828_v53 }
  0x42   : > { %1737 = vmatprep.subr.bf16.mxu1 %v1829_v54  ;;  %1051 = vmatprep.mubr.bf16.mxu0 %v1487_v22 }
  0x43   : > { %1100 = vmatprep.mubr.bf16.mxu1 %v1489_v24 }
  0x44   : > { %1710 = vmatpush3.bf16.msra.mxu0 %v1830_v55 }
  0x45   : > { %1738 = vmatpush3.bf16.msra.mxu1 %v1831_v56  ;;  %1711 = vmatprep.subr.bf16.mxu0 %v1832_v57 }
  0x46   : > { %1739 = vmatprep.subr.bf16.mxu1 %v1833_v58 }
  0x48   : > { %1712 = vmatpush3.bf16.msra.mxu0 %v1834_v59 }
  0x49   : > { %1740 = vmatpush3.bf16.msra.mxu1 %v1835_v60  ;;  %1713 = vmatprep.subr.bf16.mxu0 %v1836_v0 }
  0x4a   : > { %1741 = vmatprep.subr.bf16.mxu1 %v1837_v2 }
  0x4c   : > { %1714 = vmatpush3.bf16.msra.mxu0 %v1838_v3 }
  0x4d   : > { %1742 = vmatpush3.bf16.msra.mxu1 %v1839_v4  ;;  %1715 = vmatprep.subr.bf16.mxu0 %v1840_v9 }
  0x4e   : > { %1743 = vmatprep.subr.bf16.mxu1 %v1841_v10 }
  0x50   : > { %1716 = vmatpush3.bf16.msra.mxu0 %v1842_v11 }
  0x51   : > { %1744 = vmatpush3.bf16.msra.mxu1 %v1843_v12  ;;  %1717 = vmatprep.subr.bf16.mxu0 %v1844_v13 }
  0x52   : > { %1745 = vmatprep.subr.bf16.mxu1 %v1845_v14 }
  0x54   : > { %1718 = vmatpush3.bf16.msra.mxu0 %v1846_v15 }
  0x55   : > { %1746 = vmatpush3.bf16.msra.mxu1 %v1847_v16 }
  0x57   : > { %1052 = vmatmul.mubr.bf16.vlgmr.msra.gmra.mrb[8].mxu0 %v1486_v21 }
  0x58   : > { %1101 = vmatmul.mubr.bf16.vlgmr.msra.gmra.mrb[8].mxu1 %v1488_v23  ;;  %1059 = vmatprep.mubr.bf16.mxu0 %v1495_v28 }
  0x59   : > { %1108 = vmatprep.mubr.bf16.mxu1 %v1497_v30 }
  0x5f   : > { %1060 = vmatmul.mubr.bf16.gmra.mrb[12].mxu0 %v1494_v31 }
  0x60   : > { %1109 = vmatmul.mubr.bf16.gmra.mrb[12].mxu1 %v1496_v32 }
 0x10a   : > { %v1663_v33 = vpop.f32.mrb[0].mxu0 }
 0x10b   : > { %v1691_v34 = vpop.f32.mrb[0].mxu1  ;;  %v1664_v36 = vpop.f32.mrb[1].mxu0 }
 0x10c   : > { %v1665_v37 = vadd.f32 %v1664_v36, %v1663_v33  ;;  %v1692_v38 = vpop.f32.mrb[1].mxu1  ;;  %v1666_v39 = vpop.f32.mrb[2].mxu0 }
 0x10d   : > { %v1693_v40 = vadd.f32 %v1692_v38, %v1691_v34  ;;  %v1694_v41 = vpop.f32.mrb[2].mxu1  ;;  %v1667_v42 = vpop.f32.mrb[3].mxu0 }
 0x10e   : > { %v956_v43 = vadd.f32 %v1665_v37, %v1481_v35  ;;  %v1668_v44 = vadd.f32 %v1667_v42, %v1666_v39  ;;  %v1695_v45 = vpop.f32.mrb[3].mxu1 }
 0x10f   : > { %v1696_v46 = vadd.f32 %v1695_v45, %v1694_v41 }
 0x110   : > { %v1005_v47 = vadd.f32 %v1693_v40, %v956_v43  ;;  %v959_v48 = vadd.f32 %v1668_v44, %v1481_v35 }
 0x112   : > { %v1008_v49 = vadd.f32 %v1696_v46, %v959_v48  ;;  %v1669_v50 = vpop.f32.mrb[4].mxu0 }
 0x113   : > { %v1670_v51 = vpop.f32.mrb[5].mxu0  ;;  %v1697_v57 = vpop.f32.mrb[4].mxu1 }
 0x114   : > { %v1671_v52 = vadd.f32 %v1670_v51, %v1669_v50  ;;  %v1672_v53 = vpop.f32.mrb[6].mxu0  ;;  %v1698_v58 = vpop.f32.mrb[5].mxu1 }
 0x115   : > { %v1673_v54 = vpop.f32.mrb[7].mxu0  ;;  %v1699_v60 = vadd.f32 %v1698_v58, %v1697_v57  ;;  %v1700_v61 = vpop.f32.mrb[6].mxu1 }
 0x116   : > { %v1674_v55 = vadd.f32 %v1673_v54, %v1672_v53  ;;  %v964_v56 = vadd.f32 %v1671_v52, %v1481_v35  ;;  %v1701_v62 = vpop.f32.mrb[7].mxu1  ;;  %v1123_v53 = vld [vmem:[#allocation3] sm:$0x1] }
 0x117   : > { %v1702_v0 = vadd.f32 %v1701_v62, %v1700_v61 }
 0x118   : > { %v967_v59 = vadd.f32 %v1674_v55, %v1481_v35  ;;  %v1013_v63 = vadd.f32 %v1699_v60, %v964_v56  ;;  %v1135_v56 = vld [vmem:[#allocation4] sm:$0x1] }
 0x11a   : > { %v1016_v1 = vadd.f32 %v1702_v0, %v967_v59 }
 0x12a   : > { %v1719_v2 = vpop.f32.mrb[8].mxu0 }
 0x12b   : > { %v1747_v3 = vpop.f32.mrb[8].mxu1  ;;  %v1720_v4 = vpop.f32.mrb[9].mxu0 }
 0x12c   : > { %v1748_v5 = vpop.f32.mrb[9].mxu1  ;;  %v1721_v6 = vadd.f32 %v1720_v4, %v1719_v2  ;;  %v1722_v8 = vpop.f32.mrb[10].mxu0  ;;  %v1186_v4 = vlaneseq (!%p1563_p6) }
 0x12d   : > { %v1749_v7 = vadd.f32 %v1748_v5, %v1747_v3  ;;  %v1750_v9 = vpop.f32.mrb[10].mxu1  ;;  %v1723_v10 = vpop.f32.mrb[11].mxu0 }
 0x12e   : > { %v1751_v11 = vpop.f32.mrb[11].mxu1  ;;  %v1054_v12 = vadd.f32 %v1721_v6, %v1005_v47  ;;  %v1724_v13 = vadd.f32 %v1723_v10, %v1722_v8  ;;  %v1187_v5 = vshrl.u32 (!%p1563_p6), %v1186_v4, 7  ;;  %v1162_v6 = vld [vmem:[%s2223_s3] sm:$0x1] (!%p1563_p6) }
 0x12f   : > { %v1752_v14 = vadd.f32 %v1751_v11, %v1750_v9  ;;  %v1166_v10 = vld [vmem:[%s2224_s4] sm:$0x1] (!%p1563_p6) }
 0x130   : > { %v1103_v15 = vadd.f32 %v1749_v7, %v1054_v12  ;;  %v1057_v16 = vadd.f32 %v1724_v13, %v1008_v49  ;;  %v1188_v7 = vsub.s32 (!%p1563_p6), 0, %v1187_v5 }
 0x132   : > { %1119 = vst [vmem:[%s1118_s12] sm:$0xff] %v1103_v15  ;;  %v1106_v17 = vadd.f32 %v1752_v14, %v1057_v16  ;;  %v1725_v18 = vpop.f32.mrb[12].mxu0  ;;  %v1136_v20 = vmul.f32 %v1103_v15, %v1103_v15 }
 0x133   : > { %v1753_v19 = vpop.f32.mrb[12].mxu1  ;;  %v1726_v21 = vpop.f32.mrb[13].mxu0 }
 0x134   : > { %v1754_v22 = vpop.f32.mrb[13].mxu1  ;;  %1120 = vst [vmem:[%s1118_s12 + $0x8] sm:$0xff] %v1106_v17  ;;  %v1124_v23 = vadd.f32 %v1106_v17, %v1103_v15  ;;  %v1137_v24 = vmul.f32 %v1106_v17, %v1106_v17  ;;  %v1727_v25 = vadd.f32 %v1726_v21, %v1725_v18  ;;  %v1728_v27 = vpop.f32.mrb[14].mxu0 }
 0x135   : > { %v1755_v26 = vadd.f32 %v1754_v22, %v1753_v19  ;;  %v1756_v28 = vpop.f32.mrb[14].mxu1  ;;  %v1729_v29 = vpop.f32.mrb[15].mxu0 }
 0x136   : > { %v1757_v30 = vpop.f32.mrb[15].mxu1  ;;  %v1140_v31 = vadd.f32 %v1137_v24, %v1136_v20  ;;  %v1062_v32 = vadd.f32 %v1727_v25, %v1013_v63  ;;  %v1730_v33 = vadd.f32 %v1729_v29, %v1728_v27 }
 0x137   : > { %v1758_v34 = vadd.f32 %v1757_v30, %v1756_v28 }
 0x138   : > { %v1111_v35 = vadd.f32 %v1755_v26, %v1062_v32  ;;  %v1065_v36 = vadd.f32 %v1730_v33, %v1016_v1 }
 0x13a   : > { %1121 = vst [vmem:[%s1118_s12 + $0x10] sm:$0xff] %v1111_v35  ;;  %v1125_v37 = vadd.f32 %v1124_v23, %v1111_v35  ;;  %v1138_v38 = vmul.f32 %v1111_v35, %v1111_v35  ;;  %v1114_v39 = vadd.f32 %v1758_v34, %v1065_v36 }
 0x13c   : > { %v1141_v40 = vadd.f32 %v1140_v31, %v1138_v38  ;;  %1122 = vst [vmem:[%s1118_s12 + $0x18] sm:$0xff] %v1114_v39  ;;  %v1126_v41 = vadd.f32 %v1125_v37, %v1114_v39  ;;  %v1139_v42 = vmul.f32 %v1114_v39, %v1114_v39 }
 0x13e   : > { %v1127_v43 = vrot.slane %v1126_v41, 4  ;;  %v1142_v44 = vadd.f32 %v1141_v40, %v1139_v42 }
 0x140   : > { %v1128_v45 = vadd.f32 %v1127_v43, %v1126_v41  ;;  %v1143_v46 = vrot.slane %v1142_v44, 4 }
 0x142   : > { %v1129_v47 = vrot.slane %v1128_v45, 2  ;;  %v1144_v48 = vadd.f32 %v1143_v46, %v1142_v44 }
 0x143   : > { %v1169_v11 = vld [vmem:[#allocation2] sm:$0xff] (!%p1563_p6)  ;;  %v1170_v12 = vld [vmem:[#allocation2 + $0x8] sm:$0xff] (!%p1563_p6)  ;;  %v1171_v13 = vld [vmem:[#allocation2 + $0x10] sm:$0xff] (!%p1563_p6) }
 0x144   : > { %v1130_v49 = vadd.f32 %v1129_v47, %v1128_v45  ;;  %v1145_v50 = vrot.slane %v1144_v48, 2  ;;  %v1172_v14 = vld [vmem:[#allocation2 + $0x18] sm:$0xff] (!%p1563_p6)  ;;  %v1173_v15 = vld [vmem:[#allocation2 + $0x20] sm:$0xff] (!%p1563_p6)  ;;  %v1174_v18 = vld [vmem:[#allocation2 + $0x28] sm:$0xff] (!%p1563_p6) }
 0x145   : > { %v1175_v19 = vld [vmem:[#allocation2 + $0x30] sm:$0xff] (!%p1563_p6)  ;;  %v1176_v20 = vld [vmem:[#allocation2 + $0x38] sm:$0xff] (!%p1563_p6)  ;;  %v1177_v21 = vld [vmem:[#allocation2 + $0x40] sm:$0xff] (!%p1563_p6) }
 0x146   : > { %v1131_v51 = vrot.slane %v1130_v49, 1  ;;  %v1146_v52 = vadd.f32 %v1145_v50, %v1144_v48  ;;  %v1178_v22 = vld [vmem:[#allocation2 + $0x48] sm:$0xff] (!%p1563_p6)  ;;  %v1179_v23 = vld [vmem:[#allocation2 + $0x50] sm:$0xff] (!%p1563_p6)  ;;  %v1180_v28 = vld [vmem:[#allocation2 + $0x58] sm:$0xff] (!%p1563_p6) }
 0x147   : > { %v1181_v29 = vld [vmem:[#allocation2 + $0x60] sm:$0xff] (!%p1563_p6)  ;;  %v1182_v30 = vld [vmem:[#allocation2 + $0x68] sm:$0xff] (!%p1563_p6) }
 0x148   : > { %v1132_v54 = vadd.f32 %v1131_v51, %v1130_v49  ;;  %v1147_v55 = vrot.slane %v1146_v52, 1  ;;  %1154 = sbr.rel (%p1563_p6) target bundleno = 394 (0x18a), region = 48 }
 0x14a   : > { %v1133_v57 = vadd.f32 %v1132_v54, %v1123_v53  ;;  %v1148_v58 = vadd.f32 %v1147_v55, %v1146_v52 }
 0x14c   : > { %1134 = vst [vmem:[#allocation3] sm:$0x1] %v1133_v57  ;;  %v1149_v59 = vadd.f32 %v1148_v58, %v1135_v56 }
 0x14e   : > { %1150 = vst [vmem:[#allocation4] sm:$0x1] %v1149_v59 }
 0x153   : > { %v1155_v60 = vld [vmem:[#allocation3] sm:$0x1] }
 0x154   : > { %v1156_v62 = vmul.f32 0.0078125, %v1155_v60 }
 0x155   : > { %v1157_v61 = vld [vmem:[#allocation4] sm:$0x1] }
 0x156   : > { %v1158_v63 = vmul.f32 0.0078125, %v1157_v61  ;;  %v1159_v0 = vmul.f32 %v1156_v62, %v1156_v62 }
 0x158   : > { %v1160_v1 = vsub.f32 %v1158_v63, %v1159_v0 }
 0x15a   : > { %v1161_v2 = vmax.f32 %v1160_v1, 0.0 }
 0x15c   : > { %v1163_v3 = vadd.f32 1e-05, %v1161_v2 }
 0x15e   : > { %1848 = vrsqrt.f32 %v1163_v3 }
 0x168   : > { %v1849_v8 = vpop.eup %1848 }
 0x169   : > { %v1165_v9 = vmul.f32 %v1849_v8, %v1162_v6 }
 0x16b   : > { %v1167_v16 = vmul.f32 %v1165_v9, %v1156_v62  ;;  %v2151_v17 = vrot.slane %v1165_v9, %v1188_v7 }
 0x16d   : > { %v1168_v24 = vsub.f32 %v1166_v10, %v1167_v16  ;;  %v1191_v25 = vmul.f32 %v2151_v17, %v1169_v11  ;;  %v1192_v26 = vmul.f32 %v2151_v17, %v1170_v12  ;;  %v1193_v27 = vmul.f32 %v2151_v17, %v1171_v13  ;;  %v1183_v13 = vld [vmem:[#allocation2 + $0x70] sm:$0xff] }
 0x16e   : > { %v1194_v31 = vmul.f32 %v2151_v17, %v1172_v14  ;;  %v1195_v32 = vmul.f32 %v2151_v17, %v1173_v15  ;;  %v1196_v33 = vmul.f32 %v2151_v17, %v1174_v18  ;;  %v1197_v34 = vmul.f32 %v2151_v17, %v1175_v19 }
 0x16f   : > { %v2160_v35 = vrot.slane %v1168_v24, %v1188_v7  ;;  %v1198_v36 = vmul.f32 %v2151_v17, %v1176_v20  ;;  %v1199_v37 = vmul.f32 %v2151_v17, %v1177_v21  ;;  %v1200_v38 = vmul.f32 %v2151_v17, %v1178_v22  ;;  %v1184_v21 = vld [vmem:[#allocation2 + $0x78] sm:$0xff] }
 0x170   : > { %v1201_v39 = vmul.f32 %v2151_v17, %v1179_v23  ;;  %v1202_v40 = vmul.f32 %v2151_v17, %v1180_v28  ;;  %v1203_v41 = vmul.f32 %v2151_v17, %v1181_v29  ;;  %v1204_v42 = vmul.f32 %v2151_v17, %v1182_v30 }
 0x171   : > { %v1213_v43 = vadd.f32 %v2160_v35, %v1191_v25  ;;  %v1214_v44 = vadd.f32 %v2160_v35, %v1192_v26  ;;  %v1215_v45 = vadd.f32 %v2160_v35, %v1193_v27  ;;  %v1216_v46 = vadd.f32 %v2160_v35, %v1194_v31 }
 0x172   : > { %v1217_v47 = vadd.f32 %v2160_v35, %v1195_v32  ;;  %v1218_v48 = vadd.f32 %v2160_v35, %v1196_v33  ;;  %v1219_v49 = vadd.f32 %v2160_v35, %v1197_v34  ;;  %v1220_v50 = vadd.f32 %v2160_v35, %v1198_v36 }
 0x173   : > { %vm1229_vm0 = vcmp.ge.f32.partialorder %v1213_v43, 0.0  ;;  %vm1230_vm1 = vcmp.ge.f32.partialorder %v1214_v44, 0.0  ;;  %v1245_v51 = vmul.f32 0.2, %v1213_v43  ;;  %v1246_v52 = vmul.f32 0.2, %v1214_v44 }
 0x174   : > { %vm1231_vm2 = vcmp.ge.f32.partialorder %v1215_v45, 0.0  ;;  %vm1232_vm3 = vcmp.ge.f32.partialorder %v1216_v46, 0.0  ;;  %v1247_v53 = vmul.f32 0.2, %v1215_v45  ;;  %v1248_v54 = vmul.f32 0.2, %v1216_v46 }
 0x175   : > { %v1261_v55 = vsel %vm1229_vm0, %v1213_v43, %v1245_v51  ;;  %v1262_v56 = vsel %vm1230_vm1, %v1214_v44, %v1246_v52  ;;  %vm1233_vm4 = vcmp.ge.f32.partialorder %v1217_v47, 0.0  ;;  %vm1234_vm5 = vcmp.ge.f32.partialorder %v1218_v48, 0.0 }
 0x176   : > { %v1603_v57 = vpack.c.bf16 %v1262_v56, %v1261_v55  ;;  %v1263_v58 = vsel %vm1231_vm2, %v1215_v45, %v1247_v53  ;;  %v1264_v59 = vsel %vm1232_vm3, %v1216_v46, %v1248_v54  ;;  %v1249_v60 = vmul.f32 0.2, %v1217_v47 }
 0x177   : > { %v1608_v61 = vpack.c.bf16 %v1264_v59, %v1263_v58  ;;  %v1250_v62 = vmul.f32 0.2, %v1218_v48  ;;  %vm1235_vm6 = vcmp.ge.f32.partialorder %v1219_v49, 0.0  ;;  %vm1236_vm7 = vcmp.ge.f32.partialorder %v1220_v50, 0.0 }
 0x178   : > { %1604 = vst [vmem:[%s2225_s5] sm:$0xff] %v1603_v57   ;;  %v1265_v63 = vsel %vm1233_vm4, %v1217_v47, %v1249_v60  ;;  %v1251_v0 = vmul.f32 0.2, %v1219_v49  ;;  %v1252_v1 = vmul.f32 0.2, %v1220_v50  ;;  %v1221_v2 = vadd.f32 %v2160_v35, %v1199_v37 }
 0x179   : > { %1640 = vst [vmem:[%s2225_s5 + $0x8] sm:$0xff] %v1608_v61   ;;  %v1266_v3 = vsel %vm1234_vm5, %v1218_v48, %v1250_v62  ;;  %v1222_v4 = vadd.f32 %v2160_v35, %v1200_v38  ;;  %v1223_v5 = vadd.f32 %v2160_v35, %v1201_v39  ;;  %v1224_v6 = vadd.f32 %v2160_v35, %v1202_v40 }
 0x17a   : > { %v1613_v7 = vpack.c.bf16 %v1266_v3, %v1265_v63  ;;  %v1267_v8 = vsel %vm1235_vm6, %v1219_v49, %v1251_v0  ;;  %v1268_v9 = vsel %vm1236_vm7, %v1220_v50, %v1252_v1  ;;  %vm1237_vm8 = vcmp.ge.f32.partialorder %v1221_v2, 0.0 }
 0x17b   : > { %v1618_v10 = vpack.c.bf16 %v1268_v9, %v1267_v8  ;;  %vm1238_vm9 = vcmp.ge.f32.partialorder %v1222_v4, 0.0  ;;  %v1253_v11 = vmul.f32 0.2, %v1221_v2  ;;  %v1254_v12 = vmul.f32 0.2, %v1222_v4 }
 0x17c   : > { %1641 = vst [vmem:[%s2225_s5 + $0x10] sm:$0xff] %v1613_v7   ;;  %vm1239_vm10 = vcmp.ge.f32.partialorder %v1223_v5, 0.0  ;;  %vm1240_vm11 = vcmp.ge.f32.partialorder %v1224_v6, 0.0  ;;  %v1255_v14 = vmul.f32 0.2, %v1223_v5  ;;  %v1225_v19 = vadd.f32 %v2160_v35, %v1203_v41 }
 0x17d   : > { %v1256_v15 = vmul.f32 0.2, %v1224_v6  ;;  %1642 = vst [vmem:[%s2225_s5 + $0x18] sm:$0xff] %v1618_v10   ;;  %v1269_v16 = vsel %vm1237_vm8, %v1221_v2, %v1253_v11  ;;  %v1270_v18 = vsel %vm1238_vm9, %v1222_v4, %v1254_v12  ;;  %v1226_v20 = vadd.f32 %v2160_v35, %v1204_v42 }
 0x17e   : > { %v1623_v22 = vpack.c.bf16 %v1270_v18, %v1269_v16  ;;  %v1271_v23 = vsel %vm1239_vm10, %v1223_v5, %v1255_v14  ;;  %v1205_v25 = vmul.f32 %v2151_v17, %v1183_v13  ;;  %vm1241_vm12 = vcmp.ge.f32.partialorder %v1225_v19, 0.0 }
 0x17f   : > { %v1272_v24 = vsel %vm1240_vm11, %v1224_v6, %v1256_v15  ;;  %vm1242_vm13 = vcmp.ge.f32.partialorder %v1226_v20, 0.0  ;;  %v1257_v27 = vmul.f32 0.2, %v1225_v19  ;;  %v1258_v28 = vmul.f32 0.2, %v1226_v20 }
 0x180   : > { %v1628_v26 = vpack.c.bf16 %v1272_v24, %v1271_v23  ;;  %1643 = vst [vmem:[%s2225_s5 + $0x20] sm:$0xff] %v1623_v22   ;;  %v1206_v29 = vmul.f32 %v2151_v17, %v1184_v21  ;;  %v1227_v30 = vadd.f32 %v2160_v35, %v1205_v25 }
 0x181   : > { %v1273_v31 = vsel %vm1241_vm12, %v1225_v19, %v1257_v27  ;;  %v1274_v32 = vsel %vm1242_vm13, %v1226_v20, %v1258_v28 }
 0x182   : > { %1644 = vst [vmem:[%s2225_s5 + $0x28] sm:$0xff] %v1628_v26   ;;  %v1228_v33 = vadd.f32 %v2160_v35, %v1206_v29  ;;  %vm1243_vm14 = vcmp.ge.f32.partialorder %v1227_v30, 0.0  ;;  %v1259_v34 = vmul.f32 0.2, %v1227_v30  ;;  %v1633_v36 = vpack.c.bf16 %v1274_v32, %v1273_v31 }
 0x184   : > { %vm1244_vm15 = vcmp.ge.f32.partialorder %v1228_v33, 0.0  ;;  %v1260_v37 = vmul.f32 0.2, %v1228_v33  ;;  %v1275_v38 = vsel %vm1243_vm14, %v1227_v30, %v1259_v34  ;;  %1645 = vst [vmem:[%s2225_s5 + $0x30] sm:$0xff] %v1633_v36  }
 0x186   : > { %v1276_v17 = vsel %vm1244_vm15, %v1228_v33, %v1260_v37 }
 0x187   : > { %v1638_v39 = vpack.c.bf16 %v1276_v17, %v1275_v38 }
 0x189   : > { %1646 = vst [vmem:[%s2225_s5 + $0x38] sm:$0xff] %v1638_v39  }
 0x18a PF: > { %s15_s20 = sadd.s32 1, %s1872_s20   ;;  %s2226_s18 = smov %s1868_s19 }
 0x18b   : > { %p12_p7 = scmp.ge.s32.totalorder %s15_s20, 6   ;;  %s2227_s19 = smov %s2229_s21 }
 0x18d   :  { %14 = sbr.rel (!%p12_p7) target bundleno = 2 (0x2), region = 91 }

// kernel: e1_forward.9
= control target key start
LH: loop header
LB: loop body
LE: loop exit
PB: predicated region body
PF: predicated region fallthrough
CT: control target
= control target key end

     0   :  { %s4485_s0 = inlined_call_operand.vmem [shape: bf16[32,2048], index: 0, kind: input, shape index: {}]   ;;  %s4486_s1 = inlined_call_operand.vmem [shape: bf16[2048,256], index: 1, kind: input, shape index: {}]   ;;  %s4487_s2 = inlined_call_operand.vmem [shape: f32[1,256], index: 2, kind: input, shape index: {}]   ;;  %s4488_s3 = inlined_call_operand.vmem [shape: f32[1,256], index: 3, kind: input, shape index: {}]   ;;  %s4489_s4 = inlined_call_operand.vmem [shape: f32[1,256], index: 4, kind: input, shape index: {}]   ;;  %s4490_s5 = inlined_call_operand.vmem [shape: bf16[32,256], index: 5, kind: output, shape index: {}]  }
   0x1   :  { %4491 = sst [smem:[#allocation7_spill]] %s4486_s1 }
   0x2   :  { %s3690_s18 = smov 0   ;;  %s3692_s19 = smov 0  }
   0x3   :  { %s3694_s20 = smov 0   ;;  %s3696_s21 = smov 0  }
   0x4   :  { %s3698_s22 = smov 0   ;;  %s3700_s23 = smov 0  }
   0x5   :  { %s3702_s24 = smov 0  }
   0x6 LB: > { %s24_s25 = sadd.s32 1, %s3649_s22  ;;  %s27_s26 = sadd.s32 1, %s3653_s23  ;;  %s3657_s24 = sphi %s3702_s24, %s15_s24   ;;  %s3653_s23 = sphi %s3700_s23, %s4499_s23   ;;  %s3649_s22 = sphi %s3698_s22, %s4498_s22   ;;  %s3645_s21 = sphi %s3696_s21, %s4497_s21   ;;  %s3641_s20 = sphi %s3694_s20, %s4496_s20   ;;  %s3637_s19 = sphi %s3692_s19, %s4495_s19   ;;  %s3633_s18 = sphi %s3690_s18, %s4494_s18  }
   0x7   : > { %p25_p0 = scmp.ge.s32.totalorder %s24_s25, 4  ;;  %s3041_s27 = sadd.s32 4294967295, %s3657_s24  }
   0x8   : > { %p67_p1 = scmp.ne.s32.totalorder %s3637_s19, %s3633_s18  ;;  %p68_p2 = scmp.eq.s32.totalorder %s3657_s24, 0 }
   0x9   : > { %s4501_s25 = smov (%p25_p0, %s24_s25), 0  ;;  %s4503_s26 = smov (!%p25_p0, %s27_s26), %s3653_s23 }
   0xa   : > { %p175_p3 = scmp.eq.s32.totalorder %s3041_s27, 7  ;;  %p29_p4 = scmp.ge.s32.totalorder %s4503_s26, 2 }
   0xb   : > { %p69_p5 = por %p68_p2, %p67_p1  ;;  %s60_s30 = sadd.s32 1, %s3637_s19 }
   0xc   : > { %p3734_p6 = por %p175_p3, %p67_p1  ;;  %s4505_s26 = smov (%p29_p4, %s4503_s26), 0 }
   0xd   : > { %s57_s29 = ssub.s32 %s3653_s23, %s4505_s26  ;;  %p3044_p8 = scmp.ge.s32.totalorder %s3657_s24, 8 }
   0xe   : > { %p58_p7 = scmp.eq.s32.totalorder %s57_s29, 0 }
   0xf   : > { %197 = sbr.rel (%p3044_p8) target bundleno = 202 (0xca), region = 16 }
  0x10   : > { %s3744_s6 = scalar_select %p58_p7, %s3637_s19, %s60_s30  }
  0x16   : > { %208 = sbr.rel (!%p69_p5) target bundleno = 202 (0xca), region = 24  ;;  %s210_s7 = sand.u32 (%p69_p5), 1, %s3637_s19  }
  0x17   : > { %s3046_s8 = sshll.u32 (%p69_p5), %s3653_s23, 2  ;;  %s3045_s9 = sshll.u32 (%p69_p5), %s210_s7, 10 }
  0x18   : > { %s4493_s1 = sld [smem:[#allocation7_spill]] (%p69_p5)  ;;  %s3756_s13 = scalar_lea.vmem (%p69_p5), [#allocation5], %s3045_s9 }
  0x1e   : > { %s3752_s12 = scalar_lea.vmem %s4493_s1, %s3046_s8 }
  0x1f   : > { %v230_v0 = vld [vmem:[%s3752_s12] sm:$0xf]  ;;  %v232_v1 = vld [vmem:[%s3752_s12 + $0x8] sm:$0xf]  ;;  %v234_v2 = vld [vmem:[%s3752_s12 + $0x10] sm:$0xf] }
  0x20   : > { %231 = vst [vmem:[%s3756_s13] sm:$0xf] %v230_v0  ;;  %233 = vst [vmem:[%s3756_s13 + $0x4] sm:$0xf] %v232_v1  ;;  %v236_v3 = vld [vmem:[%s3752_s12 + $0x18] sm:$0xf] }
  0x21   : > { %v238_v4 = vld [vmem:[%s3752_s12 + $0x20] sm:$0xf]  ;;  %235 = vst [vmem:[%s3756_s13 + $0x8] sm:$0xf] %v234_v2  ;;  %237 = vst [vmem:[%s3756_s13 + $0xc] sm:$0xf] %v236_v3 }
  0x22   : > { %239 = vst [vmem:[%s3756_s13 + $0x10] sm:$0xf] %v238_v4  ;;  %v240_v5 = vld [vmem:[%s3752_s12 + $0x28] sm:$0xf]  ;;  %v242_v6 = vld [vmem:[%s3752_s12 + $0x30] sm:$0xf] }
  0x23   : > { %v244_v7 = vld [vmem:[%s3752_s12 + $0x38] sm:$0xf]  ;;  %241 = vst [vmem:[%s3756_s13 + $0x14] sm:$0xf] %v240_v5  ;;  %243 = vst [vmem:[%s3756_s13 + $0x18] sm:$0xf] %v242_v6 }
  0x24   : > { %245 = vst [vmem:[%s3756_s13 + $0x1c] sm:$0xf] %v244_v7  ;;  %v246_v8 = vld [vmem:[%s3752_s12 + $0x40] sm:$0xf]  ;;  %v248_v9 = vld [vmem:[%s3752_s12 + $0x48] sm:$0xf] }
  0x25   : > { %v250_v10 = vld [vmem:[%s3752_s12 + $0x50] sm:$0xf]  ;;  %247 = vst [vmem:[%s3756_s13 + $0x20] sm:$0xf] %v246_v8  ;;  %249 = vst [vmem:[%s3756_s13 + $0x24] sm:$0xf] %v248_v9 }
  0x26   : > { %251 = vst [vmem:[%s3756_s13 + $0x28] sm:$0xf] %v250_v10  ;;  %v252_v11 = vld [vmem:[%s3752_s12 + $0x58] sm:$0xf]  ;;  %v254_v12 = vld [vmem:[%s3752_s12 + $0x60] sm:$0xf] }
  0x27   : > { %v256_v13 = vld [vmem:[%s3752_s12 + $0x68] sm:$0xf]  ;;  %253 = vst [vmem:[%s3756_s13 + $0x2c] sm:$0xf] %v252_v11  ;;  %255 = vst [vmem:[%s3756_s13 + $0x30] sm:$0xf] %v254_v12 }
  0x28   : > { %257 = vst [vmem:[%s3756_s13 + $0x34] sm:$0xf] %v256_v13  ;;  %v258_v14 = vld [vmem:[%s3752_s12 + $0x70] sm:$0xf]  ;;  %v260_v15 = vld [vmem:[%s3752_s12 + $0x78] sm:$0xf] }
  0x29   : > { %v262_v16 = vld [vmem:[%s3752_s12 + $0x80] sm:$0xf]  ;;  %259 = vst [vmem:[%s3756_s13 + $0x38] sm:$0xf] %v258_v14  ;;  %261 = vst [vmem:[%s3756_s13 + $0x3c] sm:$0xf] %v260_v15 }
  0x2a   : > { %263 = vst [vmem:[%s3756_s13 + $0x40] sm:$0xf] %v262_v16  ;;  %v264_v17 = vld [vmem:[%s3752_s12 + $0x88] sm:$0xf]  ;;  %v266_v18 = vld [vmem:[%s3752_s12 + $0x90] sm:$0xf] }
  0x2b   : > { %v268_v19 = vld [vmem:[%s3752_s12 + $0x98] sm:$0xf]  ;;  %265 = vst [vmem:[%s3756_s13 + $0x44] sm:$0xf] %v264_v17  ;;  %267 = vst [vmem:[%s3756_s13 + $0x48] sm:$0xf] %v266_v18 }
  0x2c   : > { %269 = vst [vmem:[%s3756_s13 + $0x4c] sm:$0xf] %v268_v19  ;;  %v270_v20 = vld [vmem:[%s3752_s12 + $0xa0] sm:$0xf]  ;;  %v272_v21 = vld [vmem:[%s3752_s12 + $0xa8] sm:$0xf] }
  0x2d   : > { %v274_v22 = vld [vmem:[%s3752_s12 + $0xb0] sm:$0xf]  ;;  %271 = vst [vmem:[%s3756_s13 + $0x50] sm:$0xf] %v270_v20  ;;  %273 = vst [vmem:[%s3756_s13 + $0x54] sm:$0xf] %v272_v21 }
  0x2e   : > { %275 = vst [vmem:[%s3756_s13 + $0x58] sm:$0xf] %v274_v22  ;;  %v276_v23 = vld [vmem:[%s3752_s12 + $0xb8] sm:$0xf]  ;;  %v278_v24 = vld [vmem:[%s3752_s12 + $0xc0] sm:$0xf] }
  0x2f   : > { %v280_v25 = vld [vmem:[%s3752_s12 + $0xc8] sm:$0xf]  ;;  %277 = vst [vmem:[%s3756_s13 + $0x5c] sm:$0xf] %v276_v23  ;;  %279 = vst [vmem:[%s3756_s13 + $0x60] sm:$0xf] %v278_v24 }
  0x30   : > { %281 = vst [vmem:[%s3756_s13 + $0x64] sm:$0xf] %v280_v25  ;;  %v282_v26 = vld [vmem:[%s3752_s12 + $0xd0] sm:$0xf]  ;;  %v284_v27 = vld [vmem:[%s3752_s12 + $0xd8] sm:$0xf] }
  0x31   : > { %v286_v28 = vld [vmem:[%s3752_s12 + $0xe0] sm:$0xf]  ;;  %283 = vst [vmem:[%s3756_s13 + $0x68] sm:$0xf] %v282_v26  ;;  %285 = vst [vmem:[%s3756_s13 + $0x6c] sm:$0xf] %v284_v27 }
  0x32   : > { %287 = vst [vmem:[%s3756_s13 + $0x70] sm:$0xf] %v286_v28  ;;  %v288_v29 = vld [vmem:[%s3752_s12 + $0xe8] sm:$0xf]  ;;  %v290_v30 = vld [vmem:[%s3752_s12 + $0xf0] sm:$0xf] }
  0x33   : > { %v292_v31 = vld [vmem:[%s3752_s12 + $0xf8] sm:$0xf]  ;;  %289 = vst [vmem:[%s3756_s13 + $0x74] sm:$0xf] %v288_v29  ;;  %291 = vst [vmem:[%s3756_s13 + $0x78] sm:$0xf] %v290_v30 }
  0x34   : > { %293 = vst [vmem:[%s3756_s13 + $0x7c] sm:$0xf] %v292_v31  ;;  %v294_v32 = vld [vmem:[%s3752_s12 + $0x100] sm:$0xf]  ;;  %v296_v33 = vld [vmem:[%s3752_s12 + $0x108] sm:$0xf] }
  0x35   : > { %v298_v34 = vld [vmem:[%s3752_s12 + $0x110] sm:$0xf]  ;;  %295 = vst [vmem:[%s3756_s13 + $0x80] sm:$0xf] %v294_v32  ;;  %297 = vst [vmem:[%s3756_s13 + $0x84] sm:$0xf] %v296_v33 }
  0x36   : > { %299 = vst [vmem:[%s3756_s13 + $0x88] sm:$0xf] %v298_v34  ;;  %v300_v35 = vld [vmem:[%s3752_s12 + $0x118] sm:$0xf]  ;;  %v302_v36 = vld [vmem:[%s3752_s12 + $0x120] sm:$0xf] }
  0x37   : > { %v304_v37 = vld [vmem:[%s3752_s12 + $0x128] sm:$0xf]  ;;  %301 = vst [vmem:[%s3756_s13 + $0x8c] sm:$0xf] %v300_v35  ;;  %303 = vst [vmem:[%s3756_s13 + $0x90] sm:$0xf] %v302_v36 }
  0x38   : > { %305 = vst [vmem:[%s3756_s13 + $0x94] sm:$0xf] %v304_v37  ;;  %v306_v38 = vld [vmem:[%s3752_s12 + $0x130] sm:$0xf]  ;;  %v308_v39 = vld [vmem:[%s3752_s12 + $0x138] sm:$0xf] }
  0x39   : > { %v310_v40 = vld [vmem:[%s3752_s12 + $0x140] sm:$0xf]  ;;  %307 = vst [vmem:[%s3756_s13 + $0x98] sm:$0xf] %v306_v38  ;;  %309 = vst [vmem:[%s3756_s13 + $0x9c] sm:$0xf] %v308_v39 }
  0x3a   : > { %311 = vst [vmem:[%s3756_s13 + $0xa0] sm:$0xf] %v310_v40  ;;  %v312_v41 = vld [vmem:[%s3752_s12 + $0x148] sm:$0xf]  ;;  %v314_v42 = vld [vmem:[%s3752_s12 + $0x150] sm:$0xf] }
  0x3b   : > { %v316_v43 = vld [vmem:[%s3752_s12 + $0x158] sm:$0xf]  ;;  %313 = vst [vmem:[%s3756_s13 + $0xa4] sm:$0xf] %v312_v41  ;;  %315 = vst [vmem:[%s3756_s13 + $0xa8] sm:$0xf] %v314_v42 }
  0x3c   : > { %317 = vst [vmem:[%s3756_s13 + $0xac] sm:$0xf] %v316_v43  ;;  %v318_v44 = vld [vmem:[%s3752_s12 + $0x160] sm:$0xf]  ;;  %v320_v45 = vld [vmem:[%s3752_s12 + $0x168] sm:$0xf] }
  0x3d   : > { %v322_v46 = vld [vmem:[%s3752_s12 + $0x170] sm:$0xf]  ;;  %319 = vst [vmem:[%s3756_s13 + $0xb0] sm:$0xf] %v318_v44  ;;  %321 = vst [vmem:[%s3756_s13 + $0xb4] sm:$0xf] %v320_v45 }
  0x3e   : > { %323 = vst [vmem:[%s3756_s13 + $0xb8] sm:$0xf] %v322_v46  ;;  %v324_v47 = vld [vmem:[%s3752_s12 + $0x178] sm:$0xf]  ;;  %v326_v48 = vld [vmem:[%s3752_s12 + $0x180] sm:$0xf] }
  0x3f   : > { %v328_v49 = vld [vmem:[%s3752_s12 + $0x188] sm:$0xf]  ;;  %325 = vst [vmem:[%s3756_s13 + $0xbc] sm:$0xf] %v324_v47  ;;  %327 = vst [vmem:[%s3756_s13 + $0xc0] sm:$0xf] %v326_v48 }
  0x40   : > { %329 = vst [vmem:[%s3756_s13 + $0xc4] sm:$0xf] %v328_v49  ;;  %v330_v50 = vld [vmem:[%s3752_s12 + $0x190] sm:$0xf]  ;;  %v332_v51 = vld [vmem:[%s3752_s12 + $0x198] sm:$0xf] }
  0x41   : > { %v334_v52 = vld [vmem:[%s3752_s12 + $0x1a0] sm:$0xf]  ;;  %331 = vst [vmem:[%s3756_s13 + $0xc8] sm:$0xf] %v330_v50  ;;  %333 = vst [vmem:[%s3756_s13 + $0xcc] sm:$0xf] %v332_v51 }
  0x42   : > { %335 = vst [vmem:[%s3756_s13 + $0xd0] sm:$0xf] %v334_v52  ;;  %v336_v53 = vld [vmem:[%s3752_s12 + $0x1a8] sm:$0xf]  ;;  %v338_v54 = vld [vmem:[%s3752_s12 + $0x1b0] sm:$0xf] }
  0x43   : > { %v340_v55 = vld [vmem:[%s3752_s12 + $0x1b8] sm:$0xf]  ;;  %337 = vst [vmem:[%s3756_s13 + $0xd4] sm:$0xf] %v336_v53  ;;  %339 = vst [vmem:[%s3756_s13 + $0xd8] sm:$0xf] %v338_v54 }
  0x44   : > { %341 = vst [vmem:[%s3756_s13 + $0xdc] sm:$0xf] %v340_v55  ;;  %v342_v56 = vld [vmem:[%s3752_s12 + $0x1c0] sm:$0xf]  ;;  %v344_v57 = vld [vmem:[%s3752_s12 + $0x1c8] sm:$0xf] }
  0x45   : > { %v346_v58 = vld [vmem:[%s3752_s12 + $0x1d0] sm:$0xf]  ;;  %343 = vst [vmem:[%s3756_s13 + $0xe0] sm:$0xf] %v342_v56  ;;  %345 = vst [vmem:[%s3756_s13 + $0xe4] sm:$0xf] %v344_v57 }
  0x46   : > { %347 = vst [vmem:[%s3756_s13 + $0xe8] sm:$0xf] %v346_v58  ;;  %v348_v59 = vld [vmem:[%s3752_s12 + $0x1d8] sm:$0xf]  ;;  %v350_v60 = vld [vmem:[%s3752_s12 + $0x1e0] sm:$0xf] }
  0x47   : > { %v352_v61 = vld [vmem:[%s3752_s12 + $0x1e8] sm:$0xf]  ;;  %349 = vst [vmem:[%s3756_s13 + $0xec] sm:$0xf] %v348_v59  ;;  %351 = vst [vmem:[%s3756_s13 + $0xf0] sm:$0xf] %v350_v60 }
  0x48   : > { %353 = vst [vmem:[%s3756_s13 + $0xf4] sm:$0xf] %v352_v61  ;;  %v354_v62 = vld [vmem:[%s3752_s12 + $0x1f0] sm:$0xf]  ;;  %v356_v63 = vld [vmem:[%s3752_s12 + $0x1f8] sm:$0xf] }
  0x49   : > { %v358_v0 = vld [vmem:[%s3752_s12 + $0x200] sm:$0xf]  ;;  %355 = vst [vmem:[%s3756_s13 + $0xf8] sm:$0xf] %v354_v62  ;;  %357 = vst [vmem:[%s3756_s13 + $0xfc] sm:$0xf] %v356_v63 }
  0x4a   : > { %359 = vst [vmem:[%s3756_s13 + $0x100] sm:$0xf] %v358_v0  ;;  %v360_v1 = vld [vmem:[%s3752_s12 + $0x208] sm:$0xf]  ;;  %v362_v2 = vld [vmem:[%s3752_s12 + $0x210] sm:$0xf] }
  0x4b   : > { %v364_v3 = vld [vmem:[%s3752_s12 + $0x218] sm:$0xf]  ;;  %361 = vst [vmem:[%s3756_s13 + $0x104] sm:$0xf] %v360_v1  ;;  %363 = vst [vmem:[%s3756_s13 + $0x108] sm:$0xf] %v362_v2 }
  0x4c   : > { %365 = vst [vmem:[%s3756_s13 + $0x10c] sm:$0xf] %v364_v3  ;;  %v366_v4 = vld [vmem:[%s3752_s12 + $0x220] sm:$0xf]  ;;  %v368_v5 = vld [vmem:[%s3752_s12 + $0x228] sm:$0xf] }
  0x4d   : > { %v370_v6 = vld [vmem:[%s3752_s12 + $0x230] sm:$0xf]  ;;  %367 = vst [vmem:[%s3756_s13 + $0x110] sm:$0xf] %v366_v4  ;;  %369 = vst [vmem:[%s3756_s13 + $0x114] sm:$0xf] %v368_v5 }
  0x4e   : > { %371 = vst [vmem:[%s3756_s13 + $0x118] sm:$0xf] %v370_v6  ;;  %v372_v7 = vld [vmem:[%s3752_s12 + $0x238] sm:$0xf]  ;;  %v374_v8 = vld [vmem:[%s3752_s12 + $0x240] sm:$0xf] }
  0x4f   : > { %v376_v9 = vld [vmem:[%s3752_s12 + $0x248] sm:$0xf]  ;;  %373 = vst [vmem:[%s3756_s13 + $0x11c] sm:$0xf] %v372_v7  ;;  %375 = vst [vmem:[%s3756_s13 + $0x120] sm:$0xf] %v374_v8 }
  0x50   : > { %377 = vst [vmem:[%s3756_s13 + $0x124] sm:$0xf] %v376_v9  ;;  %v378_v10 = vld [vmem:[%s3752_s12 + $0x250] sm:$0xf]  ;;  %v380_v11 = vld [vmem:[%s3752_s12 + $0x258] sm:$0xf] }
  0x51   : > { %v382_v12 = vld [vmem:[%s3752_s12 + $0x260] sm:$0xf]  ;;  %379 = vst [vmem:[%s3756_s13 + $0x128] sm:$0xf] %v378_v10  ;;  %381 = vst [vmem:[%s3756_s13 + $0x12c] sm:$0xf] %v380_v11 }
  0x52   : > { %383 = vst [vmem:[%s3756_s13 + $0x130] sm:$0xf] %v382_v12  ;;  %v384_v13 = vld [vmem:[%s3752_s12 + $0x268] sm:$0xf]  ;;  %v386_v14 = vld [vmem:[%s3752_s12 + $0x270] sm:$0xf] }
  0x53   : > { %v388_v15 = vld [vmem:[%s3752_s12 + $0x278] sm:$0xf]  ;;  %385 = vst [vmem:[%s3756_s13 + $0x134] sm:$0xf] %v384_v13  ;;  %387 = vst [vmem:[%s3756_s13 + $0x138] sm:$0xf] %v386_v14 }
  0x54   : > { %389 = vst [vmem:[%s3756_s13 + $0x13c] sm:$0xf] %v388_v15  ;;  %v390_v16 = vld [vmem:[%s3752_s12 + $0x280] sm:$0xf]  ;;  %v392_v17 = vld [vmem:[%s3752_s12 + $0x288] sm:$0xf] }
  0x55   : > { %v394_v18 = vld [vmem:[%s3752_s12 + $0x290] sm:$0xf]  ;;  %391 = vst [vmem:[%s3756_s13 + $0x140] sm:$0xf] %v390_v16  ;;  %393 = vst [vmem:[%s3756_s13 + $0x144] sm:$0xf] %v392_v17 }
  0x56   : > { %395 = vst [vmem:[%s3756_s13 + $0x148] sm:$0xf] %v394_v18  ;;  %v396_v19 = vld [vmem:[%s3752_s12 + $0x298] sm:$0xf]  ;;  %v398_v20 = vld [vmem:[%s3752_s12 + $0x2a0] sm:$0xf] }
  0x57   : > { %v400_v21 = vld [vmem:[%s3752_s12 + $0x2a8] sm:$0xf]  ;;  %397 = vst [vmem:[%s3756_s13 + $0x14c] sm:$0xf] %v396_v19  ;;  %399 = vst [vmem:[%s3756_s13 + $0x150] sm:$0xf] %v398_v20 }
  0x58   : > { %401 = vst [vmem:[%s3756_s13 + $0x154] sm:$0xf] %v400_v21  ;;  %v402_v22 = vld [vmem:[%s3752_s12 + $0x2b0] sm:$0xf]  ;;  %v404_v23 = vld [vmem:[%s3752_s12 + $0x2b8] sm:$0xf] }
  0x59   : > { %v406_v24 = vld [vmem:[%s3752_s12 + $0x2c0] sm:$0xf]  ;;  %403 = vst [vmem:[%s3756_s13 + $0x158] sm:$0xf] %v402_v22  ;;  %405 = vst [vmem:[%s3756_s13 + $0x15c] sm:$0xf] %v404_v23 }
  0x5a   : > { %407 = vst [vmem:[%s3756_s13 + $0x160] sm:$0xf] %v406_v24  ;;  %v408_v25 = vld [vmem:[%s3752_s12 + $0x2c8] sm:$0xf]  ;;  %v410_v26 = vld [vmem:[%s3752_s12 + $0x2d0] sm:$0xf] }
  0x5b   : > { %v412_v27 = vld [vmem:[%s3752_s12 + $0x2d8] sm:$0xf]  ;;  %409 = vst [vmem:[%s3756_s13 + $0x164] sm:$0xf] %v408_v25  ;;  %411 = vst [vmem:[%s3756_s13 + $0x168] sm:$0xf] %v410_v26 }
  0x5c   : > { %413 = vst [vmem:[%s3756_s13 + $0x16c] sm:$0xf] %v412_v27  ;;  %v414_v28 = vld [vmem:[%s3752_s12 + $0x2e0] sm:$0xf]  ;;  %v416_v29 = vld [vmem:[%s3752_s12 + $0x2e8] sm:$0xf] }
  0x5d   : > { %v418_v30 = vld [vmem:[%s3752_s12 + $0x2f0] sm:$0xf]  ;;  %415 = vst [vmem:[%s3756_s13 + $0x170] sm:$0xf] %v414_v28  ;;  %417 = vst [vmem:[%s3756_s13 + $0x174] sm:$0xf] %v416_v29 }
  0x5e   : > { %419 = vst [vmem:[%s3756_s13 + $0x178] sm:$0xf] %v418_v30  ;;  %v420_v31 = vld [vmem:[%s3752_s12 + $0x2f8] sm:$0xf]  ;;  %v422_v32 = vld [vmem:[%s3752_s12 + $0x300] sm:$0xf] }
  0x5f   : > { %v424_v33 = vld [vmem:[%s3752_s12 + $0x308] sm:$0xf]  ;;  %421 = vst [vmem:[%s3756_s13 + $0x17c] sm:$0xf] %v420_v31  ;;  %423 = vst [vmem:[%s3756_s13 + $0x180] sm:$0xf] %v422_v32 }
  0x60   : > { %425 = vst [vmem:[%s3756_s13 + $0x184] sm:$0xf] %v424_v33  ;;  %v426_v34 = vld [vmem:[%s3752_s12 + $0x310] sm:$0xf]  ;;  %v428_v35 = vld [vmem:[%s3752_s12 + $0x318] sm:$0xf] }
  0x61   : > { %v430_v36 = vld [vmem:[%s3752_s12 + $0x320] sm:$0xf]  ;;  %427 = vst [vmem:[%s3756_s13 + $0x188] sm:$0xf] %v426_v34  ;;  %429 = vst [vmem:[%s3756_s13 + $0x18c] sm:$0xf] %v428_v35 }
  0x62   : > { %431 = vst [vmem:[%s3756_s13 + $0x190] sm:$0xf] %v430_v36  ;;  %v432_v37 = vld [vmem:[%s3752_s12 + $0x328] sm:$0xf]  ;;  %v434_v38 = vld [vmem:[%s3752_s12 + $0x330] sm:$0xf] }
  0x63   : > { %v436_v39 = vld [vmem:[%s3752_s12 + $0x338] sm:$0xf]  ;;  %433 = vst [vmem:[%s3756_s13 + $0x194] sm:$0xf] %v432_v37  ;;  %435 = vst [vmem:[%s3756_s13 + $0x198] sm:$0xf] %v434_v38 }
  0x64   : > { %437 = vst [vmem:[%s3756_s13 + $0x19c] sm:$0xf] %v436_v39  ;;  %v438_v40 = vld [vmem:[%s3752_s12 + $0x340] sm:$0xf]  ;;  %v440_v41 = vld [vmem:[%s3752_s12 + $0x348] sm:$0xf] }
  0x65   : > { %v442_v42 = vld [vmem:[%s3752_s12 + $0x350] sm:$0xf]  ;;  %439 = vst [vmem:[%s3756_s13 + $0x1a0] sm:$0xf] %v438_v40  ;;  %441 = vst [vmem:[%s3756_s13 + $0x1a4] sm:$0xf] %v440_v41 }
  0x66   : > { %443 = vst [vmem:[%s3756_s13 + $0x1a8] sm:$0xf] %v442_v42  ;;  %v444_v43 = vld [vmem:[%s3752_s12 + $0x358] sm:$0xf]  ;;  %v446_v44 = vld [vmem:[%s3752_s12 + $0x360] sm:$0xf] }
  0x67   : > { %v448_v45 = vld [vmem:[%s3752_s12 + $0x368] sm:$0xf]  ;;  %445 = vst [vmem:[%s3756_s13 + $0x1ac] sm:$0xf] %v444_v43  ;;  %447 = vst [vmem:[%s3756_s13 + $0x1b0] sm:$0xf] %v446_v44 }
  0x68   : > { %449 = vst [vmem:[%s3756_s13 + $0x1b4] sm:$0xf] %v448_v45  ;;  %v450_v46 = vld [vmem:[%s3752_s12 + $0x370] sm:$0xf]  ;;  %v452_v47 = vld [vmem:[%s3752_s12 + $0x378] sm:$0xf] }
  0x69   : > { %v454_v48 = vld [vmem:[%s3752_s12 + $0x380] sm:$0xf]  ;;  %451 = vst [vmem:[%s3756_s13 + $0x1b8] sm:$0xf] %v450_v46  ;;  %453 = vst [vmem:[%s3756_s13 + $0x1bc] sm:$0xf] %v452_v47 }
  0x6a   : > { %455 = vst [vmem:[%s3756_s13 + $0x1c0] sm:$0xf] %v454_v48  ;;  %v456_v49 = vld [vmem:[%s3752_s12 + $0x388] sm:$0xf]  ;;  %v458_v50 = vld [vmem:[%s3752_s12 + $0x390] sm:$0xf] }
  0x6b   : > { %v460_v51 = vld [vmem:[%s3752_s12 + $0x398] sm:$0xf]  ;;  %457 = vst [vmem:[%s3756_s13 + $0x1c4] sm:$0xf] %v456_v49  ;;  %459 = vst [vmem:[%s3756_s13 + $0x1c8] sm:$0xf] %v458_v50 }
  0x6c   : > { %461 = vst [vmem:[%s3756_s13 + $0x1cc] sm:$0xf] %v460_v51  ;;  %v462_v52 = vld [vmem:[%s3752_s12 + $0x3a0] sm:$0xf]  ;;  %v464_v53 = vld [vmem:[%s3752_s12 + $0x3a8] sm:$0xf] }
  0x6d   : > { %v466_v54 = vld [vmem:[%s3752_s12 + $0x3b0] sm:$0xf]  ;;  %463 = vst [vmem:[%s3756_s13 + $0x1d0] sm:$0xf] %v462_v52  ;;  %465 = vst [vmem:[%s3756_s13 + $0x1d4] sm:$0xf] %v464_v53 }
  0x6e   : > { %467 = vst [vmem:[%s3756_s13 + $0x1d8] sm:$0xf] %v466_v54  ;;  %v468_v55 = vld [vmem:[%s3752_s12 + $0x3b8] sm:$0xf]  ;;  %v470_v56 = vld [vmem:[%s3752_s12 + $0x3c0] sm:$0xf] }
  0x6f   : > { %v472_v57 = vld [vmem:[%s3752_s12 + $0x3c8] sm:$0xf]  ;;  %469 = vst [vmem:[%s3756_s13 + $0x1dc] sm:$0xf] %v468_v55  ;;  %471 = vst [vmem:[%s3756_s13 + $0x1e0] sm:$0xf] %v470_v56 }
  0x70   : > { %473 = vst [vmem:[%s3756_s13 + $0x1e4] sm:$0xf] %v472_v57  ;;  %v474_v58 = vld [vmem:[%s3752_s12 + $0x3d0] sm:$0xf]  ;;  %v476_v59 = vld [vmem:[%s3752_s12 + $0x3d8] sm:$0xf] }
  0x71   : > { %v478_v60 = vld [vmem:[%s3752_s12 + $0x3e0] sm:$0xf]  ;;  %475 = vst [vmem:[%s3756_s13 + $0x1e8] sm:$0xf] %v474_v58  ;;  %477 = vst [vmem:[%s3756_s13 + $0x1ec] sm:$0xf] %v476_v59 }
  0x72   : > { %479 = vst [vmem:[%s3756_s13 + $0x1f0] sm:$0xf] %v478_v60  ;;  %v480_v61 = vld [vmem:[%s3752_s12 + $0x3e8] sm:$0xf]  ;;  %v482_v62 = vld [vmem:[%s3752_s12 + $0x3f0] sm:$0xf] }
  0x73   : > { %v484_v63 = vld [vmem:[%s3752_s12 + $0x3f8] sm:$0xf]  ;;  %481 = vst [vmem:[%s3756_s13 + $0x1f4] sm:$0xf] %v480_v61  ;;  %483 = vst [vmem:[%s3756_s13 + $0x1f8] sm:$0xf] %v482_v62 }
  0x74   : > { %485 = vst [vmem:[%s3756_s13 + $0x1fc] sm:$0xf] %v484_v63  ;;  %v486_v0 = vld [vmem:[%s3752_s12 + $0x400] sm:$0xf]  ;;  %v488_v1 = vld [vmem:[%s3752_s12 + $0x408] sm:$0xf] }
  0x75   : > { %v490_v2 = vld [vmem:[%s3752_s12 + $0x410] sm:$0xf]  ;;  %487 = vst [vmem:[%s3756_s13 + $0x200] sm:$0xf] %v486_v0  ;;  %489 = vst [vmem:[%s3756_s13 + $0x204] sm:$0xf] %v488_v1 }
  0x76   : > { %491 = vst [vmem:[%s3756_s13 + $0x208] sm:$0xf] %v490_v2  ;;  %v492_v3 = vld [vmem:[%s3752_s12 + $0x418] sm:$0xf]  ;;  %v494_v4 = vld [vmem:[%s3752_s12 + $0x420] sm:$0xf] }
  0x77   : > { %v496_v5 = vld [vmem:[%s3752_s12 + $0x428] sm:$0xf]  ;;  %493 = vst [vmem:[%s3756_s13 + $0x20c] sm:$0xf] %v492_v3  ;;  %495 = vst [vmem:[%s3756_s13 + $0x210] sm:$0xf] %v494_v4 }
  0x78   : > { %497 = vst [vmem:[%s3756_s13 + $0x214] sm:$0xf] %v496_v5  ;;  %v498_v6 = vld [vmem:[%s3752_s12 + $0x430] sm:$0xf]  ;;  %v500_v7 = vld [vmem:[%s3752_s12 + $0x438] sm:$0xf] }
  0x79   : > { %v502_v8 = vld [vmem:[%s3752_s12 + $0x440] sm:$0xf]  ;;  %499 = vst [vmem:[%s3756_s13 + $0x218] sm:$0xf] %v498_v6  ;;  %501 = vst [vmem:[%s3756_s13 + $0x21c] sm:$0xf] %v500_v7 }
  0x7a   : > { %503 = vst [vmem:[%s3756_s13 + $0x220] sm:$0xf] %v502_v8  ;;  %v504_v9 = vld [vmem:[%s3752_s12 + $0x448] sm:$0xf]  ;;  %v506_v10 = vld [vmem:[%s3752_s12 + $0x450] sm:$0xf] }
  0x7b   : > { %v508_v11 = vld [vmem:[%s3752_s12 + $0x458] sm:$0xf]  ;;  %505 = vst [vmem:[%s3756_s13 + $0x224] sm:$0xf] %v504_v9  ;;  %507 = vst [vmem:[%s3756_s13 + $0x228] sm:$0xf] %v506_v10 }
  0x7c   : > { %509 = vst [vmem:[%s3756_s13 + $0x22c] sm:$0xf] %v508_v11  ;;  %v510_v12 = vld [vmem:[%s3752_s12 + $0x460] sm:$0xf]  ;;  %v512_v13 = vld [vmem:[%s3752_s12 + $0x468] sm:$0xf] }
  0x7d   : > { %v514_v14 = vld [vmem:[%s3752_s12 + $0x470] sm:$0xf]  ;;  %511 = vst [vmem:[%s3756_s13 + $0x230] sm:$0xf] %v510_v12  ;;  %513 = vst [vmem:[%s3756_s13 + $0x234] sm:$0xf] %v512_v13 }
  0x7e   : > { %515 = vst [vmem:[%s3756_s13 + $0x238] sm:$0xf] %v514_v14  ;;  %v516_v15 = vld [vmem:[%s3752_s12 + $0x478] sm:$0xf]  ;;  %v518_v16 = vld [vmem:[%s3752_s12 + $0x480] sm:$0xf] }
  0x7f   : > { %v520_v17 = vld [vmem:[%s3752_s12 + $0x488] sm:$0xf]  ;;  %517 = vst [vmem:[%s3756_s13 + $0x23c] sm:$0xf] %v516_v15  ;;  %519 = vst [vmem:[%s3756_s13 + $0x240] sm:$0xf] %v518_v16 }
  0x80   : > { %521 = vst [vmem:[%s3756_s13 + $0x244] sm:$0xf] %v520_v17  ;;  %v522_v18 = vld [vmem:[%s3752_s12 + $0x490] sm:$0xf]  ;;  %v524_v19 = vld [vmem:[%s3752_s12 + $0x498] sm:$0xf] }
  0x81   : > { %v526_v20 = vld [vmem:[%s3752_s12 + $0x4a0] sm:$0xf]  ;;  %523 = vst [vmem:[%s3756_s13 + $0x248] sm:$0xf] %v522_v18  ;;  %525 = vst [vmem:[%s3756_s13 + $0x24c] sm:$0xf] %v524_v19 }
  0x82   : > { %527 = vst [vmem:[%s3756_s13 + $0x250] sm:$0xf] %v526_v20  ;;  %v528_v21 = vld [vmem:[%s3752_s12 + $0x4a8] sm:$0xf]  ;;  %v530_v22 = vld [vmem:[%s3752_s12 + $0x4b0] sm:$0xf] }
  0x83   : > { %v532_v23 = vld [vmem:[%s3752_s12 + $0x4b8] sm:$0xf]  ;;  %529 = vst [vmem:[%s3756_s13 + $0x254] sm:$0xf] %v528_v21  ;;  %531 = vst [vmem:[%s3756_s13 + $0x258] sm:$0xf] %v530_v22 }
  0x84   : > { %533 = vst [vmem:[%s3756_s13 + $0x25c] sm:$0xf] %v532_v23  ;;  %v534_v24 = vld [vmem:[%s3752_s12 + $0x4c0] sm:$0xf]  ;;  %v536_v25 = vld [vmem:[%s3752_s12 + $0x4c8] sm:$0xf] }
  0x85   : > { %v538_v26 = vld [vmem:[%s3752_s12 + $0x4d0] sm:$0xf]  ;;  %535 = vst [vmem:[%s3756_s13 + $0x260] sm:$0xf] %v534_v24  ;;  %537 = vst [vmem:[%s3756_s13 + $0x264] sm:$0xf] %v536_v25 }
  0x86   : > { %539 = vst [vmem:[%s3756_s13 + $0x268] sm:$0xf] %v538_v26  ;;  %v540_v27 = vld [vmem:[%s3752_s12 + $0x4d8] sm:$0xf]  ;;  %v542_v28 = vld [vmem:[%s3752_s12 + $0x4e0] sm:$0xf] }
  0x87   : > { %v544_v29 = vld [vmem:[%s3752_s12 + $0x4e8] sm:$0xf]  ;;  %541 = vst [vmem:[%s3756_s13 + $0x26c] sm:$0xf] %v540_v27  ;;  %543 = vst [vmem:[%s3756_s13 + $0x270] sm:$0xf] %v542_v28 }
  0x88   : > { %545 = vst [vmem:[%s3756_s13 + $0x274] sm:$0xf] %v544_v29  ;;  %v546_v30 = vld [vmem:[%s3752_s12 + $0x4f0] sm:$0xf]  ;;  %v548_v31 = vld [vmem:[%s3752_s12 + $0x4f8] sm:$0xf] }
  0x89   : > { %v550_v32 = vld [vmem:[%s3752_s12 + $0x500] sm:$0xf]  ;;  %547 = vst [vmem:[%s3756_s13 + $0x278] sm:$0xf] %v546_v30  ;;  %549 = vst [vmem:[%s3756_s13 + $0x27c] sm:$0xf] %v548_v31 }
  0x8a   : > { %551 = vst [vmem:[%s3756_s13 + $0x280] sm:$0xf] %v550_v32  ;;  %v552_v33 = vld [vmem:[%s3752_s12 + $0x508] sm:$0xf]  ;;  %v554_v34 = vld [vmem:[%s3752_s12 + $0x510] sm:$0xf] }
  0x8b   : > { %v556_v35 = vld [vmem:[%s3752_s12 + $0x518] sm:$0xf]  ;;  %553 = vst [vmem:[%s3756_s13 + $0x284] sm:$0xf] %v552_v33  ;;  %555 = vst [vmem:[%s3756_s13 + $0x288] sm:$0xf] %v554_v34 }
  0x8c   : > { %557 = vst [vmem:[%s3756_s13 + $0x28c] sm:$0xf] %v556_v35  ;;  %v558_v36 = vld [vmem:[%s3752_s12 + $0x520] sm:$0xf]  ;;  %v560_v37 = vld [vmem:[%s3752_s12 + $0x528] sm:$0xf] }
  0x8d   : > { %v562_v38 = vld [vmem:[%s3752_s12 + $0x530] sm:$0xf]  ;;  %559 = vst [vmem:[%s3756_s13 + $0x290] sm:$0xf] %v558_v36  ;;  %561 = vst [vmem:[%s3756_s13 + $0x294] sm:$0xf] %v560_v37 }
  0x8e   : > { %563 = vst [vmem:[%s3756_s13 + $0x298] sm:$0xf] %v562_v38  ;;  %v564_v39 = vld [vmem:[%s3752_s12 + $0x538] sm:$0xf]  ;;  %v566_v40 = vld [vmem:[%s3752_s12 + $0x540] sm:$0xf] }
  0x8f   : > { %v568_v41 = vld [vmem:[%s3752_s12 + $0x548] sm:$0xf]  ;;  %565 = vst [vmem:[%s3756_s13 + $0x29c] sm:$0xf] %v564_v39  ;;  %567 = vst [vmem:[%s3756_s13 + $0x2a0] sm:$0xf] %v566_v40 }
  0x90   : > { %569 = vst [vmem:[%s3756_s13 + $0x2a4] sm:$0xf] %v568_v41  ;;  %v570_v42 = vld [vmem:[%s3752_s12 + $0x550] sm:$0xf]  ;;  %v572_v43 = vld [vmem:[%s3752_s12 + $0x558] sm:$0xf] }
  0x91   : > { %v574_v44 = vld [vmem:[%s3752_s12 + $0x560] sm:$0xf]  ;;  %571 = vst [vmem:[%s3756_s13 + $0x2a8] sm:$0xf] %v570_v42  ;;  %573 = vst [vmem:[%s3756_s13 + $0x2ac] sm:$0xf] %v572_v43 }
  0x92   : > { %575 = vst [vmem:[%s3756_s13 + $0x2b0] sm:$0xf] %v574_v44  ;;  %v576_v45 = vld [vmem:[%s3752_s12 + $0x568] sm:$0xf]  ;;  %v578_v46 = vld [vmem:[%s3752_s12 + $0x570] sm:$0xf] }
  0x93   : > { %v580_v47 = vld [vmem:[%s3752_s12 + $0x578] sm:$0xf]  ;;  %577 = vst [vmem:[%s3756_s13 + $0x2b4] sm:$0xf] %v576_v45  ;;  %579 = vst [vmem:[%s3756_s13 + $0x2b8] sm:$0xf] %v578_v46 }
  0x94   : > { %581 = vst [vmem:[%s3756_s13 + $0x2bc] sm:$0xf] %v580_v47  ;;  %v582_v48 = vld [vmem:[%s3752_s12 + $0x580] sm:$0xf]  ;;  %v584_v49 = vld [vmem:[%s3752_s12 + $0x588] sm:$0xf] }
  0x95   : > { %v586_v50 = vld [vmem:[%s3752_s12 + $0x590] sm:$0xf]  ;;  %583 = vst [vmem:[%s3756_s13 + $0x2c0] sm:$0xf] %v582_v48  ;;  %585 = vst [vmem:[%s3756_s13 + $0x2c4] sm:$0xf] %v584_v49 }
  0x96   : > { %587 = vst [vmem:[%s3756_s13 + $0x2c8] sm:$0xf] %v586_v50  ;;  %v588_v51 = vld [vmem:[%s3752_s12 + $0x598] sm:$0xf]  ;;  %v590_v52 = vld [vmem:[%s3752_s12 + $0x5a0] sm:$0xf] }
  0x97   : > { %v592_v53 = vld [vmem:[%s3752_s12 + $0x5a8] sm:$0xf]  ;;  %589 = vst [vmem:[%s3756_s13 + $0x2cc] sm:$0xf] %v588_v51  ;;  %591 = vst [vmem:[%s3756_s13 + $0x2d0] sm:$0xf] %v590_v52 }
  0x98   : > { %593 = vst [vmem:[%s3756_s13 + $0x2d4] sm:$0xf] %v592_v53  ;;  %v594_v54 = vld [vmem:[%s3752_s12 + $0x5b0] sm:$0xf]  ;;  %v596_v55 = vld [vmem:[%s3752_s12 + $0x5b8] sm:$0xf] }
  0x99   : > { %v598_v56 = vld [vmem:[%s3752_s12 + $0x5c0] sm:$0xf]  ;;  %595 = vst [vmem:[%s3756_s13 + $0x2d8] sm:$0xf] %v594_v54  ;;  %597 = vst [vmem:[%s3756_s13 + $0x2dc] sm:$0xf] %v596_v55 }
  0x9a   : > { %599 = vst [vmem:[%s3756_s13 + $0x2e0] sm:$0xf] %v598_v56  ;;  %v600_v57 = vld [vmem:[%s3752_s12 + $0x5c8] sm:$0xf]  ;;  %v602_v58 = vld [vmem:[%s3752_s12 + $0x5d0] sm:$0xf] }
  0x9b   : > { %v604_v59 = vld [vmem:[%s3752_s12 + $0x5d8] sm:$0xf]  ;;  %601 = vst [vmem:[%s3756_s13 + $0x2e4] sm:$0xf] %v600_v57  ;;  %603 = vst [vmem:[%s3756_s13 + $0x2e8] sm:$0xf] %v602_v58 }
  0x9c   : > { %605 = vst [vmem:[%s3756_s13 + $0x2ec] sm:$0xf] %v604_v59  ;;  %v606_v60 = vld [vmem:[%s3752_s12 + $0x5e0] sm:$0xf]  ;;  %v608_v61 = vld [vmem:[%s3752_s12 + $0x5e8] sm:$0xf] }
  0x9d   : > { %v610_v62 = vld [vmem:[%s3752_s12 + $0x5f0] sm:$0xf]  ;;  %607 = vst [vmem:[%s3756_s13 + $0x2f0] sm:$0xf] %v606_v60  ;;  %609 = vst [vmem:[%s3756_s13 + $0x2f4] sm:$0xf] %v608_v61 }
  0x9e   : > { %611 = vst [vmem:[%s3756_s13 + $0x2f8] sm:$0xf] %v610_v62  ;;  %v612_v63 = vld [vmem:[%s3752_s12 + $0x5f8] sm:$0xf]  ;;  %v614_v0 = vld [vmem:[%s3752_s12 + $0x600] sm:$0xf] }
  0x9f   : > { %v616_v1 = vld [vmem:[%s3752_s12 + $0x608] sm:$0xf]  ;;  %613 = vst [vmem:[%s3756_s13 + $0x2fc] sm:$0xf] %v612_v63  ;;  %615 = vst [vmem:[%s3756_s13 + $0x300] sm:$0xf] %v614_v0 }
  0xa0   : > { %617 = vst [vmem:[%s3756_s13 + $0x304] sm:$0xf] %v616_v1  ;;  %v618_v2 = vld [vmem:[%s3752_s12 + $0x610] sm:$0xf]  ;;  %v620_v3 = vld [vmem:[%s3752_s12 + $0x618] sm:$0xf] }
  0xa1   : > { %v622_v4 = vld [vmem:[%s3752_s12 + $0x620] sm:$0xf]  ;;  %619 = vst [vmem:[%s3756_s13 + $0x308] sm:$0xf] %v618_v2  ;;  %621 = vst [vmem:[%s3756_s13 + $0x30c] sm:$0xf] %v620_v3 }
  0xa2   : > { %623 = vst [vmem:[%s3756_s13 + $0x310] sm:$0xf] %v622_v4  ;;  %v624_v5 = vld [vmem:[%s3752_s12 + $0x628] sm:$0xf]  ;;  %v626_v6 = vld [vmem:[%s3752_s12 + $0x630] sm:$0xf] }
  0xa3   : > { %v628_v7 = vld [vmem:[%s3752_s12 + $0x638] sm:$0xf]  ;;  %625 = vst [vmem:[%s3756_s13 + $0x314] sm:$0xf] %v624_v5  ;;  %627 = vst [vmem:[%s3756_s13 + $0x318] sm:$0xf] %v626_v6 }
  0xa4   : > { %629 = vst [vmem:[%s3756_s13 + $0x31c] sm:$0xf] %v628_v7  ;;  %v630_v8 = vld [vmem:[%s3752_s12 + $0x640] sm:$0xf]  ;;  %v632_v9 = vld [vmem:[%s3752_s12 + $0x648] sm:$0xf] }
  0xa5   : > { %v634_v10 = vld [vmem:[%s3752_s12 + $0x650] sm:$0xf]  ;;  %631 = vst [vmem:[%s3756_s13 + $0x320] sm:$0xf] %v630_v8  ;;  %633 = vst [vmem:[%s3756_s13 + $0x324] sm:$0xf] %v632_v9 }
  0xa6   : > { %635 = vst [vmem:[%s3756_s13 + $0x328] sm:$0xf] %v634_v10  ;;  %v636_v11 = vld [vmem:[%s3752_s12 + $0x658] sm:$0xf]  ;;  %v638_v12 = vld [vmem:[%s3752_s12 + $0x660] sm:$0xf] }
  0xa7   : > { %v640_v13 = vld [vmem:[%s3752_s12 + $0x668] sm:$0xf]  ;;  %637 = vst [vmem:[%s3756_s13 + $0x32c] sm:$0xf] %v636_v11  ;;  %639 = vst [vmem:[%s3756_s13 + $0x330] sm:$0xf] %v638_v12 }
  0xa8   : > { %641 = vst [vmem:[%s3756_s13 + $0x334] sm:$0xf] %v640_v13  ;;  %v642_v14 = vld [vmem:[%s3752_s12 + $0x670] sm:$0xf]  ;;  %v644_v15 = vld [vmem:[%s3752_s12 + $0x678] sm:$0xf] }
  0xa9   : > { %v646_v16 = vld [vmem:[%s3752_s12 + $0x680] sm:$0xf]  ;;  %643 = vst [vmem:[%s3756_s13 + $0x338] sm:$0xf] %v642_v14  ;;  %645 = vst [vmem:[%s3756_s13 + $0x33c] sm:$0xf] %v644_v15 }
  0xaa   : > { %647 = vst [vmem:[%s3756_s13 + $0x340] sm:$0xf] %v646_v16  ;;  %v648_v17 = vld [vmem:[%s3752_s12 + $0x688] sm:$0xf]  ;;  %v650_v18 = vld [vmem:[%s3752_s12 + $0x690] sm:$0xf] }
  0xab   : > { %v652_v19 = vld [vmem:[%s3752_s12 + $0x698] sm:$0xf]  ;;  %649 = vst [vmem:[%s3756_s13 + $0x344] sm:$0xf] %v648_v17  ;;  %651 = vst [vmem:[%s3756_s13 + $0x348] sm:$0xf] %v650_v18 }
  0xac   : > { %653 = vst [vmem:[%s3756_s13 + $0x34c] sm:$0xf] %v652_v19  ;;  %v654_v20 = vld [vmem:[%s3752_s12 + $0x6a0] sm:$0xf]  ;;  %v656_v21 = vld [vmem:[%s3752_s12 + $0x6a8] sm:$0xf] }
  0xad   : > { %v658_v22 = vld [vmem:[%s3752_s12 + $0x6b0] sm:$0xf]  ;;  %655 = vst [vmem:[%s3756_s13 + $0x350] sm:$0xf] %v654_v20  ;;  %657 = vst [vmem:[%s3756_s13 + $0x354] sm:$0xf] %v656_v21 }
  0xae   : > { %659 = vst [vmem:[%s3756_s13 + $0x358] sm:$0xf] %v658_v22  ;;  %v660_v23 = vld [vmem:[%s3752_s12 + $0x6b8] sm:$0xf]  ;;  %v662_v24 = vld [vmem:[%s3752_s12 + $0x6c0] sm:$0xf] }
  0xaf   : > { %v664_v25 = vld [vmem:[%s3752_s12 + $0x6c8] sm:$0xf]  ;;  %661 = vst [vmem:[%s3756_s13 + $0x35c] sm:$0xf] %v660_v23  ;;  %663 = vst [vmem:[%s3756_s13 + $0x360] sm:$0xf] %v662_v24 }
  0xb0   : > { %665 = vst [vmem:[%s3756_s13 + $0x364] sm:$0xf] %v664_v25  ;;  %v666_v26 = vld [vmem:[%s3752_s12 + $0x6d0] sm:$0xf]  ;;  %v668_v27 = vld [vmem:[%s3752_s12 + $0x6d8] sm:$0xf] }
  0xb1   : > { %v670_v28 = vld [vmem:[%s3752_s12 + $0x6e0] sm:$0xf]  ;;  %667 = vst [vmem:[%s3756_s13 + $0x368] sm:$0xf] %v666_v26  ;;  %669 = vst [vmem:[%s3756_s13 + $0x36c] sm:$0xf] %v668_v27 }
  0xb2   : > { %671 = vst [vmem:[%s3756_s13 + $0x370] sm:$0xf] %v670_v28  ;;  %v672_v29 = vld [vmem:[%s3752_s12 + $0x6e8] sm:$0xf]  ;;  %v674_v30 = vld [vmem:[%s3752_s12 + $0x6f0] sm:$0xf] }
  0xb3   : > { %v676_v31 = vld [vmem:[%s3752_s12 + $0x6f8] sm:$0xf]  ;;  %673 = vst [vmem:[%s3756_s13 + $0x374] sm:$0xf] %v672_v29  ;;  %675 = vst [vmem:[%s3756_s13 + $0x378] sm:$0xf] %v674_v30 }
  0xb4   : > { %677 = vst [vmem:[%s3756_s13 + $0x37c] sm:$0xf] %v676_v31  ;;  %v678_v32 = vld [vmem:[%s3752_s12 + $0x700] sm:$0xf]  ;;  %v680_v33 = vld [vmem:[%s3752_s12 + $0x708] sm:$0xf] }
  0xb5   : > { %v682_v34 = vld [vmem:[%s3752_s12 + $0x710] sm:$0xf]  ;;  %679 = vst [vmem:[%s3756_s13 + $0x380] sm:$0xf] %v678_v32  ;;  %681 = vst [vmem:[%s3756_s13 + $0x384] sm:$0xf] %v680_v33 }
  0xb6   : > { %683 = vst [vmem:[%s3756_s13 + $0x388] sm:$0xf] %v682_v34  ;;  %v684_v35 = vld [vmem:[%s3752_s12 + $0x718] sm:$0xf]  ;;  %v686_v36 = vld [vmem:[%s3752_s12 + $0x720] sm:$0xf] }
  0xb7   : > { %v688_v37 = vld [vmem:[%s3752_s12 + $0x728] sm:$0xf]  ;;  %685 = vst [vmem:[%s3756_s13 + $0x38c] sm:$0xf] %v684_v35  ;;  %687 = vst [vmem:[%s3756_s13 + $0x390] sm:$0xf] %v686_v36 }
  0xb8   : > { %689 = vst [vmem:[%s3756_s13 + $0x394] sm:$0xf] %v688_v37  ;;  %v690_v38 = vld [vmem:[%s3752_s12 + $0x730] sm:$0xf]  ;;  %v692_v39 = vld [vmem:[%s3752_s12 + $0x738] sm:$0xf] }
  0xb9   : > { %v694_v40 = vld [vmem:[%s3752_s12 + $0x740] sm:$0xf]  ;;  %691 = vst [vmem:[%s3756_s13 + $0x398] sm:$0xf] %v690_v38  ;;  %693 = vst [vmem:[%s3756_s13 + $0x39c] sm:$0xf] %v692_v39 }
  0xba   : > { %695 = vst [vmem:[%s3756_s13 + $0x3a0] sm:$0xf] %v694_v40  ;;  %v696_v41 = vld [vmem:[%s3752_s12 + $0x748] sm:$0xf]  ;;  %v698_v42 = vld [vmem:[%s3752_s12 + $0x750] sm:$0xf] }
  0xbb   : > { %v700_v43 = vld [vmem:[%s3752_s12 + $0x758] sm:$0xf]  ;;  %697 = vst [vmem:[%s3756_s13 + $0x3a4] sm:$0xf] %v696_v41  ;;  %699 = vst [vmem:[%s3756_s13 + $0x3a8] sm:$0xf] %v698_v42 }
  0xbc   : > { %701 = vst [vmem:[%s3756_s13 + $0x3ac] sm:$0xf] %v700_v43  ;;  %v702_v44 = vld [vmem:[%s3752_s12 + $0x760] sm:$0xf]  ;;  %v704_v45 = vld [vmem:[%s3752_s12 + $0x768] sm:$0xf] }
  0xbd   : > { %v706_v46 = vld [vmem:[%s3752_s12 + $0x770] sm:$0xf]  ;;  %703 = vst [vmem:[%s3756_s13 + $0x3b0] sm:$0xf] %v702_v44  ;;  %705 = vst [vmem:[%s3756_s13 + $0x3b4] sm:$0xf] %v704_v45 }
  0xbe   : > { %707 = vst [vmem:[%s3756_s13 + $0x3b8] sm:$0xf] %v706_v46  ;;  %v708_v47 = vld [vmem:[%s3752_s12 + $0x778] sm:$0xf]  ;;  %v710_v48 = vld [vmem:[%s3752_s12 + $0x780] sm:$0xf] }
  0xbf   : > { %v712_v49 = vld [vmem:[%s3752_s12 + $0x788] sm:$0xf]  ;;  %709 = vst [vmem:[%s3756_s13 + $0x3bc] sm:$0xf] %v708_v47  ;;  %711 = vst [vmem:[%s3756_s13 + $0x3c0] sm:$0xf] %v710_v48 }
  0xc0   : > { %713 = vst [vmem:[%s3756_s13 + $0x3c4] sm:$0xf] %v712_v49  ;;  %v714_v50 = vld [vmem:[%s3752_s12 + $0x790] sm:$0xf]  ;;  %v716_v51 = vld [vmem:[%s3752_s12 + $0x798] sm:$0xf] }
  0xc1   : > { %v718_v52 = vld [vmem:[%s3752_s12 + $0x7a0] sm:$0xf]  ;;  %715 = vst [vmem:[%s3756_s13 + $0x3c8] sm:$0xf] %v714_v50  ;;  %717 = vst [vmem:[%s3756_s13 + $0x3cc] sm:$0xf] %v716_v51 }
  0xc2   : > { %719 = vst [vmem:[%s3756_s13 + $0x3d0] sm:$0xf] %v718_v52  ;;  %v720_v53 = vld [vmem:[%s3752_s12 + $0x7a8] sm:$0xf]  ;;  %v722_v54 = vld [vmem:[%s3752_s12 + $0x7b0] sm:$0xf] }
  0xc3   : > { %v724_v55 = vld [vmem:[%s3752_s12 + $0x7b8] sm:$0xf]  ;;  %721 = vst [vmem:[%s3756_s13 + $0x3d4] sm:$0xf] %v720_v53  ;;  %723 = vst [vmem:[%s3756_s13 + $0x3d8] sm:$0xf] %v722_v54 }
  0xc4   : > { %725 = vst [vmem:[%s3756_s13 + $0x3dc] sm:$0xf] %v724_v55  ;;  %v726_v56 = vld [vmem:[%s3752_s12 + $0x7c0] sm:$0xf]  ;;  %v728_v57 = vld [vmem:[%s3752_s12 + $0x7c8] sm:$0xf] }
  0xc5   : > { %v730_v58 = vld [vmem:[%s3752_s12 + $0x7d0] sm:$0xf]  ;;  %727 = vst [vmem:[%s3756_s13 + $0x3e0] sm:$0xf] %v726_v56  ;;  %729 = vst [vmem:[%s3756_s13 + $0x3e4] sm:$0xf] %v728_v57 }
  0xc6   : > { %731 = vst [vmem:[%s3756_s13 + $0x3e8] sm:$0xf] %v730_v58  ;;  %v732_v59 = vld [vmem:[%s3752_s12 + $0x7d8] sm:$0xf]  ;;  %v734_v60 = vld [vmem:[%s3752_s12 + $0x7e0] sm:$0xf] }
  0xc7   : > { %v736_v61 = vld [vmem:[%s3752_s12 + $0x7e8] sm:$0xf]  ;;  %733 = vst [vmem:[%s3756_s13 + $0x3ec] sm:$0xf] %v732_v59  ;;  %735 = vst [vmem:[%s3756_s13 + $0x3f0] sm:$0xf] %v734_v60 }
  0xc8   : > { %737 = vst [vmem:[%s3756_s13 + $0x3f4] sm:$0xf] %v736_v61  ;;  %v738_v62 = vld [vmem:[%s3752_s12 + $0x7f0] sm:$0xf]  ;;  %v740_v63 = vld [vmem:[%s3752_s12 + $0x7f8] sm:$0xf] }
  0xc9   : > { %739 = vst [vmem:[%s3756_s13 + $0x3f8] sm:$0xf] %v738_v62  ;;  %741 = vst [vmem:[%s3756_s13 + $0x3fc] sm:$0xf] %v740_v63 }
  0xca PF: > { %p3047_p9 = scmp.ge.s32.totalorder %s3657_s24, 1  ;;  %p1293_p10 = scmp.lt.s32.totalorder %s3657_s24, 9 }
  0xcc   : > { %p1294_p11 = pnand %p3047_p9, %p1293_p10 }
  0xcd   : > { %s1300_s14 = sand.u32 (!%p1294_p11), 1, %s3633_s18   ;;  %p1340_p12 = scmp.lt.s32.totalorder (!%p1294_p11), %s3641_s20, 3 }
  0xce   : > { %1297 = sbr.rel (%p1294_p11) target bundleno = 640 (0x280), region = 77  ;;  %s3048_s15 = sshll.u32 (!%p1294_p11), %s1300_s14, 10 }
  0xcf   : > { %s3049_s16 = sshll.u32 (!%p1294_p11), %s1300_s14, 4  ;;  %p1345_p13 = scmp.lt.s32.totalorder (!%p1294_p11), %s3645_s21, 1 }
  0xd0   : > { %s4294_s29 = scalar_lea.vmem (!%p1294_p11), [#allocation5], %s3048_s15  ;;  %p3052_p0 = scmp.ne.s32.totalorder (!%p1294_p11), %s3641_s20, 0 }
  0xd5   : > { %s1341_s17 = scalar_select %p1340_p12, %s3641_s20, 3 }
  0xd6   : > { %s4280_s8 = scalar_select %p1345_p13, %s3645_s21, 1 }
  0xd7   : > { %s3208_s27 = sshll.u32 %s1341_s17, 6  ;;  %1358 = sbr.rel (%p3052_p0) target bundleno = 222 (0xde), region = 85  ;;  %v3659_v0 = vmov (!%p3052_p0), 0.0  }
  0xd8   : > { %s4277_s7 = scalar_lea.vmem %s4485_s0, %s3208_s27  ;;  %s1347_s18 = scalar_lea.vmem %s4487_s2, %s4280_s8  ;;  %1359 = vst [vmem:[#allocation3] sm:$0x1] (!%p3052_p0), %v3659_v0  ;;  %1360 = vst [vmem:[#allocation4] sm:$0x1] (!%p3052_p0), %v3659_v0 }
  0xd9   : > { %s1350_s13 = scalar_lea.vmem %s4488_s3, %s4280_s8  ;;  %s1353_s1 = scalar_lea.vmem %s4489_s4, %s4280_s8 }
  0xda   : > { %s4296_s27 = scalar_lea.vmem [#allocation6], %s3049_s16 }
  0xde PF: > { %v3457_v1 = vld [vmem:[%s4294_s29 + $0x40] sm:$0xff]   ;;  %v3461_v5 = vld [vmem:[%s4294_s29 + $0x48] sm:$0xff]   ;;  %v3465_v9 = vld [vmem:[%s4294_s29 + $0x50] sm:$0xff]   ;;  %s3198_s30 = sshll.u32 %s3641_s20, 3  ;;  %p3199_p1 = scmp.ne.s32.totalorder %s3641_s20, 3 }
  0xdf   : > { %v3458_v2 = vld [vmem:[%s4294_s29 + $0xc0] sm:$0xff]   ;;  %3224 = vmatprep.subr.bf16.mxu0 %v3457_v1  ;;  %v3462_v6 = vld [vmem:[%s4294_s29 + $0xc8] sm:$0xff]   ;;  %v3466_v10 = vld [vmem:[%s4294_s29 + $0xd0] sm:$0xff]  }
  0xe0   : > { %v3459_v3 = vld [vmem:[%s4294_s29] sm:$0xff]   ;;  %3246 = vmatprep.subr.bf16.mxu1 %v3458_v2  ;;  %v3463_v7 = vld [vmem:[%s4294_s29 + $0x8] sm:$0xff]   ;;  %v3467_v11 = vld [vmem:[%s4294_s29 + $0x10] sm:$0xff]  }
  0xe1   : > { %v3460_v4 = vld [vmem:[%s4294_s29 + $0x80] sm:$0xff]   ;;  %3225 = vmatpush3.bf16.msra.mxu0 %v3459_v3  ;;  %v3464_v8 = vld [vmem:[%s4294_s29 + $0x88] sm:$0xff]   ;;  %v3468_v12 = vld [vmem:[%s4294_s29 + $0x90] sm:$0xff]  }
  0xe2   : > { %3247 = vmatpush3.bf16.msra.mxu1 %v3460_v4  ;;  %3226 = vmatprep.subr.bf16.mxu0 %v3461_v5  ;;  %v3469_v13 = vld [vmem:[%s4294_s29 + $0x58] sm:$0xff]   ;;  %v3473_v17 = vld [vmem:[%s4294_s29 + $0x60] sm:$0xff]   ;;  %v3477_v21 = vld [vmem:[%s4294_s29 + $0x68] sm:$0xff]  }
  0xe3   : > { %3248 = vmatprep.subr.bf16.mxu1 %v3462_v6  ;;  %v3470_v14 = vld [vmem:[%s4294_s29 + $0xd8] sm:$0xff]   ;;  %v3474_v18 = vld [vmem:[%s4294_s29 + $0xe0] sm:$0xff]   ;;  %v3478_v22 = vld [vmem:[%s4294_s29 + $0xe8] sm:$0xff]  }
  0xe4   : > { %v3471_v15 = vld [vmem:[%s4294_s29 + $0x18] sm:$0xff]   ;;  %v3475_v19 = vld [vmem:[%s4294_s29 + $0x20] sm:$0xff]   ;;  %v3479_v23 = vld [vmem:[%s4294_s29 + $0x28] sm:$0xff]  }
  0xe5   : > { %3227 = vmatpush3.bf16.msra.mxu0 %v3463_v7  ;;  %v3472_v16 = vld [vmem:[%s4294_s29 + $0x98] sm:$0xff]   ;;  %v3476_v20 = vld [vmem:[%s4294_s29 + $0xa0] sm:$0xff]   ;;  %v3480_v24 = vld [vmem:[%s4294_s29 + $0xa8] sm:$0xff]  }
  0xe6   : > { %3249 = vmatpush3.bf16.msra.mxu1 %v3464_v8  ;;  %3228 = vmatprep.subr.bf16.mxu0 %v3465_v9  ;;  %v3481_v25 = vld [vmem:[%s4294_s29 + $0x70] sm:$0xff]   ;;  %v3485_v29 = vld [vmem:[%s4294_s29 + $0x78] sm:$0xff]   ;;  %v1362_v34 = vld [vmem:[%s4277_s7 + $0x8] sm:$0xff] }
  0xe7   : > { %3250 = vmatprep.subr.bf16.mxu1 %v3466_v10  ;;  %v3482_v26 = vld [vmem:[%s4294_s29 + $0xf0] sm:$0xff]   ;;  %v3486_v30 = vld [vmem:[%s4294_s29 + $0xf8] sm:$0xff]   ;;  %v3056_v37 = vcombine.low %v1362_v34, %v1362_v34  ;;  %v3057_v38 = vcombine.high %v1362_v34, %v1362_v34  ;;  %v3493_v39 = vld [vmem:[%s4294_s29 + $0x140] sm:$0xff]  }
  0xe8   : > { %v3483_v27 = vld [vmem:[%s4294_s29 + $0x30] sm:$0xff]   ;;  %v3487_v31 = vld [vmem:[%s4294_s29 + $0x38] sm:$0xff]   ;;  %v3494_v40 = vld [vmem:[%s4294_s29 + $0x1c0] sm:$0xff]  }
  0xe9   : > { %3229 = vmatpush3.bf16.msra.mxu0 %v3467_v11  ;;  %v3484_v28 = vld [vmem:[%s4294_s29 + $0xb0] sm:$0xff]   ;;  %v3488_v32 = vld [vmem:[%s4294_s29 + $0xb8] sm:$0xff]   ;;  %2528 = vmatprep.mubr.bf16.mxu1 %v3057_v38  ;;  %v3495_v41 = vld [vmem:[%s4294_s29 + $0x100] sm:$0xff]  }
  0xea   : > { %3251 = vmatpush3.bf16.msra.mxu1 %v3468_v12  ;;  %3230 = vmatprep.subr.bf16.mxu0 %v3469_v13  ;;  %v1361_v33 = vld [vmem:[%s4277_s7] sm:$0xff]  ;;  %v3497_v43 = vld [vmem:[%s4294_s29 + $0x148] sm:$0xff]   ;;  %v3501_v47 = vld [vmem:[%s4294_s29 + $0x150] sm:$0xff]  }
  0xeb   : > { %3252 = vmatprep.subr.bf16.mxu1 %v3470_v14  ;;  %v3054_v35 = vcombine.low %v1361_v33, %v1361_v33  ;;  %v3055_v36 = vcombine.high %v1361_v33, %v1361_v33  ;;  %v3496_v42 = vld [vmem:[%s4294_s29 + $0x180] sm:$0xff]   ;;  %v3498_v44 = vld [vmem:[%s4294_s29 + $0x1c8] sm:$0xff]   ;;  %v3502_v48 = vld [vmem:[%s4294_s29 + $0x1d0] sm:$0xff]  }
  0xec   : > { %v3499_v45 = vld [vmem:[%s4294_s29 + $0x108] sm:$0xff]   ;;  %v3503_v49 = vld [vmem:[%s4294_s29 + $0x110] sm:$0xff]   ;;  %v3505_v51 = vld [vmem:[%s4294_s29 + $0x158] sm:$0xff]  }
  0xed   : > { %3231 = vmatpush3.bf16.msra.mxu0 %v3471_v15  ;;  %2488 = vmatprep.mubr.bf16.mxu0 %v3055_v36  ;;  %v3500_v46 = vld [vmem:[%s4294_s29 + $0x188] sm:$0xff]   ;;  %v3504_v50 = vld [vmem:[%s4294_s29 + $0x190] sm:$0xff]   ;;  %v3506_v52 = vld [vmem:[%s4294_s29 + $0x1d8] sm:$0xff]  }
  0xee   : > { %3253 = vmatpush3.bf16.msra.mxu1 %v3472_v16  ;;  %3232 = vmatprep.subr.bf16.mxu0 %v3473_v17  ;;  %v3507_v53 = vld [vmem:[%s4294_s29 + $0x118] sm:$0xff]   ;;  %v3509_v55 = vld [vmem:[%s4294_s29 + $0x160] sm:$0xff]   ;;  %v3513_v59 = vld [vmem:[%s4294_s29 + $0x168] sm:$0xff]  }
  0xef   : > { %3254 = vmatprep.subr.bf16.mxu1 %v3474_v18  ;;  %v3508_v54 = vld [vmem:[%s4294_s29 + $0x198] sm:$0xff]   ;;  %v3510_v56 = vld [vmem:[%s4294_s29 + $0x1e0] sm:$0xff]   ;;  %v3514_v60 = vld [vmem:[%s4294_s29 + $0x1e8] sm:$0xff]  }
  0xf0   : > { %v3511_v57 = vld [vmem:[%s4294_s29 + $0x120] sm:$0xff]   ;;  %v3515_v61 = vld [vmem:[%s4294_s29 + $0x128] sm:$0xff]   ;;  %v3517_v63 = vld [vmem:[%s4294_s29 + $0x170] sm:$0xff]  }
  0xf1   : > { %3233 = vmatpush3.bf16.msra.mxu0 %v3475_v19  ;;  %v3512_v58 = vld [vmem:[%s4294_s29 + $0x1a0] sm:$0xff]   ;;  %v3516_v62 = vld [vmem:[%s4294_s29 + $0x1a8] sm:$0xff]   ;;  %v3518_v0 = vld [vmem:[%s4294_s29 + $0x1f0] sm:$0xff]  }
  0xf2   : > { %3255 = vmatpush3.bf16.msra.mxu1 %v3476_v20  ;;  %3234 = vmatprep.subr.bf16.mxu0 %v3477_v21  ;;  %v3519_v1 = vld [vmem:[%s4294_s29 + $0x130] sm:$0xff]   ;;  %v3521_v3 = vld [vmem:[%s4294_s29 + $0x178] sm:$0xff]   ;;  %v3529_v13 = vld [vmem:[%s4294_s29 + $0x240] sm:$0xff]  }
  0xf3   : > { %3256 = vmatprep.subr.bf16.mxu1 %v3478_v22  ;;  %v3520_v2 = vld [vmem:[%s4294_s29 + $0x1b0] sm:$0xff]   ;;  %v3522_v4 = vld [vmem:[%s4294_s29 + $0x1f8] sm:$0xff]   ;;  %v3530_v14 = vld [vmem:[%s4294_s29 + $0x2c0] sm:$0xff]  }
  0xf4   : > { %v3523_v5 = vld [vmem:[%s4294_s29 + $0x138] sm:$0xff]   ;;  %v1363_v7 = vld [vmem:[%s4277_s7 + $0x10] sm:$0xff]  ;;  %v3531_v15 = vld [vmem:[%s4294_s29 + $0x200] sm:$0xff]  }
  0xf5   : > { %3235 = vmatpush3.bf16.msra.mxu0 %v3479_v23  ;;  %v3524_v6 = vld [vmem:[%s4294_s29 + $0x1b8] sm:$0xff]   ;;  %v3058_v8 = vcombine.low %v1363_v7, %v1363_v7  ;;  %v3059_v9 = vcombine.high %v1363_v7, %v1363_v7  ;;  %v3532_v16 = vld [vmem:[%s4294_s29 + $0x280] sm:$0xff]   ;;  %v3533_v17 = vld [vmem:[%s4294_s29 + $0x248] sm:$0xff]  }
  0xf6   : > { %3257 = vmatpush3.bf16.msra.mxu1 %v3480_v24  ;;  %3236 = vmatprep.subr.bf16.mxu0 %v3481_v25  ;;  %v1364_v10 = vld [vmem:[%s4277_s7 + $0x18] sm:$0xff]  ;;  %v3534_v18 = vld [vmem:[%s4294_s29 + $0x2c8] sm:$0xff]  }
  0xf7   : > { %3258 = vmatprep.subr.bf16.mxu1 %v3482_v26  ;;  %v3060_v11 = vcombine.low %v1364_v10, %v1364_v10  ;;  %v3061_v12 = vcombine.high %v1364_v10, %v1364_v10  ;;  %v3535_v19 = vld [vmem:[%s4294_s29 + $0x208] sm:$0xff]   ;;  %v3537_v21 = vld [vmem:[%s4294_s29 + $0x250] sm:$0xff]   ;;  %v3541_v25 = vld [vmem:[%s4294_s29 + $0x258] sm:$0xff]  }
  0xf8   : > { %v3536_v20 = vld [vmem:[%s4294_s29 + $0x288] sm:$0xff]   ;;  %v3538_v22 = vld [vmem:[%s4294_s29 + $0x2d0] sm:$0xff]   ;;  %v3542_v26 = vld [vmem:[%s4294_s29 + $0x2d8] sm:$0xff]  }
  0xf9   : > { %3237 = vmatpush3.bf16.msra.mxu0 %v3483_v27  ;;  %v3539_v23 = vld [vmem:[%s4294_s29 + $0x210] sm:$0xff]   ;;  %v3543_v27 = vld [vmem:[%s4294_s29 + $0x218] sm:$0xff]   ;;  %v3549_v33 = vld [vmem:[%s4294_s29 + $0x268] sm:$0xff]  }
  0xfa   : > { %3259 = vmatpush3.bf16.msra.mxu1 %v3484_v28  ;;  %3238 = vmatprep.subr.bf16.mxu0 %v3485_v29  ;;  %v3540_v24 = vld [vmem:[%s4294_s29 + $0x290] sm:$0xff]   ;;  %v3544_v28 = vld [vmem:[%s4294_s29 + $0x298] sm:$0xff]   ;;  %v3545_v29 = vld [vmem:[%s4294_s29 + $0x260] sm:$0xff]  }
  0xfb   : > { %3260 = vmatprep.subr.bf16.mxu1 %v3486_v30  ;;  %v3546_v30 = vld [vmem:[%s4294_s29 + $0x2e0] sm:$0xff]   ;;  %v3550_v34 = vld [vmem:[%s4294_s29 + $0x2e8] sm:$0xff]   ;;  %v3554_v38 = vld [vmem:[%s4294_s29 + $0x2f0] sm:$0xff]  }
  0xfc   : > { %v3552_v36 = vld [vmem:[%s4294_s29 + $0x2a8] sm:$0xff]  }
  0xfd   : > { %3239 = vmatpush3.bf16.msra.mxu0 %v3487_v31  ;;  %v3547_v31 = vld [vmem:[%s4294_s29 + $0x220] sm:$0xff]   ;;  %v3585_v7 = vld [vmem:[%s4294_s29 + $0x368] sm:$0xff]  }
  0xfe   : > { %3261 = vmatpush3.bf16.msra.mxu1 %v3488_v32  ;;  %3268 = vmatprep.subr.bf16.mxu0 %v3493_v39  ;;  %v3548_v32 = vld [vmem:[%s4294_s29 + $0x2a0] sm:$0xff]   ;;  %v3555_v39 = vld [vmem:[%s4294_s29 + $0x230] sm:$0xff]   ;;  %v3588_v10 = vld [vmem:[%s4294_s29 + $0x3a8] sm:$0xff]  }
  0xff   : > { %3290 = vmatprep.subr.bf16.mxu1 %v3494_v40  ;;  %v3556_v40 = vld [vmem:[%s4294_s29 + $0x2b0] sm:$0xff]  }
 0x100   : > { %2489 = vmatmul.mubr.bf16.vlgmr.msra.gmra.mrb[0].mxu0 %v3054_v35  ;;  %v3551_v35 = vld [vmem:[%s4294_s29 + $0x228] sm:$0xff]  }
 0x101   : > { %2529 = vmatmul.mubr.bf16.vlgmr.msra.gmra.mrb[0].mxu1 %v3056_v37  ;;  %3269 = vmatpush3.bf16.msra.mxu0 %v3495_v41  ;;  %v3553_v37 = vld [vmem:[%s4294_s29 + $0x270] sm:$0xff]   ;;  %v3557_v41 = vld [vmem:[%s4294_s29 + $0x278] sm:$0xff]  }
 0x102   : > { %3291 = vmatpush3.bf16.msra.mxu1 %v3496_v42  ;;  %3270 = vmatprep.subr.bf16.mxu0 %v3497_v43  ;;  %v3558_v42 = vld [vmem:[%s4294_s29 + $0x2f8] sm:$0xff]  }
 0x103   : > { %3292 = vmatprep.subr.bf16.mxu1 %v3498_v44  ;;  %2568 = vmatprep.mubr.bf16.mxu0 %v3059_v9  ;;  %v3559_v43 = vld [vmem:[%s4294_s29 + $0x238] sm:$0xff]   ;;  %v3587_v9 = vld [vmem:[%s4294_s29 + $0x328] sm:$0xff]  }
 0x104   : > { %2608 = vmatprep.mubr.bf16.mxu1 %v3061_v12  ;;  %v3560_v44 = vld [vmem:[%s4294_s29 + $0x2b8] sm:$0xff]   ;;  %v3590_v12 = vld [vmem:[%s4294_s29 + $0x3f0] sm:$0xff]  }
 0x105   : > { %3271 = vmatpush3.bf16.msra.mxu0 %v3499_v45  ;;  %v1365_v45 = vld [vmem:[%s4277_s7 + $0x20] sm:$0xff] }
 0x106   : > { %3293 = vmatpush3.bf16.msra.mxu1 %v3500_v46  ;;  %3272 = vmatprep.subr.bf16.mxu0 %v3501_v47  ;;  %v1366_v46 = vld [vmem:[%s4277_s7 + $0x28] sm:$0xff]  ;;  %v3062_v47 = vcombine.low %v1365_v45, %v1365_v45 }
 0x107   : > { %3294 = vmatprep.subr.bf16.mxu1 %v3502_v48  ;;  %v3063_v48 = vcombine.high %v1365_v45, %v1365_v45 }
 0x109   : > { %3273 = vmatpush3.bf16.msra.mxu0 %v3503_v49  ;;  %v3064_v49 = vcombine.low %v1366_v46, %v1366_v46 }
 0x10a   : > { %3295 = vmatpush3.bf16.msra.mxu1 %v3504_v50  ;;  %3274 = vmatprep.subr.bf16.mxu0 %v3505_v51  ;;  %v3065_v50 = vcombine.high %v1366_v46, %v1366_v46  ;;  %v3565_v51 = vld [vmem:[%s4294_s29 + $0x340] sm:$0xff]  }
 0x10b   : > { %3296 = vmatprep.subr.bf16.mxu1 %v3506_v52  ;;  %v3566_v52 = vld [vmem:[%s4294_s29 + $0x3c0] sm:$0xff]  }
 0x10d   : > { %3275 = vmatpush3.bf16.msra.mxu0 %v3507_v53  ;;  %v3567_v53 = vld [vmem:[%s4294_s29 + $0x300] sm:$0xff]  }
 0x10e   : > { %3297 = vmatpush3.bf16.msra.mxu1 %v3508_v54  ;;  %3276 = vmatprep.subr.bf16.mxu0 %v3509_v55  ;;  %v3568_v54 = vld [vmem:[%s4294_s29 + $0x380] sm:$0xff]   ;;  %v3569_v55 = vld [vmem:[%s4294_s29 + $0x348] sm:$0xff]  }
 0x10f   : > { %3298 = vmatprep.subr.bf16.mxu1 %v3510_v56  ;;  %v3570_v56 = vld [vmem:[%s4294_s29 + $0x3c8] sm:$0xff]  }
 0x111   : > { %3277 = vmatpush3.bf16.msra.mxu0 %v3511_v57  ;;  %v3571_v57 = vld [vmem:[%s4294_s29 + $0x308] sm:$0xff]  }
 0x112   : > { %3299 = vmatpush3.bf16.msra.mxu1 %v3512_v58  ;;  %3278 = vmatprep.subr.bf16.mxu0 %v3513_v59  ;;  %v3572_v58 = vld [vmem:[%s4294_s29 + $0x388] sm:$0xff]   ;;  %v3573_v59 = vld [vmem:[%s4294_s29 + $0x350] sm:$0xff]  }
 0x113   : > { %3300 = vmatprep.subr.bf16.mxu1 %v3514_v60  ;;  %v3574_v60 = vld [vmem:[%s4294_s29 + $0x3d0] sm:$0xff]  }
 0x115   : > { %3279 = vmatpush3.bf16.msra.mxu0 %v3515_v61  ;;  %v3575_v61 = vld [vmem:[%s4294_s29 + $0x310] sm:$0xff]  }
 0x116   : > { %3301 = vmatpush3.bf16.msra.mxu1 %v3516_v62  ;;  %3280 = vmatprep.subr.bf16.mxu0 %v3517_v63  ;;  %v3576_v62 = vld [vmem:[%s4294_s29 + $0x390] sm:$0xff]   ;;  %v3577_v63 = vld [vmem:[%s4294_s29 + $0x358] sm:$0xff]  }
 0x117   : > { %3302 = vmatprep.subr.bf16.mxu1 %v3518_v0  ;;  %v3578_v0 = vld [vmem:[%s4294_s29 + $0x3d8] sm:$0xff]  }
 0x119   : > { %3281 = vmatpush3.bf16.msra.mxu0 %v3519_v1  ;;  %v3579_v1 = vld [vmem:[%s4294_s29 + $0x318] sm:$0xff]  }
 0x11a   : > { %3303 = vmatpush3.bf16.msra.mxu1 %v3520_v2  ;;  %3282 = vmatprep.subr.bf16.mxu0 %v3521_v3  ;;  %v3580_v2 = vld [vmem:[%s4294_s29 + $0x398] sm:$0xff]   ;;  %v3581_v3 = vld [vmem:[%s4294_s29 + $0x360] sm:$0xff]  }
 0x11b   : > { %3304 = vmatprep.subr.bf16.mxu1 %v3522_v4  ;;  %v3582_v4 = vld [vmem:[%s4294_s29 + $0x3e0] sm:$0xff]  }
 0x11d   : > { %3283 = vmatpush3.bf16.msra.mxu0 %v3523_v5  ;;  %v3583_v5 = vld [vmem:[%s4294_s29 + $0x320] sm:$0xff]  }
 0x11e   : > { %3305 = vmatpush3.bf16.msra.mxu1 %v3524_v6  ;;  %3312 = vmatprep.subr.bf16.mxu0 %v3529_v13  ;;  %v3584_v6 = vld [vmem:[%s4294_s29 + $0x3a0] sm:$0xff]   ;;  %v3591_v13 = vld [vmem:[%s4294_s29 + $0x330] sm:$0xff]  }
 0x11f   : > { %3334 = vmatprep.subr.bf16.mxu1 %v3530_v14  ;;  %v3592_v14 = vld [vmem:[%s4294_s29 + $0x3b0] sm:$0xff]  }
 0x120   : > { %2569 = vmatmul.mubr.bf16.vlgmr.msra.gmra.mrb[4].mxu0 %v3058_v8  ;;  %v3586_v8 = vld [vmem:[%s4294_s29 + $0x3e8] sm:$0xff]  }
 0x121   : > { %2609 = vmatmul.mubr.bf16.vlgmr.msra.gmra.mrb[4].mxu1 %v3060_v11  ;;  %3313 = vmatpush3.bf16.msra.mxu0 %v3531_v15  ;;  %v3589_v11 = vld [vmem:[%s4294_s29 + $0x370] sm:$0xff]   ;;  %v3593_v15 = vld [vmem:[%s4294_s29 + $0x378] sm:$0xff]  }
 0x122   : > { %3335 = vmatpush3.bf16.msra.mxu1 %v3532_v16  ;;  %3314 = vmatprep.subr.bf16.mxu0 %v3533_v17  ;;  %v3594_v16 = vld [vmem:[%s4294_s29 + $0x3f8] sm:$0xff]  }
 0x123   : > { %3336 = vmatprep.subr.bf16.mxu1 %v3534_v18  ;;  %2648 = vmatprep.mubr.bf16.mxu0 %v3063_v48  ;;  %v3595_v17 = vld [vmem:[%s4294_s29 + $0x338] sm:$0xff]  }
 0x124   : > { %2688 = vmatprep.mubr.bf16.mxu1 %v3065_v50  ;;  %v3596_v18 = vld [vmem:[%s4294_s29 + $0x3b8] sm:$0xff]  }
 0x125   : > { %3315 = vmatpush3.bf16.msra.mxu0 %v3535_v19  ;;  %v1367_v19 = vld [vmem:[%s4277_s7 + $0x30] sm:$0xff] }
 0x126   : > { %3337 = vmatpush3.bf16.msra.mxu1 %v3536_v20  ;;  %3316 = vmatprep.subr.bf16.mxu0 %v3537_v21  ;;  %v1368_v20 = vld [vmem:[%s4277_s7 + $0x38] sm:$0xff]  ;;  %v3066_v21 = vcombine.low %v1367_v19, %v1367_v19  ;;  %s2777_s7 = scalar_lea.vmem [#allocation2], %s3198_s30 }
 0x127   : > { %3338 = vmatprep.subr.bf16.mxu1 %v3538_v22  ;;  %v3067_v22 = vcombine.high %v1367_v19, %v1367_v19 }
 0x129   : > { %3317 = vmatpush3.bf16.msra.mxu0 %v3539_v23  ;;  %v3068_v23 = vcombine.low %v1368_v20, %v1368_v20 }
 0x12a   : > { %3339 = vmatpush3.bf16.msra.mxu1 %v3540_v24  ;;  %3318 = vmatprep.subr.bf16.mxu0 %v3541_v25  ;;  %v3069_v24 = vcombine.high %v1368_v20, %v1368_v20  ;;  %v2779_v20 = vld [vmem:[#allocation3] sm:$0x1] }
 0x12b   : > { %3340 = vmatprep.subr.bf16.mxu1 %v3542_v26 }
 0x12d   : > { %3319 = vmatpush3.bf16.msra.mxu0 %v3543_v27  ;;  %v3053_v27 = vld [vmem:[%s1347_s18] ss:$0 sm:$0xff] }
 0x12e   : > { %3341 = vmatpush3.bf16.msra.mxu1 %v3544_v28  ;;  %3320 = vmatprep.subr.bf16.mxu0 %v3545_v29 }
 0x12f   : > { %3342 = vmatprep.subr.bf16.mxu1 %v3546_v30 }
 0x131   : > { %3321 = vmatpush3.bf16.msra.mxu0 %v3547_v31 }
 0x132   : > { %3343 = vmatpush3.bf16.msra.mxu1 %v3548_v32  ;;  %3322 = vmatprep.subr.bf16.mxu0 %v3549_v33 }
 0x133   : > { %3344 = vmatprep.subr.bf16.mxu1 %v3550_v34 }
 0x135   : > { %3323 = vmatpush3.bf16.msra.mxu0 %v3551_v35 }
 0x136   : > { %3345 = vmatpush3.bf16.msra.mxu1 %v3552_v36  ;;  %3324 = vmatprep.subr.bf16.mxu0 %v3553_v37 }
 0x137   : > { %3346 = vmatprep.subr.bf16.mxu1 %v3554_v38 }
 0x139   : > { %3325 = vmatpush3.bf16.msra.mxu0 %v3555_v39 }
 0x13a   : > { %3347 = vmatpush3.bf16.msra.mxu1 %v3556_v40  ;;  %3326 = vmatprep.subr.bf16.mxu0 %v3557_v41 }
 0x13b   : > { %3348 = vmatprep.subr.bf16.mxu1 %v3558_v42 }
 0x13d   : > { %3327 = vmatpush3.bf16.msra.mxu0 %v3559_v43 }
 0x13e   : > { %3349 = vmatpush3.bf16.msra.mxu1 %v3560_v44  ;;  %3356 = vmatprep.subr.bf16.mxu0 %v3565_v51 }
 0x13f   : > { %3378 = vmatprep.subr.bf16.mxu1 %v3566_v52 }
 0x140   : > { %2649 = vmatmul.mubr.bf16.vlgmr.msra.gmra.mrb[8].mxu0 %v3062_v47 }
 0x141   : > { %2689 = vmatmul.mubr.bf16.vlgmr.msra.gmra.mrb[8].mxu1 %v3064_v49  ;;  %3357 = vmatpush3.bf16.msra.mxu0 %v3567_v53 }
 0x142   : > { %3379 = vmatpush3.bf16.msra.mxu1 %v3568_v54  ;;  %3358 = vmatprep.subr.bf16.mxu0 %v3569_v55 }
 0x143   : > { %3380 = vmatprep.subr.bf16.mxu1 %v3570_v56  ;;  %2728 = vmatprep.mubr.bf16.mxu0 %v3067_v22 }
 0x144   : > { %2768 = vmatprep.mubr.bf16.mxu1 %v3069_v24 }
 0x145   : > { %3359 = vmatpush3.bf16.msra.mxu0 %v3571_v57 }
 0x146   : > { %3381 = vmatpush3.bf16.msra.mxu1 %v3572_v58  ;;  %3360 = vmatprep.subr.bf16.mxu0 %v3573_v59 }
 0x147   : > { %3382 = vmatprep.subr.bf16.mxu1 %v3574_v60 }
 0x149   : > { %3361 = vmatpush3.bf16.msra.mxu0 %v3575_v61 }
 0x14a   : > { %3383 = vmatpush3.bf16.msra.mxu1 %v3576_v62  ;;  %3362 = vmatprep.subr.bf16.mxu0 %v3577_v63 }
 0x14b   : > { %3384 = vmatprep.subr.bf16.mxu1 %v3578_v0 }
 0x14d   : > { %3363 = vmatpush3.bf16.msra.mxu0 %v3579_v1 }
 0x14e   : > { %3385 = vmatpush3.bf16.msra.mxu1 %v3580_v2  ;;  %3364 = vmatprep.subr.bf16.mxu0 %v3581_v3 }
 0x14f   : > { %3386 = vmatprep.subr.bf16.mxu1 %v3582_v4 }
 0x151   : > { %3365 = vmatpush3.bf16.msra.mxu0 %v3583_v5 }
 0x152   : > { %3387 = vmatpush3.bf16.msra.mxu1 %v3584_v6  ;;  %3366 = vmatprep.subr.bf16.mxu0 %v3585_v7 }
 0x153   : > { %3388 = vmatprep.subr.bf16.mxu1 %v3586_v8 }
 0x155   : > { %3367 = vmatpush3.bf16.msra.mxu0 %v3587_v9 }
 0x156   : > { %3389 = vmatpush3.bf16.msra.mxu1 %v3588_v10  ;;  %3368 = vmatprep.subr.bf16.mxu0 %v3589_v11 }
 0x157   : > { %3390 = vmatprep.subr.bf16.mxu1 %v3590_v12 }
 0x159   : > { %3369 = vmatpush3.bf16.msra.mxu0 %v3591_v13 }
 0x15a   : > { %3391 = vmatpush3.bf16.msra.mxu1 %v3592_v14  ;;  %3370 = vmatprep.subr.bf16.mxu0 %v3593_v15 }
 0x15b   : > { %3392 = vmatprep.subr.bf16.mxu1 %v3594_v16 }
 0x15d   : > { %3371 = vmatpush3.bf16.msra.mxu0 %v3595_v17 }
 0x15e   : > { %3393 = vmatpush3.bf16.msra.mxu1 %v3596_v18 }
 0x160   : > { %2729 = vmatmul.mubr.bf16.vlgmr.msra.gmra.mrb[12].mxu0 %v3066_v21 }
 0x161   : > { %2769 = vmatmul.mubr.bf16.vlgmr.msra.gmra.mrb[12].mxu1 %v3068_v23  ;;  %v2788_v23 = vld [vmem:[#allocation4] sm:$0x1] }
 0x1d3   : > { %v3240_v25 = vpop.f32.mrb[0].mxu0 }
 0x1d4   : > { %v3262_v26 = vpop.f32.mrb[0].mxu1  ;;  %v3241_v28 = vpop.f32.mrb[1].mxu0 }
 0x1d5   : > { %v3263_v29 = vpop.f32.mrb[1].mxu1  ;;  %v3242_v30 = vadd.f32 %v3241_v28, %v3240_v25  ;;  %v3243_v32 = vpop.f32.mrb[2].mxu0 }
 0x1d6   : > { %v3264_v31 = vadd.f32 %v3263_v29, %v3262_v26  ;;  %v3265_v33 = vpop.f32.mrb[2].mxu1  ;;  %v3244_v34 = vpop.f32.mrb[3].mxu0 }
 0x1d7   : > { %v3266_v35 = vpop.f32.mrb[3].mxu1  ;;  %v2491_v36 = vadd.f32 %v3242_v30, %v3053_v27 }
 0x1d8   : > { %v2821_v35 = vlaneseq (!%p3199_p1) }
 0x1d9   : > { %v2531_v37 = vadd.f32 %v3264_v31, %v2491_v36 }
 0x1da   : > { %v2822_v36 = vshrl.u32 (!%p3199_p1), %v2821_v35, 7 }
 0x1f3   : > { %v3284_v38 = vpop.f32.mrb[4].mxu0 }
 0x1f4   : > { %v3306_v39 = vpop.f32.mrb[4].mxu1  ;;  %v3285_v40 = vpop.f32.mrb[5].mxu0 }
 0x1f5   : > { %v3307_v41 = vpop.f32.mrb[5].mxu1  ;;  %v3286_v42 = vadd.f32 %v3285_v40, %v3284_v38  ;;  %v3287_v44 = vpop.f32.mrb[6].mxu0  ;;  %v2823_v38 = vsub.s32 (!%p3199_p1), 0, %v2822_v36 }
 0x1f6   : > { %v3308_v43 = vadd.f32 %v3307_v41, %v3306_v39  ;;  %v3309_v45 = vpop.f32.mrb[6].mxu1  ;;  %v3288_v46 = vpop.f32.mrb[7].mxu0  ;;  %v2813_v41 = vld [vmem:[%s1353_s1] sm:$0x1] (!%p3199_p1) }
 0x1f7   : > { %v3310_v47 = vpop.f32.mrb[7].mxu1  ;;  %v2571_v48 = vadd.f32 %v3286_v42, %v2531_v37  ;;  %v2809_v37 = vld [vmem:[%s1350_s13] sm:$0x1] (!%p3199_p1) }
 0x1f9   : > { %v2611_v49 = vadd.f32 %v3308_v43, %v2571_v48 }
 0x213   : > { %v3328_v50 = vpop.f32.mrb[8].mxu0 }
 0x214   : > { %v3350_v51 = vpop.f32.mrb[8].mxu1  ;;  %v3329_v52 = vpop.f32.mrb[9].mxu0 }
 0x215   : > { %v3330_v53 = vadd.f32 %v3329_v52, %v3328_v50  ;;  %v3351_v54 = vpop.f32.mrb[9].mxu1  ;;  %v3331_v55 = vpop.f32.mrb[10].mxu0 }
 0x216   : > { %v3352_v56 = vadd.f32 %v3351_v54, %v3350_v51  ;;  %v3353_v57 = vpop.f32.mrb[10].mxu1  ;;  %v3332_v58 = vpop.f32.mrb[11].mxu0 }
 0x217   : > { %v2651_v59 = vadd.f32 %v3330_v53, %v2611_v49  ;;  %v3354_v60 = vpop.f32.mrb[11].mxu1 }
 0x219   : > { %v2691_v61 = vadd.f32 %v3352_v56, %v2651_v59 }
 0x233   : > { %v3372_v62 = vpop.f32.mrb[12].mxu0 }
 0x234   : > { %v3394_v63 = vpop.f32.mrb[12].mxu1  ;;  %v3373_v0 = vpop.f32.mrb[13].mxu0 }
 0x235   : > { %v3374_v1 = vadd.f32 %v3373_v0, %v3372_v62  ;;  %v3395_v2 = vpop.f32.mrb[13].mxu1  ;;  %v3375_v3 = vpop.f32.mrb[14].mxu0 }
 0x236   : > { %v3396_v4 = vadd.f32 %v3395_v2, %v3394_v63  ;;  %v3397_v5 = vpop.f32.mrb[14].mxu1  ;;  %v3376_v6 = vpop.f32.mrb[15].mxu0 }
 0x237   : > { %v2731_v7 = vadd.f32 %v3374_v1, %v2691_v61  ;;  %v3398_v8 = vpop.f32.mrb[15].mxu1 }
 0x239   : > { %v2771_v9 = vadd.f32 %v3396_v4, %v2731_v7 }
 0x23b   : > { %2778 = vst [vmem:[%s2777_s7] sm:$0xff] %v2771_v9  ;;  %v2780_v10 = vrot.slane %v2771_v9, 4  ;;  %v2789_v11 = vmul.f32 %v2771_v9, %v2771_v9 }
 0x23d   : > { %v2781_v12 = vadd.f32 %v2780_v10, %v2771_v9  ;;  %v2790_v13 = vrot.slane %v2789_v11, 4 }
 0x23f   : > { %v2782_v14 = vrot.slane %v2781_v12, 2  ;;  %v2791_v15 = vadd.f32 %v2790_v13, %v2789_v11 }
 0x241   : > { %v2783_v16 = vadd.f32 %v2782_v14, %v2781_v12  ;;  %v2792_v17 = vrot.slane %v2791_v15, 2 }
 0x242   : > { %v2816_v42 = vld [vmem:[#allocation2] sm:$0xff] (!%p3199_p1)  ;;  %v2817_v43 = vld [vmem:[#allocation2 + $0x8] sm:$0xff] (!%p3199_p1)  ;;  %v2818_v44 = vld [vmem:[#allocation2 + $0x10] sm:$0xff] (!%p3199_p1) }
 0x243   : > { %v2784_v18 = vrot.slane %v2783_v16, 1  ;;  %v2793_v19 = vadd.f32 %v2792_v17, %v2791_v15  ;;  %v2819_v47 = vld [vmem:[#allocation2 + $0x18] sm:$0xff] (!%p3199_p1) }
 0x245   : > { %v2785_v21 = vadd.f32 %v2784_v18, %v2783_v16  ;;  %v2794_v22 = vrot.slane %v2793_v19, 1  ;;  %2801 = sbr.rel (%p3199_p1) target bundleno = 631 (0x277), region = 89 }
 0x247   : > { %v2786_v24 = vadd.f32 %v2785_v21, %v2779_v20  ;;  %v2795_v25 = vadd.f32 %v2794_v22, %v2793_v19 }
 0x249   : > { %2787 = vst [vmem:[#allocation3] sm:$0x1] %v2786_v24  ;;  %v2796_v26 = vadd.f32 %v2795_v25, %v2788_v23 }
 0x24b   : > { %2797 = vst [vmem:[#allocation4] sm:$0x1] %v2796_v26 }
 0x250   : > { %v2802_v27 = vld [vmem:[#allocation3] sm:$0x1] }
 0x251   : > { %v2803_v29 = vmul.f32 0.03125, %v2802_v27 }
 0x252   : > { %v2804_v28 = vld [vmem:[#allocation4] sm:$0x1] }
 0x253   : > { %v2805_v30 = vmul.f32 0.03125, %v2804_v28  ;;  %v2806_v31 = vmul.f32 %v2803_v29, %v2803_v29 }
 0x255   : > { %v2807_v32 = vsub.f32 %v2805_v30, %v2806_v31 }
 0x257   : > { %v2808_v33 = vmax.f32 %v2807_v32, 0.0 }
 0x259   : > { %v2810_v34 = vadd.f32 1e-05, %v2808_v33 }
 0x25b   : > { %3601 = vrsqrt.f32 %v2810_v34 }
 0x265   : > { %v3602_v39 = vpop.eup %3601 }
 0x266   : > { %v2812_v40 = vmul.f32 %v3602_v39, %v2809_v37 }
 0x268   : > { %v2814_v45 = vmul.f32 %v2812_v40, %v2803_v29  ;;  %v2824_v46 = vrot.slane %v2812_v40, %v2823_v38 }
 0x26a   : > { %v2815_v48 = vsub.f32 %v2813_v41, %v2814_v45  ;;  %v2826_v49 = vmul.f32 %v2824_v46, %v2816_v42  ;;  %v2827_v50 = vmul.f32 %v2824_v46, %v2817_v43  ;;  %v2828_v51 = vmul.f32 %v2824_v46, %v2818_v44 }
 0x26b   : > { %v2829_v52 = vmul.f32 %v2824_v46, %v2819_v47 }
 0x26c   : > { %v2834_v53 = vrot.slane %v2815_v48, %v2823_v38 }
 0x26e   : > { %v2836_v54 = vadd.f32 %v2834_v53, %v2826_v49  ;;  %v2837_v55 = vadd.f32 %v2834_v53, %v2827_v50  ;;  %v2838_v56 = vadd.f32 %v2834_v53, %v2828_v51  ;;  %v2839_v57 = vadd.f32 %v2834_v53, %v2829_v52 }
 0x270   : > { %vm2840_vm0 = vcmp.ge.f32.partialorder %v2836_v54, 0.0  ;;  %vm2841_vm1 = vcmp.ge.f32.partialorder %v2837_v55, 0.0  ;;  %v2844_v58 = vmul.f32 0.2, %v2836_v54  ;;  %v2845_v59 = vmul.f32 0.2, %v2837_v55 }
 0x271   : > { %vm2842_vm2 = vcmp.ge.f32.partialorder %v2838_v56, 0.0  ;;  %vm2843_vm3 = vcmp.ge.f32.partialorder %v2839_v57, 0.0  ;;  %v2846_v60 = vmul.f32 0.2, %v2838_v56  ;;  %v2847_v61 = vmul.f32 0.2, %v2839_v57 }
 0x272   : > { %v2848_v62 = vsel %vm2840_vm0, %v2836_v54, %v2844_v58  ;;  %v2849_v63 = vsel %vm2841_vm1, %v2837_v55, %v2845_v59 }
 0x273   : > { %v3216_v0 = vpack.c.bf16 %v2849_v63, %v2848_v62  ;;  %v2850_v1 = vsel %vm2842_vm2, %v2838_v56, %v2846_v60  ;;  %v2851_v2 = vsel %vm2843_vm3, %v2839_v57, %v2847_v61 }
 0x274   : > { %v3221_v3 = vpack.c.bf16 %v2851_v2, %v2850_v1 }
 0x275   : > { %3217 = vst [vmem:[%s4296_s27] sm:$0xff] %v3216_v0  }
 0x276   : > { %3223 = vst [vmem:[%s4296_s27 + $0x8] sm:$0xff] %v3221_v3  }
 0x277 PF: > { %2878 = sbr.rel (!%p3734_p6) target bundleno = 640 (0x280), region = 93  ;;  %s3205_s1 = sshll.u32 (%p3734_p6), %s3645_s21, 2 }
 0x278   : > { %s2880_s12 = scalar_lea.vmem (%p3734_p6), %s4490_s5, %s3205_s1 }
 0x27c   : > { %v2896_v4 = vld [vmem:[%s4296_s27] sm:$0xf] (%p3734_p6)  ;;  %v2898_v5 = vld [vmem:[%s4296_s27 + $0x4] sm:$0xf] (%p3734_p6) }
 0x27d   : > { %v2900_v6 = vld [vmem:[%s4296_s27 + $0x8] sm:$0xf] (%p3734_p6)  ;;  %v2902_v7 = vld [vmem:[%s4296_s27 + $0xc] sm:$0xf] (%p3734_p6)  ;;  %2897 = vst [vmem:[%s2880_s12] sm:$0xf] (%p3734_p6), %v2896_v4 }
 0x27e   : > { %2899 = vst [vmem:[%s2880_s12 + $0x8] sm:$0xf] %v2898_v5  ;;  %2901 = vst [vmem:[%s2880_s12 + $0x10] sm:$0xf] %v2900_v6 }
 0x27f   : > { %2903 = vst [vmem:[%s2880_s12 + $0x18] sm:$0xf] %v2902_v7 }
 0x280 PF: > { %s15_s24 = sadd.s32 1, %s3657_s24   ;;  %s4494_s18 = smov %s3637_s19 }
 0x281   : > { %p12_p2 = scmp.ge.s32.totalorder %s15_s24, 10   ;;  %s4495_s19 = smov %s3744_s6 }
 0x282   : > { %s4496_s20 = smov %s3649_s22  ;;  %s4497_s21 = smov %s3653_s23 }
 0x283   : > { %s4498_s22 = smov %s4501_s25  ;;  %s4499_s23 = smov %s4505_s26 }
 0x284   :  { %14 = sbr.rel (!%p12_p2) target bundleno = 6 (0x6), region = 178 }

// kernel: e1_forward.10
= control target key start
LH: loop header
LB: loop body
LE: loop exit
PB: predicated region body
PF: predicated region fallthrough
CT: control target
= control target key end

     0   :  { %s4704_s1 = inlined_call_operand.vmem [shape: bf16[4096,128], index: 1, kind: input, shape index: {}]   ;;  %s4705_s0 = inlined_call_operand.vmem [shape: bf16[8,4096], index: 0, kind: input, shape index: {}]   ;;  %s4706_s2 = inlined_call_operand.vmem [shape: f32[1,128], index: 2, kind: input, shape index: {}]   ;;  %s4707_s3 = inlined_call_operand.vmem [shape: f32[1,128], index: 3, kind: input, shape index: {}]   ;;  %s4708_s4 = inlined_call_operand.vmem [shape: f32[1,128], index: 4, kind: input, shape index: {}]   ;;  %s4709_s5 = inlined_call_operand.vmem [shape: bf16[8,128], index: 5, kind: output, shape index: {}]  }
   0x1   :  { %v3555_v0 = vld [vmem:[%s4704_s1 + $0x40] sm:$0xff]   ;;  %v3559_v4 = vld [vmem:[%s4704_s1 + $0x48] sm:$0xff]   ;;  %v3563_v8 = vld [vmem:[%s4704_s1 + $0x50] sm:$0xff]  }
   0x2   :  { %v3556_v1 = vld [vmem:[%s4704_s1 + $0xc0] sm:$0xff]   ;;  %3202 = vmatprep.subr.bf16.mxu0 %v3555_v0  ;;  %v3560_v5 = vld [vmem:[%s4704_s1 + $0xc8] sm:$0xff]   ;;  %v3564_v9 = vld [vmem:[%s4704_s1 + $0xd0] sm:$0xff]  }
   0x3   :  { %v3557_v2 = vld [vmem:[%s4704_s1] sm:$0xff]   ;;  %3224 = vmatprep.subr.bf16.mxu1 %v3556_v1  ;;  %v3561_v6 = vld [vmem:[%s4704_s1 + $0x8] sm:$0xff]   ;;  %v3565_v10 = vld [vmem:[%s4704_s1 + $0x10] sm:$0xff]  }
   0x4   :  { %v3558_v3 = vld [vmem:[%s4704_s1 + $0x80] sm:$0xff]   ;;  %3203 = vmatpush3.bf16.msra.mxu0 %v3557_v2  ;;  %v3562_v7 = vld [vmem:[%s4704_s1 + $0x88] sm:$0xff]   ;;  %v3566_v11 = vld [vmem:[%s4704_s1 + $0x90] sm:$0xff]  }
   0x5   :  { %3225 = vmatpush3.bf16.msra.mxu1 %v3558_v3  ;;  %3204 = vmatprep.subr.bf16.mxu0 %v3559_v4  ;;  %v3567_v12 = vld [vmem:[%s4704_s1 + $0x58] sm:$0xff]   ;;  %v3571_v16 = vld [vmem:[%s4704_s1 + $0x60] sm:$0xff]   ;;  %v3575_v20 = vld [vmem:[%s4704_s1 + $0x68] sm:$0xff]  }
   0x6   :  { %3226 = vmatprep.subr.bf16.mxu1 %v3560_v5  ;;  %v3568_v13 = vld [vmem:[%s4704_s1 + $0xd8] sm:$0xff]   ;;  %v3572_v17 = vld [vmem:[%s4704_s1 + $0xe0] sm:$0xff]   ;;  %v3576_v21 = vld [vmem:[%s4704_s1 + $0xe8] sm:$0xff]  }
   0x7   :  { %v3569_v14 = vld [vmem:[%s4704_s1 + $0x18] sm:$0xff]   ;;  %v3573_v18 = vld [vmem:[%s4704_s1 + $0x20] sm:$0xff]   ;;  %v3577_v22 = vld [vmem:[%s4704_s1 + $0x28] sm:$0xff]  }
   0x8   :  { %3205 = vmatpush3.bf16.msra.mxu0 %v3561_v6  ;;  %v3570_v15 = vld [vmem:[%s4704_s1 + $0x98] sm:$0xff]   ;;  %v3574_v19 = vld [vmem:[%s4704_s1 + $0xa0] sm:$0xff]   ;;  %v3578_v23 = vld [vmem:[%s4704_s1 + $0xa8] sm:$0xff]  }
   0x9   :  { %3227 = vmatpush3.bf16.msra.mxu1 %v3562_v7  ;;  %3206 = vmatprep.subr.bf16.mxu0 %v3563_v8  ;;  %v3579_v24 = vld [vmem:[%s4704_s1 + $0x70] sm:$0xff]   ;;  %v3583_v28 = vld [vmem:[%s4704_s1 + $0x78] sm:$0xff]   ;;  %v27_v32 = vld [vmem:[%s4705_s0] sm:$0xff] }
   0xa   :  { %3228 = vmatprep.subr.bf16.mxu1 %v3564_v9  ;;  %v3580_v25 = vld [vmem:[%s4704_s1 + $0xf0] sm:$0xff]   ;;  %v3584_v29 = vld [vmem:[%s4704_s1 + $0xf8] sm:$0xff]   ;;  %v28_v33 = vld [vmem:[%s4705_s0 + $0x8] sm:$0xff]  ;;  %v2914_v34 = vcombine.low %v27_v32, %v27_v32  ;;  %v2915_v35 = vcombine.high %v27_v32, %v27_v32 }
   0xb   :  { %v3581_v26 = vld [vmem:[%s4704_s1 + $0x30] sm:$0xff]   ;;  %v3585_v30 = vld [vmem:[%s4704_s1 + $0x38] sm:$0xff]   ;;  %v2916_v36 = vcombine.low %v28_v33, %v28_v33  ;;  %v2917_v37 = vcombine.high %v28_v33, %v28_v33  ;;  %v3591_v38 = vld [vmem:[%s4704_s1 + $0x140] sm:$0xff]  }
   0xc   :  { %3207 = vmatpush3.bf16.msra.mxu0 %v3565_v10  ;;  %v3582_v27 = vld [vmem:[%s4704_s1 + $0xb0] sm:$0xff]   ;;  %v3586_v31 = vld [vmem:[%s4704_s1 + $0xb8] sm:$0xff]   ;;  %v3592_v39 = vld [vmem:[%s4704_s1 + $0x1c0] sm:$0xff]   ;;  %2242 = vmatprep.mubr.bf16.mxu0 %v2915_v35 }
   0xd   :  { %3229 = vmatpush3.bf16.msra.mxu1 %v3566_v11  ;;  %3208 = vmatprep.subr.bf16.mxu0 %v3567_v12  ;;  %v3593_v40 = vld [vmem:[%s4704_s1 + $0x100] sm:$0xff]   ;;  %v3595_v42 = vld [vmem:[%s4704_s1 + $0x148] sm:$0xff]   ;;  %v3599_v46 = vld [vmem:[%s4704_s1 + $0x150] sm:$0xff]  }
   0xe   :  { %3230 = vmatprep.subr.bf16.mxu1 %v3568_v13  ;;  %2282 = vmatprep.mubr.bf16.mxu1 %v2917_v37  ;;  %v3594_v41 = vld [vmem:[%s4704_s1 + $0x180] sm:$0xff]   ;;  %v3596_v43 = vld [vmem:[%s4704_s1 + $0x1c8] sm:$0xff]   ;;  %v3600_v47 = vld [vmem:[%s4704_s1 + $0x1d0] sm:$0xff]  }
   0xf   :  { %v3597_v44 = vld [vmem:[%s4704_s1 + $0x108] sm:$0xff]   ;;  %v3601_v48 = vld [vmem:[%s4704_s1 + $0x110] sm:$0xff]   ;;  %v3603_v50 = vld [vmem:[%s4704_s1 + $0x158] sm:$0xff]  }
  0x10   :  { %3209 = vmatpush3.bf16.msra.mxu0 %v3569_v14  ;;  %v3598_v45 = vld [vmem:[%s4704_s1 + $0x188] sm:$0xff]   ;;  %v3602_v49 = vld [vmem:[%s4704_s1 + $0x190] sm:$0xff]   ;;  %v3604_v51 = vld [vmem:[%s4704_s1 + $0x1d8] sm:$0xff]  }
  0x11   :  { %3231 = vmatpush3.bf16.msra.mxu1 %v3570_v15  ;;  %3210 = vmatprep.subr.bf16.mxu0 %v3571_v16  ;;  %v3605_v52 = vld [vmem:[%s4704_s1 + $0x118] sm:$0xff]   ;;  %v3607_v54 = vld [vmem:[%s4704_s1 + $0x160] sm:$0xff]   ;;  %v3611_v58 = vld [vmem:[%s4704_s1 + $0x168] sm:$0xff]  }
  0x12   :  { %3232 = vmatprep.subr.bf16.mxu1 %v3572_v17  ;;  %v3606_v53 = vld [vmem:[%s4704_s1 + $0x198] sm:$0xff]   ;;  %v3608_v55 = vld [vmem:[%s4704_s1 + $0x1e0] sm:$0xff]   ;;  %v3612_v59 = vld [vmem:[%s4704_s1 + $0x1e8] sm:$0xff]  }
  0x13   :  { %v3609_v56 = vld [vmem:[%s4704_s1 + $0x120] sm:$0xff]   ;;  %v3613_v60 = vld [vmem:[%s4704_s1 + $0x128] sm:$0xff]   ;;  %v3615_v62 = vld [vmem:[%s4704_s1 + $0x170] sm:$0xff]  }
  0x14   :  { %3211 = vmatpush3.bf16.msra.mxu0 %v3573_v18  ;;  %v3610_v57 = vld [vmem:[%s4704_s1 + $0x1a0] sm:$0xff]   ;;  %v3614_v61 = vld [vmem:[%s4704_s1 + $0x1a8] sm:$0xff]   ;;  %v3616_v63 = vld [vmem:[%s4704_s1 + $0x1f0] sm:$0xff]  }
  0x15   :  { %3233 = vmatpush3.bf16.msra.mxu1 %v3574_v19  ;;  %3212 = vmatprep.subr.bf16.mxu0 %v3575_v20  ;;  %v3617_v0 = vld [vmem:[%s4704_s1 + $0x130] sm:$0xff]   ;;  %v3619_v2 = vld [vmem:[%s4704_s1 + $0x178] sm:$0xff]   ;;  %v3627_v12 = vld [vmem:[%s4704_s1 + $0x240] sm:$0xff]  }
  0x16   :  { %3234 = vmatprep.subr.bf16.mxu1 %v3576_v21  ;;  %v3618_v1 = vld [vmem:[%s4704_s1 + $0x1b0] sm:$0xff]   ;;  %v3620_v3 = vld [vmem:[%s4704_s1 + $0x1f8] sm:$0xff]   ;;  %v3628_v13 = vld [vmem:[%s4704_s1 + $0x2c0] sm:$0xff]  }
  0x17   :  { %v3621_v4 = vld [vmem:[%s4704_s1 + $0x138] sm:$0xff]   ;;  %v29_v6 = vld [vmem:[%s4705_s0 + $0x10] sm:$0xff]  ;;  %v3629_v14 = vld [vmem:[%s4704_s1 + $0x200] sm:$0xff]  }
  0x18   :  { %3213 = vmatpush3.bf16.msra.mxu0 %v3577_v22  ;;  %v3622_v5 = vld [vmem:[%s4704_s1 + $0x1b8] sm:$0xff]   ;;  %v2918_v7 = vcombine.low %v29_v6, %v29_v6  ;;  %v2919_v8 = vcombine.high %v29_v6, %v29_v6  ;;  %v3630_v15 = vld [vmem:[%s4704_s1 + $0x280] sm:$0xff]   ;;  %v3631_v16 = vld [vmem:[%s4704_s1 + $0x248] sm:$0xff]  }
  0x19   :  { %3235 = vmatpush3.bf16.msra.mxu1 %v3578_v23  ;;  %3214 = vmatprep.subr.bf16.mxu0 %v3579_v24  ;;  %v30_v9 = vld [vmem:[%s4705_s0 + $0x18] sm:$0xff]  ;;  %v3632_v17 = vld [vmem:[%s4704_s1 + $0x2c8] sm:$0xff]   ;;  %v3635_v20 = vld [vmem:[%s4704_s1 + $0x250] sm:$0xff]  }
  0x1a   :  { %3236 = vmatprep.subr.bf16.mxu1 %v3580_v25  ;;  %v2920_v10 = vcombine.low %v30_v9, %v30_v9  ;;  %v2921_v11 = vcombine.high %v30_v9, %v30_v9  ;;  %v3633_v18 = vld [vmem:[%s4704_s1 + $0x208] sm:$0xff]   ;;  %v3636_v21 = vld [vmem:[%s4704_s1 + $0x2d0] sm:$0xff]   ;;  %v3639_v24 = vld [vmem:[%s4704_s1 + $0x258] sm:$0xff]  }
  0x1b   :  { %v3634_v19 = vld [vmem:[%s4704_s1 + $0x288] sm:$0xff]   ;;  %v3637_v22 = vld [vmem:[%s4704_s1 + $0x210] sm:$0xff]   ;;  %v3640_v25 = vld [vmem:[%s4704_s1 + $0x2d8] sm:$0xff]  }
  0x1c   :  { %3215 = vmatpush3.bf16.msra.mxu0 %v3581_v26  ;;  %v3638_v23 = vld [vmem:[%s4704_s1 + $0x290] sm:$0xff]   ;;  %v3641_v26 = vld [vmem:[%s4704_s1 + $0x218] sm:$0xff]   ;;  %v3647_v32 = vld [vmem:[%s4704_s1 + $0x268] sm:$0xff]  }
  0x1d   :  { %3237 = vmatpush3.bf16.msra.mxu1 %v3582_v27  ;;  %3216 = vmatprep.subr.bf16.mxu0 %v3583_v28  ;;  %v3642_v27 = vld [vmem:[%s4704_s1 + $0x298] sm:$0xff]   ;;  %v3643_v28 = vld [vmem:[%s4704_s1 + $0x260] sm:$0xff]   ;;  %v3648_v33 = vld [vmem:[%s4704_s1 + $0x2e8] sm:$0xff]  }
  0x1e   :  { %3238 = vmatprep.subr.bf16.mxu1 %v3584_v29  ;;  %v3644_v29 = vld [vmem:[%s4704_s1 + $0x2e0] sm:$0xff]   ;;  %v3650_v35 = vld [vmem:[%s4704_s1 + $0x2a8] sm:$0xff]   ;;  %v3652_v37 = vld [vmem:[%s4704_s1 + $0x2f0] sm:$0xff]  }
  0x1f   :  { %v3683_v6 = vld [vmem:[%s4704_s1 + $0x368] sm:$0xff]  }
  0x20   :  { %3217 = vmatpush3.bf16.msra.mxu0 %v3585_v30  ;;  %v3645_v30 = vld [vmem:[%s4704_s1 + $0x220] sm:$0xff]   ;;  %v3686_v9 = vld [vmem:[%s4704_s1 + $0x3a8] sm:$0xff]  }
  0x21   :  { %3239 = vmatpush3.bf16.msra.mxu1 %v3586_v31  ;;  %3246 = vmatprep.subr.bf16.mxu0 %v3591_v38  ;;  %v3646_v31 = vld [vmem:[%s4704_s1 + $0x2a0] sm:$0xff]   ;;  %v3653_v38 = vld [vmem:[%s4704_s1 + $0x230] sm:$0xff]  }
  0x22   :  { %3268 = vmatprep.subr.bf16.mxu1 %v3592_v39  ;;  %v3654_v39 = vld [vmem:[%s4704_s1 + $0x2b0] sm:$0xff]  }
  0x23   :  { %2243 = vmatmul.mubr.bf16.vlgmr.msra.gmra.mrb[0].mxu0 %v2914_v34  ;;  %v3649_v34 = vld [vmem:[%s4704_s1 + $0x228] sm:$0xff]  }
  0x24   :  { %2283 = vmatmul.mubr.bf16.vlgmr.msra.gmra.mrb[0].mxu1 %v2916_v36  ;;  %3247 = vmatpush3.bf16.msra.mxu0 %v3593_v40  ;;  %v3651_v36 = vld [vmem:[%s4704_s1 + $0x270] sm:$0xff]   ;;  %v3655_v40 = vld [vmem:[%s4704_s1 + $0x278] sm:$0xff]  }
  0x25   :  { %3269 = vmatpush3.bf16.msra.mxu1 %v3594_v41  ;;  %3248 = vmatprep.subr.bf16.mxu0 %v3595_v42  ;;  %v3656_v41 = vld [vmem:[%s4704_s1 + $0x2f8] sm:$0xff]  }
  0x26   :  { %3270 = vmatprep.subr.bf16.mxu1 %v3596_v43  ;;  %2322 = vmatprep.mubr.bf16.mxu0 %v2919_v8  ;;  %v3657_v42 = vld [vmem:[%s4704_s1 + $0x238] sm:$0xff]   ;;  %v3685_v8 = vld [vmem:[%s4704_s1 + $0x328] sm:$0xff]  }
  0x27   :  { %2362 = vmatprep.mubr.bf16.mxu1 %v2921_v11  ;;  %v3658_v43 = vld [vmem:[%s4704_s1 + $0x2b8] sm:$0xff]   ;;  %v3688_v11 = vld [vmem:[%s4704_s1 + $0x3f0] sm:$0xff]  }
  0x28   :  { %3249 = vmatpush3.bf16.msra.mxu0 %v3597_v44  ;;  %v31_v44 = vld [vmem:[%s4705_s0 + $0x20] sm:$0xff] }
  0x29   :  { %3271 = vmatpush3.bf16.msra.mxu1 %v3598_v45  ;;  %3250 = vmatprep.subr.bf16.mxu0 %v3599_v46  ;;  %v32_v45 = vld [vmem:[%s4705_s0 + $0x28] sm:$0xff]  ;;  %v2922_v46 = vcombine.low %v31_v44, %v31_v44 }
  0x2a   :  { %3272 = vmatprep.subr.bf16.mxu1 %v3600_v47  ;;  %v2923_v47 = vcombine.high %v31_v44, %v31_v44  ;;  %v3719_v44 = vld [vmem:[%s4704_s1 + $0x468] sm:$0xff]  }
  0x2c   :  { %3251 = vmatpush3.bf16.msra.mxu0 %v3601_v48  ;;  %v2924_v48 = vcombine.low %v32_v45, %v32_v45 }
  0x2d   :  { %3273 = vmatpush3.bf16.msra.mxu1 %v3602_v49  ;;  %3252 = vmatprep.subr.bf16.mxu0 %v3603_v50  ;;  %v2925_v49 = vcombine.high %v32_v45, %v32_v45  ;;  %v3663_v50 = vld [vmem:[%s4704_s1 + $0x340] sm:$0xff]   ;;  %v3720_v45 = vld [vmem:[%s4704_s1 + $0x4e8] sm:$0xff]  }
  0x2e   :  { %3274 = vmatprep.subr.bf16.mxu1 %v3604_v51  ;;  %v3664_v51 = vld [vmem:[%s4704_s1 + $0x3c0] sm:$0xff]  }
  0x30   :  { %3253 = vmatpush3.bf16.msra.mxu0 %v3605_v52  ;;  %v3665_v52 = vld [vmem:[%s4704_s1 + $0x300] sm:$0xff]  }
  0x31   :  { %3275 = vmatpush3.bf16.msra.mxu1 %v3606_v53  ;;  %3254 = vmatprep.subr.bf16.mxu0 %v3607_v54  ;;  %v3666_v53 = vld [vmem:[%s4704_s1 + $0x380] sm:$0xff]   ;;  %v3667_v54 = vld [vmem:[%s4704_s1 + $0x348] sm:$0xff]  }
  0x32   :  { %3276 = vmatprep.subr.bf16.mxu1 %v3608_v55  ;;  %v3668_v55 = vld [vmem:[%s4704_s1 + $0x3c8] sm:$0xff]  }
  0x34   :  { %3255 = vmatpush3.bf16.msra.mxu0 %v3609_v56  ;;  %v3669_v56 = vld [vmem:[%s4704_s1 + $0x308] sm:$0xff]  }
  0x35   :  { %3277 = vmatpush3.bf16.msra.mxu1 %v3610_v57  ;;  %3256 = vmatprep.subr.bf16.mxu0 %v3611_v58  ;;  %v3670_v57 = vld [vmem:[%s4704_s1 + $0x388] sm:$0xff]   ;;  %v3671_v58 = vld [vmem:[%s4704_s1 + $0x350] sm:$0xff]  }
  0x36   :  { %3278 = vmatprep.subr.bf16.mxu1 %v3612_v59  ;;  %v3672_v59 = vld [vmem:[%s4704_s1 + $0x3d0] sm:$0xff]  }
  0x38   :  { %3257 = vmatpush3.bf16.msra.mxu0 %v3613_v60  ;;  %v3673_v60 = vld [vmem:[%s4704_s1 + $0x310] sm:$0xff]  }
  0x39   :  { %3279 = vmatpush3.bf16.msra.mxu1 %v3614_v61  ;;  %3258 = vmatprep.subr.bf16.mxu0 %v3615_v62  ;;  %v3674_v61 = vld [vmem:[%s4704_s1 + $0x390] sm:$0xff]   ;;  %v3675_v62 = vld [vmem:[%s4704_s1 + $0x358] sm:$0xff]  }
  0x3a   :  { %3280 = vmatprep.subr.bf16.mxu1 %v3616_v63  ;;  %v3676_v63 = vld [vmem:[%s4704_s1 + $0x3d8] sm:$0xff]  }
  0x3c   :  { %3259 = vmatpush3.bf16.msra.mxu0 %v3617_v0  ;;  %v3677_v0 = vld [vmem:[%s4704_s1 + $0x318] sm:$0xff]  }
  0x3d   :  { %3281 = vmatpush3.bf16.msra.mxu1 %v3618_v1  ;;  %3260 = vmatprep.subr.bf16.mxu0 %v3619_v2  ;;  %v3678_v1 = vld [vmem:[%s4704_s1 + $0x398] sm:$0xff]   ;;  %v3679_v2 = vld [vmem:[%s4704_s1 + $0x360] sm:$0xff]  }
  0x3e   :  { %3282 = vmatprep.subr.bf16.mxu1 %v3620_v3  ;;  %v3680_v3 = vld [vmem:[%s4704_s1 + $0x3e0] sm:$0xff]  }
  0x40   :  { %3261 = vmatpush3.bf16.msra.mxu0 %v3621_v4  ;;  %v3681_v4 = vld [vmem:[%s4704_s1 + $0x320] sm:$0xff]  }
  0x41   :  { %3283 = vmatpush3.bf16.msra.mxu1 %v3622_v5  ;;  %3290 = vmatprep.subr.bf16.mxu0 %v3627_v12  ;;  %v3682_v5 = vld [vmem:[%s4704_s1 + $0x3a0] sm:$0xff]   ;;  %v3689_v12 = vld [vmem:[%s4704_s1 + $0x330] sm:$0xff]  }
  0x42   :  { %3312 = vmatprep.subr.bf16.mxu1 %v3628_v13  ;;  %v3690_v13 = vld [vmem:[%s4704_s1 + $0x3b0] sm:$0xff]  }
  0x43   :  { %2323 = vmatmul.mubr.bf16.vlgmr.msra.gmra.mrb[4].mxu0 %v2918_v7  ;;  %v3684_v7 = vld [vmem:[%s4704_s1 + $0x3e8] sm:$0xff]  }
  0x44   :  { %2363 = vmatmul.mubr.bf16.vlgmr.msra.gmra.mrb[4].mxu1 %v2920_v10  ;;  %3291 = vmatpush3.bf16.msra.mxu0 %v3629_v14  ;;  %v3687_v10 = vld [vmem:[%s4704_s1 + $0x370] sm:$0xff]   ;;  %v3691_v14 = vld [vmem:[%s4704_s1 + $0x378] sm:$0xff]  }
  0x45   :  { %3313 = vmatpush3.bf16.msra.mxu1 %v3630_v15  ;;  %3292 = vmatprep.subr.bf16.mxu0 %v3631_v16  ;;  %v3692_v15 = vld [vmem:[%s4704_s1 + $0x3f8] sm:$0xff]  }
  0x46   :  { %3314 = vmatprep.subr.bf16.mxu1 %v3632_v17  ;;  %2402 = vmatprep.mubr.bf16.mxu0 %v2923_v47  ;;  %v3693_v16 = vld [vmem:[%s4704_s1 + $0x338] sm:$0xff]   ;;  %v3722_v47 = vld [vmem:[%s4704_s1 + $0x4a8] sm:$0xff]  }
  0x47   :  { %2442 = vmatprep.mubr.bf16.mxu1 %v2925_v49  ;;  %v3694_v17 = vld [vmem:[%s4704_s1 + $0x3b8] sm:$0xff]   ;;  %v3724_v49 = vld [vmem:[%s4704_s1 + $0x4f0] sm:$0xff]  }
  0x48   :  { %3293 = vmatpush3.bf16.msra.mxu0 %v3633_v18  ;;  %v33_v18 = vld [vmem:[%s4705_s0 + $0x30] sm:$0xff] }
  0x49   :  { %3315 = vmatpush3.bf16.msra.mxu1 %v3634_v19  ;;  %3294 = vmatprep.subr.bf16.mxu0 %v3635_v20  ;;  %v34_v19 = vld [vmem:[%s4705_s0 + $0x38] sm:$0xff]  ;;  %v2926_v20 = vcombine.low %v33_v18, %v33_v18 }
  0x4a   :  { %3316 = vmatprep.subr.bf16.mxu1 %v3636_v21  ;;  %v2927_v21 = vcombine.high %v33_v18, %v33_v18  ;;  %v3755_v18 = vld [vmem:[%s4704_s1 + $0x568] sm:$0xff]  }
  0x4c   :  { %3295 = vmatpush3.bf16.msra.mxu0 %v3637_v22  ;;  %v2928_v22 = vcombine.low %v34_v19, %v34_v19 }
  0x4d   :  { %3317 = vmatpush3.bf16.msra.mxu1 %v3638_v23  ;;  %3296 = vmatprep.subr.bf16.mxu0 %v3639_v24  ;;  %v3699_v23 = vld [vmem:[%s4704_s1 + $0x440] sm:$0xff]   ;;  %v2929_v24 = vcombine.high %v34_v19, %v34_v19  ;;  %v3756_v19 = vld [vmem:[%s4704_s1 + $0x5e8] sm:$0xff]  }
  0x4e   :  { %3318 = vmatprep.subr.bf16.mxu1 %v3640_v25  ;;  %v3700_v25 = vld [vmem:[%s4704_s1 + $0x4c0] sm:$0xff]  }
  0x50   :  { %3297 = vmatpush3.bf16.msra.mxu0 %v3641_v26  ;;  %v3701_v26 = vld [vmem:[%s4704_s1 + $0x400] sm:$0xff]  }
  0x51   :  { %3319 = vmatpush3.bf16.msra.mxu1 %v3642_v27  ;;  %3298 = vmatprep.subr.bf16.mxu0 %v3643_v28  ;;  %v3702_v27 = vld [vmem:[%s4704_s1 + $0x480] sm:$0xff]   ;;  %v3703_v28 = vld [vmem:[%s4704_s1 + $0x448] sm:$0xff]  }
  0x52   :  { %3320 = vmatprep.subr.bf16.mxu1 %v3644_v29  ;;  %v3704_v29 = vld [vmem:[%s4704_s1 + $0x4c8] sm:$0xff]  }
  0x54   :  { %3299 = vmatpush3.bf16.msra.mxu0 %v3645_v30  ;;  %v3705_v30 = vld [vmem:[%s4704_s1 + $0x408] sm:$0xff]  }
  0x55   :  { %3321 = vmatpush3.bf16.msra.mxu1 %v3646_v31  ;;  %3300 = vmatprep.subr.bf16.mxu0 %v3647_v32  ;;  %v3706_v31 = vld [vmem:[%s4704_s1 + $0x488] sm:$0xff]   ;;  %v3707_v32 = vld [vmem:[%s4704_s1 + $0x450] sm:$0xff]  }
  0x56   :  { %3322 = vmatprep.subr.bf16.mxu1 %v3648_v33  ;;  %v3708_v33 = vld [vmem:[%s4704_s1 + $0x4d0] sm:$0xff]  }
  0x58   :  { %3301 = vmatpush3.bf16.msra.mxu0 %v3649_v34  ;;  %v3709_v34 = vld [vmem:[%s4704_s1 + $0x410] sm:$0xff]  }
  0x59   :  { %3323 = vmatpush3.bf16.msra.mxu1 %v3650_v35  ;;  %3302 = vmatprep.subr.bf16.mxu0 %v3651_v36  ;;  %v3710_v35 = vld [vmem:[%s4704_s1 + $0x490] sm:$0xff]   ;;  %v3711_v36 = vld [vmem:[%s4704_s1 + $0x458] sm:$0xff]  }
  0x5a   :  { %3324 = vmatprep.subr.bf16.mxu1 %v3652_v37  ;;  %v3712_v37 = vld [vmem:[%s4704_s1 + $0x4d8] sm:$0xff]  }
  0x5c   :  { %3303 = vmatpush3.bf16.msra.mxu0 %v3653_v38  ;;  %v3713_v38 = vld [vmem:[%s4704_s1 + $0x418] sm:$0xff]  }
  0x5d   :  { %3325 = vmatpush3.bf16.msra.mxu1 %v3654_v39  ;;  %3304 = vmatprep.subr.bf16.mxu0 %v3655_v40  ;;  %v3714_v39 = vld [vmem:[%s4704_s1 + $0x498] sm:$0xff]   ;;  %v3715_v40 = vld [vmem:[%s4704_s1 + $0x460] sm:$0xff]  }
  0x5e   :  { %3326 = vmatprep.subr.bf16.mxu1 %v3656_v41  ;;  %v3716_v41 = vld [vmem:[%s4704_s1 + $0x4e0] sm:$0xff]  }
  0x60   :  { %3305 = vmatpush3.bf16.msra.mxu0 %v3657_v42  ;;  %v3717_v42 = vld [vmem:[%s4704_s1 + $0x420] sm:$0xff]  }
  0x61   :  { %3327 = vmatpush3.bf16.msra.mxu1 %v3658_v43  ;;  %3334 = vmatprep.subr.bf16.mxu0 %v3663_v50  ;;  %v3718_v43 = vld [vmem:[%s4704_s1 + $0x4a0] sm:$0xff]   ;;  %v3725_v50 = vld [vmem:[%s4704_s1 + $0x430] sm:$0xff]  }
  0x62   :  { %3356 = vmatprep.subr.bf16.mxu1 %v3664_v51  ;;  %v3726_v51 = vld [vmem:[%s4704_s1 + $0x4b0] sm:$0xff]  }
  0x63   :  { %2403 = vmatmul.mubr.bf16.vlgmr.msra.gmra.mrb[8].mxu0 %v2922_v46  ;;  %v3721_v46 = vld [vmem:[%s4704_s1 + $0x428] sm:$0xff]  }
  0x64   :  { %2443 = vmatmul.mubr.bf16.vlgmr.msra.gmra.mrb[8].mxu1 %v2924_v48  ;;  %3335 = vmatpush3.bf16.msra.mxu0 %v3665_v52  ;;  %v3723_v48 = vld [vmem:[%s4704_s1 + $0x470] sm:$0xff]   ;;  %v3727_v52 = vld [vmem:[%s4704_s1 + $0x478] sm:$0xff]  }
  0x65   :  { %3357 = vmatpush3.bf16.msra.mxu1 %v3666_v53  ;;  %3336 = vmatprep.subr.bf16.mxu0 %v3667_v54  ;;  %v3728_v53 = vld [vmem:[%s4704_s1 + $0x4f8] sm:$0xff]  }
  0x66   :  { %3358 = vmatprep.subr.bf16.mxu1 %v3668_v55  ;;  %2482 = vmatprep.mubr.bf16.mxu0 %v2927_v21  ;;  %v3729_v54 = vld [vmem:[%s4704_s1 + $0x438] sm:$0xff]   ;;  %v3758_v21 = vld [vmem:[%s4704_s1 + $0x5a8] sm:$0xff]  }
  0x67   :  { %2522 = vmatprep.mubr.bf16.mxu1 %v2929_v24  ;;  %v3730_v55 = vld [vmem:[%s4704_s1 + $0x4b8] sm:$0xff]   ;;  %v3761_v24 = vld [vmem:[%s4704_s1 + $0x530] sm:$0xff]  }
  0x68   :  { %3337 = vmatpush3.bf16.msra.mxu0 %v3669_v56  ;;  %v35_v56 = vld [vmem:[%s4705_s0 + $0x40] sm:$0xff] }
  0x69   :  { %3359 = vmatpush3.bf16.msra.mxu1 %v3670_v57  ;;  %3338 = vmatprep.subr.bf16.mxu0 %v3671_v58  ;;  %v2930_v57 = vcombine.low %v35_v56, %v35_v56  ;;  %v2931_v58 = vcombine.high %v35_v56, %v35_v56  ;;  %v3791_v56 = vld [vmem:[%s4704_s1 + $0x668] sm:$0xff]  }
  0x6a   :  { %3360 = vmatprep.subr.bf16.mxu1 %v3672_v59  ;;  %v36_v59 = vld [vmem:[%s4705_s0 + $0x48] sm:$0xff] }
  0x6c   :  { %3339 = vmatpush3.bf16.msra.mxu0 %v3673_v60  ;;  %v2932_v60 = vcombine.low %v36_v59, %v36_v59 }
  0x6d   :  { %3361 = vmatpush3.bf16.msra.mxu1 %v3674_v61  ;;  %3340 = vmatprep.subr.bf16.mxu0 %v3675_v62  ;;  %v2933_v61 = vcombine.high %v36_v59, %v36_v59  ;;  %v3735_v62 = vld [vmem:[%s4704_s1 + $0x540] sm:$0xff]   ;;  %v3794_v59 = vld [vmem:[%s4704_s1 + $0x6a8] sm:$0xff]  }
  0x6e   :  { %3362 = vmatprep.subr.bf16.mxu1 %v3676_v63  ;;  %v3736_v63 = vld [vmem:[%s4704_s1 + $0x5c0] sm:$0xff]  }
  0x70   :  { %3341 = vmatpush3.bf16.msra.mxu0 %v3677_v0  ;;  %v3737_v0 = vld [vmem:[%s4704_s1 + $0x500] sm:$0xff]  }
  0x71   :  { %3363 = vmatpush3.bf16.msra.mxu1 %v3678_v1  ;;  %3342 = vmatprep.subr.bf16.mxu0 %v3679_v2  ;;  %v3738_v1 = vld [vmem:[%s4704_s1 + $0x580] sm:$0xff]   ;;  %v3739_v2 = vld [vmem:[%s4704_s1 + $0x548] sm:$0xff]  }
  0x72   :  { %3364 = vmatprep.subr.bf16.mxu1 %v3680_v3  ;;  %v3740_v3 = vld [vmem:[%s4704_s1 + $0x5c8] sm:$0xff]  }
  0x74   :  { %3343 = vmatpush3.bf16.msra.mxu0 %v3681_v4  ;;  %v3741_v4 = vld [vmem:[%s4704_s1 + $0x508] sm:$0xff]  }
  0x75   :  { %3365 = vmatpush3.bf16.msra.mxu1 %v3682_v5  ;;  %3344 = vmatprep.subr.bf16.mxu0 %v3683_v6  ;;  %v3742_v5 = vld [vmem:[%s4704_s1 + $0x588] sm:$0xff]   ;;  %v3743_v6 = vld [vmem:[%s4704_s1 + $0x550] sm:$0xff]  }
  0x76   :  { %3366 = vmatprep.subr.bf16.mxu1 %v3684_v7  ;;  %v3744_v7 = vld [vmem:[%s4704_s1 + $0x5d0] sm:$0xff]  }
  0x78   :  { %3345 = vmatpush3.bf16.msra.mxu0 %v3685_v8  ;;  %v3745_v8 = vld [vmem:[%s4704_s1 + $0x510] sm:$0xff]  }
  0x79   :  { %3367 = vmatpush3.bf16.msra.mxu1 %v3686_v9  ;;  %3346 = vmatprep.subr.bf16.mxu0 %v3687_v10  ;;  %v3746_v9 = vld [vmem:[%s4704_s1 + $0x590] sm:$0xff]   ;;  %v3747_v10 = vld [vmem:[%s4704_s1 + $0x558] sm:$0xff]  }
  0x7a   :  { %3368 = vmatprep.subr.bf16.mxu1 %v3688_v11  ;;  %v3748_v11 = vld [vmem:[%s4704_s1 + $0x5d8] sm:$0xff]  }
  0x7c   :  { %3347 = vmatpush3.bf16.msra.mxu0 %v3689_v12  ;;  %v3749_v12 = vld [vmem:[%s4704_s1 + $0x518] sm:$0xff]  }
  0x7d   :  { %3369 = vmatpush3.bf16.msra.mxu1 %v3690_v13  ;;  %3348 = vmatprep.subr.bf16.mxu0 %v3691_v14  ;;  %v3750_v13 = vld [vmem:[%s4704_s1 + $0x598] sm:$0xff]   ;;  %v3751_v14 = vld [vmem:[%s4704_s1 + $0x560] sm:$0xff]  }
  0x7e   :  { %3370 = vmatprep.subr.bf16.mxu1 %v3692_v15  ;;  %v3752_v15 = vld [vmem:[%s4704_s1 + $0x5e0] sm:$0xff]  }
  0x80   :  { %3349 = vmatpush3.bf16.msra.mxu0 %v3693_v16  ;;  %v3753_v16 = vld [vmem:[%s4704_s1 + $0x520] sm:$0xff]  }
  0x81   :  { %3371 = vmatpush3.bf16.msra.mxu1 %v3694_v17  ;;  %3378 = vmatprep.subr.bf16.mxu0 %v3699_v23  ;;  %v3754_v17 = vld [vmem:[%s4704_s1 + $0x5a0] sm:$0xff]   ;;  %v3760_v23 = vld [vmem:[%s4704_s1 + $0x5f0] sm:$0xff]  }
  0x82   :  { %3400 = vmatprep.subr.bf16.mxu1 %v3700_v25  ;;  %v3762_v25 = vld [vmem:[%s4704_s1 + $0x5b0] sm:$0xff]  }
  0x83   :  { %2483 = vmatmul.mubr.bf16.vlgmr.msra.gmra.mrb[12].mxu0 %v2926_v20  ;;  %v3757_v20 = vld [vmem:[%s4704_s1 + $0x528] sm:$0xff]  }
  0x84   :  { %2523 = vmatmul.mubr.bf16.vlgmr.msra.gmra.mrb[12].mxu1 %v2928_v22  ;;  %3379 = vmatpush3.bf16.msra.mxu0 %v3701_v26  ;;  %v3759_v22 = vld [vmem:[%s4704_s1 + $0x570] sm:$0xff]   ;;  %v3763_v26 = vld [vmem:[%s4704_s1 + $0x578] sm:$0xff]  }
  0x85   :  { %3401 = vmatpush3.bf16.msra.mxu1 %v3702_v27  ;;  %3380 = vmatprep.subr.bf16.mxu0 %v3703_v28  ;;  %v3764_v27 = vld [vmem:[%s4704_s1 + $0x5f8] sm:$0xff]  }
  0x86   :  { %3402 = vmatprep.subr.bf16.mxu1 %v3704_v29  ;;  %2562 = vmatprep.mubr.bf16.mxu0 %v2931_v58  ;;  %v3765_v28 = vld [vmem:[%s4704_s1 + $0x538] sm:$0xff]   ;;  %v3793_v58 = vld [vmem:[%s4704_s1 + $0x628] sm:$0xff]  }
  0x87   :  { %2602 = vmatprep.mubr.bf16.mxu1 %v2933_v61  ;;  %v3766_v29 = vld [vmem:[%s4704_s1 + $0x5b8] sm:$0xff]   ;;  %v3796_v61 = vld [vmem:[%s4704_s1 + $0x6f0] sm:$0xff]  }
  0x88   :  { %3381 = vmatpush3.bf16.msra.mxu0 %v3705_v30  ;;  %v37_v30 = vld [vmem:[%s4705_s0 + $0x50] sm:$0xff] }
  0x89   :  { %3403 = vmatpush3.bf16.msra.mxu1 %v3706_v31  ;;  %3382 = vmatprep.subr.bf16.mxu0 %v3707_v32  ;;  %v38_v31 = vld [vmem:[%s4705_s0 + $0x58] sm:$0xff]  ;;  %v2934_v32 = vcombine.low %v37_v30, %v37_v30 }
  0x8a   :  { %3404 = vmatprep.subr.bf16.mxu1 %v3708_v33  ;;  %v2935_v33 = vcombine.high %v37_v30, %v37_v30  ;;  %v3826_v30 = vld [vmem:[%s4704_s1 + $0x7a0] sm:$0xff]  }
  0x8c   :  { %3383 = vmatpush3.bf16.msra.mxu0 %v3709_v34  ;;  %v2936_v34 = vcombine.low %v38_v31, %v38_v31 }
  0x8d   :  { %3405 = vmatpush3.bf16.msra.mxu1 %v3710_v35  ;;  %3384 = vmatprep.subr.bf16.mxu0 %v3711_v36  ;;  %v2937_v35 = vcombine.high %v38_v31, %v38_v31  ;;  %v3771_v36 = vld [vmem:[%s4704_s1 + $0x640] sm:$0xff]  }
  0x8e   :  { %3406 = vmatprep.subr.bf16.mxu1 %v3712_v37  ;;  %v3772_v37 = vld [vmem:[%s4704_s1 + $0x6c0] sm:$0xff]  }
  0x90   :  { %3385 = vmatpush3.bf16.msra.mxu0 %v3713_v38  ;;  %v3773_v38 = vld [vmem:[%s4704_s1 + $0x600] sm:$0xff]  }
  0x91   :  { %3407 = vmatpush3.bf16.msra.mxu1 %v3714_v39  ;;  %3386 = vmatprep.subr.bf16.mxu0 %v3715_v40  ;;  %v3774_v39 = vld [vmem:[%s4704_s1 + $0x680] sm:$0xff]   ;;  %v3775_v40 = vld [vmem:[%s4704_s1 + $0x648] sm:$0xff]  }
  0x92   :  { %3408 = vmatprep.subr.bf16.mxu1 %v3716_v41  ;;  %v3776_v41 = vld [vmem:[%s4704_s1 + $0x6c8] sm:$0xff]  }
  0x94   :  { %3387 = vmatpush3.bf16.msra.mxu0 %v3717_v42  ;;  %v3777_v42 = vld [vmem:[%s4704_s1 + $0x608] sm:$0xff]  }
  0x95   :  { %3409 = vmatpush3.bf16.msra.mxu1 %v3718_v43  ;;  %3388 = vmatprep.subr.bf16.mxu0 %v3719_v44  ;;  %v3778_v43 = vld [vmem:[%s4704_s1 + $0x688] sm:$0xff]   ;;  %v3779_v44 = vld [vmem:[%s4704_s1 + $0x650] sm:$0xff]  }
  0x96   :  { %3410 = vmatprep.subr.bf16.mxu1 %v3720_v45  ;;  %v3780_v45 = vld [vmem:[%s4704_s1 + $0x6d0] sm:$0xff]  }
  0x98   :  { %3389 = vmatpush3.bf16.msra.mxu0 %v3721_v46  ;;  %v3781_v46 = vld [vmem:[%s4704_s1 + $0x610] sm:$0xff]  }
  0x99   :  { %3411 = vmatpush3.bf16.msra.mxu1 %v3722_v47  ;;  %3390 = vmatprep.subr.bf16.mxu0 %v3723_v48  ;;  %v3782_v47 = vld [vmem:[%s4704_s1 + $0x690] sm:$0xff]   ;;  %v3783_v48 = vld [vmem:[%s4704_s1 + $0x658] sm:$0xff]  }
  0x9a   :  { %3412 = vmatprep.subr.bf16.mxu1 %v3724_v49  ;;  %v3784_v49 = vld [vmem:[%s4704_s1 + $0x6d8] sm:$0xff]  }
  0x9c   :  { %3391 = vmatpush3.bf16.msra.mxu0 %v3725_v50  ;;  %v3785_v50 = vld [vmem:[%s4704_s1 + $0x618] sm:$0xff]  }
  0x9d   :  { %3413 = vmatpush3.bf16.msra.mxu1 %v3726_v51  ;;  %3392 = vmatprep.subr.bf16.mxu0 %v3727_v52  ;;  %v3786_v51 = vld [vmem:[%s4704_s1 + $0x698] sm:$0xff]   ;;  %v3787_v52 = vld [vmem:[%s4704_s1 + $0x660] sm:$0xff]  }
  0x9e   :  { %3414 = vmatprep.subr.bf16.mxu1 %v3728_v53  ;;  %v3788_v53 = vld [vmem:[%s4704_s1 + $0x6e0] sm:$0xff]  }
  0xa0   :  { %3393 = vmatpush3.bf16.msra.mxu0 %v3729_v54  ;;  %v3789_v54 = vld [vmem:[%s4704_s1 + $0x620] sm:$0xff]  }
  0xa1   :  { %3415 = vmatpush3.bf16.msra.mxu1 %v3730_v55  ;;  %3422 = vmatprep.subr.bf16.mxu0 %v3735_v62  ;;  %v3790_v55 = vld [vmem:[%s4704_s1 + $0x6a0] sm:$0xff]   ;;  %v3797_v62 = vld [vmem:[%s4704_s1 + $0x630] sm:$0xff]  }
  0xa2   :  { %3444 = vmatprep.subr.bf16.mxu1 %v3736_v63  ;;  %v3798_v63 = vld [vmem:[%s4704_s1 + $0x6b0] sm:$0xff]  }
  0xa3   :  { %2563 = vmatmul.mubr.bf16.vlgmr.msra.gmra.mrb[16].mxu0 %v2930_v57  ;;  %v3792_v57 = vld [vmem:[%s4704_s1 + $0x6e8] sm:$0xff]  }
  0xa4   :  { %2603 = vmatmul.mubr.bf16.vlgmr.msra.gmra.mrb[16].mxu1 %v2932_v60  ;;  %3423 = vmatpush3.bf16.msra.mxu0 %v3737_v0  ;;  %v3795_v60 = vld [vmem:[%s4704_s1 + $0x670] sm:$0xff]   ;;  %v3799_v0 = vld [vmem:[%s4704_s1 + $0x678] sm:$0xff]  }
  0xa5   :  { %3445 = vmatpush3.bf16.msra.mxu1 %v3738_v1  ;;  %3424 = vmatprep.subr.bf16.mxu0 %v3739_v2  ;;  %v3800_v1 = vld [vmem:[%s4704_s1 + $0x6f8] sm:$0xff]  }
  0xa6   :  { %3446 = vmatprep.subr.bf16.mxu1 %v3740_v3  ;;  %2642 = vmatprep.mubr.bf16.mxu0 %v2935_v33  ;;  %v3801_v2 = vld [vmem:[%s4704_s1 + $0x638] sm:$0xff]  }
  0xa7   :  { %2682 = vmatprep.mubr.bf16.mxu1 %v2937_v35  ;;  %v3802_v3 = vld [vmem:[%s4704_s1 + $0x6b8] sm:$0xff]  }
  0xa8   :  { %3425 = vmatpush3.bf16.msra.mxu0 %v3741_v4  ;;  %v39_v4 = vld [vmem:[%s4705_s0 + $0x60] sm:$0xff] }
  0xa9   :  { %3447 = vmatpush3.bf16.msra.mxu1 %v3742_v5  ;;  %3426 = vmatprep.subr.bf16.mxu0 %v3743_v6  ;;  %v40_v5 = vld [vmem:[%s4705_s0 + $0x68] sm:$0xff]  ;;  %v2938_v6 = vcombine.low %v39_v4, %v39_v4 }
  0xaa   :  { %3448 = vmatprep.subr.bf16.mxu1 %v3744_v7  ;;  %v2939_v7 = vcombine.high %v39_v4, %v39_v4 }
  0xac   :  { %3427 = vmatpush3.bf16.msra.mxu0 %v3745_v8  ;;  %v2940_v8 = vcombine.low %v40_v5, %v40_v5 }
  0xad   :  { %3449 = vmatpush3.bf16.msra.mxu1 %v3746_v9  ;;  %3428 = vmatprep.subr.bf16.mxu0 %v3747_v10  ;;  %v3807_v9 = vld [vmem:[%s4704_s1 + $0x740] sm:$0xff]   ;;  %v2941_v10 = vcombine.high %v40_v5, %v40_v5 }
  0xae   :  { %3450 = vmatprep.subr.bf16.mxu1 %v3748_v11  ;;  %v3808_v11 = vld [vmem:[%s4704_s1 + $0x7c0] sm:$0xff]  }
  0xb0   :  { %3429 = vmatpush3.bf16.msra.mxu0 %v3749_v12  ;;  %v3809_v12 = vld [vmem:[%s4704_s1 + $0x700] sm:$0xff]  }
  0xb1   :  { %3451 = vmatpush3.bf16.msra.mxu1 %v3750_v13  ;;  %3430 = vmatprep.subr.bf16.mxu0 %v3751_v14  ;;  %v3810_v13 = vld [vmem:[%s4704_s1 + $0x780] sm:$0xff]   ;;  %v3811_v14 = vld [vmem:[%s4704_s1 + $0x748] sm:$0xff]  }
  0xb2   :  { %3452 = vmatprep.subr.bf16.mxu1 %v3752_v15  ;;  %v3812_v15 = vld [vmem:[%s4704_s1 + $0x7c8] sm:$0xff]  }
  0xb4   :  { %3431 = vmatpush3.bf16.msra.mxu0 %v3753_v16  ;;  %v3813_v16 = vld [vmem:[%s4704_s1 + $0x708] sm:$0xff]  }
  0xb5   :  { %3453 = vmatpush3.bf16.msra.mxu1 %v3754_v17  ;;  %3432 = vmatprep.subr.bf16.mxu0 %v3755_v18  ;;  %v3814_v17 = vld [vmem:[%s4704_s1 + $0x788] sm:$0xff]   ;;  %v3815_v18 = vld [vmem:[%s4704_s1 + $0x750] sm:$0xff]  }
  0xb6   :  { %3454 = vmatprep.subr.bf16.mxu1 %v3756_v19  ;;  %v3816_v19 = vld [vmem:[%s4704_s1 + $0x7d0] sm:$0xff]  }
  0xb8   :  { %3433 = vmatpush3.bf16.msra.mxu0 %v3757_v20  ;;  %v3817_v20 = vld [vmem:[%s4704_s1 + $0x710] sm:$0xff]  }
  0xb9   :  { %3455 = vmatpush3.bf16.msra.mxu1 %v3758_v21  ;;  %3434 = vmatprep.subr.bf16.mxu0 %v3759_v22  ;;  %v3818_v21 = vld [vmem:[%s4704_s1 + $0x790] sm:$0xff]   ;;  %v3819_v22 = vld [vmem:[%s4704_s1 + $0x758] sm:$0xff]  }
  0xba   :  { %3456 = vmatprep.subr.bf16.mxu1 %v3760_v23  ;;  %v3820_v23 = vld [vmem:[%s4704_s1 + $0x7d8] sm:$0xff]  }
  0xbc   :  { %3435 = vmatpush3.bf16.msra.mxu0 %v3761_v24  ;;  %v3821_v24 = vld [vmem:[%s4704_s1 + $0x718] sm:$0xff]  }
  0xbd   :  { %3457 = vmatpush3.bf16.msra.mxu1 %v3762_v25  ;;  %3436 = vmatprep.subr.bf16.mxu0 %v3763_v26  ;;  %v3822_v25 = vld [vmem:[%s4704_s1 + $0x798] sm:$0xff]   ;;  %v3823_v26 = vld [vmem:[%s4704_s1 + $0x760] sm:$0xff]  }
  0xbe   :  { %3458 = vmatprep.subr.bf16.mxu1 %v3764_v27  ;;  %v3824_v27 = vld [vmem:[%s4704_s1 + $0x7e0] sm:$0xff]  }
  0xc0   :  { %3437 = vmatpush3.bf16.msra.mxu0 %v3765_v28  ;;  %v3825_v28 = vld [vmem:[%s4704_s1 + $0x720] sm:$0xff]  }
  0xc1   :  { %3459 = vmatpush3.bf16.msra.mxu1 %v3766_v29  ;;  %3466 = vmatprep.subr.bf16.mxu0 %v3771_v36 }
  0xc2   :  { %3488 = vmatprep.subr.bf16.mxu1 %v3772_v37  ;;  %v3827_v37 = vld [vmem:[%s4704_s1 + $0x768] sm:$0xff]  }
  0xc3   :  { %2643 = vmatmul.mubr.bf16.vlgmr.msra.gmra.mrb[20].mxu0 %v2934_v32  ;;  %v2913_v32 = vld [vmem:[%s4706_s2] ss:$0 sm:$0xff] }
  0xc4   :  { %2683 = vmatmul.mubr.bf16.vlgmr.msra.gmra.mrb[20].mxu1 %v2936_v34  ;;  %3467 = vmatpush3.bf16.msra.mxu0 %v3773_v38 }
  0xc5   :  { %3489 = vmatpush3.bf16.msra.mxu1 %v3774_v39  ;;  %3468 = vmatprep.subr.bf16.mxu0 %v3775_v40  ;;  %v3828_v39 = vld [vmem:[%s4704_s1 + $0x7e8] sm:$0xff]  }
  0xc6   :  { %3490 = vmatprep.subr.bf16.mxu1 %v3776_v41  ;;  %2722 = vmatprep.mubr.bf16.mxu0 %v2939_v7 }
  0xc7   :  { %2762 = vmatprep.mubr.bf16.mxu1 %v2941_v10 }
  0xc8   :  { %3469 = vmatpush3.bf16.msra.mxu0 %v3777_v42  ;;  %v3829_v42 = vld [vmem:[%s4704_s1 + $0x728] sm:$0xff]  }
  0xc9   :  { %3491 = vmatpush3.bf16.msra.mxu1 %v3778_v43  ;;  %3470 = vmatprep.subr.bf16.mxu0 %v3779_v44  ;;  %v3830_v44 = vld [vmem:[%s4704_s1 + $0x7a8] sm:$0xff]  }
  0xca   :  { %3492 = vmatprep.subr.bf16.mxu1 %v3780_v45 }
  0xcc   :  { %3471 = vmatpush3.bf16.msra.mxu0 %v3781_v46 }
  0xcd   :  { %3493 = vmatpush3.bf16.msra.mxu1 %v3782_v47  ;;  %3472 = vmatprep.subr.bf16.mxu0 %v3783_v48  ;;  %v3831_v47 = vld [vmem:[%s4704_s1 + $0x770] sm:$0xff]  }
  0xce   :  { %3494 = vmatprep.subr.bf16.mxu1 %v3784_v49  ;;  %v3832_v48 = vld [vmem:[%s4704_s1 + $0x7f0] sm:$0xff]  }
  0xcf   :  { %v3833_v49 = vld [vmem:[%s4704_s1 + $0x730] sm:$0xff]  }
  0xd0   :  { %3473 = vmatpush3.bf16.msra.mxu0 %v3785_v50  ;;  %v3834_v50 = vld [vmem:[%s4704_s1 + $0x7b0] sm:$0xff]  }
  0xd1   :  { %3495 = vmatpush3.bf16.msra.mxu1 %v3786_v51  ;;  %3474 = vmatprep.subr.bf16.mxu0 %v3787_v52  ;;  %v3835_v51 = vld [vmem:[%s4704_s1 + $0x778] sm:$0xff]  }
  0xd2   :  { %3496 = vmatprep.subr.bf16.mxu1 %v3788_v53  ;;  %v3836_v52 = vld [vmem:[%s4704_s1 + $0x7f8] sm:$0xff]  }
  0xd3   :  { %v3837_v53 = vld [vmem:[%s4704_s1 + $0x738] sm:$0xff]  }
  0xd4   :  { %3475 = vmatpush3.bf16.msra.mxu0 %v3789_v54  ;;  %v3838_v54 = vld [vmem:[%s4704_s1 + $0x7b8] sm:$0xff]  }
  0xd5   :  { %3497 = vmatpush3.bf16.msra.mxu1 %v3790_v55  ;;  %3476 = vmatprep.subr.bf16.mxu0 %v3791_v56  ;;  %v41_v55 = vld [vmem:[%s4705_s0 + $0x70] sm:$0xff]  ;;  %v42_v56 = vld [vmem:[%s4705_s0 + $0x78] sm:$0xff] }
  0xd6   :  { %3498 = vmatprep.subr.bf16.mxu1 %v3792_v57  ;;  %v2942_v57 = vcombine.low %v41_v55, %v41_v55 }
  0xd8   :  { %3477 = vmatpush3.bf16.msra.mxu0 %v3793_v58  ;;  %v2943_v58 = vcombine.high %v41_v55, %v41_v55 }
  0xd9   :  { %3499 = vmatpush3.bf16.msra.mxu1 %v3794_v59  ;;  %3478 = vmatprep.subr.bf16.mxu0 %v3795_v60  ;;  %v2944_v59 = vcombine.low %v42_v56, %v42_v56  ;;  %v2945_v60 = vcombine.high %v42_v56, %v42_v56 }
  0xda   :  { %3500 = vmatprep.subr.bf16.mxu1 %v3796_v61 }
  0xdc   :  { %3479 = vmatpush3.bf16.msra.mxu0 %v3797_v62 }
  0xdd   :  { %3501 = vmatpush3.bf16.msra.mxu1 %v3798_v63  ;;  %3480 = vmatprep.subr.bf16.mxu0 %v3799_v0 }
  0xde   :  { %3502 = vmatprep.subr.bf16.mxu1 %v3800_v1 }
  0xe0   :  { %3481 = vmatpush3.bf16.msra.mxu0 %v3801_v2 }
  0xe1   :  { %3503 = vmatpush3.bf16.msra.mxu1 %v3802_v3  ;;  %3510 = vmatprep.subr.bf16.mxu0 %v3807_v9 }
  0xe2   :  { %3532 = vmatprep.subr.bf16.mxu1 %v3808_v11 }
  0xe3   :  { %2723 = vmatmul.mubr.bf16.vlgmr.msra.gmra.mrb[24].mxu0 %v2938_v6 }
  0xe4   :  { %2763 = vmatmul.mubr.bf16.vlgmr.msra.gmra.mrb[24].mxu1 %v2940_v8  ;;  %3511 = vmatpush3.bf16.msra.mxu0 %v3809_v12 }
  0xe5   :  { %3533 = vmatpush3.bf16.msra.mxu1 %v3810_v13  ;;  %3512 = vmatprep.subr.bf16.mxu0 %v3811_v14 }
  0xe6   :  { %3534 = vmatprep.subr.bf16.mxu1 %v3812_v15  ;;  %2802 = vmatprep.mubr.bf16.mxu0 %v2943_v58 }
  0xe7   :  { %2842 = vmatprep.mubr.bf16.mxu1 %v2945_v60 }
  0xe8   :  { %3513 = vmatpush3.bf16.msra.mxu0 %v3813_v16 }
  0xe9   :  { %3535 = vmatpush3.bf16.msra.mxu1 %v3814_v17  ;;  %3514 = vmatprep.subr.bf16.mxu0 %v3815_v18 }
  0xea   :  { %3536 = vmatprep.subr.bf16.mxu1 %v3816_v19 }
  0xec   :  { %3515 = vmatpush3.bf16.msra.mxu0 %v3817_v20 }
  0xed   :  { %3537 = vmatpush3.bf16.msra.mxu1 %v3818_v21  ;;  %3516 = vmatprep.subr.bf16.mxu0 %v3819_v22 }
  0xee   :  { %3538 = vmatprep.subr.bf16.mxu1 %v3820_v23 }
  0xf0   :  { %3517 = vmatpush3.bf16.msra.mxu0 %v3821_v24 }
  0xf1   :  { %3539 = vmatpush3.bf16.msra.mxu1 %v3822_v25  ;;  %3518 = vmatprep.subr.bf16.mxu0 %v3823_v26 }
  0xf2   :  { %3540 = vmatprep.subr.bf16.mxu1 %v3824_v27 }
  0xf4   :  { %3519 = vmatpush3.bf16.msra.mxu0 %v3825_v28 }
  0xf5   :  { %3541 = vmatpush3.bf16.msra.mxu1 %v3826_v30  ;;  %3520 = vmatprep.subr.bf16.mxu0 %v3827_v37 }
  0xf6   :  { %v3218_v29 = vpop.f32.mrb[0].mxu0  ;;  %3542 = vmatprep.subr.bf16.mxu1 %v3828_v39 }
  0xf7   :  { %v3240_v31 = vpop.f32.mrb[0].mxu1  ;;  %v3219_v33 = vpop.f32.mrb[1].mxu0 }
  0xf8   :  { %v3241_v34 = vpop.f32.mrb[1].mxu1  ;;  %v3220_v35 = vadd.f32 %v3219_v33, %v3218_v29  ;;  %v3221_v38 = vpop.f32.mrb[2].mxu0  ;;  %3521 = vmatpush3.bf16.msra.mxu0 %v3829_v42  ;;  %v3845_v33 = vmov 0.0  }
  0xf9   :  { %v3242_v36 = vadd.f32 %v3241_v34, %v3240_v31  ;;  %v3243_v40 = vpop.f32.mrb[2].mxu1  ;;  %v3222_v43 = vpop.f32.mrb[3].mxu0  ;;  %3543 = vmatpush3.bf16.msra.mxu1 %v3830_v44  ;;  %3522 = vmatprep.subr.bf16.mxu0 %v3831_v47  ;;  %25 = vst [vmem:[#allocation3] sm:$0x1] %v3845_v33  ;;  %26 = vst [vmem:[#allocation4] sm:$0x1] %v3845_v33 }
  0xfa   :  { %v2245_v41 = vadd.f32 %v3220_v35, %v2913_v32  ;;  %v3244_v45 = vpop.f32.mrb[3].mxu1  ;;  %3544 = vmatprep.subr.bf16.mxu1 %v3832_v48 }
  0xfc   :  { %v2285_v46 = vadd.f32 %v3242_v36, %v2245_v41  ;;  %3523 = vmatpush3.bf16.msra.mxu0 %v3833_v49 }
  0xfd   :  { %3545 = vmatpush3.bf16.msra.mxu1 %v3834_v50  ;;  %3524 = vmatprep.subr.bf16.mxu0 %v3835_v51 }
  0xfe   :  { %3546 = vmatprep.subr.bf16.mxu1 %v3836_v52 }
 0x100   :  { %3525 = vmatpush3.bf16.msra.mxu0 %v3837_v53 }
 0x101   :  { %3547 = vmatpush3.bf16.msra.mxu1 %v3838_v54 }
 0x103   :  { %2803 = vmatmul.mubr.bf16.vlgmr.msra.gmra.mrb[28].mxu0 %v2942_v57 }
 0x104   :  { %2843 = vmatmul.mubr.bf16.vlgmr.msra.gmra.mrb[28].mxu1 %v2944_v59 }
 0x116   :  { %v3262_v61 = vpop.f32.mrb[4].mxu0 }
 0x117   :  { %v3284_v62 = vpop.f32.mrb[4].mxu1  ;;  %v3263_v63 = vpop.f32.mrb[5].mxu0 }
 0x118   :  { %v3285_v0 = vpop.f32.mrb[5].mxu1  ;;  %v3264_v1 = vadd.f32 %v3263_v63, %v3262_v61  ;;  %v3265_v3 = vpop.f32.mrb[6].mxu0 }
 0x119   :  { %v3286_v2 = vadd.f32 %v3285_v0, %v3284_v62  ;;  %v3287_v4 = vpop.f32.mrb[6].mxu1  ;;  %v3266_v5 = vpop.f32.mrb[7].mxu0 }
 0x11a   :  { %v3288_v6 = vpop.f32.mrb[7].mxu1  ;;  %v2325_v7 = vadd.f32 %v3264_v1, %v2285_v46 }
 0x11c   :  { %v2365_v8 = vadd.f32 %v3286_v2, %v2325_v7 }
 0x136   :  { %v3306_v9 = vpop.f32.mrb[8].mxu0 }
 0x137   :  { %v3328_v10 = vpop.f32.mrb[8].mxu1  ;;  %v3307_v11 = vpop.f32.mrb[9].mxu0 }
 0x138   :  { %v3308_v12 = vadd.f32 %v3307_v11, %v3306_v9  ;;  %v3329_v13 = vpop.f32.mrb[9].mxu1  ;;  %v3309_v14 = vpop.f32.mrb[10].mxu0 }
 0x139   :  { %v3330_v15 = vadd.f32 %v3329_v13, %v3328_v10  ;;  %v3331_v16 = vpop.f32.mrb[10].mxu1  ;;  %v3310_v17 = vpop.f32.mrb[11].mxu0 }
 0x13a   :  { %v2405_v18 = vadd.f32 %v3308_v12, %v2365_v8  ;;  %v3332_v19 = vpop.f32.mrb[11].mxu1 }
 0x13c   :  { %v2445_v20 = vadd.f32 %v3330_v15, %v2405_v18 }
 0x156   :  { %v3350_v21 = vpop.f32.mrb[12].mxu0 }
 0x157   :  { %v3372_v22 = vpop.f32.mrb[12].mxu1  ;;  %v3351_v23 = vpop.f32.mrb[13].mxu0 }
 0x158   :  { %v3352_v24 = vadd.f32 %v3351_v23, %v3350_v21  ;;  %v3373_v25 = vpop.f32.mrb[13].mxu1  ;;  %v3353_v26 = vpop.f32.mrb[14].mxu0 }
 0x159   :  { %v3374_v27 = vadd.f32 %v3373_v25, %v3372_v22  ;;  %v3375_v28 = vpop.f32.mrb[14].mxu1  ;;  %v3354_v29 = vpop.f32.mrb[15].mxu0 }
 0x15a   :  { %v2485_v30 = vadd.f32 %v3352_v24, %v2445_v20  ;;  %v3376_v31 = vpop.f32.mrb[15].mxu1  ;;  %v2853_v28 = vld [vmem:[#allocation3] sm:$0x1] }
 0x15b   :  { %v2862_v31 = vld [vmem:[#allocation4] sm:$0x1] }
 0x15c   :  { %v2525_v32 = vadd.f32 %v3374_v27, %v2485_v30 }
 0x176   :  { %v3394_v34 = vpop.f32.mrb[16].mxu0 }
 0x177   :  { %v3416_v35 = vpop.f32.mrb[16].mxu1  ;;  %v3395_v36 = vpop.f32.mrb[17].mxu0 }
 0x178   :  { %v3417_v37 = vpop.f32.mrb[17].mxu1  ;;  %v3396_v38 = vadd.f32 %v3395_v36, %v3394_v34  ;;  %v3397_v40 = vpop.f32.mrb[18].mxu0 }
 0x179   :  { %v3418_v39 = vadd.f32 %v3417_v37, %v3416_v35  ;;  %v3419_v41 = vpop.f32.mrb[18].mxu1  ;;  %v3398_v42 = vpop.f32.mrb[19].mxu0 }
 0x17a   :  { %v3420_v43 = vpop.f32.mrb[19].mxu1  ;;  %v2565_v44 = vadd.f32 %v3396_v38, %v2525_v32 }
 0x17b   :  { %v2891_v43 = vlaneseq }
 0x17c   :  { %v2605_v45 = vadd.f32 %v3418_v39, %v2565_v44 }
 0x17d   :  { %v2892_v44 = vshrl.u32 %v2891_v43, 7 }
 0x196   :  { %v3438_v46 = vpop.f32.mrb[20].mxu0 }
 0x197   :  { %v3460_v47 = vpop.f32.mrb[20].mxu1  ;;  %v3439_v48 = vpop.f32.mrb[21].mxu0 }
 0x198   :  { %v3440_v49 = vadd.f32 %v3439_v48, %v3438_v46  ;;  %v3461_v50 = vpop.f32.mrb[21].mxu1  ;;  %v3441_v51 = vpop.f32.mrb[22].mxu0  ;;  %v2893_v46 = vsub.s32 0, %v2892_v44 }
 0x199   :  { %v3462_v52 = vadd.f32 %v3461_v50, %v3460_v47  ;;  %v3463_v53 = vpop.f32.mrb[22].mxu1  ;;  %v3442_v54 = vpop.f32.mrb[23].mxu0 }
 0x19a   :  { %v2645_v55 = vadd.f32 %v3440_v49, %v2605_v45  ;;  %v3464_v56 = vpop.f32.mrb[23].mxu1  ;;  %v2882_v45 = vld [vmem:[%s4707_s3] sm:$0x1] }
 0x19b   :  { %v2886_v49 = vld [vmem:[%s4708_s4] sm:$0x1] }
 0x19c   :  { %v2685_v57 = vadd.f32 %v3462_v52, %v2645_v55 }
 0x1b6   :  { %v3482_v58 = vpop.f32.mrb[24].mxu0 }
 0x1b7   :  { %v3504_v59 = vpop.f32.mrb[24].mxu1  ;;  %v3483_v60 = vpop.f32.mrb[25].mxu0 }
 0x1b8   :  { %v3484_v61 = vadd.f32 %v3483_v60, %v3482_v58  ;;  %v3505_v62 = vpop.f32.mrb[25].mxu1  ;;  %v3485_v63 = vpop.f32.mrb[26].mxu0 }
 0x1b9   :  { %v3506_v0 = vadd.f32 %v3505_v62, %v3504_v59  ;;  %v3507_v1 = vpop.f32.mrb[26].mxu1  ;;  %v3486_v2 = vpop.f32.mrb[27].mxu0 }
 0x1ba   :  { %v2725_v3 = vadd.f32 %v3484_v61, %v2685_v57  ;;  %v3508_v4 = vpop.f32.mrb[27].mxu1 }
 0x1bc   :  { %v2765_v5 = vadd.f32 %v3506_v0, %v2725_v3 }
 0x1d6   :  { %v3526_v6 = vpop.f32.mrb[28].mxu0 }
 0x1d7   :  { %v3548_v7 = vpop.f32.mrb[28].mxu1  ;;  %v3527_v8 = vpop.f32.mrb[29].mxu0 }
 0x1d8   :  { %v3528_v9 = vadd.f32 %v3527_v8, %v3526_v6  ;;  %v3549_v10 = vpop.f32.mrb[29].mxu1  ;;  %v3529_v11 = vpop.f32.mrb[30].mxu0 }
 0x1d9   :  { %v3550_v12 = vadd.f32 %v3549_v10, %v3548_v7  ;;  %v3551_v13 = vpop.f32.mrb[30].mxu1  ;;  %v3530_v14 = vpop.f32.mrb[31].mxu0 }
 0x1da   :  { %v2805_v15 = vadd.f32 %v3528_v9, %v2765_v5  ;;  %v3552_v16 = vpop.f32.mrb[31].mxu1 }
 0x1dc   :  { %v2845_v17 = vadd.f32 %v3550_v12, %v2805_v15 }
 0x1de   :  { %v2854_v18 = vrot.slane %v2845_v17, 4  ;;  %v2863_v19 = vmul.f32 %v2845_v17, %v2845_v17 }
 0x1e0   :  { %v2855_v20 = vadd.f32 %v2854_v18, %v2845_v17  ;;  %v2864_v21 = vrot.slane %v2863_v19, 4 }
 0x1e2   :  { %v2856_v22 = vrot.slane %v2855_v20, 2  ;;  %v2865_v23 = vadd.f32 %v2864_v21, %v2863_v19 }
 0x1e4   :  { %v2857_v24 = vadd.f32 %v2856_v22, %v2855_v20  ;;  %v2866_v25 = vrot.slane %v2865_v23, 2 }
 0x1e6   :  { %v2858_v26 = vrot.slane %v2857_v24, 1  ;;  %v2867_v27 = vadd.f32 %v2866_v25, %v2865_v23 }
 0x1e8   :  { %v2859_v29 = vadd.f32 %v2858_v26, %v2857_v24  ;;  %v2868_v30 = vrot.slane %v2867_v27, 1 }
 0x1ea   :  { %v2860_v32 = vadd.f32 %v2859_v29, %v2853_v28  ;;  %v2869_v33 = vadd.f32 %v2868_v30, %v2867_v27 }
 0x1ec   :  { %2861 = vst [vmem:[#allocation3] sm:$0x1] %v2860_v32  ;;  %v2870_v34 = vadd.f32 %v2869_v33, %v2862_v31 }
 0x1ee   :  { %2871 = vst [vmem:[#allocation4] sm:$0x1] %v2870_v34 }
 0x1f3   :  { %v2875_v35 = vld [vmem:[#allocation3] sm:$0x1] }
 0x1f4   :  { %v2876_v36 = vmul.f32 0.125, %v2875_v35 }
 0x1f5   :  { %v2877_v37 = vld [vmem:[#allocation4] sm:$0x1] }
 0x1f6   :  { %v2878_v38 = vmul.f32 0.125, %v2877_v37  ;;  %v2879_v39 = vmul.f32 %v2876_v36, %v2876_v36 }
 0x1f8   :  { %v2880_v40 = vsub.f32 %v2878_v38, %v2879_v39 }
 0x1fa   :  { %v2881_v41 = vmax.f32 %v2880_v40, 0.0 }
 0x1fc   :  { %v2883_v42 = vadd.f32 1e-05, %v2881_v41 }
 0x1fe   :  { %3843 = vrsqrt.f32 %v2883_v42 }
 0x208   :  { %v3844_v47 = vpop.eup %3843 }
 0x209   :  { %v2885_v48 = vmul.f32 %v3844_v47, %v2882_v45 }
 0x20b   :  { %v2887_v50 = vmul.f32 %v2885_v48, %v2876_v36  ;;  %v2894_v51 = vrot.slane %v2885_v48, %v2893_v46 }
 0x20d   :  { %v2888_v52 = vsub.f32 %v2886_v49, %v2887_v50  ;;  %v2896_v53 = vmul.f32 %v2894_v51, %v2845_v17 }
 0x20f   :  { %v2901_v54 = vrot.slane %v2888_v52, %v2893_v46 }
 0x211   :  { %v2903_v55 = vadd.f32 %v2901_v54, %v2896_v53 }
 0x213   :  { %vm2904_vm0 = vcmp.ge.f32.partialorder %v2903_v55, 0.0  ;;  %v2905_v56 = vmul.f32 0.2, %v2903_v55 }
 0x215   :  { %v2906_v57 = vsel %vm2904_vm0, %v2903_v55, %v2905_v56 }
 0x216   :  { %v2907_v58 = vpack.c.bf16 %v2906_v57, %v2906_v57 }
 0x218   :  { %2908 = vst [vmem:[%s4709_s5] sm:$0xf] %v2907_v58 }

// kernel: e1_forward.11
= control target key start
LH: loop header
LB: loop body
LE: loop exit
PB: predicated region body
PF: predicated region fallthrough
CT: control target
= control target key end

     0   :  { %v299_v28 = vlaneseq  ;;  %v2036_v36 = vmov 1966171168   ;;  %s2508_s0 = inlined_call_operand.vmem [shape: bf16[2,2048], index: 0, kind: input, shape index: {}]   ;;  %s2509_s1 = inlined_call_operand.vmem [shape: bf16[2048,128], index: 1, kind: input, shape index: {}]   ;;  %s2510_s2 = inlined_call_operand.vmem [shape: f32[1,128], index: 2, kind: input, shape index: {}]   ;;  %s2511_s3 = inlined_call_operand.vmem [shape: f32[1,128], index: 3, kind: input, shape index: {}]   ;;  %s2512_s4 = inlined_call_operand.vmem [shape: f32[1,128], index: 4, kind: input, shape index: {}]   ;;  %s2513_s5 = inlined_call_operand.hbm [shape: f32[2,128], index: 5, kind: output, shape index: {}]  }
   0x1   :  { %v1880_v0 = vld [vmem:[%s2509_s1 + $0x40] sm:$0xff]   ;;  %v1884_v4 = vld [vmem:[%s2509_s1 + $0x48] sm:$0xff]   ;;  %v1888_v8 = vld [vmem:[%s2509_s1 + $0x50] sm:$0xff]   ;;  %v297_v37 = vunpack.c.l.s4 %v2036_v36 }
   0x2   :  { %v1881_v1 = vld [vmem:[%s2509_s1 + $0xc0] sm:$0xff]   ;;  %1701 = vmatprep.subr.bf16.mxu0 %v1880_v0  ;;  %v1885_v5 = vld [vmem:[%s2509_s1 + $0xc8] sm:$0xff]   ;;  %v1889_v9 = vld [vmem:[%s2509_s1 + $0xd0] sm:$0xff]   ;;  %v2165_v33 = vshrl.u32 %v299_v28, 7 }
   0x3   :  { %v1882_v2 = vld [vmem:[%s2509_s1] sm:$0xff]   ;;  %1723 = vmatprep.subr.bf16.mxu1 %v1881_v1  ;;  %v1886_v6 = vld [vmem:[%s2509_s1 + $0x8] sm:$0xff]   ;;  %v1890_v10 = vld [vmem:[%s2509_s1 + $0x10] sm:$0xff]   ;;  %v298_v40 = vunpack.c.0.s8 %v297_v37 }
   0x4   :  { %v1883_v3 = vld [vmem:[%s2509_s1 + $0x80] sm:$0xff]   ;;  %1702 = vmatpush3.bf16.msra.mxu0 %v1882_v2  ;;  %v1887_v7 = vld [vmem:[%s2509_s1 + $0x88] sm:$0xff]   ;;  %v1891_v11 = vld [vmem:[%s2509_s1 + $0x90] sm:$0xff]  }
   0x5   :  { %1724 = vmatpush3.bf16.msra.mxu1 %v1883_v3  ;;  %1703 = vmatprep.subr.bf16.mxu0 %v1884_v4  ;;  %v1892_v12 = vld [vmem:[%s2509_s1 + $0x58] sm:$0xff]   ;;  %v1896_v16 = vld [vmem:[%s2509_s1 + $0x60] sm:$0xff]   ;;  %v1900_v20 = vld [vmem:[%s2509_s1 + $0x68] sm:$0xff]   ;;  %v2177_v41 = vsub.s32 %v298_v40, %v2165_v33 }
   0x6   :  { %1725 = vmatprep.subr.bf16.mxu1 %v1885_v5  ;;  %v1893_v13 = vld [vmem:[%s2509_s1 + $0xd8] sm:$0xff]   ;;  %v1897_v17 = vld [vmem:[%s2509_s1 + $0xe0] sm:$0xff]   ;;  %v1901_v21 = vld [vmem:[%s2509_s1 + $0xe8] sm:$0xff]  }
   0x7   :  { %v1894_v14 = vld [vmem:[%s2509_s1 + $0x18] sm:$0xff]   ;;  %v1898_v18 = vld [vmem:[%s2509_s1 + $0x20] sm:$0xff]   ;;  %v1902_v22 = vld [vmem:[%s2509_s1 + $0x28] sm:$0xff]  }
   0x8   :  { %1704 = vmatpush3.bf16.msra.mxu0 %v1886_v6  ;;  %v1895_v15 = vld [vmem:[%s2509_s1 + $0x98] sm:$0xff]   ;;  %v1899_v19 = vld [vmem:[%s2509_s1 + $0xa0] sm:$0xff]   ;;  %v1903_v23 = vld [vmem:[%s2509_s1 + $0xa8] sm:$0xff]  }
   0x9   :  { %1726 = vmatpush3.bf16.msra.mxu1 %v1887_v7  ;;  %1705 = vmatprep.subr.bf16.mxu0 %v1888_v8  ;;  %v1904_v24 = vld [vmem:[%s2509_s1 + $0x70] sm:$0xff]   ;;  %v1908_v29 = vld [vmem:[%s2509_s1 + $0x78] sm:$0xff]   ;;  %v28_v34 = vld [vmem:[%s2508_s0] sm:$0xff] }
   0xa   :  { %1727 = vmatprep.subr.bf16.mxu1 %v1889_v9  ;;  %v1905_v25 = vld [vmem:[%s2509_s1 + $0xf0] sm:$0xff]   ;;  %v1909_v30 = vld [vmem:[%s2509_s1 + $0xf8] sm:$0xff]   ;;  %v1913_v35 = vld [vmem:[%s2509_s1 + $0x140] sm:$0xff]   ;;  %v295_v39 = vcombine.high %v28_v34, %v28_v34  ;;  %v302_v42 = vrot.slane %v28_v34, %v2177_v41 }
   0xb   :  { %v1906_v26 = vld [vmem:[%s2509_s1 + $0x30] sm:$0xff]   ;;  %v1910_v31 = vld [vmem:[%s2509_s1 + $0x38] sm:$0xff]   ;;  %v1914_v38 = vld [vmem:[%s2509_s1 + $0x1c0] sm:$0xff]  }
   0xc   :  { %1706 = vmatpush3.bf16.msra.mxu0 %v1890_v10  ;;  %v1907_v27 = vld [vmem:[%s2509_s1 + $0xb0] sm:$0xff]   ;;  %v1911_v32 = vld [vmem:[%s2509_s1 + $0xb8] sm:$0xff]   ;;  %v2181_v43 = vrot.slane %v295_v39, %v2177_v41  ;;  %v310_v44 = vcombine.high %v302_v42, %v302_v42  ;;  %v318_v45 = vrot.slane %v302_v42, %v2177_v41  ;;  %v1915_v48 = vld [vmem:[%s2509_s1 + $0x100] sm:$0xff]  }
   0xd   :  { %1728 = vmatpush3.bf16.msra.mxu1 %v1891_v11  ;;  %1707 = vmatprep.subr.bf16.mxu0 %v1892_v12  ;;  %v1917_v51 = vld [vmem:[%s2509_s1 + $0x148] sm:$0xff]   ;;  %v1916_v53 = vld [vmem:[%s2509_s1 + $0x180] sm:$0xff]   ;;  %v1921_v57 = vld [vmem:[%s2509_s1 + $0x150] sm:$0xff]  }
   0xe   :  { %1729 = vmatprep.subr.bf16.mxu1 %v1893_v13  ;;  %v311_v46 = vcombine.high %v2181_v43, %v2181_v43  ;;  %v332_v47 = vrot.slane %v310_v44, %v2177_v41  ;;  %v340_v50 = vcombine.high %v318_v45, %v318_v45  ;;  %v1918_v54 = vld [vmem:[%s2509_s1 + $0x1c8] sm:$0xff]   ;;  %v1922_v59 = vld [vmem:[%s2509_s1 + $0x1d0] sm:$0xff]   ;;  %v1925_v61 = vld [vmem:[%s2509_s1 + $0x158] sm:$0xff]  }
   0xf   :  { %v1919_v56 = vld [vmem:[%s2509_s1 + $0x108] sm:$0xff]   ;;  %v1923_v60 = vld [vmem:[%s2509_s1 + $0x110] sm:$0xff]   ;;  %v1926_v63 = vld [vmem:[%s2509_s1 + $0x1d8] sm:$0xff]  }
  0x10   :  { %1708 = vmatpush3.bf16.msra.mxu0 %v1894_v14  ;;  %v339_v49 = vrot.slane %v311_v46, %v2177_v41  ;;  %1209 = vmatprep.mubr.bf16.mxu0 %v332_v47  ;;  %v342_v52 = vcombine.high %v332_v47, %v332_v47  ;;  %v1920_v58 = vld [vmem:[%s2509_s1 + $0x188] sm:$0xff]   ;;  %v1924_v62 = vld [vmem:[%s2509_s1 + $0x190] sm:$0xff]   ;;  %v1927_v0 = vld [vmem:[%s2509_s1 + $0x118] sm:$0xff]  }
  0x11   :  { %1730 = vmatpush3.bf16.msra.mxu1 %v1895_v15  ;;  %1709 = vmatprep.subr.bf16.mxu0 %v1896_v16  ;;  %v1929_v1 = vld [vmem:[%s2509_s1 + $0x160] sm:$0xff]   ;;  %v1928_v2 = vld [vmem:[%s2509_s1 + $0x198] sm:$0xff]   ;;  %v1933_v5 = vld [vmem:[%s2509_s1 + $0x168] sm:$0xff]  }
  0x12   :  { %1731 = vmatprep.subr.bf16.mxu1 %v1897_v17  ;;  %v343_v55 = vcombine.high %v339_v49, %v339_v49  ;;  %1249 = vmatprep.mubr.bf16.mxu1 %v342_v52  ;;  %v1930_v3 = vld [vmem:[%s2509_s1 + $0x1e0] sm:$0xff]   ;;  %v1934_v7 = vld [vmem:[%s2509_s1 + $0x1e8] sm:$0xff]   ;;  %v1937_v9 = vld [vmem:[%s2509_s1 + $0x170] sm:$0xff]   ;;  %v325_v17 = vrot.slane %v2181_v43, %v2177_v41 }
  0x13   :  { %v1931_v4 = vld [vmem:[%s2509_s1 + $0x120] sm:$0xff]   ;;  %v1935_v8 = vld [vmem:[%s2509_s1 + $0x128] sm:$0xff]   ;;  %v1938_v11 = vld [vmem:[%s2509_s1 + $0x1f0] sm:$0xff]  }
  0x14   :  { %1710 = vmatpush3.bf16.msra.mxu0 %v1898_v18  ;;  %v1932_v6 = vld [vmem:[%s2509_s1 + $0x1a0] sm:$0xff]   ;;  %v1936_v10 = vld [vmem:[%s2509_s1 + $0x1a8] sm:$0xff]   ;;  %v1939_v12 = vld [vmem:[%s2509_s1 + $0x130] sm:$0xff]  }
  0x15   :  { %1732 = vmatpush3.bf16.msra.mxu1 %v1899_v19  ;;  %1711 = vmatprep.subr.bf16.mxu0 %v1900_v20  ;;  %v1941_v13 = vld [vmem:[%s2509_s1 + $0x178] sm:$0xff]   ;;  %v1940_v14 = vld [vmem:[%s2509_s1 + $0x1b0] sm:$0xff]   ;;  %v1945_v18 = vld [vmem:[%s2509_s1 + $0x240] sm:$0xff]  }
  0x16   :  { %1733 = vmatprep.subr.bf16.mxu1 %v1901_v21  ;;  %v1942_v15 = vld [vmem:[%s2509_s1 + $0x1f8] sm:$0xff]   ;;  %v1946_v20 = vld [vmem:[%s2509_s1 + $0x2c0] sm:$0xff]   ;;  %v1952_v28 = vld [vmem:[%s2509_s1 + $0x288] sm:$0xff]  }
  0x17   :  { %v1943_v16 = vld [vmem:[%s2509_s1 + $0x138] sm:$0xff]   ;;  %v1947_v21 = vld [vmem:[%s2509_s1 + $0x200] sm:$0xff]   ;;  %v1965_v40 = vld [vmem:[%s2509_s1 + $0x268] sm:$0xff]  }
  0x18   :  { %1712 = vmatpush3.bf16.msra.mxu0 %v1902_v22  ;;  %v1944_v19 = vld [vmem:[%s2509_s1 + $0x1b8] sm:$0xff]   ;;  %v341_v22 = vcombine.high %v325_v17, %v325_v17  ;;  %v1961_v36 = vld [vmem:[%s2509_s1 + $0x260] sm:$0xff]   ;;  %v1966_v43 = vld [vmem:[%s2509_s1 + $0x2e8] sm:$0xff]  }
  0x19   :  { %1734 = vmatpush3.bf16.msra.mxu1 %v1903_v23  ;;  %1713 = vmatprep.subr.bf16.mxu0 %v1904_v24  ;;  %v1949_v23 = vld [vmem:[%s2509_s1 + $0x248] sm:$0xff]   ;;  %v1948_v24 = vld [vmem:[%s2509_s1 + $0x280] sm:$0xff]   ;;  %v1958_v34 = vld [vmem:[%s2509_s1 + $0x2d8] sm:$0xff]  }
  0x1a   :  { %1735 = vmatprep.subr.bf16.mxu1 %v1905_v25  ;;  %v1950_v25 = vld [vmem:[%s2509_s1 + $0x2c8] sm:$0xff]   ;;  %v1960_v37 = vld [vmem:[%s2509_s1 + $0x298] sm:$0xff]   ;;  %v1963_v39 = vld [vmem:[%s2509_s1 + $0x220] sm:$0xff]  }
  0x1b   :  { %v1964_v42 = vld [vmem:[%s2509_s1 + $0x2a0] sm:$0xff]   ;;  %v1967_v44 = vld [vmem:[%s2509_s1 + $0x228] sm:$0xff]  }
  0x1c   :  { %1714 = vmatpush3.bf16.msra.mxu0 %v1906_v26  ;;  %v1951_v26 = vld [vmem:[%s2509_s1 + $0x208] sm:$0xff]  }
  0x1d   :  { %1736 = vmatpush3.bf16.msra.mxu1 %v1907_v27  ;;  %1715 = vmatprep.subr.bf16.mxu0 %v1908_v29  ;;  %v1953_v27 = vld [vmem:[%s2509_s1 + $0x250] sm:$0xff]   ;;  %v29_v46 = vld [vmem:[%s2508_s0 + $0x8] sm:$0xff] }
  0x1e   :  { %1737 = vmatprep.subr.bf16.mxu1 %v1909_v30  ;;  %v1954_v29 = vld [vmem:[%s2509_s1 + $0x2d0] sm:$0xff]   ;;  %v1968_v47 = vld [vmem:[%s2509_s1 + $0x2a8] sm:$0xff]  }
  0x1f   :  { %v1955_v30 = vld [vmem:[%s2509_s1 + $0x210] sm:$0xff]  }
  0x20   :  { %1716 = vmatpush3.bf16.msra.mxu0 %v1910_v31  ;;  %v1957_v31 = vld [vmem:[%s2509_s1 + $0x258] sm:$0xff]  }
  0x21   :  { %1738 = vmatpush3.bf16.msra.mxu1 %v1911_v32  ;;  %1745 = vmatprep.subr.bf16.mxu0 %v1913_v35  ;;  %v1956_v32 = vld [vmem:[%s2509_s1 + $0x290] sm:$0xff]   ;;  %v1959_v35 = vld [vmem:[%s2509_s1 + $0x218] sm:$0xff]  }
  0x22   :  { %1767 = vmatprep.subr.bf16.mxu1 %v1914_v38  ;;  %v1962_v38 = vld [vmem:[%s2509_s1 + $0x2e0] sm:$0xff]  }
  0x23   :  { %1210 = vmatmul.mubr.bf16.vlgmr.msra.gmra.mrb[0].mxu0 %v318_v45  ;;  %v1969_v45 = vld [vmem:[%s2509_s1 + $0x270] sm:$0xff]  }
  0x24   :  { %1746 = vmatpush3.bf16.msra.mxu0 %v1915_v48  ;;  %1250 = vmatmul.mubr.bf16.vlgmr.msra.gmra.mrb[0].mxu1 %v340_v50  ;;  %v351_v48 = vrot.slane %v29_v46, %v2177_v41  ;;  %v1970_v50 = vld [vmem:[%s2509_s1 + $0x2f0] sm:$0xff]  }
  0x25   :  { %1747 = vmatprep.subr.bf16.mxu0 %v1917_v51  ;;  %1768 = vmatpush3.bf16.msra.mxu1 %v1916_v53  ;;  %v1971_v51 = vld [vmem:[%s2509_s1 + $0x230] sm:$0xff]  }
  0x26   :  { %1289 = vmatprep.mubr.bf16.mxu0 %v339_v49  ;;  %1769 = vmatprep.subr.bf16.mxu1 %v1918_v54  ;;  %v344_v49 = vcombine.high %v29_v46, %v29_v46  ;;  %v359_v52 = vcombine.high %v351_v48, %v351_v48  ;;  %v1973_v54 = vld [vmem:[%s2509_s1 + $0x278] sm:$0xff]  }
  0x27   :  { %1329 = vmatprep.mubr.bf16.mxu1 %v343_v55  ;;  %v1972_v55 = vld [vmem:[%s2509_s1 + $0x2b0] sm:$0xff]  }
  0x28   :  { %1748 = vmatpush3.bf16.msra.mxu0 %v1919_v56  ;;  %v2366_v53 = vrot.slane %v344_v49, %v2177_v41  ;;  %v381_v56 = vrot.slane %v359_v52, %v2177_v41 }
  0x29   :  { %1749 = vmatprep.subr.bf16.mxu0 %v1921_v57  ;;  %1770 = vmatpush3.bf16.msra.mxu1 %v1920_v58  ;;  %v1974_v58 = vld [vmem:[%s2509_s1 + $0x2f8] sm:$0xff]  }
  0x2a   :  { %1771 = vmatprep.subr.bf16.mxu1 %v1922_v59  ;;  %v360_v57 = vcombine.high %v2366_v53, %v2366_v53  ;;  %v1975_v59 = vld [vmem:[%s2509_s1 + $0x238] sm:$0xff]  }
  0x2c   :  { %1750 = vmatpush3.bf16.msra.mxu0 %v1923_v60  ;;  %v391_v60 = vcombine.high %v381_v56, %v381_v56 }
  0x2d   :  { %1751 = vmatprep.subr.bf16.mxu0 %v1925_v61  ;;  %1772 = vmatpush3.bf16.msra.mxu1 %v1924_v62  ;;  %v367_v61 = vrot.slane %v351_v48, %v2177_v41  ;;  %v1977_v62 = vld [vmem:[%s2509_s1 + $0x340] sm:$0xff]  }
  0x2e   :  { %1773 = vmatprep.subr.bf16.mxu1 %v1926_v63  ;;  %v1976_v63 = vld [vmem:[%s2509_s1 + $0x2b8] sm:$0xff]  }
  0x30   :  { %1752 = vmatpush3.bf16.msra.mxu0 %v1927_v0  ;;  %v388_v0 = vrot.slane %v360_v57, %v2177_v41 }
  0x31   :  { %1753 = vmatprep.subr.bf16.mxu0 %v1929_v1  ;;  %1774 = vmatpush3.bf16.msra.mxu1 %v1928_v2  ;;  %v1978_v1 = vld [vmem:[%s2509_s1 + $0x3c0] sm:$0xff]  }
  0x32   :  { %1775 = vmatprep.subr.bf16.mxu1 %v1930_v3  ;;  %v1979_v2 = vld [vmem:[%s2509_s1 + $0x300] sm:$0xff]   ;;  %v389_v3 = vcombine.high %v367_v61, %v367_v61 }
  0x34   :  { %1754 = vmatpush3.bf16.msra.mxu0 %v1931_v4  ;;  %v1981_v4 = vld [vmem:[%s2509_s1 + $0x348] sm:$0xff]  }
  0x35   :  { %1755 = vmatprep.subr.bf16.mxu0 %v1933_v5  ;;  %1776 = vmatpush3.bf16.msra.mxu1 %v1932_v6  ;;  %v1980_v5 = vld [vmem:[%s2509_s1 + $0x380] sm:$0xff]   ;;  %v392_v6 = vcombine.high %v388_v0, %v388_v0 }
  0x36   :  { %1777 = vmatprep.subr.bf16.mxu1 %v1934_v7  ;;  %v1982_v7 = vld [vmem:[%s2509_s1 + $0x3c8] sm:$0xff]  }
  0x38   :  { %1756 = vmatpush3.bf16.msra.mxu0 %v1935_v8  ;;  %v1983_v8 = vld [vmem:[%s2509_s1 + $0x308] sm:$0xff]  }
  0x39   :  { %1757 = vmatprep.subr.bf16.mxu0 %v1937_v9  ;;  %1778 = vmatpush3.bf16.msra.mxu1 %v1936_v10  ;;  %v1985_v9 = vld [vmem:[%s2509_s1 + $0x350] sm:$0xff]   ;;  %v1984_v10 = vld [vmem:[%s2509_s1 + $0x388] sm:$0xff]  }
  0x3a   :  { %1779 = vmatprep.subr.bf16.mxu1 %v1938_v11  ;;  %v1986_v11 = vld [vmem:[%s2509_s1 + $0x3d0] sm:$0xff]  }
  0x3c   :  { %1758 = vmatpush3.bf16.msra.mxu0 %v1939_v12  ;;  %v1987_v12 = vld [vmem:[%s2509_s1 + $0x310] sm:$0xff]  }
  0x3d   :  { %1759 = vmatprep.subr.bf16.mxu0 %v1941_v13  ;;  %1780 = vmatpush3.bf16.msra.mxu1 %v1940_v14  ;;  %v1989_v13 = vld [vmem:[%s2509_s1 + $0x358] sm:$0xff]   ;;  %v1988_v14 = vld [vmem:[%s2509_s1 + $0x390] sm:$0xff]  }
  0x3e   :  { %1781 = vmatprep.subr.bf16.mxu1 %v1942_v15  ;;  %v1990_v15 = vld [vmem:[%s2509_s1 + $0x3d8] sm:$0xff]  }
  0x40   :  { %1760 = vmatpush3.bf16.msra.mxu0 %v1943_v16  ;;  %v1991_v16 = vld [vmem:[%s2509_s1 + $0x318] sm:$0xff]  }
  0x41   :  { %1789 = vmatprep.subr.bf16.mxu0 %v1945_v18  ;;  %1782 = vmatpush3.bf16.msra.mxu1 %v1944_v19  ;;  %v1992_v18 = vld [vmem:[%s2509_s1 + $0x398] sm:$0xff]   ;;  %v1994_v19 = vld [vmem:[%s2509_s1 + $0x3e0] sm:$0xff]  }
  0x42   :  { %1811 = vmatprep.subr.bf16.mxu1 %v1946_v20  ;;  %v1995_v20 = vld [vmem:[%s2509_s1 + $0x320] sm:$0xff]  }
  0x43   :  { %1290 = vmatmul.mubr.bf16.vlgmr.msra.gmra.mrb[4].mxu0 %v325_v17  ;;  %v1993_v17 = vld [vmem:[%s2509_s1 + $0x360] sm:$0xff]  }
  0x44   :  { %1790 = vmatpush3.bf16.msra.mxu0 %v1947_v21  ;;  %1330 = vmatmul.mubr.bf16.vlgmr.msra.gmra.mrb[4].mxu1 %v341_v22  ;;  %v1997_v21 = vld [vmem:[%s2509_s1 + $0x368] sm:$0xff]   ;;  %v1996_v22 = vld [vmem:[%s2509_s1 + $0x3a0] sm:$0xff]  }
  0x45   :  { %1791 = vmatprep.subr.bf16.mxu0 %v1949_v23  ;;  %1812 = vmatpush3.bf16.msra.mxu1 %v1948_v24  ;;  %v1998_v23 = vld [vmem:[%s2509_s1 + $0x3e8] sm:$0xff]  }
  0x46   :  { %1813 = vmatprep.subr.bf16.mxu1 %v1950_v25  ;;  %1369 = vmatprep.mubr.bf16.mxu0 %v381_v56  ;;  %v1999_v24 = vld [vmem:[%s2509_s1 + $0x328] sm:$0xff]   ;;  %v2001_v25 = vld [vmem:[%s2509_s1 + $0x370] sm:$0xff]  }
  0x47   :  { %1409 = vmatprep.mubr.bf16.mxu1 %v391_v60 }
  0x48   :  { %1792 = vmatpush3.bf16.msra.mxu0 %v1951_v26 }
  0x49   :  { %1793 = vmatprep.subr.bf16.mxu0 %v1953_v27  ;;  %1814 = vmatpush3.bf16.msra.mxu1 %v1952_v28 }
  0x4a   :  { %1815 = vmatprep.subr.bf16.mxu1 %v1954_v29 }
  0x4c   :  { %1794 = vmatpush3.bf16.msra.mxu0 %v1955_v30 }
  0x4d   :  { %1795 = vmatprep.subr.bf16.mxu0 %v1957_v31  ;;  %1816 = vmatpush3.bf16.msra.mxu1 %v1956_v32 }
  0x4e   :  { %1817 = vmatprep.subr.bf16.mxu1 %v1958_v34 }
  0x50   :  { %1796 = vmatpush3.bf16.msra.mxu0 %v1959_v35 }
  0x51   :  { %1797 = vmatprep.subr.bf16.mxu0 %v1961_v36  ;;  %1818 = vmatpush3.bf16.msra.mxu1 %v1960_v37 }
  0x52   :  { %1819 = vmatprep.subr.bf16.mxu1 %v1962_v38 }
  0x54   :  { %1798 = vmatpush3.bf16.msra.mxu0 %v1963_v39 }
  0x55   :  { %1799 = vmatprep.subr.bf16.mxu0 %v1965_v40  ;;  %1820 = vmatpush3.bf16.msra.mxu1 %v1964_v42 }
  0x56   :  { %1821 = vmatprep.subr.bf16.mxu1 %v1966_v43 }
  0x58   :  { %1800 = vmatpush3.bf16.msra.mxu0 %v1967_v44 }
  0x59   :  { %1801 = vmatprep.subr.bf16.mxu0 %v1969_v45  ;;  %1822 = vmatpush3.bf16.msra.mxu1 %v1968_v47 }
  0x5a   :  { %1823 = vmatprep.subr.bf16.mxu1 %v1970_v50 }
  0x5c   :  { %1802 = vmatpush3.bf16.msra.mxu0 %v1971_v51 }
  0x5d   :  { %1803 = vmatprep.subr.bf16.mxu0 %v1973_v54  ;;  %1824 = vmatpush3.bf16.msra.mxu1 %v1972_v55 }
  0x5e   :  { %1825 = vmatprep.subr.bf16.mxu1 %v1974_v58 }
  0x60   :  { %1804 = vmatpush3.bf16.msra.mxu0 %v1975_v59 }
  0x61   :  { %1833 = vmatprep.subr.bf16.mxu0 %v1977_v62  ;;  %1826 = vmatpush3.bf16.msra.mxu1 %v1976_v63 }
  0x62   :  { %1855 = vmatprep.subr.bf16.mxu1 %v1978_v1 }
  0x63   :  { %1370 = vmatmul.mubr.bf16.vlgmr.msra.gmra.mrb[8].mxu0 %v367_v61 }
  0x64   :  { %1834 = vmatpush3.bf16.msra.mxu0 %v1979_v2  ;;  %1449 = vmatprep.mubr.bf16.mxu0 %v388_v0 }
  0x65   :  { %1410 = vmatmul.mubr.bf16.vlgmr.msra.gmra.mrb[8].mxu1 %v389_v3  ;;  %1835 = vmatprep.subr.bf16.mxu0 %v1981_v4 }
  0x66   :  { %1856 = vmatpush3.bf16.msra.mxu1 %v1980_v5  ;;  %1489 = vmatprep.mubr.bf16.mxu1 %v392_v6 }
  0x67   :  { %1857 = vmatprep.subr.bf16.mxu1 %v1982_v7 }
  0x68   :  { %1836 = vmatpush3.bf16.msra.mxu0 %v1983_v8 }
  0x69   :  { %1837 = vmatprep.subr.bf16.mxu0 %v1985_v9 }
  0x6a   :  { %1858 = vmatpush3.bf16.msra.mxu1 %v1984_v10 }
  0x6b   :  { %1859 = vmatprep.subr.bf16.mxu1 %v1986_v11 }
  0x6c   :  { %1838 = vmatpush3.bf16.msra.mxu0 %v1987_v12 }
  0x6d   :  { %1839 = vmatprep.subr.bf16.mxu0 %v1989_v13 }
  0x6e   :  { %1860 = vmatpush3.bf16.msra.mxu1 %v1988_v14 }
  0x6f   :  { %1861 = vmatprep.subr.bf16.mxu1 %v1990_v15 }
  0x70   :  { %1840 = vmatpush3.bf16.msra.mxu0 %v1991_v16 }
  0x71   :  { %1841 = vmatprep.subr.bf16.mxu0 %v1993_v17 }
  0x72   :  { %1862 = vmatpush3.bf16.msra.mxu1 %v1992_v18 }
  0x73   :  { %1863 = vmatprep.subr.bf16.mxu1 %v1994_v19 }
  0x74   :  { %1842 = vmatpush3.bf16.msra.mxu0 %v1995_v20 }
  0x75   :  { %1843 = vmatprep.subr.bf16.mxu0 %v1997_v21 }
  0x76   :  { %10 = vsyncpa [#allocation6], 0  ;;  %1864 = vmatpush3.bf16.msra.mxu1 %v1996_v22  ;;  %v2000_v26 = vld [vmem:[%s2509_s1 + $0x3a8] sm:$0xff]   ;;  %v2002_v27 = vld [vmem:[%s2509_s1 + $0x3f0] sm:$0xff]   ;;  %v374_v34 = vrot.slane %v2366_v53, %v2177_v41  ;;  %v2037_v37 = vmov 0.0   ;;  %vm1501_vm0 = vcmask 1041408  }
  0x77   :  { %1865 = vmatprep.subr.bf16.mxu1 %v1998_v23  ;;  %v2003_v28 = vld [vmem:[%s2509_s1 + $0x330] sm:$0xff]   ;;  %v2005_v29 = vld [vmem:[%s2509_s1 + $0x378] sm:$0xff]   ;;  %26 = vst [vmem:[#allocation3] sm:$0x1] %v2037_v37  ;;  %27 = vst [vmem:[#allocation4] sm:$0x1] %v2037_v37 }
  0x78   :  { %1844 = vmatpush3.bf16.msra.mxu0 %v1999_v24  ;;  %v2004_v30 = vld [vmem:[%s2509_s1 + $0x3b0] sm:$0xff]   ;;  %v2006_v31 = vld [vmem:[%s2509_s1 + $0x3f8] sm:$0xff]   ;;  %v390_v36 = vcombine.high %v374_v34, %v374_v34  ;;  %v1572_v39 = vld [vmem:[%s2510_s2] ss:$0 sm:$0xff]  ;;  %s2038_s0 = smov [#allocation5]  }
  0x79   :  { %1845 = vmatprep.subr.bf16.mxu0 %v2001_v25  ;;  %v2007_v32 = vld [vmem:[%s2509_s1 + $0x338] sm:$0xff]   ;;  %s1564_s29 = sshll.u32 %s2038_s0, 4  ;;  %s1565_s29 = int_to_ptr.vmem [resolvable:$true] %s1564_s29 }
  0x7a   :  { %1866 = vmatpush3.bf16.msra.mxu1 %v2000_v26  ;;  %v2008_v35 = vld [vmem:[%s2509_s1 + $0x3b8] sm:$0xff]   ;;  %p2017_p1 = scmp.lt.s32.totalorder %s1565_s29, %s1565_s29 }
  0x7b   :  { %1867 = vmatprep.subr.bf16.mxu1 %v2002_v27 }
  0x7c   :  { %1846 = vmatpush3.bf16.msra.mxu0 %v2003_v28 }
  0x7d   :  { %1847 = vmatprep.subr.bf16.mxu0 %v2005_v29 }
  0x7e   :  { %1868 = vmatpush3.bf16.msra.mxu1 %v2004_v30 }
  0x7f   :  { %1869 = vmatprep.subr.bf16.mxu1 %v2006_v31 }
  0x80   :  { %1848 = vmatpush3.bf16.msra.mxu0 %v2007_v32 }
  0x82   :  { %1870 = vmatpush3.bf16.msra.mxu1 %v2008_v35 }
  0x83   :  { %1450 = vmatmul.mubr.bf16.vlgmr.msra.gmra.mrb[12].mxu0 %v374_v34 }
  0x85   :  { %1490 = vmatmul.mubr.bf16.vlgmr.msra.gmra.mrb[12].mxu1 %v390_v36  ;;  %v1500_v36 = vld [vmem:[#allocation3] sm:$0x1] }
  0xf6   :  { %v1717_v38 = vpop.f32.mrb[0].mxu0 }
  0xf7   :  { %v1718_v41 = vpop.f32.mrb[1].mxu0  ;;  %v1739_v40 = vpop.f32.mrb[0].mxu1 }
  0xf8   :  { %v1719_v42 = vadd.f32 %v1718_v41, %v1717_v38  ;;  %v1720_v43 = vpop.f32.mrb[2].mxu0  ;;  %v1740_v44 = vpop.f32.mrb[1].mxu1 }
  0xf9   :  { %v1721_v45 = vpop.f32.mrb[3].mxu0  ;;  %v1741_v47 = vadd.f32 %v1740_v44, %v1739_v40  ;;  %v1742_v48 = vpop.f32.mrb[2].mxu1 }
  0xfa   :  { %v1212_v46 = vadd.f32 %v1719_v42, %v1572_v39  ;;  %v1743_v49 = vpop.f32.mrb[3].mxu1  ;;  %v1511_v39 = vld [vmem:[#allocation4] sm:$0x1] }
  0xfc   :  { %v1252_v50 = vadd.f32 %v1741_v47, %v1212_v46 }
 0x116   :  { %v1761_v51 = vpop.f32.mrb[4].mxu0 }
 0x117   :  { %v1762_v52 = vpop.f32.mrb[5].mxu0  ;;  %v1783_v53 = vpop.f32.mrb[4].mxu1 }
 0x118   :  { %v1763_v54 = vadd.f32 %v1762_v52, %v1761_v51  ;;  %v1764_v55 = vpop.f32.mrb[6].mxu0  ;;  %v1784_v56 = vpop.f32.mrb[5].mxu1  ;;  %v1532_v51 = vld [vmem:[%s2511_s3] sm:$0x1]  ;;  %v1543_v52 = vsub.s32 0, %v2165_v33  ;;  %s2012_s3 = scalar_lea.vmem %s1565_s29, 32 }
 0x119   :  { %v1765_v57 = vpop.f32.mrb[7].mxu0  ;;  %v1785_v59 = vadd.f32 %v1784_v56, %v1783_v53  ;;  %v1786_v60 = vpop.f32.mrb[6].mxu1  ;;  %v1536_v55 = vld [vmem:[%s2512_s4] sm:$0x1]  ;;  %p2013_p0 = scmp.ne.s32.totalorder %s1565_s29, %s2012_s3  ;;  %p2018_p2 = scmp.lt.s32.totalorder %s2012_s3, %s2012_s3 }
 0x11a   :  { %v1292_v58 = vadd.f32 %v1763_v54, %v1252_v50  ;;  %v1787_v61 = vpop.f32.mrb[7].mxu1 }
 0x11b   :  { %p2019_p3 = por %p2018_p2, %p2017_p1 }
 0x11c   :  { %v1332_v62 = vadd.f32 %v1785_v59, %v1292_v58 }
 0x11d   :  { %p2020_p4 = pnand %p2019_p3, %p2013_p0 }
 0x136   :  { %v1805_v63 = vpop.f32.mrb[8].mxu0 }
 0x137   :  { %v1806_v0 = vpop.f32.mrb[9].mxu0 }
 0x138   :  { %v1827_v1 = vpop.f32.mrb[8].mxu1  ;;  %v1807_v2 = vadd.f32 %v1806_v0, %v1805_v63  ;;  %v1808_v3 = vpop.f32.mrb[10].mxu0 }
 0x139   :  { %v1828_v4 = vpop.f32.mrb[9].mxu1  ;;  %v1809_v5 = vpop.f32.mrb[11].mxu0 }
 0x13a   :  { %v1372_v6 = vadd.f32 %v1807_v2, %v1332_v62  ;;  %v1829_v7 = vadd.f32 %v1828_v4, %v1827_v1  ;;  %v1830_v8 = vpop.f32.mrb[10].mxu1 }
 0x13b   :  { %v1831_v9 = vpop.f32.mrb[11].mxu1 }
 0x13c   :  { %v1412_v10 = vadd.f32 %v1829_v7, %v1372_v6 }
 0x156   :  { %v1849_v11 = vpop.f32.mrb[12].mxu0 }
 0x157   :  { %v1850_v12 = vpop.f32.mrb[13].mxu0 }
 0x158   :  { %v1871_v13 = vpop.f32.mrb[12].mxu1  ;;  %v1851_v14 = vadd.f32 %v1850_v12, %v1849_v11  ;;  %v1852_v15 = vpop.f32.mrb[14].mxu0 }
 0x159   :  { %v1872_v16 = vpop.f32.mrb[13].mxu1  ;;  %v1853_v17 = vpop.f32.mrb[15].mxu0 }
 0x15a   :  { %v1452_v18 = vadd.f32 %v1851_v14, %v1412_v10  ;;  %v1873_v19 = vadd.f32 %v1872_v16, %v1871_v13  ;;  %v1874_v20 = vpop.f32.mrb[14].mxu1 }
 0x15b   :  { %v1875_v21 = vpop.f32.mrb[15].mxu1 }
 0x15c   :  { %v1492_v22 = vadd.f32 %v1873_v19, %v1452_v18 }
 0x15e   :  { %1499 = vst [vmem:[#allocation2] sm:$0x3] %v1492_v22  ;;  %v1502_v23 = vsel %vm1501_vm0, %v1492_v22, 0.0  ;;  %v1512_v24 = vmul.f32 %v1492_v22, %v1492_v22 }
 0x15f   :  { %v1503_v25 = vrot.slane %v1502_v23, 4 }
 0x160   :  { %v1513_v26 = vsel %vm1501_vm0, %v1512_v24, 0.0 }
 0x161   :  { %v1504_v27 = vadd.f32 %v1503_v25, %v1502_v23  ;;  %v1514_v28 = vrot.slane %v1513_v26, 4 }
 0x163   :  { %v1505_v29 = vrot.slane %v1504_v27, 2  ;;  %v1515_v30 = vadd.f32 %v1514_v28, %v1513_v26 }
 0x165   :  { %v1506_v31 = vadd.f32 %v1505_v29, %v1504_v27  ;;  %v1516_v32 = vrot.slane %v1515_v30, 2  ;;  %v1539_v59 = vld [vmem:[#allocation2] sm:$0x3] }
 0x167   :  { %v1507_v34 = vrot.slane %v1506_v31, 1  ;;  %v1517_v35 = vadd.f32 %v1516_v32, %v1515_v30 }
 0x169   :  { %v1508_v37 = vadd.f32 %v1507_v34, %v1506_v31  ;;  %v1518_v38 = vrot.slane %v1517_v35, 1 }
 0x16b   :  { %v1509_v41 = vadd.f32 %v1508_v37, %v1500_v36  ;;  %v1519_v40 = vadd.f32 %v1518_v38, %v1517_v35 }
 0x16d   :  { %1510 = vst [vmem:[#allocation3] sm:$0x1] %v1509_v41  ;;  %v1520_v42 = vadd.f32 %v1519_v40, %v1511_v39 }
 0x16f   :  { %1521 = vst [vmem:[#allocation4] sm:$0x1] %v1520_v42 }
 0x174   :  { %v1525_v43 = vld [vmem:[#allocation3] sm:$0x1] }
 0x175   :  { %v1526_v44 = vmul.f32 0.5, %v1525_v43 }
 0x176   :  { %v1527_v45 = vld [vmem:[#allocation4] sm:$0x1] }
 0x177   :  { %v1528_v46 = vmul.f32 0.5, %v1527_v45  ;;  %v1529_v47 = vmul.f32 %v1526_v44, %v1526_v44 }
 0x179   :  { %v1530_v48 = vsub.f32 %v1528_v46, %v1529_v47 }
 0x17b   :  { %v1531_v49 = vmax.f32 %v1530_v48, 0.0 }
 0x17d   :  { %v1533_v50 = vadd.f32 1e-05, %v1531_v49 }
 0x17f   :  { %2010 = vrsqrt.f32 %v1533_v50 }
 0x189   :  { %v2011_v53 = vpop.eup %2010 }
 0x18a   :  { %v1535_v54 = vmul.f32 %v2011_v53, %v1532_v51 }
 0x18c   :  { %v1537_v56 = vmul.f32 %v1535_v54, %v1526_v44  ;;  %v1544_v57 = vrot.slane %v1535_v54, %v1543_v52 }
 0x18e   :  { %v1538_v58 = vsub.f32 %v1536_v55, %v1537_v56  ;;  %v1546_v60 = vmul.f32 %v1544_v57, %v1539_v59 }
 0x190   :  { %v1551_v61 = vrot.slane %v1538_v58, %v1543_v52 }
 0x192   :  { %v1553_v62 = vadd.f32 %v1551_v61, %v1546_v60 }
 0x194   :  { %vm1554_vm1 = vcmp.ge.f32.partialorder %v1553_v62, 0.0  ;;  %v1555_v63 = vmul.f32 0.2, %v1553_v62 }
 0x196   :  { %v1556_v0 = vsel %vm1554_vm1, %v1553_v62, %v1555_v63 }
 0x197   :  { %1557 = vst [vmem:[#allocation5] sm:$0x3] %v1556_v0 }
 0x198   :  { %2023 = shalt.err (!%p2020_p4)
}
 0x199   :  { %s2024_s6 = scalar_lea.hbm %s2513_s5, 32 }
 0x19a   :  { %p2025_p5 = scmp.ne.s32.totalorder %s2513_s5, %s2024_s6  ;;  %p2028_p6 = scmp.lt.u32.totalorder %s2024_s6, %s2513_s5 }
 0x19c   :  { %p2030_p7 = pnand %p2028_p6, %p2025_p5 }
 0x19e   :  { %2033 = shalt.err (!%p2030_p7)
}
 0x19f   :  { %1567 = dma.vmem_to_hbm [thread:$0]  %s1565_s29, 32, %s2513_s5, [#allocation6]  }
 0x1a0   :  { %2034 = dma.done.wait [#allocation6], 32  }
 0x1a1   :  { %2035 = vsyncadd [#allocation6], 4294967264 }
 0x1a2   :  { %1571 = vsyncpa [#allocation6], 1 }

</bundles_post_ra>
